<compile_context>
chip_gen: v7x
topology: tpu7x:2x2x1
jax: 0.10.0
libtpu: 0.0.40
codegen_flags: <defaults>
</compile_context>

<pallas_src>
import functools

import jax
import jax.numpy as jnp
import numpy as np
from jax.experimental import pallas as pl
from jax.experimental.pallas import tpu as pltpu

Z_DIM = 6
HIDDEN = 24
NUM_LAYERS = 3
HP = 128  # lane-padded hidden width: one full 128-lane chunk per gate
GP = 4 * HP


def tg_generator_kernel(x_ref,
                        wih0_ref, whh0_ref, b0_ref,
                        wih1_ref, whh1_ref, b1_ref,
                        wih2_ref, whh2_ref, b2_ref,
                        wfc_ref, bfc_ref,
                        out_ref,
                        *, seq_len, batch):
    T, B = seq_len, batch

    # ---- Hoisted, non-recurrent work (off the serial chain) -----------------
    x = x_ref[...].astype(jnp.float32)                       # (T*B, HP), time-major
    # Layer-0 input gate contribution for ALL timesteps in one matmul,
    # with the layer-0 bias folded in.
    xg0 = (jnp.dot(x, wih0_ref[...], preferred_element_type=jnp.float32)
           + jnp.broadcast_to(b0_ref[...], (T * B, GP)))     # (T*B, 4*HP)

    whh = (whh0_ref[...], whh1_ref[...], whh2_ref[...])      # (HP, 4*HP) each
    wih = (None, wih1_ref[...], wih2_ref[...])                # layers 1,2 only
    # Bias broadcasts hoisted out of the unrolled time loop (no CSE inside it).
    b = (None,
         jnp.broadcast_to(b1_ref[...], (B, GP)),
         jnp.broadcast_to(b2_ref[...], (B, GP)))

    h = [jnp.zeros((B, HP), jnp.float32) for _ in range(NUM_LAYERS)]
    c = [jnp.zeros((B, HP), jnp.float32) for _ in range(NUM_LAYERS)]

    # ---- Sequential recurrence (small static T -> fully unrolled) -----------
    outs = []
    for t in range(T):
        for l in range(NUM_LAYERS):
            if l == 0:
                # Input contribution precomputed above; only the recurrent dot
                # remains on the critical path (K=128).
                gates = xg0[t * B:(t + 1) * B, :] + jnp.dot(
                    h[0], whh[0], preferred_element_type=jnp.float32)
            else:
                gates = (jnp.dot(h[l - 1], wih[l],
                                 preferred_element_type=jnp.float32)
                         + jnp.dot(h[l], whh[l],
                                   preferred_element_type=jnp.float32)
                         + b[l])
            # Gate order (i, f, g, o); each slice is a whole 128-lane chunk.
            s = jax.nn.sigmoid(gates)                         # one EUP pass
            i_g = s[:, 0 * HP:1 * HP]
            f_g = s[:, 1 * HP:2 * HP]
            o_g = s[:, 3 * HP:4 * HP]
            g_g = jnp.tanh(gates[:, 2 * HP:3 * HP])
            c[l] = f_g * c[l] + i_g * g_g
            h[l] = o_g * jnp.tanh(c[l])
        outs.append(h[NUM_LAYERS - 1])

    # ---- Hoisted FC + sigmoid + single dense store ---------------------------
    h_all = jnp.concatenate(outs, axis=0)                     # (T*B, HP) time-major
    e = (jnp.dot(h_all, wfc_ref[...], preferred_element_type=jnp.float32)
         + jnp.broadcast_to(bfc_ref[...], (T * B, HP)))
    out_ref[...] = jax.nn.sigmoid(e).astype(out_ref.dtype)    # lane/sublane-dense


def _pack_params(params):
    """Pack LSTM weights into lane-padded kernel weights.

    Per layer: W_ih_p / W_hh_p are (HP, 4*HP); gate k occupies columns
    [k*HP : k*HP+H]; rows 0:in_dim (resp. 0:H) hold the real weights, the rest
    are zero so padded input/hidden lanes are inert.  Assumes weights already
    transposed to (in_dim, 4H) (real PyTorch weight_ih/hh are (4H, in) and must
    be transposed by the caller).
    """
    H = HIDDEN
    packed = {}
    for l in range(NUM_LAYERS):
        in_dim = Z_DIM if l == 0 else H
        w_ih = np.asarray(params[f"w_ih{l}"])   # (in_dim, 4H)
        w_hh = np.asarray(params[f"w_hh{l}"])   # (H, 4H)
        bias = np.asarray(params[f"b{l}"])      # (1, 4H)  (= b_ih + b_hh)
        wi = np.zeros((HP, GP), np.float32)
        wh = np.zeros((HP, GP), np.float32)
        bf = np.zeros((1, GP), np.float32)
        for k in range(4):
            wi[0:in_dim, k * HP:k * HP + H] = w_ih[:, k * H:(k + 1) * H]
            wh[0:H, k * HP:k * HP + H] = w_hh[:, k * H:(k + 1) * H]
            bf[0, k * HP:k * HP + H] = bias[0, k * H:(k + 1) * H]
        packed[f"w_ih{l}"] = jnp.asarray(wi)
        packed[f"w_hh{l}"] = jnp.asarray(wh)
        packed[f"b{l}"] = jnp.asarray(bf)
    wfc = np.zeros((HP, HP), np.float32)
    wfc[:H, :H] = np.asarray(params["w_fc"])
    bfc = np.zeros((1, HP), np.float32)
    bfc[0, :H] = np.asarray(params["b_fc"])[0]
    packed["w_fc"] = jnp.asarray(wfc)
    packed["b_fc"] = jnp.asarray(bfc)
    return packed


def tg_generator(z, params, packed=None):
    """z: (B, T, Z_DIM) batch_first, like the PyTorch module. Returns (B, T, HIDDEN)."""
    B, T, Zd = z.shape
    assert Zd == Z_DIM
    if packed is None:
        packed = _pack_params(params)

    # Time-major, lane-padded input slab (T*B, HP): wrapper-side layout plumbing
    # so the kernel's hoisted matmuls see dense, well-shaped operands.
    z_tb = jnp.transpose(z, (1, 0, 2)).reshape(T * B, Z_DIM)
    z_tb = jnp.pad(z_tb, ((0, 0), (0, HP - Z_DIM)))          # zeros hit zero rows

    names = ["w_ih0", "w_hh0", "b0", "w_ih1", "w_hh1", "b1",
             "w_ih2", "w_hh2", "b2", "w_fc", "b_fc"]
    weights = [packed[n] for n in names]

    kernel = functools.partial(tg_generator_kernel, seq_len=T, batch=B)

    # No grid: single invocation, whole arrays resident in VMEM, no pointless
    # double-buffering for what is a latency-bound serial recurrence.
    vmem = pl.BlockSpec(memory_space=pltpu.MemorySpace.VMEM)
    out_tb = pl.pallas_call(
        kernel,
        out_shape=jax.ShapeDtypeStruct((T * B, HP), z.dtype),
        in_specs=[vmem] * (1 + len(weights)),
        out_specs=vmem,
    )(z_tb, *weights)

    # (T*B, HP) time-major -> (B, T, HIDDEN); strip lane padding (padded lanes
    # hold sigmoid(0)=0.5 and must not be consumed).
    return jnp.transpose(out_tb.reshape(T, B, HP), (1, 0, 2))[:, :, :HIDDEN]


def init_params(key):
    """Deterministic synthetic weights (PyTorch-style U(-1/sqrt(H), 1/sqrt(H)))."""
    H = HIDDEN
    k = 1.0 / jnp.sqrt(jnp.float32(H))
    params = {}
    keys = jax.random.split(key, 4 * NUM_LAYERS + 2)
    idx = 0
    for l in range(NUM_LAYERS):
        in_dim = Z_DIM if l == 0 else H
        # stored already transposed: x @ w_ih, h @ w_hh
        params[f"w_ih{l}"] = jax.random.uniform(keys[idx], (in_dim, 4 * H), jnp.float32, -k, k); idx += 1
        params[f"w_hh{l}"] = jax.random.uniform(keys[idx], (H, 4 * H), jnp.float32, -k, k); idx += 1
        b_ih = jax.random.uniform(keys[idx], (4 * H,), jnp.float32, -k, k); idx += 1
        b_hh = jax.random.uniform(keys[idx], (4 * H,), jnp.float32, -k, k); idx += 1
        params[f"b{l}"] = (b_ih + b_hh).reshape(1, 4 * H)
    params["w_fc"] = jax.random.uniform(keys[idx], (H, H), jnp.float32, -k, k); idx += 1
    params["b_fc"] = jax.random.uniform(keys[idx], (1, H), jnp.float32, -k, k); idx += 1
    return params


def reference(z, params):
    """Pure-JAX reference of the same LSTM + fc + sigmoid, for validation."""
    B, T, _ = z.shape
    H = HIDDEN
    h = [jnp.zeros((B, H), jnp.float32) for _ in range(NUM_LAYERS)]
    c = [jnp.zeros((B, H), jnp.float32) for _ in range(NUM_LAYERS)]
    outs = []
    for t in range(T):
        inp = z[:, t, :].astype(jnp.float32)
        for l in range(NUM_LAYERS):
            gates = inp @ params[f"w_ih{l}"] + h[l] @ params[f"w_hh{l}"] + params[f"b{l}"]
            i_g = jax.nn.sigmoid(gates[:, 0 * H:1 * H])
            f_g = jax.nn.sigmoid(gates[:, 1 * H:2 * H])
            g_g = jnp.tanh(gates[:, 2 * H:3 * H])
            o_g = jax.nn.sigmoid(gates[:, 3 * H:4 * H])
            c[l] = f_g * c[l] + i_g * g_g
            h[l] = o_g * jnp.tanh(c[l])
            inp = h[l]
        outs.append(jax.nn.sigmoid(inp @ params["w_fc"] + params["b_fc"]))
    return jnp.stack(outs, axis=1)


if __name__ == "__main__":
    key = jax.random.PRNGKey(0)
    k_param, k_data = jax.random.split(key)

    B, T = 2, 8
    params = init_params(k_param)
    z = jax.random.normal(k_data, (B, T, Z_DIM), jnp.float32)

    out = tg_generator(z, params)
    out = jax.block_until_ready(out)

    ref = reference(z, params)
    assert out.shape == (B, T, HIDDEN)
    assert jnp.allclose(out, ref, atol=1e-3, rtol=1e-3), "mismatch vs reference"

    print("KERNEL_OK")
</pallas_src>

<mosaic_0001>
module attributes {stable_mosaic.version = 11 : i64} {
  func.func @tg_generator_kernel(%arg0: memref<16x128xf32, #tpu.memory_space<vmem>>, %arg1: memref<128x512xf32, #tpu.memory_space<vmem>>, %arg2: memref<128x512xf32, #tpu.memory_space<vmem>>, %arg3: memref<1x512xf32, #tpu.memory_space<vmem>>, %arg4: memref<128x512xf32, #tpu.memory_space<vmem>>, %arg5: memref<128x512xf32, #tpu.memory_space<vmem>>, %arg6: memref<1x512xf32, #tpu.memory_space<vmem>>, %arg7: memref<128x512xf32, #tpu.memory_space<vmem>>, %arg8: memref<128x512xf32, #tpu.memory_space<vmem>>, %arg9: memref<1x512xf32, #tpu.memory_space<vmem>>, %arg10: memref<128x128xf32, #tpu.memory_space<vmem>>, %arg11: memref<1x128xf32, #tpu.memory_space<vmem>>, %arg12: memref<16x128xf32, #tpu.memory_space<vmem>>) attributes {dimension_semantics = [], scalar_prefetch = 0 : i64, scratch_operands = 0 : i64, tpu.core_type = #tpu.core_type<tc>} {
    %c0 = arith.constant 0 : index
    %c0_0 = arith.constant 0 : index
    %0 = vector.load %arg0[%c0, %c0_0] : memref<16x128xf32, #tpu.memory_space<vmem>>, vector<16x128xf32>
    %c0_1 = arith.constant 0 : index
    %c0_2 = arith.constant 0 : index
    %1 = vector.load %arg1[%c0_1, %c0_2] : memref<128x512xf32, #tpu.memory_space<vmem>>, vector<128x512xf32>
    %cst = arith.constant dense<0.000000e+00> : vector<16x512xf32>
    %2 = tpu.matmul %0, %1, %cst {dimension_numbers = #tpu.dot_dimension_numbers<[1], [0], [0], [1], [0, 0, 1, 1], [], []>} : vector<16x128xf32>, vector<128x512xf32>, vector<16x512xf32> -> vector<16x512xf32>
    %c0_3 = arith.constant 0 : index
    %c0_4 = arith.constant 0 : index
    %3 = vector.load %arg3[%c0_3, %c0_4] : memref<1x512xf32, #tpu.memory_space<vmem>>, vector<1x512xf32>
    %4 = vector.shape_cast %3 : vector<1x512xf32> to vector<1x512xf32>
    %5 = vector.broadcast %4 : vector<1x512xf32> to vector<16x512xf32>
    %6 = arith.addf %2, %5 : vector<16x512xf32>
    %c0_5 = arith.constant 0 : index
    %c0_6 = arith.constant 0 : index
    %7 = vector.load %arg2[%c0_5, %c0_6] : memref<128x512xf32, #tpu.memory_space<vmem>>, vector<128x512xf32>
    %c0_7 = arith.constant 0 : index
    %c0_8 = arith.constant 0 : index
    %8 = vector.load %arg5[%c0_7, %c0_8] : memref<128x512xf32, #tpu.memory_space<vmem>>, vector<128x512xf32>
    %c0_9 = arith.constant 0 : index
    %c0_10 = arith.constant 0 : index
    %9 = vector.load %arg8[%c0_9, %c0_10] : memref<128x512xf32, #tpu.memory_space<vmem>>, vector<128x512xf32>
    %c0_11 = arith.constant 0 : index
    %c0_12 = arith.constant 0 : index
    %10 = vector.load %arg4[%c0_11, %c0_12] : memref<128x512xf32, #tpu.memory_space<vmem>>, vector<128x512xf32>
    %c0_13 = arith.constant 0 : index
    %c0_14 = arith.constant 0 : index
    %11 = vector.load %arg7[%c0_13, %c0_14] : memref<128x512xf32, #tpu.memory_space<vmem>>, vector<128x512xf32>
    %c0_15 = arith.constant 0 : index
    %c0_16 = arith.constant 0 : index
    %12 = vector.load %arg6[%c0_15, %c0_16] : memref<1x512xf32, #tpu.memory_space<vmem>>, vector<1x512xf32>
    %13 = vector.shape_cast %12 : vector<1x512xf32> to vector<1x512xf32>
    %14 = vector.broadcast %13 : vector<1x512xf32> to vector<2x512xf32>
    %c0_17 = arith.constant 0 : index
    %c0_18 = arith.constant 0 : index
    %15 = vector.load %arg9[%c0_17, %c0_18] : memref<1x512xf32, #tpu.memory_space<vmem>>, vector<1x512xf32>
    %16 = vector.shape_cast %15 : vector<1x512xf32> to vector<1x512xf32>
    %17 = vector.broadcast %16 : vector<1x512xf32> to vector<2x512xf32>
    %cst_19 = arith.constant 0.000000e+00 : f32
    %18 = vector.broadcast %cst_19 : f32 to vector<2x128xf32>
    %cst_20 = arith.constant 0.000000e+00 : f32
    %19 = vector.broadcast %cst_20 : f32 to vector<2x128xf32>
    %cst_21 = arith.constant 0.000000e+00 : f32
    %20 = vector.broadcast %cst_21 : f32 to vector<2x128xf32>
    %cst_22 = arith.constant 0.000000e+00 : f32
    %21 = vector.broadcast %cst_22 : f32 to vector<2x128xf32>
    %cst_23 = arith.constant 0.000000e+00 : f32
    %22 = vector.broadcast %cst_23 : f32 to vector<2x128xf32>
    %cst_24 = arith.constant 0.000000e+00 : f32
    %23 = vector.broadcast %cst_24 : f32 to vector<2x128xf32>
    %24 = vector.extract_strided_slice %6 {offsets = [0, 0], sizes = [2, 512], strides = [1, 1]} : vector<16x512xf32> to vector<2x512xf32>
    %cst_25 = arith.constant dense<0.000000e+00> : vector<2x512xf32>
    %25 = tpu.matmul %18, %7, %cst_25 {dimension_numbers = #tpu.dot_dimension_numbers<[1], [0], [0], [1], [0, 0, 1, 1], [], []>} : vector<2x128xf32>, vector<128x512xf32>, vector<2x512xf32> -> vector<2x512xf32>
    %26 = arith.addf %24, %25 : vector<2x512xf32>
    %27 = arith.negf %26 : vector<2x512xf32>
    %28 = math.exp %27 : vector<2x512xf32>
    %cst_26 = arith.constant 1.000000e+00 : f32
    %29 = vector.broadcast %cst_26 : f32 to vector<2x512xf32>
    %30 = arith.addf %29, %28 : vector<2x512xf32>
    %31 = arith.divf %29, %30 : vector<2x512xf32>
    %32 = vector.extract_strided_slice %31 {offsets = [0, 0], sizes = [2, 128], strides = [1, 1]} : vector<2x512xf32> to vector<2x128xf32>
    %33 = vector.extract_strided_slice %31 {offsets = [0, 128], sizes = [2, 128], strides = [1, 1]} : vector<2x512xf32> to vector<2x128xf32>
    %34 = vector.extract_strided_slice %31 {offsets = [0, 384], sizes = [2, 128], strides = [1, 1]} : vector<2x512xf32> to vector<2x128xf32>
    %35 = vector.extract_strided_slice %26 {offsets = [0, 256], sizes = [2, 128], strides = [1, 1]} : vector<2x512xf32> to vector<2x128xf32>
    %36 = math.tanh %35 : vector<2x128xf32>
    %37 = arith.mulf %33, %21 : vector<2x128xf32>
    %38 = arith.mulf %32, %36 : vector<2x128xf32>
    %39 = arith.addf %37, %38 : vector<2x128xf32>
    %40 = math.tanh %39 : vector<2x128xf32>
    %41 = arith.mulf %34, %40 : vector<2x128xf32>
    %cst_27 = arith.constant dense<0.000000e+00> : vector<2x512xf32>
    %42 = tpu.matmul %41, %10, %cst_27 {dimension_numbers = #tpu.dot_dimension_numbers<[1], [0], [0], [1], [0, 0, 1, 1], [], []>} : vector<2x128xf32>, vector<128x512xf32>, vector<2x512xf32> -> vector<2x512xf32>
    %cst_28 = arith.constant dense<0.000000e+00> : vector<2x512xf32>
    %43 = tpu.matmul %19, %8, %cst_28 {dimension_numbers = #tpu.dot_dimension_numbers<[1], [0], [0], [1], [0, 0, 1, 1], [], []>} : vector<2x128xf32>, vector<128x512xf32>, vector<2x512xf32> -> vector<2x512xf32>
    %44 = arith.addf %42, %43 : vector<2x512xf32>
    %45 = arith.addf %44, %14 : vector<2x512xf32>
    %46 = arith.negf %45 : vector<2x512xf32>
    %47 = math.exp %46 : vector<2x512xf32>
    %cst_29 = arith.constant 1.000000e+00 : f32
    %48 = vector.broadcast %cst_29 : f32 to vector<2x512xf32>
    %49 = arith.addf %48, %47 : vector<2x512xf32>
    %50 = arith.divf %48, %49 : vector<2x512xf32>
    %51 = vector.extract_strided_slice %50 {offsets = [0, 0], sizes = [2, 128], strides = [1, 1]} : vector<2x512xf32> to vector<2x128xf32>
    %52 = vector.extract_strided_slice %50 {offsets = [0, 128], sizes = [2, 128], strides = [1, 1]} : vector<2x512xf32> to vector<2x128xf32>
    %53 = vector.extract_strided_slice %50 {offsets = [0, 384], sizes = [2, 128], strides = [1, 1]} : vector<2x512xf32> to vector<2x128xf32>
    %54 = vector.extract_strided_slice %45 {offsets = [0, 256], sizes = [2, 128], strides = [1, 1]} : vector<2x512xf32> to vector<2x128xf32>
    %55 = math.tanh %54 : vector<2x128xf32>
    %56 = arith.mulf %52, %22 : vector<2x128xf32>
    %57 = arith.mulf %51, %55 : vector<2x128xf32>
    %58 = arith.addf %56, %57 : vector<2x128xf32>
    %59 = math.tanh %58 : vector<2x128xf32>
    %60 = arith.mulf %53, %59 : vector<2x128xf32>
    %cst_30 = arith.constant dense<0.000000e+00> : vector<2x512xf32>
    %61 = tpu.matmul %60, %11, %cst_30 {dimension_numbers = #tpu.dot_dimension_numbers<[1], [0], [0], [1], [0, 0, 1, 1], [], []>} : vector<2x128xf32>, vector<128x512xf32>, vector<2x512xf32> -> vector<2x512xf32>
    %cst_31 = arith.constant dense<0.000000e+00> : vector<2x512xf32>
    %62 = tpu.matmul %20, %9, %cst_31 {dimension_numbers = #tpu.dot_dimension_numbers<[1], [0], [0], [1], [0, 0, 1, 1], [], []>} : vector<2x128xf32>, vector<128x512xf32>, vector<2x512xf32> -> vector<2x512xf32>
    %63 = arith.addf %61, %62 : vector<2x512xf32>
    %64 = arith.addf %63, %17 : vector<2x512xf32>
    %65 = arith.negf %64 : vector<2x512xf32>
    %66 = math.exp %65 : vector<2x512xf32>
    %cst_32 = arith.constant 1.000000e+00 : f32
    %67 = vector.broadcast %cst_32 : f32 to vector<2x512xf32>
    %68 = arith.addf %67, %66 : vector<2x512xf32>
    %69 = arith.divf %67, %68 : vector<2x512xf32>
    %70 = vector.extract_strided_slice %69 {offsets = [0, 0], sizes = [2, 128], strides = [1, 1]} : vector<2x512xf32> to vector<2x128xf32>
    %71 = vector.extract_strided_slice %69 {offsets = [0, 128], sizes = [2, 128], strides = [1, 1]} : vector<2x512xf32> to vector<2x128xf32>
    %72 = vector.extract_strided_slice %69 {offsets = [0, 384], sizes = [2, 128], strides = [1, 1]} : vector<2x512xf32> to vector<2x128xf32>
    %73 = vector.extract_strided_slice %64 {offsets = [0, 256], sizes = [2, 128], strides = [1, 1]} : vector<2x512xf32> to vector<2x128xf32>
    %74 = math.tanh %73 : vector<2x128xf32>
    %75 = arith.mulf %71, %23 : vector<2x128xf32>
    %76 = arith.mulf %70, %74 : vector<2x128xf32>
    %77 = arith.addf %75, %76 : vector<2x128xf32>
    %78 = math.tanh %77 : vector<2x128xf32>
    %79 = arith.mulf %72, %78 : vector<2x128xf32>
    %80 = vector.extract_strided_slice %6 {offsets = [2, 0], sizes = [2, 512], strides = [1, 1]} : vector<16x512xf32> to vector<2x512xf32>
    %cst_33 = arith.constant dense<0.000000e+00> : vector<2x512xf32>
    %81 = tpu.matmul %41, %7, %cst_33 {dimension_numbers = #tpu.dot_dimension_numbers<[1], [0], [0], [1], [0, 0, 1, 1], [], []>} : vector<2x128xf32>, vector<128x512xf32>, vector<2x512xf32> -> vector<2x512xf32>
    %82 = arith.addf %80, %81 : vector<2x512xf32>
    %83 = arith.negf %82 : vector<2x512xf32>
    %84 = math.exp %83 : vector<2x512xf32>
    %cst_34 = arith.constant 1.000000e+00 : f32
    %85 = vector.broadcast %cst_34 : f32 to vector<2x512xf32>
    %86 = arith.addf %85, %84 : vector<2x512xf32>
    %87 = arith.divf %85, %86 : vector<2x512xf32>
    %88 = vector.extract_strided_slice %87 {offsets = [0, 0], sizes = [2, 128], strides = [1, 1]} : vector<2x512xf32> to vector<2x128xf32>
    %89 = vector.extract_strided_slice %87 {offsets = [0, 128], sizes = [2, 128], strides = [1, 1]} : vector<2x512xf32> to vector<2x128xf32>
    %90 = vector.extract_strided_slice %87 {offsets = [0, 384], sizes = [2, 128], strides = [1, 1]} : vector<2x512xf32> to vector<2x128xf32>
    %91 = vector.extract_strided_slice %82 {offsets = [0, 256], sizes = [2, 128], strides = [1, 1]} : vector<2x512xf32> to vector<2x128xf32>
    %92 = math.tanh %91 : vector<2x128xf32>
    %93 = arith.mulf %89, %39 : vector<2x128xf32>
    %94 = arith.mulf %88, %92 : vector<2x128xf32>
    %95 = arith.addf %93, %94 : vector<2x128xf32>
    %96 = math.tanh %95 : vector<2x128xf32>
    %97 = arith.mulf %90, %96 : vector<2x128xf32>
    %cst_35 = arith.constant dense<0.000000e+00> : vector<2x512xf32>
    %98 = tpu.matmul %97, %10, %cst_35 {dimension_numbers = #tpu.dot_dimension_numbers<[1], [0], [0], [1], [0, 0, 1, 1], [], []>} : vector<2x128xf32>, vector<128x512xf32>, vector<2x512xf32> -> vector<2x512xf32>
    %cst_36 = arith.constant dense<0.000000e+00> : vector<2x512xf32>
    %99 = tpu.matmul %60, %8, %cst_36 {dimension_numbers = #tpu.dot_dimension_numbers<[1], [0], [0], [1], [0, 0, 1, 1], [], []>} : vector<2x128xf32>, vector<128x512xf32>, vector<2x512xf32> -> vector<2x512xf32>
    %100 = arith.addf %98, %99 : vector<2x512xf32>
    %101 = arith.addf %100, %14 : vector<2x512xf32>
    %102 = arith.negf %101 : vector<2x512xf32>
    %103 = math.exp %102 : vector<2x512xf32>
    %cst_37 = arith.constant 1.000000e+00 : f32
    %104 = vector.broadcast %cst_37 : f32 to vector<2x512xf32>
    %105 = arith.addf %104, %103 : vector<2x512xf32>
    %106 = arith.divf %104, %105 : vector<2x512xf32>
    %107 = vector.extract_strided_slice %106 {offsets = [0, 0], sizes = [2, 128], strides = [1, 1]} : vector<2x512xf32> to vector<2x128xf32>
    %108 = vector.extract_strided_slice %106 {offsets = [0, 128], sizes = [2, 128], strides = [1, 1]} : vector<2x512xf32> to vector<2x128xf32>
    %109 = vector.extract_strided_slice %106 {offsets = [0, 384], sizes = [2, 128], strides = [1, 1]} : vector<2x512xf32> to vector<2x128xf32>
    %110 = vector.extract_strided_slice %101 {offsets = [0, 256], sizes = [2, 128], strides = [1, 1]} : vector<2x512xf32> to vector<2x128xf32>
    %111 = math.tanh %110 : vector<2x128xf32>
    %112 = arith.mulf %108, %58 : vector<2x128xf32>
    %113 = arith.mulf %107, %111 : vector<2x128xf32>
    %114 = arith.addf %112, %113 : vector<2x128xf32>
    %115 = math.tanh %114 : vector<2x128xf32>
    %116 = arith.mulf %109, %115 : vector<2x128xf32>
    %cst_38 = arith.constant dense<0.000000e+00> : vector<2x512xf32>
    %117 = tpu.matmul %116, %11, %cst_38 {dimension_numbers = #tpu.dot_dimension_numbers<[1], [0], [0], [1], [0, 0, 1, 1], [], []>} : vector<2x128xf32>, vector<128x512xf32>, vector<2x512xf32> -> vector<2x512xf32>
    %cst_39 = arith.constant dense<0.000000e+00> : vector<2x512xf32>
    %118 = tpu.matmul %79, %9, %cst_39 {dimension_numbers = #tpu.dot_dimension_numbers<[1], [0], [0], [1], [0, 0, 1, 1], [], []>} : vector<2x128xf32>, vector<128x512xf32>, vector<2x512xf32> -> vector<2x512xf32>
    %119 = arith.addf %117, %118 : vector<2x512xf32>
    %120 = arith.addf %119, %17 : vector<2x512xf32>
    %121 = arith.negf %120 : vector<2x512xf32>
    %122 = math.exp %121 : vector<2x512xf32>
    %cst_40 = arith.constant 1.000000e+00 : f32
    %123 = vector.broadcast %cst_40 : f32 to vector<2x512xf32>
    %124 = arith.addf %123, %122 : vector<2x512xf32>
    %125 = arith.divf %123, %124 : vector<2x512xf32>
    %126 = vector.extract_strided_slice %125 {offsets = [0, 0], sizes = [2, 128], strides = [1, 1]} : vector<2x512xf32> to vector<2x128xf32>
    %127 = vector.extract_strided_slice %125 {offsets = [0, 128], sizes = [2, 128], strides = [1, 1]} : vector<2x512xf32> to vector<2x128xf32>
    %128 = vector.extract_strided_slice %125 {offsets = [0, 384], sizes = [2, 128], strides = [1, 1]} : vector<2x512xf32> to vector<2x128xf32>
    %129 = vector.extract_strided_slice %120 {offsets = [0, 256], sizes = [2, 128], strides = [1, 1]} : vector<2x512xf32> to vector<2x128xf32>
    %130 = math.tanh %129 : vector<2x128xf32>
    %131 = arith.mulf %127, %77 : vector<2x128xf32>
    %132 = arith.mulf %126, %130 : vector<2x128xf32>
    %133 = arith.addf %131, %132 : vector<2x128xf32>
    %134 = math.tanh %133 : vector<2x128xf32>
    %135 = arith.mulf %128, %134 : vector<2x128xf32>
    %136 = vector.extract_strided_slice %6 {offsets = [4, 0], sizes = [2, 512], strides = [1, 1]} : vector<16x512xf32> to vector<2x512xf32>
    %cst_41 = arith.constant dense<0.000000e+00> : vector<2x512xf32>
    %137 = tpu.matmul %97, %7, %cst_41 {dimension_numbers = #tpu.dot_dimension_numbers<[1], [0], [0], [1], [0, 0, 1, 1], [], []>} : vector<2x128xf32>, vector<128x512xf32>, vector<2x512xf32> -> vector<2x512xf32>
    %138 = arith.addf %136, %137 : vector<2x512xf32>
    %139 = arith.negf %138 : vector<2x512xf32>
    %140 = math.exp %139 : vector<2x512xf32>
    %cst_42 = arith.constant 1.000000e+00 : f32
    %141 = vector.broadcast %cst_42 : f32 to vector<2x512xf32>
    %142 = arith.addf %141, %140 : vector<2x512xf32>
    %143 = arith.divf %141, %142 : vector<2x512xf32>
    %144 = vector.extract_strided_slice %143 {offsets = [0, 0], sizes = [2, 128], strides = [1, 1]} : vector<2x512xf32> to vector<2x128xf32>
    %145 = vector.extract_strided_slice %143 {offsets = [0, 128], sizes = [2, 128], strides = [1, 1]} : vector<2x512xf32> to vector<2x128xf32>
    %146 = vector.extract_strided_slice %143 {offsets = [0, 384], sizes = [2, 128], strides = [1, 1]} : vector<2x512xf32> to vector<2x128xf32>
    %147 = vector.extract_strided_slice %138 {offsets = [0, 256], sizes = [2, 128], strides = [1, 1]} : vector<2x512xf32> to vector<2x128xf32>
    %148 = math.tanh %147 : vector<2x128xf32>
    %149 = arith.mulf %145, %95 : vector<2x128xf32>
    %150 = arith.mulf %144, %148 : vector<2x128xf32>
    %151 = arith.addf %149, %150 : vector<2x128xf32>
    %152 = math.tanh %151 : vector<2x128xf32>
    %153 = arith.mulf %146, %152 : vector<2x128xf32>
    %cst_43 = arith.constant dense<0.000000e+00> : vector<2x512xf32>
    %154 = tpu.matmul %153, %10, %cst_43 {dimension_numbers = #tpu.dot_dimension_numbers<[1], [0], [0], [1], [0, 0, 1, 1], [], []>} : vector<2x128xf32>, vector<128x512xf32>, vector<2x512xf32> -> vector<2x512xf32>
    %cst_44 = arith.constant dense<0.000000e+00> : vector<2x512xf32>
    %155 = tpu.matmul %116, %8, %cst_44 {dimension_numbers = #tpu.dot_dimension_numbers<[1], [0], [0], [1], [0, 0, 1, 1], [], []>} : vector<2x128xf32>, vector<128x512xf32>, vector<2x512xf32> -> vector<2x512xf32>
    %156 = arith.addf %154, %155 : vector<2x512xf32>
    %157 = arith.addf %156, %14 : vector<2x512xf32>
    %158 = arith.negf %157 : vector<2x512xf32>
    %159 = math.exp %158 : vector<2x512xf32>
    %cst_45 = arith.constant 1.000000e+00 : f32
    %160 = vector.broadcast %cst_45 : f32 to vector<2x512xf32>
    %161 = arith.addf %160, %159 : vector<2x512xf32>
    %162 = arith.divf %160, %161 : vector<2x512xf32>
    %163 = vector.extract_strided_slice %162 {offsets = [0, 0], sizes = [2, 128], strides = [1, 1]} : vector<2x512xf32> to vector<2x128xf32>
    %164 = vector.extract_strided_slice %162 {offsets = [0, 128], sizes = [2, 128], strides = [1, 1]} : vector<2x512xf32> to vector<2x128xf32>
    %165 = vector.extract_strided_slice %162 {offsets = [0, 384], sizes = [2, 128], strides = [1, 1]} : vector<2x512xf32> to vector<2x128xf32>
    %166 = vector.extract_strided_slice %157 {offsets = [0, 256], sizes = [2, 128], strides = [1, 1]} : vector<2x512xf32> to vector<2x128xf32>
    %167 = math.tanh %166 : vector<2x128xf32>
    %168 = arith.mulf %164, %114 : vector<2x128xf32>
    %169 = arith.mulf %163, %167 : vector<2x128xf32>
    %170 = arith.addf %168, %169 : vector<2x128xf32>
    %171 = math.tanh %170 : vector<2x128xf32>
    %172 = arith.mulf %165, %171 : vector<2x128xf32>
    %cst_46 = arith.constant dense<0.000000e+00> : vector<2x512xf32>
    %173 = tpu.matmul %172, %11, %cst_46 {dimension_numbers = #tpu.dot_dimension_numbers<[1], [0], [0], [1], [0, 0, 1, 1], [], []>} : vector<2x128xf32>, vector<128x512xf32>, vector<2x512xf32> -> vector<2x512xf32>
    %cst_47 = arith.constant dense<0.000000e+00> : vector<2x512xf32>
    %174 = tpu.matmul %135, %9, %cst_47 {dimension_numbers = #tpu.dot_dimension_numbers<[1], [0], [0], [1], [0, 0, 1, 1], [], []>} : vector<2x128xf32>, vector<128x512xf32>, vector<2x512xf32> -> vector<2x512xf32>
    %175 = arith.addf %173, %174 : vector<2x512xf32>
    %176 = arith.addf %175, %17 : vector<2x512xf32>
    %177 = arith.negf %176 : vector<2x512xf32>
    %178 = math.exp %177 : vector<2x512xf32>
    %cst_48 = arith.constant 1.000000e+00 : f32
    %179 = vector.broadcast %cst_48 : f32 to vector<2x512xf32>
    %180 = arith.addf %179, %178 : vector<2x512xf32>
    %181 = arith.divf %179, %180 : vector<2x512xf32>
    %182 = vector.extract_strided_slice %181 {offsets = [0, 0], sizes = [2, 128], strides = [1, 1]} : vector<2x512xf32> to vector<2x128xf32>
    %183 = vector.extract_strided_slice %181 {offsets = [0, 128], sizes = [2, 128], strides = [1, 1]} : vector<2x512xf32> to vector<2x128xf32>
    %184 = vector.extract_strided_slice %181 {offsets = [0, 384], sizes = [2, 128], strides = [1, 1]} : vector<2x512xf32> to vector<2x128xf32>
    %185 = vector.extract_strided_slice %176 {offsets = [0, 256], sizes = [2, 128], strides = [1, 1]} : vector<2x512xf32> to vector<2x128xf32>
    %186 = math.tanh %185 : vector<2x128xf32>
    %187 = arith.mulf %183, %133 : vector<2x128xf32>
    %188 = arith.mulf %182, %186 : vector<2x128xf32>
    %189 = arith.addf %187, %188 : vector<2x128xf32>
    %190 = math.tanh %189 : vector<2x128xf32>
    %191 = arith.mulf %184, %190 : vector<2x128xf32>
    %192 = vector.extract_strided_slice %6 {offsets = [6, 0], sizes = [2, 512], strides = [1, 1]} : vector<16x512xf32> to vector<2x512xf32>
    %cst_49 = arith.constant dense<0.000000e+00> : vector<2x512xf32>
    %193 = tpu.matmul %153, %7, %cst_49 {dimension_numbers = #tpu.dot_dimension_numbers<[1], [0], [0], [1], [0, 0, 1, 1], [], []>} : vector<2x128xf32>, vector<128x512xf32>, vector<2x512xf32> -> vector<2x512xf32>
    %194 = arith.addf %192, %193 : vector<2x512xf32>
    %195 = arith.negf %194 : vector<2x512xf32>
    %196 = math.exp %195 : vector<2x512xf32>
    %cst_50 = arith.constant 1.000000e+00 : f32
    %197 = vector.broadcast %cst_50 : f32 to vector<2x512xf32>
    %198 = arith.addf %197, %196 : vector<2x512xf32>
    %199 = arith.divf %197, %198 : vector<2x512xf32>
    %200 = vector.extract_strided_slice %199 {offsets = [0, 0], sizes = [2, 128], strides = [1, 1]} : vector<2x512xf32> to vector<2x128xf32>
    %201 = vector.extract_strided_slice %199 {offsets = [0, 128], sizes = [2, 128], strides = [1, 1]} : vector<2x512xf32> to vector<2x128xf32>
    %202 = vector.extract_strided_slice %199 {offsets = [0, 384], sizes = [2, 128], strides = [1, 1]} : vector<2x512xf32> to vector<2x128xf32>
    %203 = vector.extract_strided_slice %194 {offsets = [0, 256], sizes = [2, 128], strides = [1, 1]} : vector<2x512xf32> to vector<2x128xf32>
    %204 = math.tanh %203 : vector<2x128xf32>
    %205 = arith.mulf %201, %151 : vector<2x128xf32>
    %206 = arith.mulf %200, %204 : vector<2x128xf32>
    %207 = arith.addf %205, %206 : vector<2x128xf32>
    %208 = math.tanh %207 : vector<2x128xf32>
    %209 = arith.mulf %202, %208 : vector<2x128xf32>
    %cst_51 = arith.constant dense<0.000000e+00> : vector<2x512xf32>
    %210 = tpu.matmul %209, %10, %cst_51 {dimension_numbers = #tpu.dot_dimension_numbers<[1], [0], [0], [1], [0, 0, 1, 1], [], []>} : vector<2x128xf32>, vector<128x512xf32>, vector<2x512xf32> -> vector<2x512xf32>
    %cst_52 = arith.constant dense<0.000000e+00> : vector<2x512xf32>
    %211 = tpu.matmul %172, %8, %cst_52 {dimension_numbers = #tpu.dot_dimension_numbers<[1], [0], [0], [1], [0, 0, 1, 1], [], []>} : vector<2x128xf32>, vector<128x512xf32>, vector<2x512xf32> -> vector<2x512xf32>
    %212 = arith.addf %210, %211 : vector<2x512xf32>
    %213 = arith.addf %212, %14 : vector<2x512xf32>
    %214 = arith.negf %213 : vector<2x512xf32>
    %215 = math.exp %214 : vector<2x512xf32>
    %cst_53 = arith.constant 1.000000e+00 : f32
    %216 = vector.broadcast %cst_53 : f32 to vector<2x512xf32>
    %217 = arith.addf %216, %215 : vector<2x512xf32>
    %218 = arith.divf %216, %217 : vector<2x512xf32>
    %219 = vector.extract_strided_slice %218 {offsets = [0, 0], sizes = [2, 128], strides = [1, 1]} : vector<2x512xf32> to vector<2x128xf32>
    %220 = vector.extract_strided_slice %218 {offsets = [0, 128], sizes = [2, 128], strides = [1, 1]} : vector<2x512xf32> to vector<2x128xf32>
    %221 = vector.extract_strided_slice %218 {offsets = [0, 384], sizes = [2, 128], strides = [1, 1]} : vector<2x512xf32> to vector<2x128xf32>
    %222 = vector.extract_strided_slice %213 {offsets = [0, 256], sizes = [2, 128], strides = [1, 1]} : vector<2x512xf32> to vector<2x128xf32>
    %223 = math.tanh %222 : vector<2x128xf32>
    %224 = arith.mulf %220, %170 : vector<2x128xf32>
    %225 = arith.mulf %219, %223 : vector<2x128xf32>
    %226 = arith.addf %224, %225 : vector<2x128xf32>
    %227 = math.tanh %226 : vector<2x128xf32>
    %228 = arith.mulf %221, %227 : vector<2x128xf32>
    %cst_54 = arith.constant dense<0.000000e+00> : vector<2x512xf32>
    %229 = tpu.matmul %228, %11, %cst_54 {dimension_numbers = #tpu.dot_dimension_numbers<[1], [0], [0], [1], [0, 0, 1, 1], [], []>} : vector<2x128xf32>, vector<128x512xf32>, vector<2x512xf32> -> vector<2x512xf32>
    %cst_55 = arith.constant dense<0.000000e+00> : vector<2x512xf32>
    %230 = tpu.matmul %191, %9, %cst_55 {dimension_numbers = #tpu.dot_dimension_numbers<[1], [0], [0], [1], [0, 0, 1, 1], [], []>} : vector<2x128xf32>, vector<128x512xf32>, vector<2x512xf32> -> vector<2x512xf32>
    %231 = arith.addf %229, %230 : vector<2x512xf32>
    %232 = arith.addf %231, %17 : vector<2x512xf32>
    %233 = arith.negf %232 : vector<2x512xf32>
    %234 = math.exp %233 : vector<2x512xf32>
    %cst_56 = arith.constant 1.000000e+00 : f32
    %235 = vector.broadcast %cst_56 : f32 to vector<2x512xf32>
    %236 = arith.addf %235, %234 : vector<2x512xf32>
    %237 = arith.divf %235, %236 : vector<2x512xf32>
    %238 = vector.extract_strided_slice %237 {offsets = [0, 0], sizes = [2, 128], strides = [1, 1]} : vector<2x512xf32> to vector<2x128xf32>
    %239 = vector.extract_strided_slice %237 {offsets = [0, 128], sizes = [2, 128], strides = [1, 1]} : vector<2x512xf32> to vector<2x128xf32>
    %240 = vector.extract_strided_slice %237 {offsets = [0, 384], sizes = [2, 128], strides = [1, 1]} : vector<2x512xf32> to vector<2x128xf32>
    %241 = vector.extract_strided_slice %232 {offsets = [0, 256], sizes = [2, 128], strides = [1, 1]} : vector<2x512xf32> to vector<2x128xf32>
    %242 = math.tanh %241 : vector<2x128xf32>
    %243 = arith.mulf %239, %189 : vector<2x128xf32>
    %244 = arith.mulf %238, %242 : vector<2x128xf32>
    %245 = arith.addf %243, %244 : vector<2x128xf32>
    %246 = math.tanh %245 : vector<2x128xf32>
    %247 = arith.mulf %240, %246 : vector<2x128xf32>
    %248 = vector.extract_strided_slice %6 {offsets = [8, 0], sizes = [2, 512], strides = [1, 1]} : vector<16x512xf32> to vector<2x512xf32>
    %cst_57 = arith.constant dense<0.000000e+00> : vector<2x512xf32>
    %249 = tpu.matmul %209, %7, %cst_57 {dimension_numbers = #tpu.dot_dimension_numbers<[1], [0], [0], [1], [0, 0, 1, 1], [], []>} : vector<2x128xf32>, vector<128x512xf32>, vector<2x512xf32> -> vector<2x512xf32>
    %250 = arith.addf %248, %249 : vector<2x512xf32>
    %251 = arith.negf %250 : vector<2x512xf32>
    %252 = math.exp %251 : vector<2x512xf32>
    %cst_58 = arith.constant 1.000000e+00 : f32
    %253 = vector.broadcast %cst_58 : f32 to vector<2x512xf32>
    %254 = arith.addf %253, %252 : vector<2x512xf32>
    %255 = arith.divf %253, %254 : vector<2x512xf32>
    %256 = vector.extract_strided_slice %255 {offsets = [0, 0], sizes = [2, 128], strides = [1, 1]} : vector<2x512xf32> to vector<2x128xf32>
    %257 = vector.extract_strided_slice %255 {offsets = [0, 128], sizes = [2, 128], strides = [1, 1]} : vector<2x512xf32> to vector<2x128xf32>
    %258 = vector.extract_strided_slice %255 {offsets = [0, 384], sizes = [2, 128], strides = [1, 1]} : vector<2x512xf32> to vector<2x128xf32>
    %259 = vector.extract_strided_slice %250 {offsets = [0, 256], sizes = [2, 128], strides = [1, 1]} : vector<2x512xf32> to vector<2x128xf32>
    %260 = math.tanh %259 : vector<2x128xf32>
    %261 = arith.mulf %257, %207 : vector<2x128xf32>
    %262 = arith.mulf %256, %260 : vector<2x128xf32>
    %263 = arith.addf %261, %262 : vector<2x128xf32>
    %264 = math.tanh %263 : vector<2x128xf32>
    %265 = arith.mulf %258, %264 : vector<2x128xf32>
    %cst_59 = arith.constant dense<0.000000e+00> : vector<2x512xf32>
    %266 = tpu.matmul %265, %10, %cst_59 {dimension_numbers = #tpu.dot_dimension_numbers<[1], [0], [0], [1], [0, 0, 1, 1], [], []>} : vector<2x128xf32>, vector<128x512xf32>, vector<2x512xf32> -> vector<2x512xf32>
    %cst_60 = arith.constant dense<0.000000e+00> : vector<2x512xf32>
    %267 = tpu.matmul %228, %8, %cst_60 {dimension_numbers = #tpu.dot_dimension_numbers<[1], [0], [0], [1], [0, 0, 1, 1], [], []>} : vector<2x128xf32>, vector<128x512xf32>, vector<2x512xf32> -> vector<2x512xf32>
    %268 = arith.addf %266, %267 : vector<2x512xf32>
    %269 = arith.addf %268, %14 : vector<2x512xf32>
    %270 = arith.negf %269 : vector<2x512xf32>
    %271 = math.exp %270 : vector<2x512xf32>
    %cst_61 = arith.constant 1.000000e+00 : f32
    %272 = vector.broadcast %cst_61 : f32 to vector<2x512xf32>
    %273 = arith.addf %272, %271 : vector<2x512xf32>
    %274 = arith.divf %272, %273 : vector<2x512xf32>
    %275 = vector.extract_strided_slice %274 {offsets = [0, 0], sizes = [2, 128], strides = [1, 1]} : vector<2x512xf32> to vector<2x128xf32>
    %276 = vector.extract_strided_slice %274 {offsets = [0, 128], sizes = [2, 128], strides = [1, 1]} : vector<2x512xf32> to vector<2x128xf32>
    %277 = vector.extract_strided_slice %274 {offsets = [0, 384], sizes = [2, 128], strides = [1, 1]} : vector<2x512xf32> to vector<2x128xf32>
    %278 = vector.extract_strided_slice %269 {offsets = [0, 256], sizes = [2, 128], strides = [1, 1]} : vector<2x512xf32> to vector<2x128xf32>
    %279 = math.tanh %278 : vector<2x128xf32>
    %280 = arith.mulf %276, %226 : vector<2x128xf32>
    %281 = arith.mulf %275, %279 : vector<2x128xf32>
    %282 = arith.addf %280, %281 : vector<2x128xf32>
    %283 = math.tanh %282 : vector<2x128xf32>
    %284 = arith.mulf %277, %283 : vector<2x128xf32>
    %cst_62 = arith.constant dense<0.000000e+00> : vector<2x512xf32>
    %285 = tpu.matmul %284, %11, %cst_62 {dimension_numbers = #tpu.dot_dimension_numbers<[1], [0], [0], [1], [0, 0, 1, 1], [], []>} : vector<2x128xf32>, vector<128x512xf32>, vector<2x512xf32> -> vector<2x512xf32>
    %cst_63 = arith.constant dense<0.000000e+00> : vector<2x512xf32>
    %286 = tpu.matmul %247, %9, %cst_63 {dimension_numbers = #tpu.dot_dimension_numbers<[1], [0], [0], [1], [0, 0, 1, 1], [], []>} : vector<2x128xf32>, vector<128x512xf32>, vector<2x512xf32> -> vector<2x512xf32>
    %287 = arith.addf %285, %286 : vector<2x512xf32>
    %288 = arith.addf %287, %17 : vector<2x512xf32>
    %289 = arith.negf %288 : vector<2x512xf32>
    %290 = math.exp %289 : vector<2x512xf32>
    %cst_64 = arith.constant 1.000000e+00 : f32
    %291 = vector.broadcast %cst_64 : f32 to vector<2x512xf32>
    %292 = arith.addf %291, %290 : vector<2x512xf32>
    %293 = arith.divf %291, %292 : vector<2x512xf32>
    %294 = vector.extract_strided_slice %293 {offsets = [0, 0], sizes = [2, 128], strides = [1, 1]} : vector<2x512xf32> to vector<2x128xf32>
    %295 = vector.extract_strided_slice %293 {offsets = [0, 128], sizes = [2, 128], strides = [1, 1]} : vector<2x512xf32> to vector<2x128xf32>
    %296 = vector.extract_strided_slice %293 {offsets = [0, 384], sizes = [2, 128], strides = [1, 1]} : vector<2x512xf32> to vector<2x128xf32>
    %297 = vector.extract_strided_slice %288 {offsets = [0, 256], sizes = [2, 128], strides = [1, 1]} : vector<2x512xf32> to vector<2x128xf32>
    %298 = math.tanh %297 : vector<2x128xf32>
    %299 = arith.mulf %295, %245 : vector<2x128xf32>
    %300 = arith.mulf %294, %298 : vector<2x128xf32>
    %301 = arith.addf %299, %300 : vector<2x128xf32>
    %302 = math.tanh %301 : vector<2x128xf32>
    %303 = arith.mulf %296, %302 : vector<2x128xf32>
    %304 = vector.extract_strided_slice %6 {offsets = [10, 0], sizes = [2, 512], strides = [1, 1]} : vector<16x512xf32> to vector<2x512xf32>
    %cst_65 = arith.constant dense<0.000000e+00> : vector<2x512xf32>
    %305 = tpu.matmul %265, %7, %cst_65 {dimension_numbers = #tpu.dot_dimension_numbers<[1], [0], [0], [1], [0, 0, 1, 1], [], []>} : vector<2x128xf32>, vector<128x512xf32>, vector<2x512xf32> -> vector<2x512xf32>
    %306 = arith.addf %304, %305 : vector<2x512xf32>
    %307 = arith.negf %306 : vector<2x512xf32>
    %308 = math.exp %307 : vector<2x512xf32>
    %cst_66 = arith.constant 1.000000e+00 : f32
    %309 = vector.broadcast %cst_66 : f32 to vector<2x512xf32>
    %310 = arith.addf %309, %308 : vector<2x512xf32>
    %311 = arith.divf %309, %310 : vector<2x512xf32>
    %312 = vector.extract_strided_slice %311 {offsets = [0, 0], sizes = [2, 128], strides = [1, 1]} : vector<2x512xf32> to vector<2x128xf32>
    %313 = vector.extract_strided_slice %311 {offsets = [0, 128], sizes = [2, 128], strides = [1, 1]} : vector<2x512xf32> to vector<2x128xf32>
    %314 = vector.extract_strided_slice %311 {offsets = [0, 384], sizes = [2, 128], strides = [1, 1]} : vector<2x512xf32> to vector<2x128xf32>
    %315 = vector.extract_strided_slice %306 {offsets = [0, 256], sizes = [2, 128], strides = [1, 1]} : vector<2x512xf32> to vector<2x128xf32>
    %316 = math.tanh %315 : vector<2x128xf32>
    %317 = arith.mulf %313, %263 : vector<2x128xf32>
    %318 = arith.mulf %312, %316 : vector<2x128xf32>
    %319 = arith.addf %317, %318 : vector<2x128xf32>
    %320 = math.tanh %319 : vector<2x128xf32>
    %321 = arith.mulf %314, %320 : vector<2x128xf32>
    %cst_67 = arith.constant dense<0.000000e+00> : vector<2x512xf32>
    %322 = tpu.matmul %321, %10, %cst_67 {dimension_numbers = #tpu.dot_dimension_numbers<[1], [0], [0], [1], [0, 0, 1, 1], [], []>} : vector<2x128xf32>, vector<128x512xf32>, vector<2x512xf32> -> vector<2x512xf32>
    %cst_68 = arith.constant dense<0.000000e+00> : vector<2x512xf32>
    %323 = tpu.matmul %284, %8, %cst_68 {dimension_numbers = #tpu.dot_dimension_numbers<[1], [0], [0], [1], [0, 0, 1, 1], [], []>} : vector<2x128xf32>, vector<128x512xf32>, vector<2x512xf32> -> vector<2x512xf32>
    %324 = arith.addf %322, %323 : vector<2x512xf32>
    %325 = arith.addf %324, %14 : vector<2x512xf32>
    %326 = arith.negf %325 : vector<2x512xf32>
    %327 = math.exp %326 : vector<2x512xf32>
    %cst_69 = arith.constant 1.000000e+00 : f32
    %328 = vector.broadcast %cst_69 : f32 to vector<2x512xf32>
    %329 = arith.addf %328, %327 : vector<2x512xf32>
    %330 = arith.divf %328, %329 : vector<2x512xf32>
    %331 = vector.extract_strided_slice %330 {offsets = [0, 0], sizes = [2, 128], strides = [1, 1]} : vector<2x512xf32> to vector<2x128xf32>
    %332 = vector.extract_strided_slice %330 {offsets = [0, 128], sizes = [2, 128], strides = [1, 1]} : vector<2x512xf32> to vector<2x128xf32>
    %333 = vector.extract_strided_slice %330 {offsets = [0, 384], sizes = [2, 128], strides = [1, 1]} : vector<2x512xf32> to vector<2x128xf32>
    %334 = vector.extract_strided_slice %325 {offsets = [0, 256], sizes = [2, 128], strides = [1, 1]} : vector<2x512xf32> to vector<2x128xf32>
    %335 = math.tanh %334 : vector<2x128xf32>
    %336 = arith.mulf %332, %282 : vector<2x128xf32>
    %337 = arith.mulf %331, %335 : vector<2x128xf32>
    %338 = arith.addf %336, %337 : vector<2x128xf32>
    %339 = math.tanh %338 : vector<2x128xf32>
    %340 = arith.mulf %333, %339 : vector<2x128xf32>
    %cst_70 = arith.constant dense<0.000000e+00> : vector<2x512xf32>
    %341 = tpu.matmul %340, %11, %cst_70 {dimension_numbers = #tpu.dot_dimension_numbers<[1], [0], [0], [1], [0, 0, 1, 1], [], []>} : vector<2x128xf32>, vector<128x512xf32>, vector<2x512xf32> -> vector<2x512xf32>
    %cst_71 = arith.constant dense<0.000000e+00> : vector<2x512xf32>
    %342 = tpu.matmul %303, %9, %cst_71 {dimension_numbers = #tpu.dot_dimension_numbers<[1], [0], [0], [1], [0, 0, 1, 1], [], []>} : vector<2x128xf32>, vector<128x512xf32>, vector<2x512xf32> -> vector<2x512xf32>
    %343 = arith.addf %341, %342 : vector<2x512xf32>
    %344 = arith.addf %343, %17 : vector<2x512xf32>
    %345 = arith.negf %344 : vector<2x512xf32>
    %346 = math.exp %345 : vector<2x512xf32>
    %cst_72 = arith.constant 1.000000e+00 : f32
    %347 = vector.broadcast %cst_72 : f32 to vector<2x512xf32>
    %348 = arith.addf %347, %346 : vector<2x512xf32>
    %349 = arith.divf %347, %348 : vector<2x512xf32>
    %350 = vector.extract_strided_slice %349 {offsets = [0, 0], sizes = [2, 128], strides = [1, 1]} : vector<2x512xf32> to vector<2x128xf32>
    %351 = vector.extract_strided_slice %349 {offsets = [0, 128], sizes = [2, 128], strides = [1, 1]} : vector<2x512xf32> to vector<2x128xf32>
    %352 = vector.extract_strided_slice %349 {offsets = [0, 384], sizes = [2, 128], strides = [1, 1]} : vector<2x512xf32> to vector<2x128xf32>
    %353 = vector.extract_strided_slice %344 {offsets = [0, 256], sizes = [2, 128], strides = [1, 1]} : vector<2x512xf32> to vector<2x128xf32>
    %354 = math.tanh %353 : vector<2x128xf32>
    %355 = arith.mulf %351, %301 : vector<2x128xf32>
    %356 = arith.mulf %350, %354 : vector<2x128xf32>
    %357 = arith.addf %355, %356 : vector<2x128xf32>
    %358 = math.tanh %357 : vector<2x128xf32>
    %359 = arith.mulf %352, %358 : vector<2x128xf32>
    %360 = vector.extract_strided_slice %6 {offsets = [12, 0], sizes = [2, 512], strides = [1, 1]} : vector<16x512xf32> to vector<2x512xf32>
    %cst_73 = arith.constant dense<0.000000e+00> : vector<2x512xf32>
    %361 = tpu.matmul %321, %7, %cst_73 {dimension_numbers = #tpu.dot_dimension_numbers<[1], [0], [0], [1], [0, 0, 1, 1], [], []>} : vector<2x128xf32>, vector<128x512xf32>, vector<2x512xf32> -> vector<2x512xf32>
    %362 = arith.addf %360, %361 : vector<2x512xf32>
    %363 = arith.negf %362 : vector<2x512xf32>
    %364 = math.exp %363 : vector<2x512xf32>
    %cst_74 = arith.constant 1.000000e+00 : f32
    %365 = vector.broadcast %cst_74 : f32 to vector<2x512xf32>
    %366 = arith.addf %365, %364 : vector<2x512xf32>
    %367 = arith.divf %365, %366 : vector<2x512xf32>
    %368 = vector.extract_strided_slice %367 {offsets = [0, 0], sizes = [2, 128], strides = [1, 1]} : vector<2x512xf32> to vector<2x128xf32>
    %369 = vector.extract_strided_slice %367 {offsets = [0, 128], sizes = [2, 128], strides = [1, 1]} : vector<2x512xf32> to vector<2x128xf32>
    %370 = vector.extract_strided_slice %367 {offsets = [0, 384], sizes = [2, 128], strides = [1, 1]} : vector<2x512xf32> to vector<2x128xf32>
    %371 = vector.extract_strided_slice %362 {offsets = [0, 256], sizes = [2, 128], strides = [1, 1]} : vector<2x512xf32> to vector<2x128xf32>
    %372 = math.tanh %371 : vector<2x128xf32>
    %373 = arith.mulf %369, %319 : vector<2x128xf32>
    %374 = arith.mulf %368, %372 : vector<2x128xf32>
    %375 = arith.addf %373, %374 : vector<2x128xf32>
    %376 = math.tanh %375 : vector<2x128xf32>
    %377 = arith.mulf %370, %376 : vector<2x128xf32>
    %cst_75 = arith.constant dense<0.000000e+00> : vector<2x512xf32>
    %378 = tpu.matmul %377, %10, %cst_75 {dimension_numbers = #tpu.dot_dimension_numbers<[1], [0], [0], [1], [0, 0, 1, 1], [], []>} : vector<2x128xf32>, vector<128x512xf32>, vector<2x512xf32> -> vector<2x512xf32>
    %cst_76 = arith.constant dense<0.000000e+00> : vector<2x512xf32>
    %379 = tpu.matmul %340, %8, %cst_76 {dimension_numbers = #tpu.dot_dimension_numbers<[1], [0], [0], [1], [0, 0, 1, 1], [], []>} : vector<2x128xf32>, vector<128x512xf32>, vector<2x512xf32> -> vector<2x512xf32>
    %380 = arith.addf %378, %379 : vector<2x512xf32>
    %381 = arith.addf %380, %14 : vector<2x512xf32>
    %382 = arith.negf %381 : vector<2x512xf32>
    %383 = math.exp %382 : vector<2x512xf32>
    %cst_77 = arith.constant 1.000000e+00 : f32
    %384 = vector.broadcast %cst_77 : f32 to vector<2x512xf32>
    %385 = arith.addf %384, %383 : vector<2x512xf32>
    %386 = arith.divf %384, %385 : vector<2x512xf32>
    %387 = vector.extract_strided_slice %386 {offsets = [0, 0], sizes = [2, 128], strides = [1, 1]} : vector<2x512xf32> to vector<2x128xf32>
    %388 = vector.extract_strided_slice %386 {offsets = [0, 128], sizes = [2, 128], strides = [1, 1]} : vector<2x512xf32> to vector<2x128xf32>
    %389 = vector.extract_strided_slice %386 {offsets = [0, 384], sizes = [2, 128], strides = [1, 1]} : vector<2x512xf32> to vector<2x128xf32>
    %390 = vector.extract_strided_slice %381 {offsets = [0, 256], sizes = [2, 128], strides = [1, 1]} : vector<2x512xf32> to vector<2x128xf32>
    %391 = math.tanh %390 : vector<2x128xf32>
    %392 = arith.mulf %388, %338 : vector<2x128xf32>
    %393 = arith.mulf %387, %391 : vector<2x128xf32>
    %394 = arith.addf %392, %393 : vector<2x128xf32>
    %395 = math.tanh %394 : vector<2x128xf32>
    %396 = arith.mulf %389, %395 : vector<2x128xf32>
    %cst_78 = arith.constant dense<0.000000e+00> : vector<2x512xf32>
    %397 = tpu.matmul %396, %11, %cst_78 {dimension_numbers = #tpu.dot_dimension_numbers<[1], [0], [0], [1], [0, 0, 1, 1], [], []>} : vector<2x128xf32>, vector<128x512xf32>, vector<2x512xf32> -> vector<2x512xf32>
    %cst_79 = arith.constant dense<0.000000e+00> : vector<2x512xf32>
    %398 = tpu.matmul %359, %9, %cst_79 {dimension_numbers = #tpu.dot_dimension_numbers<[1], [0], [0], [1], [0, 0, 1, 1], [], []>} : vector<2x128xf32>, vector<128x512xf32>, vector<2x512xf32> -> vector<2x512xf32>
    %399 = arith.addf %397, %398 : vector<2x512xf32>
    %400 = arith.addf %399, %17 : vector<2x512xf32>
    %401 = arith.negf %400 : vector<2x512xf32>
    %402 = math.exp %401 : vector<2x512xf32>
    %cst_80 = arith.constant 1.000000e+00 : f32
    %403 = vector.broadcast %cst_80 : f32 to vector<2x512xf32>
    %404 = arith.addf %403, %402 : vector<2x512xf32>
    %405 = arith.divf %403, %404 : vector<2x512xf32>
    %406 = vector.extract_strided_slice %405 {offsets = [0, 0], sizes = [2, 128], strides = [1, 1]} : vector<2x512xf32> to vector<2x128xf32>
    %407 = vector.extract_strided_slice %405 {offsets = [0, 128], sizes = [2, 128], strides = [1, 1]} : vector<2x512xf32> to vector<2x128xf32>
    %408 = vector.extract_strided_slice %405 {offsets = [0, 384], sizes = [2, 128], strides = [1, 1]} : vector<2x512xf32> to vector<2x128xf32>
    %409 = vector.extract_strided_slice %400 {offsets = [0, 256], sizes = [2, 128], strides = [1, 1]} : vector<2x512xf32> to vector<2x128xf32>
    %410 = math.tanh %409 : vector<2x128xf32>
    %411 = arith.mulf %407, %357 : vector<2x128xf32>
    %412 = arith.mulf %406, %410 : vector<2x128xf32>
    %413 = arith.addf %411, %412 : vector<2x128xf32>
    %414 = math.tanh %413 : vector<2x128xf32>
    %415 = arith.mulf %408, %414 : vector<2x128xf32>
    %416 = vector.extract_strided_slice %6 {offsets = [14, 0], sizes = [2, 512], strides = [1, 1]} : vector<16x512xf32> to vector<2x512xf32>
    %cst_81 = arith.constant dense<0.000000e+00> : vector<2x512xf32>
    %417 = tpu.matmul %377, %7, %cst_81 {dimension_numbers = #tpu.dot_dimension_numbers<[1], [0], [0], [1], [0, 0, 1, 1], [], []>} : vector<2x128xf32>, vector<128x512xf32>, vector<2x512xf32> -> vector<2x512xf32>
    %418 = arith.addf %416, %417 : vector<2x512xf32>
    %419 = arith.negf %418 : vector<2x512xf32>
    %420 = math.exp %419 : vector<2x512xf32>
    %cst_82 = arith.constant 1.000000e+00 : f32
    %421 = vector.broadcast %cst_82 : f32 to vector<2x512xf32>
    %422 = arith.addf %421, %420 : vector<2x512xf32>
    %423 = arith.divf %421, %422 : vector<2x512xf32>
    %424 = vector.extract_strided_slice %423 {offsets = [0, 0], sizes = [2, 128], strides = [1, 1]} : vector<2x512xf32> to vector<2x128xf32>
    %425 = vector.extract_strided_slice %423 {offsets = [0, 128], sizes = [2, 128], strides = [1, 1]} : vector<2x512xf32> to vector<2x128xf32>
    %426 = vector.extract_strided_slice %423 {offsets = [0, 384], sizes = [2, 128], strides = [1, 1]} : vector<2x512xf32> to vector<2x128xf32>
    %427 = vector.extract_strided_slice %418 {offsets = [0, 256], sizes = [2, 128], strides = [1, 1]} : vector<2x512xf32> to vector<2x128xf32>
    %428 = math.tanh %427 : vector<2x128xf32>
    %429 = arith.mulf %425, %375 : vector<2x128xf32>
    %430 = arith.mulf %424, %428 : vector<2x128xf32>
    %431 = arith.addf %429, %430 : vector<2x128xf32>
    %432 = math.tanh %431 : vector<2x128xf32>
    %433 = arith.mulf %426, %432 : vector<2x128xf32>
    %cst_83 = arith.constant dense<0.000000e+00> : vector<2x512xf32>
    %434 = tpu.matmul %433, %10, %cst_83 {dimension_numbers = #tpu.dot_dimension_numbers<[1], [0], [0], [1], [0, 0, 1, 1], [], []>} : vector<2x128xf32>, vector<128x512xf32>, vector<2x512xf32> -> vector<2x512xf32>
    %cst_84 = arith.constant dense<0.000000e+00> : vector<2x512xf32>
    %435 = tpu.matmul %396, %8, %cst_84 {dimension_numbers = #tpu.dot_dimension_numbers<[1], [0], [0], [1], [0, 0, 1, 1], [], []>} : vector<2x128xf32>, vector<128x512xf32>, vector<2x512xf32> -> vector<2x512xf32>
    %436 = arith.addf %434, %435 : vector<2x512xf32>
    %437 = arith.addf %436, %14 : vector<2x512xf32>
    %438 = arith.negf %437 : vector<2x512xf32>
    %439 = math.exp %438 : vector<2x512xf32>
    %cst_85 = arith.constant 1.000000e+00 : f32
    %440 = vector.broadcast %cst_85 : f32 to vector<2x512xf32>
    %441 = arith.addf %440, %439 : vector<2x512xf32>
    %442 = arith.divf %440, %441 : vector<2x512xf32>
    %443 = vector.extract_strided_slice %442 {offsets = [0, 0], sizes = [2, 128], strides = [1, 1]} : vector<2x512xf32> to vector<2x128xf32>
    %444 = vector.extract_strided_slice %442 {offsets = [0, 128], sizes = [2, 128], strides = [1, 1]} : vector<2x512xf32> to vector<2x128xf32>
    %445 = vector.extract_strided_slice %442 {offsets = [0, 384], sizes = [2, 128], strides = [1, 1]} : vector<2x512xf32> to vector<2x128xf32>
    %446 = vector.extract_strided_slice %437 {offsets = [0, 256], sizes = [2, 128], strides = [1, 1]} : vector<2x512xf32> to vector<2x128xf32>
    %447 = math.tanh %446 : vector<2x128xf32>
    %448 = arith.mulf %444, %394 : vector<2x128xf32>
    %449 = arith.mulf %443, %447 : vector<2x128xf32>
    %450 = arith.addf %448, %449 : vector<2x128xf32>
    %451 = math.tanh %450 : vector<2x128xf32>
    %452 = arith.mulf %445, %451 : vector<2x128xf32>
    %cst_86 = arith.constant dense<0.000000e+00> : vector<2x512xf32>
    %453 = tpu.matmul %452, %11, %cst_86 {dimension_numbers = #tpu.dot_dimension_numbers<[1], [0], [0], [1], [0, 0, 1, 1], [], []>} : vector<2x128xf32>, vector<128x512xf32>, vector<2x512xf32> -> vector<2x512xf32>
    %cst_87 = arith.constant dense<0.000000e+00> : vector<2x512xf32>
    %454 = tpu.matmul %415, %9, %cst_87 {dimension_numbers = #tpu.dot_dimension_numbers<[1], [0], [0], [1], [0, 0, 1, 1], [], []>} : vector<2x128xf32>, vector<128x512xf32>, vector<2x512xf32> -> vector<2x512xf32>
    %455 = arith.addf %453, %454 : vector<2x512xf32>
    %456 = arith.addf %455, %17 : vector<2x512xf32>
    %457 = arith.negf %456 : vector<2x512xf32>
    %458 = math.exp %457 : vector<2x512xf32>
    %cst_88 = arith.constant 1.000000e+00 : f32
    %459 = vector.broadcast %cst_88 : f32 to vector<2x512xf32>
    %460 = arith.addf %459, %458 : vector<2x512xf32>
    %461 = arith.divf %459, %460 : vector<2x512xf32>
    %462 = vector.extract_strided_slice %461 {offsets = [0, 0], sizes = [2, 128], strides = [1, 1]} : vector<2x512xf32> to vector<2x128xf32>
    %463 = vector.extract_strided_slice %461 {offsets = [0, 128], sizes = [2, 128], strides = [1, 1]} : vector<2x512xf32> to vector<2x128xf32>
    %464 = vector.extract_strided_slice %461 {offsets = [0, 384], sizes = [2, 128], strides = [1, 1]} : vector<2x512xf32> to vector<2x128xf32>
    %465 = vector.extract_strided_slice %456 {offsets = [0, 256], sizes = [2, 128], strides = [1, 1]} : vector<2x512xf32> to vector<2x128xf32>
    %466 = math.tanh %465 : vector<2x128xf32>
    %467 = arith.mulf %463, %413 : vector<2x128xf32>
    %468 = arith.mulf %462, %466 : vector<2x128xf32>
    %469 = arith.addf %467, %468 : vector<2x128xf32>
    %470 = math.tanh %469 : vector<2x128xf32>
    %471 = arith.mulf %464, %470 : vector<2x128xf32>
    %472 = tpu.concatenate %79, %135, %191, %247, %303, %359, %415, %471 in 0 : vector<2x128xf32>, vector<2x128xf32>, vector<2x128xf32>, vector<2x128xf32>, vector<2x128xf32>, vector<2x128xf32>, vector<2x128xf32>, vector<2x128xf32> -> vector<16x128xf32>
    %c0_89 = arith.constant 0 : index
    %c0_90 = arith.constant 0 : index
    %473 = vector.load %arg10[%c0_89, %c0_90] : memref<128x128xf32, #tpu.memory_space<vmem>>, vector<128x128xf32>
    %cst_91 = arith.constant dense<0.000000e+00> : vector<16x128xf32>
    %474 = tpu.matmul %472, %473, %cst_91 {dimension_numbers = #tpu.dot_dimension_numbers<[1], [0], [0], [1], [0, 0, 1, 1], [], []>} : vector<16x128xf32>, vector<128x128xf32>, vector<16x128xf32> -> vector<16x128xf32>
    %c0_92 = arith.constant 0 : index
    %c0_93 = arith.constant 0 : index
    %475 = vector.load %arg11[%c0_92, %c0_93] : memref<1x128xf32, #tpu.memory_space<vmem>>, vector<1x128xf32>
    %476 = vector.shape_cast %475 : vector<1x128xf32> to vector<1x128xf32>
    %477 = vector.broadcast %476 : vector<1x128xf32> to vector<16x128xf32>
    %478 = arith.addf %474, %477 : vector<16x128xf32>
    %479 = arith.negf %478 : vector<16x128xf32>
    %480 = math.exp %479 : vector<16x128xf32>
    %cst_94 = arith.constant 1.000000e+00 : f32
    %481 = vector.broadcast %cst_94 : f32 to vector<16x128xf32>
    %482 = arith.addf %481, %480 : vector<16x128xf32>
    %483 = arith.divf %481, %482 : vector<16x128xf32>
    %c0_95 = arith.constant 0 : index
    %c0_96 = arith.constant 0 : index
    %484 = vector.load %arg12[%c0_95, %c0_96] : memref<16x128xf32, #tpu.memory_space<vmem>>, vector<16x128xf32>
    tpu.vector_store %arg12[%c0_95, %c0_96], %483 {strides = array<i32>} : memref<16x128xf32, #tpu.memory_space<vmem>>, vector<16x128xf32>,
    return
  }
}

</mosaic_0001>

<bundles_post_ra>
// kernel: tpu_custom_call.1
= control target key start
LH: loop header
LB: loop body
LE: loop exit
PB: predicated region body
PF: predicated region fallthrough
CT: control target
= control target key end

     0   :  { %17 = vsyncpa [#allocation3], 0  ;;  %s13137_s0 = inlined_call_operand.hbm [shape: f32[16,128], index: 0, kind: input, shape index: {}]   ;;  %s13138_s1 = inlined_call_operand.hbm [shape: f32[128,512], index: 1, kind: input, shape index: {}]   ;;  %s13139_s2 = inlined_call_operand.hbm [shape: f32[128,512], index: 2, kind: input, shape index: {}]   ;;  %s13140_s3 = inlined_call_operand.vmem [shape: f32[1,512], index: 3, kind: input, shape index: {}]   ;;  %s13141_s4 = inlined_call_operand.hbm [shape: f32[128,512], index: 4, kind: input, shape index: {}]   ;;  %s13142_s5 = inlined_call_operand.hbm [shape: f32[128,512], index: 5, kind: input, shape index: {}]   ;;  %s13143_s6 = inlined_call_operand.vmem [shape: f32[1,512], index: 6, kind: input, shape index: {}]   ;;  %s13144_s7 = inlined_call_operand.hbm [shape: f32[128,512], index: 7, kind: input, shape index: {}]   ;;  %s13145_s8 = inlined_call_operand.hbm [shape: f32[128,512], index: 8, kind: input, shape index: {}]   ;;  %s13146_s9 = inlined_call_operand.vmem [shape: f32[1,512], index: 9, kind: input, shape index: {}]   ;;  %s13147_s10 = inlined_call_operand.hbm [shape: f32[128,128], index: 10, kind: input, shape index: {}]   ;;  %s13148_s11 = inlined_call_operand.vmem [shape: f32[1,128], index: 11, kind: input, shape index: {}]   ;;  %s13149_s12 = inlined_call_operand.hbm [shape: f32[16,128], index: 12, kind: output, shape index: {}]  }
   0x1   :  { %18 = vsyncpa [#allocation6], 0 }
   0x2   :  { %19 = vsyncpa [#allocation9], 0 }
   0x3   :  { %20 = vsyncpa [#allocation12], 0 }
   0x4   :  { %21 = vsyncpa [#allocation15], 0 }
   0x5   :  { %22 = vsyncpa [#allocation4], 0  ;;  %s10844_s21 = smov [#allocation5]   ;;  %s10634_s25 = scalar_lea.hbm %s13138_s1, 8192 }
   0x6   :  { %s40_s22 = sshll.u32 %s10844_s21, 4  ;;  %p10635_p0 = scmp.ne.s32.totalorder %s13138_s1, %s10634_s25  ;;  %s41_s22 = int_to_ptr.vmem [resolvable:$true] %s40_s22 }
   0x7   :  { %p10638_p1 = scmp.lt.u32.totalorder %s10634_s25, %s13138_s1 }
   0x9   :  { %p10640_p2 = pnand %p10638_p1, %p10635_p0 }
   0xb   :  { %10643 = shalt.err (!%p10640_p2)
}
   0xc   :  { %s10644_s30 = scalar_lea.vmem %s41_s22, 8192  ;;  %p10649_p4 = scmp.lt.s32.totalorder %s41_s22, %s41_s22 }
   0xd   :  { %p10645_p3 = scmp.ne.s32.totalorder %s41_s22, %s10644_s30  ;;  %p10650_p5 = scmp.lt.s32.totalorder %s10644_s30, %s10644_s30 }
   0xf   :  { %p10651_p6 = por %p10650_p5, %p10649_p4 }
  0x11   :  { %p10652_p7 = pnand %p10651_p6, %p10645_p3 }
  0x13   :  { %10655 = shalt.err (!%p10652_p7)
}
  0x14   :  { %s10845_s13 = smov 512   ;;  %s10846_s14 = smov 32  }
  0x15   :  { %46 = dma.hbm_to_vmem [thread:$0]  %s13138_s1, 8192, %s41_s22, [#allocation6], %s10845_s13, %s10845_s13, %s10846_s14  }
  0x16   :  { %s10847_s17 = smov [#allocation8]   ;;  %s10848_s19 = smov [#allocation11]  }
  0x17   :  { %s66_s18 = sshll.u32 %s10847_s17, 4  ;;  %s92_s20 = sshll.u32 %s10848_s19, 4  ;;  %s67_s18 = int_to_ptr.vmem [resolvable:$true] %s66_s18  ;;  %s93_s20 = int_to_ptr.vmem [resolvable:$true] %s92_s20 }
  0x18   :  { %s10656_s24 = scalar_lea.hbm %s13141_s4, 8192 }
  0x19   :  { %p10657_p8 = scmp.ne.s32.totalorder %s13141_s4, %s10656_s24  ;;  %p10660_p9 = scmp.lt.u32.totalorder %s10656_s24, %s13141_s4 }
  0x1b   :  { %p10662_p10 = pnand %p10660_p9, %p10657_p8 }
  0x1d   :  { %10665 = shalt.err (!%p10662_p10)
}
  0x1e   :  { %s10666_s1 = scalar_lea.vmem %s67_s18, 8192  ;;  %p10671_p12 = scmp.lt.s32.totalorder %s67_s18, %s67_s18 }
  0x1f   :  { %p10667_p11 = scmp.ne.s32.totalorder %s67_s18, %s10666_s1  ;;  %p10672_p13 = scmp.lt.s32.totalorder %s10666_s1, %s10666_s1 }
  0x21   :  { %p10673_p0 = por %p10672_p13, %p10671_p12 }
  0x23   :  { %p10674_p1 = pnand %p10673_p0, %p10667_p11 }
  0x25   :  { %10677 = shalt.err (!%p10674_p1)
}
  0x26   :  { %72 = dma.hbm_to_vmem [thread:$0]  %s13141_s4, 8192, %s67_s18, [#allocation9], %s10845_s13, %s10845_s13, %s10846_s14  }
  0x27   :  { %s10678_s16 = scalar_lea.hbm %s13144_s7, 8192 }
  0x28   :  { %p10679_p2 = scmp.ne.s32.totalorder %s13144_s7, %s10678_s16  ;;  %p10682_p3 = scmp.lt.u32.totalorder %s10678_s16, %s13144_s7 }
  0x2a   :  { %p10684_p4 = pnand %p10682_p3, %p10679_p2 }
  0x2c   :  { %10687 = shalt.err (!%p10684_p4)
}
  0x2d   :  { %s10688_s24 = scalar_lea.vmem %s93_s20, 8192  ;;  %p10693_p6 = scmp.lt.s32.totalorder %s93_s20, %s93_s20 }
  0x2e   :  { %p10689_p5 = scmp.ne.s32.totalorder %s93_s20, %s10688_s24  ;;  %p10694_p7 = scmp.lt.s32.totalorder %s10688_s24, %s10688_s24 }
  0x30   :  { %p10695_p8 = por %p10694_p7, %p10693_p6 }
  0x32   :  { %p10696_p9 = pnand %p10695_p8, %p10689_p5 }
  0x34   :  { %10699 = shalt.err (!%p10696_p9)
}
  0x35   :  { %98 = dma.hbm_to_vmem [thread:$0]  %s13144_s7, 8192, %s93_s20, [#allocation12], %s10845_s13, %s10845_s13, %s10846_s14  }
  0x36   :  { %s10849_s25 = smov [#allocation2]   ;;  %s10700_s1 = scalar_lea.hbm %s13137_s0, 256 }
  0x37   :  { %s28_s26 = sshll.u32 %s10849_s25, 4  ;;  %p10701_p10 = scmp.ne.s32.totalorder %s13137_s0, %s10700_s1  ;;  %s29_s26 = int_to_ptr.vmem [resolvable:$true] %s28_s26 }
  0x38   :  { %p10704_p11 = scmp.lt.u32.totalorder %s10700_s1, %s13137_s0 }
  0x3a   :  { %p10706_p12 = pnand %p10704_p11, %p10701_p10 }
  0x3c   :  { %10709 = shalt.err (!%p10706_p12)
}
  0x3d   :  { %s10710_s16 = scalar_lea.vmem %s29_s26, 256  ;;  %p10715_p0 = scmp.lt.s32.totalorder %s29_s26, %s29_s26 }
  0x3e   :  { %p10711_p13 = scmp.ne.s32.totalorder %s29_s26, %s10710_s16  ;;  %p10716_p1 = scmp.lt.s32.totalorder %s10710_s16, %s10710_s16 }
  0x40   :  { %p10717_p2 = por %p10716_p1, %p10715_p0 }
  0x42   :  { %p10718_p3 = pnand %p10717_p2, %p10711_p13 }
  0x44   :  { %10721 = shalt.err (!%p10718_p3)
}
  0x45   :  { %s10850_s7 = smov 128   ;;  %s10851_s20 = smov 8  }
  0x46   :  { %34 = dma.hbm_to_vmem [thread:$0]  %s13137_s0, 256, %s29_s26, [#allocation3], %s10850_s7, %s10850_s7, %s10851_s20  }
  0x47   :  { %s10852_s21 = smov [#allocation7]   ;;  %s10853_s24 = smov [#allocation10]  }
  0x48   :  { %s52_s23 = sshll.u32 %s10852_s21, 4  ;;  %s78_s4 = sshll.u32 %s10853_s24, 4  ;;  %s53_s23 = int_to_ptr.vmem [resolvable:$true] %s52_s23  ;;  %s10983_s4 = int_to_ptr.vmem [resolvable:$true] %s78_s4 }
  0x49   :  { %s10722_s27 = scalar_lea.hbm %s13139_s2, 8192 }
  0x4a   :  { %p10723_p4 = scmp.ne.s32.totalorder %s13139_s2, %s10722_s27  ;;  %p10726_p5 = scmp.lt.u32.totalorder %s10722_s27, %s13139_s2 }
  0x4c   :  { %p10728_p6 = pnand %p10726_p5, %p10723_p4 }
  0x4e   :  { %10731 = shalt.err (!%p10728_p6)
}
  0x4f   :  { %s10732_s0 = scalar_lea.vmem %s53_s23, 8192  ;;  %p10737_p8 = scmp.lt.s32.totalorder %s53_s23, %s53_s23 }
  0x50   :  { %p10733_p7 = scmp.ne.s32.totalorder %s53_s23, %s10732_s0  ;;  %p10738_p9 = scmp.lt.s32.totalorder %s10732_s0, %s10732_s0 }
  0x52   :  { %p10739_p10 = por %p10738_p9, %p10737_p8 }
  0x54   :  { %p10740_p11 = pnand %p10739_p10, %p10733_p7 }
  0x56   :  { %10743 = shalt.err (!%p10740_p11)
}
  0x57   :  { %58 = dma.hbm_to_vmem [thread:$0]  %s13139_s2, 8192, %s53_s23, [#allocation6], %s10845_s13, %s10845_s13, %s10846_s14  }
  0x58   :  { %s10744_s17 = scalar_lea.hbm %s13142_s5, 8192 }
  0x59   :  { %p10745_p12 = scmp.ne.s32.totalorder %s13142_s5, %s10744_s17  ;;  %p10748_p13 = scmp.lt.u32.totalorder %s10744_s17, %s13142_s5 }
  0x5b   :  { %p10750_p0 = pnand %p10748_p13, %p10745_p12 }
  0x5d   :  { %10753 = shalt.err (!%p10750_p0)
}
  0x5e   :  { %s10754_s25 = scalar_lea.vmem %s10983_s4, 8192  ;;  %p10759_p2 = scmp.lt.s32.totalorder %s10983_s4, %s10983_s4 }
  0x5f   :  { %p10755_p1 = scmp.ne.s32.totalorder %s10983_s4, %s10754_s25  ;;  %p10760_p3 = scmp.lt.s32.totalorder %s10754_s25, %s10754_s25 }
  0x61   :  { %p10761_p4 = por %p10760_p3, %p10759_p2 }
  0x63   :  { %p10762_p5 = pnand %p10761_p4, %p10755_p1 }
  0x65   :  { %10765 = shalt.err (!%p10762_p5)
}
  0x66   :  { %84 = dma.hbm_to_vmem [thread:$0]  %s13142_s5, 8192, %s10983_s4, [#allocation9], %s10845_s13, %s10845_s13, %s10846_s14  }
  0x67   :  { %s10854_s27 = smov [#allocation13]   ;;  %s10855_s1 = smov [#allocation14]  }
  0x68   :  { %s104_s28 = sshll.u32 %s10854_s27, 4  ;;  %s118_s22 = sshll.u32 %s10855_s1, 4  ;;  %s105_s28 = int_to_ptr.vmem [resolvable:$true] %s104_s28  ;;  %s11020_s22 = int_to_ptr.vmem [resolvable:$true] %s118_s22 }
  0x69   :  { %s10766_s26 = scalar_lea.hbm %s13145_s8, 8192 }
  0x6a   :  { %p10767_p6 = scmp.ne.s32.totalorder %s13145_s8, %s10766_s26  ;;  %p10770_p7 = scmp.lt.u32.totalorder %s10766_s26, %s13145_s8 }
  0x6c   :  { %p10772_p8 = pnand %p10770_p7, %p10767_p6 }
  0x6e   :  { %10775 = shalt.err (!%p10772_p8)
}
  0x6f   :  { %s10776_s5 = scalar_lea.vmem %s105_s28, 8192  ;;  %p10781_p10 = scmp.lt.s32.totalorder %s105_s28, %s105_s28 }
  0x70   :  { %p10777_p9 = scmp.ne.s32.totalorder %s105_s28, %s10776_s5  ;;  %p10782_p11 = scmp.lt.s32.totalorder %s10776_s5, %s10776_s5 }
  0x72   :  { %p10783_p12 = por %p10782_p11, %p10781_p10 }
  0x74   :  { %p10784_p13 = pnand %p10783_p12, %p10777_p9 }
  0x76   :  { %10787 = shalt.err (!%p10784_p13)
}
  0x77   :  { %110 = dma.hbm_to_vmem [thread:$0]  %s13145_s8, 8192, %s105_s28, [#allocation12], %s10845_s13, %s10845_s13, %s10846_s14  }
  0x78   :  { %s10788_s18 = scalar_lea.hbm %s13147_s10, 2048 }
  0x79   :  { %p10789_p0 = scmp.ne.s32.totalorder %s13147_s10, %s10788_s18  ;;  %p10792_p1 = scmp.lt.u32.totalorder %s10788_s18, %s13147_s10 }
  0x7b   :  { %p10794_p2 = pnand %p10792_p1, %p10789_p0 }
  0x7d   :  { %10797 = shalt.err (!%p10794_p2)
}
  0x7e   :  { %s10798_s1 = scalar_lea.vmem %s11020_s22, 2048  ;;  %p10803_p4 = scmp.lt.s32.totalorder %s11020_s22, %s11020_s22 }
  0x7f   :  { %p10799_p3 = scmp.ne.s32.totalorder %s11020_s22, %s10798_s1  ;;  %p10804_p5 = scmp.lt.s32.totalorder %s10798_s1, %s10798_s1 }
  0x81   :  { %p10805_p6 = por %p10804_p5, %p10803_p4 }
  0x83   :  { %p10806_p7 = pnand %p10805_p6, %p10799_p3 }
  0x85   :  { %10809 = shalt.err (!%p10806_p7)
}
  0x86   :  { %124 = dma.hbm_to_vmem [thread:$0]  %s13147_s10, 2048, %s11020_s22, [#allocation15], %s10850_s7, %s10850_s7, %s10851_s20  }
  0x87   :  { %10832 = dma.done.wait [#allocation3], 256  }
  0x88   :  { %10833 = vsyncadd [#allocation3], 4294967040 }
  0x89   :  { %10834 = dma.done.wait [#allocation6], 16384  }
  0x8a   :  { %10835 = vsyncadd [#allocation6], 4294950912 }
  0x8b   :  { %10836 = dma.done.wait [#allocation9], 16384  }
  0x8c   :  { %10837 = vsyncadd [#allocation9], 4294950912 }
  0x8d   :  { %10838 = dma.done.wait [#allocation12], 16384  }
  0x8e   :  { %10839 = vsyncadd [#allocation12], 4294950912 }
  0x8f   :  { %10840 = dma.done.wait [#allocation15], 2048  }
  0x90   :  { %10841 = vsyncadd [#allocation15], 4294965248  ;;  %v13150_v0 = vmov 0.0   ;;  %v154_v1 = vld [vmem:[#allocation5 + $0x8] sm:$0xff]  ;;  %v156_v3 = vld [vmem:[#allocation5 + $0x18] sm:$0xff]  ;;  %vm7238_vm0 = vcmask 1041408  }
  0x91   :  { %303 = vmatprep.mubr.f32.mxu0 %v13150_v0  ;;  %380 = vmatprep.mubr.f32.mxu1 %v13150_v0  ;;  %v158_v2 = vld [vmem:[#allocation5 + $0x28] sm:$0xff]  ;;  %v160_v5 = vld [vmem:[#allocation5 + $0x38] sm:$0xff]  ;;  %v153_v6 = vld [vmem:[#allocation5] sm:$0xff]  ;;  %vm7240_vm1 = vcmask 1043456   ;;  %vm7242_vm2 = vcmask 1045504   ;;  %s10857_s0 = smov [#allocation16]  }
  0x92   :  { %v7508_v4 = vpack.c.bf16 %v158_v2, %v154_v1  ;;  %v157_v7 = vld [vmem:[#allocation5 + $0x20] sm:$0xff]  ;;  %v7540_v8 = vpack.c.bf16 %v160_v5, %v156_v3  ;;  %v155_v10 = vld [vmem:[#allocation5 + $0x10] sm:$0xff]  ;;  %v162_v12 = vld [vmem:[#allocation5 + $0x48] sm:$0xff]  ;;  %s7364_s26 = sshll.u32 %s10857_s0, 4  ;;  %s7365_s26 = int_to_ptr.vmem [resolvable:$true] %s7364_s26 }
  0x93   :  { %v7510_v9 = vpack.c.bf16 %v157_v7, %v153_v6  ;;  %v159_v11 = vld [vmem:[#allocation5 + $0x30] sm:$0xff]  ;;  %v166_v14 = vld [vmem:[#allocation5 + $0x68] sm:$0xff]  ;;  %v164_v15 = vld [vmem:[#allocation5 + $0x58] sm:$0xff]  ;;  %p10815_p9 = scmp.lt.s32.totalorder %s7365_s26, %s7365_s26 }
  0x94   :  { %7509 = vmatprep.subr.bf16.mxu0 %v7508_v4  ;;  %v7542_v13 = vpack.c.bf16 %v159_v11, %v155_v10  ;;  %v168_v16 = vld [vmem:[#allocation5 + $0x78] sm:$0xff]  ;;  %7541 = vmatprep.subr.bf16.mxu1 %v7540_v8  ;;  %v7512_v17 = vpack.c.bf16 %v166_v14, %v162_v12  ;;  %v161_v19 = vld [vmem:[#allocation5 + $0x40] sm:$0xff]  ;;  %v163_v21 = vld [vmem:[#allocation5 + $0x50] sm:$0xff] }
  0x95   :  { %7511 = vmatpush1.bf16.msra.mxu0 %v7510_v9  ;;  %v7544_v18 = vpack.c.bf16 %v168_v16, %v164_v15  ;;  %v165_v20 = vld [vmem:[#allocation5 + $0x60] sm:$0xff]  ;;  %v167_v23 = vld [vmem:[#allocation5 + $0x70] sm:$0xff]  ;;  %v170_v24 = vld [vmem:[#allocation5 + $0x88] sm:$0xff] }
  0x96   :  { %7543 = vmatpush1.bf16.msra.mxu1 %v7542_v13  ;;  %v7514_v22 = vpack.c.bf16 %v165_v20, %v161_v19  ;;  %v174_v25 = vld [vmem:[#allocation5 + $0xa8] sm:$0xff]  ;;  %7513 = vmatprep.subr.bf16.mxu0 %v7512_v17  ;;  %v7546_v26 = vpack.c.bf16 %v167_v23, %v163_v21  ;;  %v172_v28 = vld [vmem:[#allocation5 + $0x98] sm:$0xff]  ;;  %v169_v30 = vld [vmem:[#allocation5 + $0x80] sm:$0xff] }
  0x97   :  { %7545 = vmatprep.subr.bf16.mxu1 %v7544_v18  ;;  %v7516_v27 = vpack.c.bf16 %v174_v25, %v170_v24  ;;  %v176_v29 = vld [vmem:[#allocation5 + $0xb8] sm:$0xff]  ;;  %v173_v32 = vld [vmem:[#allocation5 + $0xa0] sm:$0xff]  ;;  %v171_v33 = vld [vmem:[#allocation5 + $0x90] sm:$0xff] }
  0x98   :  { %v7548_v31 = vpack.c.bf16 %v176_v29, %v172_v28  ;;  %v175_v34 = vld [vmem:[#allocation5 + $0xb0] sm:$0xff]  ;;  %v7518_v35 = vpack.c.bf16 %v173_v32, %v169_v30  ;;  %v178_v36 = vld [vmem:[#allocation5 + $0xc8] sm:$0xff]  ;;  %v180_v38 = vld [vmem:[#allocation5 + $0xd8] sm:$0xff] }
  0x99   :  { %7515 = vmatpush1.bf16.msra.mxu0 %v7514_v22  ;;  %v182_v37 = vld [vmem:[#allocation5 + $0xe8] sm:$0xff]  ;;  %v7550_v39 = vpack.c.bf16 %v175_v34, %v171_v33  ;;  %v184_v41 = vld [vmem:[#allocation5 + $0xf8] sm:$0xff]  ;;  %v177_v42 = vld [vmem:[#allocation5 + $0xc0] sm:$0xff] }
  0x9a   :  { %7547 = vmatpush1.bf16.msra.mxu1 %v7546_v26  ;;  %7517 = vmatprep.subr.bf16.mxu0 %v7516_v27  ;;  %v7520_v40 = vpack.c.bf16 %v182_v37, %v178_v36  ;;  %v181_v43 = vld [vmem:[#allocation5 + $0xe0] sm:$0xff]  ;;  %v7552_v44 = vpack.c.bf16 %v184_v41, %v180_v38  ;;  %v179_v45 = vld [vmem:[#allocation5 + $0xd0] sm:$0xff]  ;;  %v186_v47 = vld [vmem:[#allocation5 + $0x108] sm:$0xff] }
  0x9b   :  { %7549 = vmatprep.subr.bf16.mxu1 %v7548_v31  ;;  %v183_v46 = vld [vmem:[#allocation5 + $0xf0] sm:$0xff]  ;;  %v190_v48 = vld [vmem:[#allocation5 + $0x128] sm:$0xff]  ;;  %v188_v49 = vld [vmem:[#allocation5 + $0x118] sm:$0xff]  ;;  %v7522_v51 = vpack.c.bf16 %v181_v43, %v177_v42 }
  0x9c   :  { %v192_v50 = vld [vmem:[#allocation5 + $0x138] sm:$0xff]  ;;  %v7554_v52 = vpack.c.bf16 %v183_v46, %v179_v45  ;;  %v7524_v53 = vpack.c.bf16 %v190_v48, %v186_v47  ;;  %v185_v54 = vld [vmem:[#allocation5 + $0x100] sm:$0xff]  ;;  %v187_v56 = vld [vmem:[#allocation5 + $0x110] sm:$0xff] }
  0x9d   :  { %7519 = vmatpush1.bf16.msra.mxu0 %v7518_v35  ;;  %v189_v55 = vld [vmem:[#allocation5 + $0x120] sm:$0xff]  ;;  %v7556_v57 = vpack.c.bf16 %v192_v50, %v188_v49  ;;  %v191_v58 = vld [vmem:[#allocation5 + $0x130] sm:$0xff]  ;;  %v194_v59 = vld [vmem:[#allocation5 + $0x148] sm:$0xff] }
  0x9e   :  { %7551 = vmatpush1.bf16.msra.mxu1 %v7550_v39  ;;  %7521 = vmatprep.subr.bf16.mxu0 %v7520_v40  ;;  %v198_v60 = vld [vmem:[#allocation5 + $0x168] sm:$0xff]  ;;  %v196_v61 = vld [vmem:[#allocation5 + $0x158] sm:$0xff]  ;;  %v7526_v63 = vpack.c.bf16 %v189_v55, %v185_v54  ;;  %v7558_v1 = vpack.c.bf16 %v191_v58, %v187_v56  ;;  %v193_v3 = vld [vmem:[#allocation5 + $0x140] sm:$0xff] }
  0x9f   :  { %7553 = vmatprep.subr.bf16.mxu1 %v7552_v44  ;;  %v200_v62 = vld [vmem:[#allocation5 + $0x178] sm:$0xff]  ;;  %v7528_v2 = vpack.c.bf16 %v198_v60, %v194_v59  ;;  %v197_v4 = vld [vmem:[#allocation5 + $0x160] sm:$0xff]  ;;  %v195_v5 = vld [vmem:[#allocation5 + $0x150] sm:$0xff] }
  0xa0   :  { %v7560_v6 = vpack.c.bf16 %v200_v62, %v196_v61  ;;  %v199_v7 = vld [vmem:[#allocation5 + $0x170] sm:$0xff]  ;;  %v202_v8 = vld [vmem:[#allocation5 + $0x188] sm:$0xff]  ;;  %v204_v10 = vld [vmem:[#allocation5 + $0x198] sm:$0xff]  ;;  %v7530_v12 = vpack.c.bf16 %v197_v4, %v193_v3 }
  0xa1   :  { %7523 = vmatpush1.bf16.msra.mxu0 %v7522_v51  ;;  %v206_v9 = vld [vmem:[#allocation5 + $0x1a8] sm:$0xff]  ;;  %v208_v11 = vld [vmem:[#allocation5 + $0x1b8] sm:$0xff]  ;;  %v7562_v13 = vpack.c.bf16 %v199_v7, %v195_v5  ;;  %v201_v15 = vld [vmem:[#allocation5 + $0x180] sm:$0xff] }
  0xa2   :  { %7555 = vmatpush1.bf16.msra.mxu1 %v7554_v52  ;;  %7525 = vmatprep.subr.bf16.mxu0 %v7524_v53  ;;  %v7532_v14 = vpack.c.bf16 %v206_v9, %v202_v8  ;;  %v205_v16 = vld [vmem:[#allocation5 + $0x1a0] sm:$0xff]  ;;  %v203_v17 = vld [vmem:[#allocation5 + $0x190] sm:$0xff]  ;;  %v7564_v18 = vpack.c.bf16 %v208_v11, %v204_v10  ;;  %v210_v20 = vld [vmem:[#allocation5 + $0x1c8] sm:$0xff] }
  0xa3   :  { %7557 = vmatprep.subr.bf16.mxu1 %v7556_v57  ;;  %v207_v19 = vld [vmem:[#allocation5 + $0x1b0] sm:$0xff]  ;;  %v214_v21 = vld [vmem:[#allocation5 + $0x1e8] sm:$0xff]  ;;  %v212_v22 = vld [vmem:[#allocation5 + $0x1d8] sm:$0xff]  ;;  %v7534_v24 = vpack.c.bf16 %v205_v16, %v201_v15 }
  0xa4   :  { %v216_v23 = vld [vmem:[#allocation5 + $0x1f8] sm:$0xff]  ;;  %v7566_v25 = vpack.c.bf16 %v207_v19, %v203_v17  ;;  %v7536_v26 = vpack.c.bf16 %v214_v21, %v210_v20  ;;  %v209_v27 = vld [vmem:[#allocation5 + $0x1c0] sm:$0xff]  ;;  %v211_v29 = vld [vmem:[#allocation5 + $0x1d0] sm:$0xff] }
  0xa5   :  { %7527 = vmatpush1.bf16.msra.mxu0 %v7526_v63  ;;  %v213_v28 = vld [vmem:[#allocation5 + $0x1e0] sm:$0xff]  ;;  %v7568_v30 = vpack.c.bf16 %v216_v23, %v212_v22  ;;  %v215_v31 = vld [vmem:[#allocation5 + $0x1f0] sm:$0xff]  ;;  %v394_v32 = vld [vmem:[#allocation7 + $0x8] sm:$0xff] }
  0xa6   :  { %7559 = vmatpush1.bf16.msra.mxu1 %v7558_v1  ;;  %7529 = vmatprep.subr.bf16.mxu0 %v7528_v2  ;;  %v398_v33 = vld [vmem:[#allocation7 + $0x28] sm:$0xff]  ;;  %v396_v34 = vld [vmem:[#allocation7 + $0x18] sm:$0xff]  ;;  %v7538_v36 = vpack.c.bf16 %v213_v28, %v209_v27  ;;  %v7570_v37 = vpack.c.bf16 %v215_v31, %v211_v29  ;;  %v393_v39 = vld [vmem:[#allocation7] sm:$0xff] }
  0xa7   :  { %7561 = vmatprep.subr.bf16.mxu1 %v7560_v6  ;;  %v400_v35 = vld [vmem:[#allocation7 + $0x38] sm:$0xff]  ;;  %v11059_v38 = vpack.c.bf16 %v398_v33, %v394_v32  ;;  %v397_v40 = vld [vmem:[#allocation7 + $0x20] sm:$0xff]  ;;  %v395_v41 = vld [vmem:[#allocation7 + $0x10] sm:$0xff] }
  0xa8   :  { %v11061_v42 = vpack.c.bf16 %v400_v35, %v396_v34  ;;  %v399_v43 = vld [vmem:[#allocation7 + $0x30] sm:$0xff]  ;;  %v402_v44 = vld [vmem:[#allocation7 + $0x48] sm:$0xff]  ;;  %v404_v46 = vld [vmem:[#allocation7 + $0x58] sm:$0xff]  ;;  %v11063_v49 = vpack.c.bf16 %v397_v40, %v393_v39 }
  0xa9   :  { %7531 = vmatpush1.bf16.msra.mxu0 %v7530_v12  ;;  %13462 = vst [vmem:[#allocation23_spill] sm:$0xff] %v11059_v38  ;;  %v406_v45 = vld [vmem:[#allocation7 + $0x68] sm:$0xff]  ;;  %v408_v47 = vld [vmem:[#allocation7 + $0x78] sm:$0xff]  ;;  %v151_v48 = vld [vmem:[#allocation2] sm:$0xff]  ;;  %v11066_v50 = vpack.c.bf16 %v399_v43, %v395_v41 }
  0xaa   :  { %7563 = vmatpush1.bf16.msra.mxu1 %v7562_v13  ;;  %7533 = vmatprep.subr.bf16.mxu0 %v7532_v14  ;;  %13463 = vst [vmem:[#allocation24_spill] sm:$0xff] %v11061_v42  ;;  %v11068_v51 = vpack.c.bf16 %v406_v45, %v402_v44  ;;  %v401_v52 = vld [vmem:[#allocation7 + $0x40] sm:$0xff]  ;;  %v403_v54 = vld [vmem:[#allocation7 + $0x50] sm:$0xff]  ;;  %v11071_v55 = vpack.c.bf16 %v408_v47, %v404_v46  ;;  %v410_v57 = vld [vmem:[#allocation7 + $0x88] sm:$0xff] }
  0xab   :  { %7565 = vmatprep.subr.bf16.mxu1 %v7564_v18  ;;  %v405_v53 = vld [vmem:[#allocation7 + $0x60] sm:$0xff]  ;;  %v407_v56 = vld [vmem:[#allocation7 + $0x70] sm:$0xff]  ;;  %v414_v58 = vld [vmem:[#allocation7 + $0xa8] sm:$0xff] }
  0xac   :  { %v412_v59 = vld [vmem:[#allocation7 + $0x98] sm:$0xff]  ;;  %v11074_v61 = vpack.c.bf16 %v405_v53, %v401_v52  ;;  %v11078_v62 = vpack.c.bf16 %v407_v56, %v403_v54  ;;  %v11080_v63 = vpack.c.bf16 %v414_v58, %v410_v57  ;;  %v409_v1 = vld [vmem:[#allocation7 + $0x80] sm:$0xff]  ;;  %v411_v3 = vld [vmem:[#allocation7 + $0x90] sm:$0xff] }
  0xad   :  { %7535 = vmatpush1.bf16.msra.mxu0 %v7534_v24  ;;  %v416_v60 = vld [vmem:[#allocation7 + $0xb8] sm:$0xff]  ;;  %v413_v2 = vld [vmem:[#allocation7 + $0xa0] sm:$0xff]  ;;  %v415_v5 = vld [vmem:[#allocation7 + $0xb0] sm:$0xff] }
  0xae   :  { %7567 = vmatpush1.bf16.msra.mxu1 %v7566_v25  ;;  %7537 = vmatprep.subr.bf16.mxu0 %v7536_v26  ;;  %v11083_v4 = vpack.c.bf16 %v416_v60, %v412_v59  ;;  %v418_v6 = vld [vmem:[#allocation7 + $0xc8] sm:$0xff]  ;;  %v420_v8 = vld [vmem:[#allocation7 + $0xd8] sm:$0xff]  ;;  %v11088_v10 = vpack.c.bf16 %v413_v2, %v409_v1  ;;  %v11092_v12 = vpack.c.bf16 %v415_v5, %v411_v3  ;;  %v417_v14 = vld [vmem:[#allocation7 + $0xc0] sm:$0xff] }
  0xaf   :  { %7569 = vmatprep.subr.bf16.mxu1 %v7568_v30  ;;  %v422_v7 = vld [vmem:[#allocation7 + $0xe8] sm:$0xff]  ;;  %v424_v9 = vld [vmem:[#allocation7 + $0xf8] sm:$0xff]  ;;  %v421_v15 = vld [vmem:[#allocation7 + $0xe0] sm:$0xff] }
  0xb0   :  { %v152_v11 = vld [vmem:[#allocation2 + $0x8] sm:$0xff]  ;;  %v11094_v13 = vpack.c.bf16 %v422_v7, %v418_v6  ;;  %v419_v16 = vld [vmem:[#allocation7 + $0xd0] sm:$0xff]  ;;  %v11097_v17 = vpack.c.bf16 %v424_v9, %v420_v8  ;;  %v426_v19 = vld [vmem:[#allocation7 + $0x108] sm:$0xff]  ;;  %v11101_v23 = vpack.c.bf16 %v421_v15, %v417_v14 }
  0xb1   :  { %7539 = vmatpush1.bf16.msra.mxu0 %v7538_v36  ;;  %v423_v18 = vld [vmem:[#allocation7 + $0xf0] sm:$0xff]  ;;  %v430_v20 = vld [vmem:[#allocation7 + $0x128] sm:$0xff]  ;;  %v428_v21 = vld [vmem:[#allocation7 + $0x118] sm:$0xff] }
  0xb2   :  { %7571 = vmatpush1.bf16.msra.mxu1 %v7570_v37  ;;  %7573 = vmatprep.subr.bf16.mxu0 %v11059_v38  ;;  %v432_v22 = vld [vmem:[#allocation7 + $0x138] sm:$0xff]  ;;  %v11106_v24 = vpack.c.bf16 %v423_v18, %v419_v16  ;;  %v11108_v25 = vpack.c.bf16 %v430_v20, %v426_v19  ;;  %v425_v26 = vld [vmem:[#allocation7 + $0x100] sm:$0xff]  ;;  %v427_v28 = vld [vmem:[#allocation7 + $0x110] sm:$0xff] }
  0xb3   :  { %7605 = vmatprep.subr.bf16.mxu1 %v11061_v42  ;;  %v429_v27 = vld [vmem:[#allocation7 + $0x120] sm:$0xff]  ;;  %v11111_v29 = vpack.c.bf16 %v432_v22, %v428_v21  ;;  %v431_v30 = vld [vmem:[#allocation7 + $0x130] sm:$0xff]  ;;  %v434_v31 = vld [vmem:[#allocation7 + $0x148] sm:$0xff] }
  0xb4   :  { %304 = vmatmul.mubr.f32.vlgmr.msra.gmra.mrb[0].mxu0 %v151_v48  ;;  %v438_v32 = vld [vmem:[#allocation7 + $0x168] sm:$0xff]  ;;  %v436_v33 = vld [vmem:[#allocation7 + $0x158] sm:$0xff]  ;;  %v11114_v35 = vpack.c.bf16 %v429_v27, %v425_v26  ;;  %v11118_v36 = vpack.c.bf16 %v431_v30, %v427_v28  ;;  %v433_v39 = vld [vmem:[#allocation7 + $0x140] sm:$0xff] }
  0xb5   :  { %381 = vmatmul.mubr.f32.vlgmr.msra.gmra.mrb[0].mxu1 %v151_v48  ;;  %7575 = vmatpush1.bf16.msra.mxu0 %v11063_v49  ;;  %v440_v34 = vld [vmem:[#allocation7 + $0x178] sm:$0xff]  ;;  %v11120_v37 = vpack.c.bf16 %v438_v32, %v434_v31  ;;  %v437_v40 = vld [vmem:[#allocation7 + $0x160] sm:$0xff]  ;;  %v435_v41 = vld [vmem:[#allocation7 + $0x150] sm:$0xff] }
  0xb6   :  { %7607 = vmatpush1.bf16.msra.mxu1 %v11066_v50  ;;  %7577 = vmatprep.subr.bf16.mxu0 %v11068_v51  ;;  %v11123_v43 = vpack.c.bf16 %v440_v34, %v436_v33  ;;  %v439_v44 = vld [vmem:[#allocation7 + $0x170] sm:$0xff]  ;;  %v442_v45 = vld [vmem:[#allocation7 + $0x188] sm:$0xff]  ;;  %v444_v47 = vld [vmem:[#allocation7 + $0x198] sm:$0xff]  ;;  %v11126_v52 = vpack.c.bf16 %v437_v40, %v433_v39 }
  0xb7   :  { %7609 = vmatprep.subr.bf16.mxu1 %v11071_v55  ;;  %309 = vmatprep.mubr.f32.mxu0 %v13150_v0  ;;  %v446_v46 = vld [vmem:[#allocation7 + $0x1a8] sm:$0xff]  ;;  %v448_v48 = vld [vmem:[#allocation7 + $0x1b8] sm:$0xff]  ;;  %v11130_v53 = vpack.c.bf16 %v439_v44, %v435_v41  ;;  %v441_v56 = vld [vmem:[#allocation7 + $0x180] sm:$0xff] }
  0xb8   :  { %386 = vmatprep.mubr.f32.mxu1 %v13150_v0  ;;  %310 = vmatmul.mubr.f32.gmra.mrb[2].mxu0 %v152_v11  ;;  %13464 = vst [vmem:[#allocation25_spill] sm:$0xff] %v11126_v52  ;;  %v11132_v54 = vpack.c.bf16 %v446_v46, %v442_v45  ;;  %v445_v57 = vld [vmem:[#allocation7 + $0x1a0] sm:$0xff]  ;;  %v443_v58 = vld [vmem:[#allocation7 + $0x190] sm:$0xff]  ;;  %v11135_v59 = vpack.c.bf16 %v448_v48, %v444_v47  ;;  %v450_v1 = vld [vmem:[#allocation7 + $0x1c8] sm:$0xff] }
  0xb9   :  { %7579 = vmatpush1.bf16.msra.mxu0 %v11074_v61  ;;  %387 = vmatmul.mubr.f32.gmra.mrb[2].mxu1 %v152_v11  ;;  %13465 = vst [vmem:[#allocation26_spill] sm:$0xff] %v11130_v53  ;;  %v447_v60 = vld [vmem:[#allocation7 + $0x1b0] sm:$0xff]  ;;  %v454_v2 = vld [vmem:[#allocation7 + $0x1e8] sm:$0xff]  ;;  %v452_v3 = vld [vmem:[#allocation7 + $0x1d8] sm:$0xff]  ;;  %v11138_v6 = vpack.c.bf16 %v445_v57, %v441_v56 }
  0xba   :  { %7611 = vmatpush1.bf16.msra.mxu1 %v11078_v62  ;;  %7581 = vmatprep.subr.bf16.mxu0 %v11080_v63  ;;  %13466 = vst [vmem:[#allocation27_spill] sm:$0xff] %v11132_v54  ;;  %13467 = vst [vmem:[#allocation28_spill] sm:$0xff] %v11135_v59  ;;  %v456_v5 = vld [vmem:[#allocation7 + $0x1f8] sm:$0xff]  ;;  %v11142_v7 = vpack.c.bf16 %v447_v60, %v443_v58  ;;  %v11144_v8 = vpack.c.bf16 %v454_v2, %v450_v1  ;;  %v449_v9 = vld [vmem:[#allocation7 + $0x1c0] sm:$0xff] }
  0xbb   :  { %7613 = vmatprep.subr.bf16.mxu1 %v11083_v4  ;;  %821 = vmatprep.mubr.f32.mxu0 %v13150_v0  ;;  %13468 = vst [vmem:[#allocation29_spill] sm:$0xff] %v11138_v6  ;;  %v453_v11 = vld [vmem:[#allocation7 + $0x1e0] sm:$0xff]  ;;  %v11147_v14 = vpack.c.bf16 %v456_v5, %v452_v3  ;;  %v451_v15 = vld [vmem:[#allocation7 + $0x1d0] sm:$0xff]  ;;  %v458_v20 = vld [vmem:[#allocation10 + $0x8] sm:$0xff] }
  0xbc   :  { %892 = vmatprep.mubr.f32.mxu1 %v13150_v0  ;;  %13469 = vst [vmem:[#allocation30_spill] sm:$0xff] %v11142_v7  ;;  %13470 = vst [vmem:[#allocation31_spill] sm:$0xff] %v11144_v8  ;;  %v455_v16 = vld [vmem:[#allocation7 + $0x1f0] sm:$0xff]  ;;  %v11150_v18 = vpack.c.bf16 %v453_v11, %v449_v9  ;;  %v462_v21 = vld [vmem:[#allocation10 + $0x28] sm:$0xff] }
  0xbd   :  { %7583 = vmatpush1.bf16.msra.mxu0 %v11088_v10  ;;  %13471 = vst [vmem:[#allocation32_spill] sm:$0xff] %v11147_v14  ;;  %v11154_v19 = vpack.c.bf16 %v455_v16, %v451_v15  ;;  %v460_v22 = vld [vmem:[#allocation10 + $0x18] sm:$0xff]  ;;  %v11163_v26 = vpack.c.bf16 %v462_v21, %v458_v20  ;;  %v457_v28 = vld [vmem:[#allocation10] sm:$0xff]  ;;  %v459_v33 = vld [vmem:[#allocation10 + $0x10] sm:$0xff] }
  0xbe   :  { %7615 = vmatpush1.bf16.msra.mxu1 %v11092_v12  ;;  %7585 = vmatprep.subr.bf16.mxu0 %v11094_v13  ;;  %13472 = vst [vmem:[#allocation33_spill] sm:$0xff] %v11150_v18  ;;  %v464_v27 = vld [vmem:[#allocation10 + $0x38] sm:$0xff]  ;;  %v461_v30 = vld [vmem:[#allocation10 + $0x20] sm:$0xff]  ;;  %v463_v34 = vld [vmem:[#allocation10 + $0x30] sm:$0xff] }
  0xbf   :  { %7617 = vmatprep.subr.bf16.mxu1 %v11097_v17  ;;  %13473 = vst [vmem:[#allocation34_spill] sm:$0xff] %v11154_v19  ;;  %13474 = vst [vmem:[#allocation35_spill] sm:$0xff] %v11163_v26  ;;  %v11165_v31 = vpack.c.bf16 %v464_v27, %v460_v22  ;;  %v11167_v32 = vpack.c.bf16 %v461_v30, %v457_v28  ;;  %v466_v39 = vld [vmem:[#allocation10 + $0x48] sm:$0xff]  ;;  %v468_v41 = vld [vmem:[#allocation10 + $0x58] sm:$0xff]  ;;  %v11172_v45 = vpack.c.bf16 %v463_v34, %v459_v33 }
  0xc0   :  { %v470_v40 = vld [vmem:[#allocation10 + $0x68] sm:$0xff]  ;;  %v472_v44 = vld [vmem:[#allocation10 + $0x78] sm:$0xff]  ;;  %v465_v46 = vld [vmem:[#allocation10 + $0x40] sm:$0xff] }
  0xc1   :  { %7587 = vmatpush1.bf16.msra.mxu0 %v11101_v23  ;;  %13475 = vst [vmem:[#allocation36_spill] sm:$0xff] %v11165_v31  ;;  %13476 = vst [vmem:[#allocation37_spill] sm:$0xff] %v11167_v32  ;;  %v469_v47 = vld [vmem:[#allocation10 + $0x60] sm:$0xff]  ;;  %v467_v48 = vld [vmem:[#allocation10 + $0x50] sm:$0xff]  ;;  %v11174_v56 = vpack.c.bf16 %v470_v40, %v466_v39  ;;  %v11176_v57 = vpack.c.bf16 %v472_v44, %v468_v41 }
  0xc2   :  { %7619 = vmatpush1.bf16.msra.mxu1 %v11106_v24  ;;  %7589 = vmatprep.subr.bf16.mxu0 %v11108_v25  ;;  %13477 = vst [vmem:[#allocation38_spill] sm:$0xff] %v11172_v45  ;;  %v11178_v58 = vpack.c.bf16 %v469_v47, %v465_v46  ;;  %v471_v60 = vld [vmem:[#allocation10 + $0x70] sm:$0xff]  ;;  %v474_v1 = vld [vmem:[#allocation10 + $0x88] sm:$0xff]  ;;  %v476_v9 = vld [vmem:[#allocation10 + $0x98] sm:$0xff] }
  0xc3   :  { %7621 = vmatprep.subr.bf16.mxu1 %v11111_v29  ;;  %13478 = vst [vmem:[#allocation39_spill] sm:$0xff] %v11174_v56  ;;  %13479 = vst [vmem:[#allocation40_spill] sm:$0xff] %v11176_v57  ;;  %v478_v2 = vld [vmem:[#allocation10 + $0xa8] sm:$0xff]  ;;  %v11181_v3 = vpack.c.bf16 %v471_v60, %v467_v48  ;;  %v480_v11 = vld [vmem:[#allocation10 + $0xb8] sm:$0xff] }
  0xc4   :  { %13480 = vst [vmem:[#allocation41_spill] sm:$0xff] %v11178_v58  ;;  %v11183_v5 = vpack.c.bf16 %v478_v2, %v474_v1  ;;  %v473_v15 = vld [vmem:[#allocation10 + $0x80] sm:$0xff]  ;;  %v11187_v16 = vpack.c.bf16 %v480_v11, %v476_v9  ;;  %v475_v21 = vld [vmem:[#allocation10 + $0x90] sm:$0xff]  ;;  %v482_v28 = vld [vmem:[#allocation10 + $0xc8] sm:$0xff] }
  0xc5   :  { %7591 = vmatpush1.bf16.msra.mxu0 %v11114_v35  ;;  %13481 = vst [vmem:[#allocation42_spill] sm:$0xff] %v11181_v3  ;;  %v477_v20 = vld [vmem:[#allocation10 + $0xa0] sm:$0xff]  ;;  %v479_v22 = vld [vmem:[#allocation10 + $0xb0] sm:$0xff]  ;;  %v486_v30 = vld [vmem:[#allocation10 + $0xe8] sm:$0xff] }
  0xc6   :  { %7623 = vmatpush1.bf16.msra.mxu1 %v11118_v36  ;;  %7593 = vmatprep.subr.bf16.mxu0 %v11120_v37  ;;  %13482 = vst [vmem:[#allocation43_spill] sm:$0xff] %v11183_v5  ;;  %13483 = vst [vmem:[#allocation44_spill] sm:$0xff] %v11187_v16  ;;  %v11190_v27 = vpack.c.bf16 %v477_v20, %v473_v15  ;;  %v484_v33 = vld [vmem:[#allocation10 + $0xd8] sm:$0xff]  ;;  %v11193_v34 = vpack.c.bf16 %v486_v30, %v482_v28  ;;  %v481_v40 = vld [vmem:[#allocation10 + $0xc0] sm:$0xff] }
  0xc7   :  { %7625 = vmatprep.subr.bf16.mxu1 %v11123_v43  ;;  %v488_v39 = vld [vmem:[#allocation10 + $0xf8] sm:$0xff]  ;;  %v485_v41 = vld [vmem:[#allocation10 + $0xe0] sm:$0xff]  ;;  %v11196_v44 = vpack.c.bf16 %v479_v22, %v475_v21  ;;  %v490_v46 = vld [vmem:[#allocation10 + $0x108] sm:$0xff] }
  0xc8   :  { %13484 = vst [vmem:[#allocation45_spill] sm:$0xff] %v11190_v27  ;;  %13485 = vst [vmem:[#allocation46_spill] sm:$0xff] %v11193_v34  ;;  %v11199_v47 = vpack.c.bf16 %v488_v39, %v484_v33  ;;  %v483_v48 = vld [vmem:[#allocation10 + $0xd0] sm:$0xff]  ;;  %v494_v1 = vld [vmem:[#allocation10 + $0x128] sm:$0xff]  ;;  %v11202_v2 = vpack.c.bf16 %v485_v41, %v481_v40 }
  0xc9   :  { %7595 = vmatpush1.bf16.msra.mxu0 %v11126_v52  ;;  %13486 = vst [vmem:[#allocation47_spill] sm:$0xff] %v11196_v44  ;;  %v487_v60 = vld [vmem:[#allocation10 + $0xf0] sm:$0xff]  ;;  %v492_v9 = vld [vmem:[#allocation10 + $0x118] sm:$0xff]  ;;  %v11205_v15 = vpack.c.bf16 %v494_v1, %v490_v46  ;;  %v489_v22 = vld [vmem:[#allocation10 + $0x100] sm:$0xff] }
  0xca   :  { %7627 = vmatpush1.bf16.msra.mxu1 %v11130_v53  ;;  %7597 = vmatprep.subr.bf16.mxu0 %v11132_v54  ;;  %13487 = vst [vmem:[#allocation48_spill] sm:$0xff] %v11199_v47  ;;  %13488 = vst [vmem:[#allocation49_spill] sm:$0xff] %v11202_v2  ;;  %v496_v11 = vld [vmem:[#allocation10 + $0x138] sm:$0xff]  ;;  %v11208_v20 = vpack.c.bf16 %v487_v60, %v483_v48  ;;  %v493_v28 = vld [vmem:[#allocation10 + $0x120] sm:$0xff] }
  0xcb   :  { %7629 = vmatprep.subr.bf16.mxu1 %v11135_v59  ;;  %13489 = vst [vmem:[#allocation50_spill] sm:$0xff] %v11205_v15  ;;  %v11211_v21 = vpack.c.bf16 %v496_v11, %v492_v9  ;;  %v491_v30 = vld [vmem:[#allocation10 + $0x110] sm:$0xff]  ;;  %v11217_v33 = vpack.c.bf16 %v493_v28, %v489_v22  ;;  %v498_v41 = vld [vmem:[#allocation10 + $0x148] sm:$0xff]  ;;  %v500_v48 = vld [vmem:[#allocation10 + $0x158] sm:$0xff] }
  0xcc   :  { %13490 = vst [vmem:[#allocation51_spill] sm:$0xff] %v11208_v20  ;;  %v495_v39 = vld [vmem:[#allocation10 + $0x130] sm:$0xff]  ;;  %v502_v46 = vld [vmem:[#allocation10 + $0x168] sm:$0xff]  ;;  %v504_v1 = vld [vmem:[#allocation10 + $0x178] sm:$0xff] }
  0xcd   :  { %7599 = vmatpush1.bf16.msra.mxu0 %v11138_v6  ;;  %13491 = vst [vmem:[#allocation52_spill] sm:$0xff] %v11211_v21  ;;  %13492 = vst [vmem:[#allocation53_spill] sm:$0xff] %v11217_v33  ;;  %v11219_v40 = vpack.c.bf16 %v495_v39, %v491_v30  ;;  %v11223_v60 = vpack.c.bf16 %v502_v46, %v498_v41  ;;  %v497_v9 = vld [vmem:[#allocation10 + $0x140] sm:$0xff]  ;;  %v499_v22 = vld [vmem:[#allocation10 + $0x150] sm:$0xff] }
  0xce   :  { %7631 = vmatpush1.bf16.msra.mxu1 %v11142_v7  ;;  %7601 = vmatprep.subr.bf16.mxu0 %v11144_v8  ;;  %v501_v11 = vld [vmem:[#allocation10 + $0x160] sm:$0xff]  ;;  %v503_v28 = vld [vmem:[#allocation10 + $0x170] sm:$0xff]  ;;  %v506_v39 = vld [vmem:[#allocation10 + $0x188] sm:$0xff] }
  0xcf   :  { %7633 = vmatprep.subr.bf16.mxu1 %v11147_v14  ;;  %13493 = vst [vmem:[#allocation54_spill] sm:$0xff] %v11219_v40  ;;  %13494 = vst [vmem:[#allocation55_spill] sm:$0xff] %v11223_v60  ;;  %v11230_v30 = vpack.c.bf16 %v503_v28, %v499_v22  ;;  %v510_v41 = vld [vmem:[#allocation10 + $0x1a8] sm:$0xff]  ;;  %v508_v46 = vld [vmem:[#allocation10 + $0x198] sm:$0xff] }
  0xd0   :  { %v507_v22 = vld [vmem:[#allocation10 + $0x190] sm:$0xff] }
  0xd1   :  { %7603 = vmatpush1.bf16.msra.mxu0 %v11150_v18  ;;  %13497 = vst [vmem:[#allocation58_spill] sm:$0xff] %v11230_v30  ;;  %v511_v28 = vld [vmem:[#allocation10 + $0x1b0] sm:$0xff] }
  0xd2   :  { %7635 = vmatpush1.bf16.msra.mxu1 %v11154_v19  ;;  %7637 = vmatprep.subr.bf16.mxu0 %v11163_v26 }
  0xd3   :  { %7669 = vmatprep.subr.bf16.mxu1 %v11165_v31 }
  0xd4   :  { %822 = vmatmul.mubr.f32.vlgmr.msra.gmra.mrb[4].mxu0 %v13150_v0 }
  0xd5   :  { %893 = vmatmul.mubr.f32.vlgmr.msra.gmra.mrb[4].mxu1 %v13150_v0  ;;  %991 = vmatprep.mubr.f32.mxu0 %v13150_v0 }
  0xd6   :  { %1062 = vmatprep.mubr.f32.mxu1 %v13150_v0  ;;  %7639 = vmatpush1.bf16.msra.mxu0 %v11167_v32  ;;  %v11225_v0 = vpack.c.bf16 %v504_v1, %v500_v48  ;;  %v512_v48 = vld [vmem:[#allocation10 + $0x1b8] sm:$0xff]  ;;  %v505_v1 = vld [vmem:[#allocation10 + $0x180] sm:$0xff] }
  0xd7   :  { %7671 = vmatpush1.bf16.msra.mxu1 %v11172_v45  ;;  %7641 = vmatprep.subr.bf16.mxu0 %v11174_v56 }
  0xd8   :  { %7673 = vmatprep.subr.bf16.mxu1 %v11176_v57  ;;  %13495 = vst [vmem:[#allocation56_spill] sm:$0xff] %v11225_v0 }
  0xda   :  { %7643 = vmatpush1.bf16.msra.mxu0 %v11178_v58 }
  0xdb   :  { %7645 = vmatprep.subr.bf16.mxu0 %v11183_v5  ;;  %7675 = vmatpush1.bf16.msra.mxu1 %v11181_v3 }
  0xdc   :  { %7677 = vmatprep.subr.bf16.mxu1 %v11187_v16 }
  0xde   :  { %7647 = vmatpush1.bf16.msra.mxu0 %v11190_v27 }
  0xdf   :  { %7649 = vmatprep.subr.bf16.mxu0 %v11193_v34  ;;  %7679 = vmatpush1.bf16.msra.mxu1 %v11196_v44 }
  0xe0   :  { %7681 = vmatprep.subr.bf16.mxu1 %v11199_v47 }
  0xe2   :  { %7651 = vmatpush1.bf16.msra.mxu0 %v11202_v2  ;;  %v640_v2 = vld [vmem:[#allocation8 + $0x1b8] sm:$0xff] }
  0xe3   :  { %7653 = vmatprep.subr.bf16.mxu0 %v11205_v15  ;;  %7683 = vmatpush1.bf16.msra.mxu1 %v11208_v20  ;;  %v638_v20 = vld [vmem:[#allocation8 + $0x1a8] sm:$0xff] }
  0xe4   :  { %7685 = vmatprep.subr.bf16.mxu1 %v11211_v21  ;;  %v11227_v21 = vpack.c.bf16 %v501_v11, %v497_v9  ;;  %v509_v9 = vld [vmem:[#allocation10 + $0x1a0] sm:$0xff]  ;;  %v11237_v11 = vpack.c.bf16 %v512_v48, %v508_v46  ;;  %v520_v46 = vld [vmem:[#allocation10 + $0x1f8] sm:$0xff] }
  0xe5   :  { %v513_v48 = vld [vmem:[#allocation10 + $0x1c0] sm:$0xff] }
  0xe6   :  { %7655 = vmatpush1.bf16.msra.mxu0 %v11217_v33  ;;  %13496 = vst [vmem:[#allocation57_spill] sm:$0xff] %v11227_v21  ;;  %13499 = vst [vmem:[#allocation60_spill] sm:$0xff] %v11237_v11  ;;  %v11239_v33 = vpack.c.bf16 %v509_v9, %v505_v1  ;;  %v517_v1 = vld [vmem:[#allocation10 + $0x1e0] sm:$0xff] }
  0xe7   :  { %7687 = vmatpush1.bf16.msra.mxu1 %v11219_v40  ;;  %7657 = vmatprep.subr.bf16.mxu0 %v11223_v60  ;;  %v11235_v40 = vpack.c.bf16 %v510_v41, %v506_v39  ;;  %v518_v39 = vld [vmem:[#allocation10 + $0x1e8] sm:$0xff]  ;;  %v516_v41 = vld [vmem:[#allocation10 + $0x1d8] sm:$0xff]  ;;  %v11251_v60 = vpack.c.bf16 %v517_v1, %v513_v48  ;;  %v589_v48 = vld [vmem:[#allocation8 + $0x20] sm:$0xff] }
  0xe8   :  { %7689 = vmatprep.subr.bf16.mxu1 %v11225_v0  ;;  %13500 = vst [vmem:[#allocation61_spill] sm:$0xff] %v11239_v33  ;;  %v11242_v0 = vpack.c.bf16 %v511_v28, %v507_v22  ;;  %v11249_v9 = vpack.c.bf16 %v520_v46, %v516_v41  ;;  %v515_v22 = vld [vmem:[#allocation10 + $0x1d0] sm:$0xff]  ;;  %v592_v41 = vld [vmem:[#allocation8 + $0x38] sm:$0xff]  ;;  %v585_v46 = vld [vmem:[#allocation8] sm:$0xff] }
  0xe9   :  { %13498 = vst [vmem:[#allocation59_spill] sm:$0xff] %v11235_v40  ;;  %13504 = vst [vmem:[#allocation65_spill] sm:$0xff] %v11251_v60  ;;  %v519_v28 = vld [vmem:[#allocation10 + $0x1f0] sm:$0xff] }
  0xea   :  { %7659 = vmatpush1.bf16.msra.mxu0 %v11227_v21  ;;  %13501 = vst [vmem:[#allocation62_spill] sm:$0xff] %v11242_v0  ;;  %13503 = vst [vmem:[#allocation64_spill] sm:$0xff] %v11249_v9 }
  0xeb   :  { %7691 = vmatpush1.bf16.msra.mxu1 %v11230_v30  ;;  %7661 = vmatprep.subr.bf16.mxu0 %v11235_v40  ;;  %v514_v30 = vld [vmem:[#allocation10 + $0x1c8] sm:$0xff]  ;;  %v11263_v40 = vpack.c.bf16 %v589_v48, %v585_v46  ;;  %v593_v46 = vld [vmem:[#allocation8 + $0x40] sm:$0xff] }
  0xec   :  { %7693 = vmatprep.subr.bf16.mxu1 %v11237_v11  ;;  %v11247_v21 = vpack.c.bf16 %v518_v39, %v514_v30  ;;  %v11254_v11 = vpack.c.bf16 %v519_v28, %v515_v22  ;;  %v590_v30 = vld [vmem:[#allocation8 + $0x28] sm:$0xff]  ;;  %v588_v39 = vld [vmem:[#allocation8 + $0x18] sm:$0xff]  ;;  %v587_v22 = vld [vmem:[#allocation8 + $0x10] sm:$0xff] }
  0xed   :  { %v11261_v1 = vpack.c.bf16 %v592_v41, %v588_v39  ;;  %13508 = vst [vmem:[#allocation69_spill] sm:$0xff] %v11263_v40  ;;  %v591_v28 = vld [vmem:[#allocation8 + $0x30] sm:$0xff]  ;;  %v600_v41 = vld [vmem:[#allocation8 + $0x78] sm:$0xff]  ;;  %v597_v48 = vld [vmem:[#allocation8 + $0x60] sm:$0xff] }
  0xee   :  { %7663 = vmatpush1.bf16.msra.mxu0 %v11239_v33  ;;  %13502 = vst [vmem:[#allocation63_spill] sm:$0xff] %v11247_v21  ;;  %13505 = vst [vmem:[#allocation66_spill] sm:$0xff] %v11254_v11 }
  0xef   :  { %7695 = vmatpush1.bf16.msra.mxu1 %v11242_v0  ;;  %7665 = vmatprep.subr.bf16.mxu0 %v11247_v21  ;;  %v586_v0 = vld [vmem:[#allocation8 + $0x8] sm:$0xff]  ;;  %13507 = vst [vmem:[#allocation68_spill] sm:$0xff] %v11261_v1 }
  0xf0   :  { %7697 = vmatprep.subr.bf16.mxu1 %v11249_v9  ;;  %v11259_v33 = vpack.c.bf16 %v590_v30, %v586_v0  ;;  %v13509_v9 = vmov 0.0   ;;  %v594_v0 = vld [vmem:[#allocation8 + $0x48] sm:$0xff] }
  0xf1   :  { %v598_v30 = vld [vmem:[#allocation8 + $0x68] sm:$0xff] }
  0xf2   :  { %7667 = vmatpush1.bf16.msra.mxu0 %v11251_v60  ;;  %13506 = vst [vmem:[#allocation67_spill] sm:$0xff] %v11259_v33  ;;  %v11267_v60 = vpack.c.bf16 %v591_v28, %v587_v22  ;;  %v11273_v39 = vpack.c.bf16 %v598_v30, %v594_v0  ;;  %v11277_v22 = vpack.c.bf16 %v597_v48, %v593_v46  ;;  %v595_v28 = vld [vmem:[#allocation8 + $0x50] sm:$0xff]  ;;  %v602_v0 = vld [vmem:[#allocation8 + $0x88] sm:$0xff]  ;;  %v601_v46 = vld [vmem:[#allocation8 + $0x80] sm:$0xff] }
  0xf3   :  { %7699 = vmatpush1.bf16.msra.mxu1 %v11254_v11  ;;  %7701 = vmatprep.subr.bf16.mxu0 %v11259_v33  ;;  %v596_v11 = vld [vmem:[#allocation8 + $0x58] sm:$0xff]  ;;  %v606_v30 = vld [vmem:[#allocation8 + $0xa8] sm:$0xff]  ;;  %v605_v48 = vld [vmem:[#allocation8 + $0xa0] sm:$0xff] }
  0xf4   :  { %13510 = vst [vmem:[#allocation70_spill] sm:$0xff] %v11267_v60  ;;  %7733 = vmatprep.subr.bf16.mxu1 %v11261_v1  ;;  %13511 = vst [vmem:[#allocation71_spill] sm:$0xff] %v11273_v39  ;;  %v11275_v33 = vpack.c.bf16 %v600_v41, %v596_v11  ;;  %v599_v1 = vld [vmem:[#allocation8 + $0x70] sm:$0xff]  ;;  %v11287_v11 = vpack.c.bf16 %v606_v30, %v602_v0  ;;  %v608_v41 = vld [vmem:[#allocation8 + $0xb8] sm:$0xff]  ;;  %v11291_v15 = vpack.c.bf16 %v605_v48, %v601_v46 }
  0xf5   :  { %992 = vmatmul.mubr.f32.vlgmr.msra.gmra.mrb[6].mxu0 %v13509_v9  ;;  %13513 = vst [vmem:[#allocation73_spill] sm:$0xff] %v11277_v22  ;;  %v609_v30 = vld [vmem:[#allocation8 + $0xc0] sm:$0xff] }
  0xf6   :  { %1063 = vmatmul.mubr.f32.vlgmr.msra.gmra.mrb[6].mxu1 %v13509_v9  ;;  %7703 = vmatpush1.bf16.msra.mxu0 %v11263_v40  ;;  %13512 = vst [vmem:[#allocation72_spill] sm:$0xff] %v11275_v33  ;;  %v11282_v40 = vpack.c.bf16 %v599_v1, %v595_v28  ;;  %13515 = vst [vmem:[#allocation75_spill] sm:$0xff] %v11287_v11  ;;  %v603_v1 = vld [vmem:[#allocation8 + $0x90] sm:$0xff] }
  0xf7   :  { %7735 = vmatpush1.bf16.msra.mxu1 %v11267_v60  ;;  %1133 = vmatprep.mubr.f32.mxu0 %v13509_v9  ;;  %v604_v60 = vld [vmem:[#allocation8 + $0x98] sm:$0xff]  ;;  %13517 = vst [vmem:[#allocation77_spill] sm:$0xff] %v11291_v15  ;;  %v607_v28 = vld [vmem:[#allocation8 + $0xb0] sm:$0xff] }
  0xf8   :  { %1204 = vmatprep.mubr.f32.mxu1 %v13509_v9  ;;  %7705 = vmatprep.subr.bf16.mxu0 %v11273_v39  ;;  %13514 = vst [vmem:[#allocation74_spill] sm:$0xff] %v11282_v40  ;;  %v11289_v21 = vpack.c.bf16 %v608_v41, %v604_v60  ;;  %v614_v39 = vld [vmem:[#allocation8 + $0xe8] sm:$0xff]  ;;  %v616_v60 = vld [vmem:[#allocation8 + $0xf8] sm:$0xff]  ;;  %v613_v41 = vld [vmem:[#allocation8 + $0xe0] sm:$0xff] }
  0xf9   :  { %7737 = vmatprep.subr.bf16.mxu1 %v11275_v33  ;;  %v11294_v33 = vpack.c.bf16 %v607_v28, %v603_v1  ;;  %v11303_v48 = vpack.c.bf16 %v613_v41, %v609_v30  ;;  %v611_v1 = vld [vmem:[#allocation8 + $0xd0] sm:$0xff] }
  0xfa   :  { %7707 = vmatpush1.bf16.msra.mxu0 %v11277_v22  ;;  %13516 = vst [vmem:[#allocation76_spill] sm:$0xff] %v11289_v21  ;;  %v610_v22 = vld [vmem:[#allocation8 + $0xc8] sm:$0xff]  ;;  %v615_v28 = vld [vmem:[#allocation8 + $0xf0] sm:$0xff] }
  0xfb   :  { %7739 = vmatpush1.bf16.msra.mxu1 %v11282_v40  ;;  %7709 = vmatprep.subr.bf16.mxu0 %v11287_v11  ;;  %13518 = vst [vmem:[#allocation78_spill] sm:$0xff] %v11294_v33  ;;  %v612_v40 = vld [vmem:[#allocation8 + $0xd8] sm:$0xff]  ;;  %v11299_v0 = vpack.c.bf16 %v614_v39, %v610_v22  ;;  %13521 = vst [vmem:[#allocation81_spill] sm:$0xff] %v11303_v48  ;;  %v622_v11 = vld [vmem:[#allocation8 + $0x128] sm:$0xff] }
  0xfc   :  { %7741 = vmatprep.subr.bf16.mxu1 %v11289_v21  ;;  %v11301_v46 = vpack.c.bf16 %v616_v60, %v612_v40  ;;  %v11306_v21 = vpack.c.bf16 %v615_v28, %v611_v1  ;;  %v624_v40 = vld [vmem:[#allocation8 + $0x138] sm:$0xff]  ;;  %v617_v22 = vld [vmem:[#allocation8 + $0x100] sm:$0xff]  ;;  %v619_v1 = vld [vmem:[#allocation8 + $0x110] sm:$0xff] }
  0xfd   :  { %13519 = vst [vmem:[#allocation79_spill] sm:$0xff] %v11299_v0  ;;  %v621_v60 = vld [vmem:[#allocation8 + $0x120] sm:$0xff]  ;;  %v623_v28 = vld [vmem:[#allocation8 + $0x130] sm:$0xff] }
  0xfe   :  { %7711 = vmatpush1.bf16.msra.mxu0 %v11291_v15  ;;  %13520 = vst [vmem:[#allocation80_spill] sm:$0xff] %v11301_v46  ;;  %13522 = vst [vmem:[#allocation82_spill] sm:$0xff] %v11306_v21  ;;  %v618_v15 = vld [vmem:[#allocation8 + $0x108] sm:$0xff]  ;;  %v11315_v41 = vpack.c.bf16 %v621_v60, %v617_v22 }
  0xff   :  { %7743 = vmatpush1.bf16.msra.mxu1 %v11294_v33  ;;  %7713 = vmatprep.subr.bf16.mxu0 %v11299_v0  ;;  %v620_v33 = vld [vmem:[#allocation8 + $0x118] sm:$0xff]  ;;  %v11311_v39 = vpack.c.bf16 %v622_v11, %v618_v15  ;;  %v630_v0 = vld [vmem:[#allocation8 + $0x168] sm:$0xff]  ;;  %v625_v11 = vld [vmem:[#allocation8 + $0x140] sm:$0xff] }
 0x100   :  { %7745 = vmatprep.subr.bf16.mxu1 %v11301_v46  ;;  %v11313_v30 = vpack.c.bf16 %v624_v40, %v620_v33  ;;  %13525 = vst [vmem:[#allocation85_spill] sm:$0xff] %v11315_v41  ;;  %v11318_v46 = vpack.c.bf16 %v623_v28, %v619_v1  ;;  %v632_v33 = vld [vmem:[#allocation8 + $0x178] sm:$0xff]  ;;  %v629_v40 = vld [vmem:[#allocation8 + $0x160] sm:$0xff]  ;;  %v627_v1 = vld [vmem:[#allocation8 + $0x150] sm:$0xff] }
 0x101   :  { %13523 = vst [vmem:[#allocation83_spill] sm:$0xff] %v11311_v39  ;;  %v11327_v60 = vpack.c.bf16 %v629_v40, %v625_v11  ;;  %v631_v28 = vld [vmem:[#allocation8 + $0x170] sm:$0xff] }
 0x102   :  { %7715 = vmatpush1.bf16.msra.mxu0 %v11303_v48  ;;  %13524 = vst [vmem:[#allocation84_spill] sm:$0xff] %v11313_v30  ;;  %13526 = vst [vmem:[#allocation86_spill] sm:$0xff] %v11318_v46  ;;  %v626_v48 = vld [vmem:[#allocation8 + $0x148] sm:$0xff]  ;;  %v635_v11 = vld [vmem:[#allocation8 + $0x190] sm:$0xff] }
 0x103   :  { %7747 = vmatpush1.bf16.msra.mxu1 %v11306_v21  ;;  %7717 = vmatprep.subr.bf16.mxu0 %v11311_v39  ;;  %v628_v21 = vld [vmem:[#allocation8 + $0x158] sm:$0xff]  ;;  %v11323_v15 = vpack.c.bf16 %v630_v0, %v626_v48  ;;  %13529 = vst [vmem:[#allocation89_spill] sm:$0xff] %v11327_v60  ;;  %v634_v39 = vld [vmem:[#allocation8 + $0x188] sm:$0xff] }
 0x104   :  { %7749 = vmatprep.subr.bf16.mxu1 %v11313_v30  ;;  %v11325_v22 = vpack.c.bf16 %v632_v33, %v628_v21  ;;  %v11330_v30 = vpack.c.bf16 %v631_v28, %v627_v1  ;;  %v11333_v0 = vpack.c.bf16 %v638_v20, %v634_v39  ;;  %v633_v21 = vld [vmem:[#allocation8 + $0x180] sm:$0xff]  ;;  %v639_v1 = vld [vmem:[#allocation8 + $0x1b0] sm:$0xff]  ;;  %v642_v28 = vld [vmem:[#allocation8 + $0x1c8] sm:$0xff] }
 0x105   :  { %13527 = vst [vmem:[#allocation87_spill] sm:$0xff] %v11323_v15  ;;  %v637_v33 = vld [vmem:[#allocation8 + $0x1a0] sm:$0xff]  ;;  %v11343_v20 = vpack.c.bf16 %v639_v1, %v635_v11  ;;  %v644_v39 = vld [vmem:[#allocation8 + $0x1d8] sm:$0xff]  ;;  %v526_v11 = vld [vmem:[#allocation13 + $0x28] sm:$0xff] }
 0x106   :  { %7719 = vmatpush1.bf16.msra.mxu0 %v11315_v41  ;;  %13528 = vst [vmem:[#allocation88_spill] sm:$0xff] %v11325_v22  ;;  %13530 = vst [vmem:[#allocation90_spill] sm:$0xff] %v11330_v30  ;;  %v636_v41 = vld [vmem:[#allocation8 + $0x198] sm:$0xff]  ;;  %v11339_v40 = vpack.c.bf16 %v637_v33, %v633_v21  ;;  %v647_v21 = vld [vmem:[#allocation8 + $0x1f0] sm:$0xff] }
 0x107   :  { %7751 = vmatpush1.bf16.msra.mxu1 %v11318_v46  ;;  %7721 = vmatprep.subr.bf16.mxu0 %v11323_v15  ;;  %13531 = vst [vmem:[#allocation91_spill] sm:$0xff] %v11333_v0  ;;  %v11335_v48 = vpack.c.bf16 %v640_v2, %v636_v41  ;;  %v646_v15 = vld [vmem:[#allocation8 + $0x1e8] sm:$0xff]  ;;  %13534 = vst [vmem:[#allocation94_spill] sm:$0xff] %v11343_v20  ;;  %v648_v41 = vld [vmem:[#allocation8 + $0x1f8] sm:$0xff] }
 0x108   :  { %7753 = vmatprep.subr.bf16.mxu1 %v11325_v22  ;;  %13533 = vst [vmem:[#allocation93_spill] sm:$0xff] %v11339_v40  ;;  %v11345_v2 = vpack.c.bf16 %v646_v15, %v642_v28  ;;  %v641_v22 = vld [vmem:[#allocation8 + $0x1c0] sm:$0xff]  ;;  %v11347_v46 = vpack.c.bf16 %v648_v41, %v644_v39  ;;  %v522_v15 = vld [vmem:[#allocation13 + $0x8] sm:$0xff]  ;;  %v524_v1 = vld [vmem:[#allocation13 + $0x18] sm:$0xff] }
 0x109   :  { %13532 = vst [vmem:[#allocation92_spill] sm:$0xff] %v11335_v48  ;;  %v11359_v28 = vpack.c.bf16 %v526_v11, %v522_v15  ;;  %v528_v39 = vld [vmem:[#allocation13 + $0x38] sm:$0xff]  ;;  %v217_v15 = vld [vmem:[%s13140_s3] sm:$0xf] }
 0x10a   :  { %7723 = vmatpush1.bf16.msra.mxu0 %v11327_v60  ;;  %13535 = vst [vmem:[#allocation95_spill] sm:$0xff] %v11345_v2  ;;  %13536 = vst [vmem:[#allocation96_spill] sm:$0xff] %v11347_v46  ;;  %v645_v60 = vld [vmem:[#allocation8 + $0x1e0] sm:$0xff]  ;;  %v11361_v41 = vpack.c.bf16 %v528_v39, %v524_v1 }
 0x10b   :  { %7755 = vmatpush1.bf16.msra.mxu1 %v11330_v30  ;;  %7725 = vmatprep.subr.bf16.mxu0 %v11333_v0  ;;  %v643_v30 = vld [vmem:[#allocation8 + $0x1d0] sm:$0xff]  ;;  %v11351_v33 = vpack.c.bf16 %v645_v60, %v641_v22  ;;  %13539 = vst [vmem:[#allocation99_spill] sm:$0xff] %v11359_v28 }
 0x10c   :  { %7757 = vmatprep.subr.bf16.mxu1 %v11335_v48  ;;  %v11353_v0 = vpack.c.bf16 %v647_v21, %v643_v30  ;;  %13540 = vst [vmem:[#allocation100_spill] sm:$0xff] %v11361_v41  ;;  %v219_v30 = vlaneseq }
 0x10d   :  { %13537 = vst [vmem:[#allocation97_spill] sm:$0xff] %v11351_v33 }
 0x10e   :  { %7727 = vmatpush1.bf16.msra.mxu0 %v11339_v40  ;;  %13538 = vst [vmem:[#allocation98_spill] sm:$0xff] %v11353_v0  ;;  %v220_v22 = vshrl.u32 %v219_v30, 7 }
 0x10f   :  { %7759 = vmatpush1.bf16.msra.mxu1 %v11343_v20  ;;  %7729 = vmatprep.subr.bf16.mxu0 %v11345_v2 }
 0x110   :  { %7761 = vmatprep.subr.bf16.mxu1 %v11347_v46  ;;  %v11370_v11 = vsub.s32 1, %v220_v22  ;;  %v11372_v1 = vsub.s32 2, %v220_v22  ;;  %v11374_v39 = vsub.s32 3, %v220_v22 }
 0x112   :  { %7731 = vmatpush1.bf16.msra.mxu0 %v11351_v33  ;;  %v11365_v33 = vsub.s32 0, %v220_v22  ;;  %v226_v30 = vrot.slane %v217_v15, %v11370_v11  ;;  %v234_v20 = vrot.slane %v217_v15, %v11374_v39 }
 0x113   :  { %7763 = vmatpush1.bf16.msra.mxu1 %v11353_v0  ;;  %7765 = vmatprep.subr.bf16.mxu0 %v11359_v28  ;;  %v230_v28 = vrot.slane %v217_v15, %v11372_v1 }
 0x114   :  { %7797 = vmatprep.subr.bf16.mxu1 %v11361_v41  ;;  %v222_v41 = vrot.slane %v217_v15, %v11365_v33 }
 0x187   :  { %v305_v60 = vpop.f32.mrb[0].mxu0 }
 0x188   :  { %v307_v21 = vpop.f32.mrb[1].mxu0  ;;  %v382_v46 = vpop.f32.mrb[0].mxu1  ;;  %v11388_v16 = vadd.f32 %v305_v60, %v222_v41 }
 0x189   :  { %v384_v0 = vpop.f32.mrb[1].mxu1  ;;  %v11390_v5 = vadd.f32 %v307_v21, %v226_v30 }
 0x18a   :  { %13545 = vst [vmem:[#allocation105_spill] sm:$0xff] %v11388_v16 }
 0x18b   :  { %v311_v2 = vpop.f32.mrb[2].mxu0  ;;  %13546 = vst [vmem:[#allocation106_spill] sm:$0xff] %v11390_v5 }
 0x18c   :  { %v11380_v40 = vadd.f32 %v311_v2, %v222_v41  ;;  %v313_v48 = vpop.f32.mrb[3].mxu0  ;;  %v388_v47 = vpop.f32.mrb[2].mxu1  ;;  %v11397_v41 = vadd.f32 %v382_v46, %v230_v28 }
 0x18d   :  { %v11382_v34 = vadd.f32 %v313_v48, %v226_v30  ;;  %v11384_v44 = vadd.f32 %v388_v47, %v230_v28  ;;  %v390_v27 = vpop.f32.mrb[3].mxu1  ;;  %v11394_v47 = vadd.f32 %v384_v0, %v234_v20  ;;  %v525_v28 = vld [vmem:[#allocation13 + $0x20] sm:$0xff] }
 0x18e   :  { %13541 = vst [vmem:[#allocation101_spill] sm:$0xff] %v11380_v40  ;;  %v11386_v22 = vadd.f32 %v390_v27, %v234_v20  ;;  %13548 = vst [vmem:[#allocation108_spill] sm:$0xff] %v11397_v41 }
 0x18f   :  { %13542 = vst [vmem:[#allocation102_spill] sm:$0xff] %v11382_v34  ;;  %13543 = vst [vmem:[#allocation103_spill] sm:$0xff] %v11384_v44 }
 0x190   :  { %13544 = vst [vmem:[#allocation104_spill] sm:$0xff] %v11386_v22  ;;  %13547 = vst [vmem:[#allocation107_spill] sm:$0xff] %v11394_v47 }
 0x1a7   :  { %v823_v3 = vpop.f32.mrb[4].mxu0 }
 0x1a8   :  { %v899_v58 = vadd.f32 %v823_v3, %v11388_v16  ;;  %v894_v57 = vpop.f32.mrb[4].mxu1  ;;  %v825_v15 = vpop.f32.mrb[5].mxu0  ;;  %v544_v16 = vld [vmem:[#allocation13 + $0xb8] sm:$0xff] }
 0x1a9   :  { %v900_v2 = vadd.f32 %v825_v15, %v11390_v5  ;;  %v896_v40 = vpop.f32.mrb[5].mxu1  ;;  %v901_v21 = vadd.f32 %v894_v57, %v11397_v41  ;;  %v521_v57 = vld [vmem:[#allocation13] sm:$0xff]  ;;  %v538_v41 = vld [vmem:[#allocation13 + $0x88] sm:$0xff]  ;;  %v540_v5 = vld [vmem:[#allocation13 + $0x98] sm:$0xff] }
 0x1aa   :  { %v7380_v56 = vmul.f32 -1.442695, %v899_v58  ;;  %v902_v27 = vadd.f32 %v896_v40, %v11394_v47  ;;  %v11403_v34 = vpack.c.bf16 %v525_v28, %v521_v57  ;;  %v542_v47 = vld [vmem:[#allocation13 + $0xa8] sm:$0xff]  ;;  %v537_v28 = vld [vmem:[#allocation13 + $0x80] sm:$0xff] }
 0x1ab   :  { %v7381_v48 = vmul.f32 -1.442695, %v900_v2 }
 0x1ac   :  { %10242 = vpow2.f32 %v7380_v56  ;;  %v7382_v60 = vmul.f32 -1.442695, %v902_v27  ;;  %v523_v27 = vld [vmem:[#allocation13 + $0x10] sm:$0xff]  ;;  %13550 = vst [vmem:[#allocation110_spill] sm:$0xff] %v11403_v34 }
 0x1ad   :  { %10244 = vpow2.f32 %v7381_v48 }
 0x1ae   :  { %10246 = vpow2.f32 %v7382_v60  ;;  %v527_v60 = vld [vmem:[#allocation13 + $0x30] sm:$0xff] }
 0x1af   :  { %10248 = vtanh.f32 %v901_v21  ;;  %v530_v21 = vld [vmem:[#allocation13 + $0x48] sm:$0xff] }
 0x1b6   :  { %v10243_v30 = vpop.eup %10242 }
 0x1b7   :  { %v10245_v3 = vpop.eup %10244  ;;  %v912_v44 = vadd.f32 1.0, %v10243_v30  ;;  %v534_v30 = vld [vmem:[#allocation13 + $0x68] sm:$0xff] }
 0x1b8   :  { %v913_v15 = vadd.f32 1.0, %v10245_v3  ;;  %v10247_v58 = vpop.eup %10246  ;;  %v536_v3 = vld [vmem:[#allocation13 + $0x78] sm:$0xff] }
 0x1b9   :  { %10250 = vrcp.f32 %v912_v44  ;;  %v10249_v56 = vpop.eup %10248  ;;  %v914_v48 = vadd.f32 1.0, %v10247_v58  ;;  %v532_v44 = vld [vmem:[#allocation13 + $0x58] sm:$0xff]  ;;  %v529_v58 = vld [vmem:[#allocation13 + $0x40] sm:$0xff] }
 0x1ba   :  { %10252 = vrcp.f32 %v913_v15 }
 0x1bb   :  { %10254 = vrcp.f32 %v914_v48  ;;  %v11411_v48 = vpack.c.bf16 %v536_v3, %v532_v44  ;;  %v543_v44 = vld [vmem:[#allocation13 + $0xb0] sm:$0xff]  ;;  %v546_v3 = vld [vmem:[#allocation13 + $0xc8] sm:$0xff] }
 0x1bd   :  { %13553 = vst [vmem:[#allocation113_spill] sm:$0xff] %v11411_v48 }
 0x1c3   :  { %v10251_v0 = vpop.eup %10250 }
 0x1c4   :  { %v10253_v20 = vpop.eup %10252  ;;  %v923_v2 = vmul.f32 %v10251_v0, %v10249_v56  ;;  %v11405_v56 = vpack.c.bf16 %v527_v60, %v523_v27  ;;  %v533_v0 = vld [vmem:[#allocation13 + $0x60] sm:$0xff]  ;;  %v11423_v60 = vpack.c.bf16 %v542_v47, %v538_v41 }
 0x1c5   :  { %v922_v40 = vmul.f32 0.0, %v10253_v20  ;;  %v10255_v15 = vpop.eup %10254  ;;  %v541_v27 = vld [vmem:[#allocation13 + $0xa0] sm:$0xff] }
 0x1c6   :  { %13551 = vst [vmem:[#allocation111_spill] sm:$0xff] %v11405_v56  ;;  %13556 = vst [vmem:[#allocation116_spill] sm:$0xff] %v11423_v60 }
 0x1c7   :  { %v11400_v46 = vadd.f32 %v923_v2, %v922_v40  ;;  %v11409_v2 = vpack.c.bf16 %v534_v30, %v530_v21  ;;  %v531_v40 = vld [vmem:[#allocation13 + $0x50] sm:$0xff]  ;;  %v11425_v21 = vpack.c.bf16 %v544_v16, %v540_v5  ;;  %v545_v5 = vld [vmem:[#allocation13 + $0xc0] sm:$0xff] }
 0x1c8   :  { %v539_v30 = vld [vmem:[#allocation13 + $0x90] sm:$0xff]  ;;  %v549_v16 = vld [vmem:[#allocation13 + $0xe0] sm:$0xff] }
 0x1c9   :  { %13549 = vst [vmem:[#allocation109_spill] sm:$0xff] %v11400_v46  ;;  %10256 = vtanh.f32 %v11400_v46  ;;  %13552 = vst [vmem:[#allocation112_spill] sm:$0xff] %v11409_v2  ;;  %v535_v46 = vld [vmem:[#allocation13 + $0x70] sm:$0xff]  ;;  %v11433_v47 = vpack.c.bf16 %v543_v44, %v539_v30  ;;  %v553_v30 = vld [vmem:[#allocation13 + $0x100] sm:$0xff] }
 0x1ca   :  { %v11419_v57 = vpack.c.bf16 %v535_v46, %v531_v40  ;;  %13557 = vst [vmem:[#allocation117_spill] sm:$0xff] %v11425_v21  ;;  %v11431_v46 = vpack.c.bf16 %v541_v27, %v537_v28  ;;  %v551_v40 = vld [vmem:[#allocation13 + $0xf0] sm:$0xff]  ;;  %v11443_v28 = vpack.c.bf16 %v549_v16, %v545_v5  ;;  %v557_v44 = vld [vmem:[#allocation13 + $0x120] sm:$0xff] }
 0x1cb   :  { %13559 = vst [vmem:[#allocation119_spill] sm:$0xff] %v11433_v47  ;;  %v11455_v5 = vpack.c.bf16 %v557_v44, %v553_v30 }
 0x1cc   :  { %13555 = vst [vmem:[#allocation115_spill] sm:$0xff] %v11419_v57  ;;  %13558 = vst [vmem:[#allocation118_spill] sm:$0xff] %v11431_v46 }
 0x1cd   :  { %13562 = vst [vmem:[#allocation122_spill] sm:$0xff] %v11443_v28  ;;  %13566 = vst [vmem:[#allocation126_spill] sm:$0xff] %v11455_v5 }
 0x1d3   :  { %v10257_v22 = vpop.eup %10256 }
 0x1d4   :  { %v11407_v20 = vmul.f32 %v10257_v22, %v10255_v15  ;;  %v11417_v22 = vpack.c.bf16 %v533_v0, %v529_v58  ;;  %v550_v15 = vld [vmem:[#allocation13 + $0xe8] sm:$0xff]  ;;  %v547_v0 = vld [vmem:[#allocation13 + $0xd0] sm:$0xff] }
 0x1d5   :  { %v11437_v41 = vpack.c.bf16 %v550_v15, %v546_v3  ;;  %v11445_v27 = vpack.c.bf16 %v551_v40, %v547_v0  ;;  %v555_v3 = vld [vmem:[#allocation13 + $0x110] sm:$0xff]  ;;  %v568_v0 = vld [vmem:[#allocation13 + $0x178] sm:$0xff]  ;;  %v561_v40 = vld [vmem:[#allocation13 + $0x140] sm:$0xff] }
 0x1d6   :  { %1134 = vmatmul.mubr.f32.vlgmr.msra.gmra.mrb[6].mxu0 %v11407_v20  ;;  %1205 = vmatmul.mubr.f32.vlgmr.msra.gmra.mrb[6].mxu1 %v11407_v20  ;;  %13554 = vst [vmem:[#allocation114_spill] sm:$0xff] %v11417_v22  ;;  %v559_v15 = vld [vmem:[#allocation13 + $0x130] sm:$0xff] }
 0x1d7   :  { %7767 = vmatpush1.bf16.msra.mxu0 %v11403_v34  ;;  %7799 = vmatpush1.bf16.msra.mxu1 %v11405_v56  ;;  %v548_v34 = vld [vmem:[#allocation13 + $0xd8] sm:$0xff]  ;;  %13560 = vst [vmem:[#allocation120_spill] sm:$0xff] %v11437_v41  ;;  %13563 = vst [vmem:[#allocation123_spill] sm:$0xff] %v11445_v27  ;;  %v11457_v16 = vpack.c.bf16 %v559_v15, %v555_v3  ;;  %v563_v3 = vld [vmem:[#allocation13 + $0x150] sm:$0xff] }
 0x1d8   :  { %7769 = vmatprep.subr.bf16.mxu0 %v11409_v2  ;;  %7801 = vmatprep.subr.bf16.mxu1 %v11411_v48  ;;  %v552_v56 = vld [vmem:[#allocation13 + $0xf8] sm:$0xff]  ;;  %v554_v48 = vld [vmem:[#allocation13 + $0x108] sm:$0xff]  ;;  %v567_v15 = vld [vmem:[#allocation13 + $0x170] sm:$0xff] }
 0x1d9   :  { %1303 = vmatprep.mubr.f32.mxu0 %v13509_v9  ;;  %1374 = vmatprep.mubr.f32.mxu1 %v13509_v9  ;;  %v11439_v58 = vpack.c.bf16 %v552_v56, %v548_v34  ;;  %v556_v2 = vld [vmem:[#allocation13 + $0x118] sm:$0xff]  ;;  %13567 = vst [vmem:[#allocation127_spill] sm:$0xff] %v11457_v16 }
 0x1db   :  { %7771 = vmatpush1.bf16.msra.mxu0 %v11417_v22  ;;  %7803 = vmatpush1.bf16.msra.mxu1 %v11419_v57  ;;  %13561 = vst [vmem:[#allocation121_spill] sm:$0xff] %v11439_v58  ;;  %v558_v22 = vld [vmem:[#allocation13 + $0x128] sm:$0xff]  ;;  %v560_v57 = vld [vmem:[#allocation13 + $0x138] sm:$0xff] }
 0x1dc   :  { %7773 = vmatprep.subr.bf16.mxu0 %v11423_v60  ;;  %7805 = vmatprep.subr.bf16.mxu1 %v11425_v21  ;;  %v11449_v34 = vpack.c.bf16 %v558_v22, %v554_v48  ;;  %v11451_v56 = vpack.c.bf16 %v560_v57, %v556_v2  ;;  %v562_v2 = vld [vmem:[#allocation13 + $0x148] sm:$0xff]  ;;  %v564_v22 = vld [vmem:[#allocation13 + $0x158] sm:$0xff] }
 0x1dd   :  { %v566_v48 = vld [vmem:[#allocation13 + $0x168] sm:$0xff]  ;;  %v11465_v30 = vpack.c.bf16 %v568_v0, %v564_v22  ;;  %v576_v22 = vld [vmem:[#allocation13 + $0x1b8] sm:$0xff]  ;;  %v573_v0 = vld [vmem:[#allocation13 + $0x1a0] sm:$0xff] }
 0x1de   :  { %13564 = vst [vmem:[#allocation124_spill] sm:$0xff] %v11449_v34  ;;  %13565 = vst [vmem:[#allocation125_spill] sm:$0xff] %v11451_v56  ;;  %v11463_v57 = vpack.c.bf16 %v566_v48, %v562_v2  ;;  %v574_v2 = vld [vmem:[#allocation13 + $0x1a8] sm:$0xff]  ;;  %v572_v48 = vld [vmem:[#allocation13 + $0x198] sm:$0xff] }
 0x1df   :  { %7775 = vmatpush1.bf16.msra.mxu0 %v11431_v46  ;;  %7807 = vmatpush1.bf16.msra.mxu1 %v11433_v47  ;;  %13569 = vst [vmem:[#allocation129_spill] sm:$0xff] %v11465_v30 }
 0x1e0   :  { %7777 = vmatprep.subr.bf16.mxu0 %v11437_v41  ;;  %7809 = vmatprep.subr.bf16.mxu1 %v11439_v58  ;;  %13568 = vst [vmem:[#allocation128_spill] sm:$0xff] %v11463_v57  ;;  %v704_v58 = vld [vmem:[#allocation11 + $0x1b8] sm:$0xff] }
 0x1e3   :  { %7779 = vmatpush1.bf16.msra.mxu0 %v11443_v28  ;;  %7811 = vmatpush1.bf16.msra.mxu1 %v11445_v27  ;;  %v565_v27 = vld [vmem:[#allocation13 + $0x160] sm:$0xff]  ;;  %v702_v28 = vld [vmem:[#allocation11 + $0x1a8] sm:$0xff] }
 0x1e4   :  { %7781 = vmatprep.subr.bf16.mxu0 %v11449_v34  ;;  %7813 = vmatprep.subr.bf16.mxu1 %v11451_v56  ;;  %v11467_v44 = vpack.c.bf16 %v565_v27, %v561_v40  ;;  %v11470_v56 = vpack.c.bf16 %v567_v15, %v563_v3  ;;  %v569_v27 = vld [vmem:[#allocation13 + $0x180] sm:$0xff]  ;;  %v11477_v40 = vpack.c.bf16 %v576_v22, %v572_v48  ;;  %v571_v3 = vld [vmem:[#allocation13 + $0x190] sm:$0xff]  ;;  %v584_v48 = vld [vmem:[#allocation13 + $0x1f8] sm:$0xff] }
 0x1e5   :  { %v11479_v34 = vpack.c.bf16 %v573_v0, %v569_v27  ;;  %v575_v15 = vld [vmem:[#allocation13 + $0x1b0] sm:$0xff]  ;;  %v577_v22 = vld [vmem:[#allocation13 + $0x1c0] sm:$0xff] }
 0x1e6   :  { %13570 = vst [vmem:[#allocation130_spill] sm:$0xff] %v11467_v44  ;;  %13571 = vst [vmem:[#allocation131_spill] sm:$0xff] %v11470_v56  ;;  %v581_v27 = vld [vmem:[#allocation13 + $0x1e0] sm:$0xff] }
 0x1e7   :  { %7783 = vmatpush1.bf16.msra.mxu0 %v11455_v5  ;;  %7815 = vmatpush1.bf16.msra.mxu1 %v11457_v16  ;;  %v570_v16 = vld [vmem:[#allocation13 + $0x188] sm:$0xff]  ;;  %13573 = vst [vmem:[#allocation133_spill] sm:$0xff] %v11477_v40  ;;  %13574 = vst [vmem:[#allocation134_spill] sm:$0xff] %v11479_v34 }
 0x1e8   :  { %7785 = vmatprep.subr.bf16.mxu0 %v11463_v57  ;;  %7817 = vmatprep.subr.bf16.mxu1 %v11465_v30  ;;  %v11475_v5 = vpack.c.bf16 %v574_v2, %v570_v16  ;;  %v11482_v30 = vpack.c.bf16 %v575_v15, %v571_v3  ;;  %v582_v16 = vld [vmem:[#allocation13 + $0x1e8] sm:$0xff]  ;;  %v580_v2 = vld [vmem:[#allocation13 + $0x1d8] sm:$0xff]  ;;  %v11491_v57 = vpack.c.bf16 %v581_v27, %v577_v22  ;;  %v579_v3 = vld [vmem:[#allocation13 + $0x1d0] sm:$0xff] }
 0x1e9   :  { %v11489_v0 = vpack.c.bf16 %v584_v48, %v580_v2  ;;  %v583_v15 = vld [vmem:[#allocation13 + $0x1f0] sm:$0xff]  ;;  %v656_v2 = vld [vmem:[#allocation11 + $0x38] sm:$0xff]  ;;  %v649_v48 = vld [vmem:[#allocation11] sm:$0xff] }
 0x1ea   :  { %13572 = vst [vmem:[#allocation132_spill] sm:$0xff] %v11475_v5  ;;  %13575 = vst [vmem:[#allocation135_spill] sm:$0xff] %v11482_v30  ;;  %v653_v22 = vld [vmem:[#allocation11 + $0x20] sm:$0xff] }
 0x1eb   :  { %7787 = vmatpush1.bf16.msra.mxu0 %v11467_v44  ;;  %7819 = vmatpush1.bf16.msra.mxu1 %v11470_v56  ;;  %v578_v56 = vld [vmem:[#allocation13 + $0x1c8] sm:$0xff]  ;;  %13577 = vst [vmem:[#allocation137_spill] sm:$0xff] %v11489_v0  ;;  %13578 = vst [vmem:[#allocation138_spill] sm:$0xff] %v11491_v57 }
 0x1ec   :  { %7789 = vmatprep.subr.bf16.mxu0 %v11475_v5  ;;  %7821 = vmatprep.subr.bf16.mxu1 %v11477_v40  ;;  %v11487_v44 = vpack.c.bf16 %v582_v16, %v578_v56  ;;  %v11494_v40 = vpack.c.bf16 %v583_v15, %v579_v3  ;;  %v654_v56 = vld [vmem:[#allocation11 + $0x28] sm:$0xff]  ;;  %v652_v16 = vld [vmem:[#allocation11 + $0x18] sm:$0xff]  ;;  %v11503_v5 = vpack.c.bf16 %v653_v22, %v649_v48  ;;  %v651_v3 = vld [vmem:[#allocation11 + $0x10] sm:$0xff] }
 0x1ed   :  { %v11501_v27 = vpack.c.bf16 %v656_v2, %v652_v16  ;;  %v655_v15 = vld [vmem:[#allocation11 + $0x30] sm:$0xff]  ;;  %v664_v2 = vld [vmem:[#allocation11 + $0x78] sm:$0xff]  ;;  %v657_v48 = vld [vmem:[#allocation11 + $0x40] sm:$0xff] }
 0x1ee   :  { %13576 = vst [vmem:[#allocation136_spill] sm:$0xff] %v11487_v44  ;;  %13579 = vst [vmem:[#allocation139_spill] sm:$0xff] %v11494_v40  ;;  %v661_v22 = vld [vmem:[#allocation11 + $0x60] sm:$0xff] }
 0x1ef   :  { %7791 = vmatpush1.bf16.msra.mxu0 %v11479_v34  ;;  %7823 = vmatpush1.bf16.msra.mxu1 %v11482_v30  ;;  %v650_v30 = vld [vmem:[#allocation11 + $0x8] sm:$0xff]  ;;  %13581 = vst [vmem:[#allocation141_spill] sm:$0xff] %v11501_v27  ;;  %13582 = vst [vmem:[#allocation142_spill] sm:$0xff] %v11503_v5 }
 0x1f0   :  { %7793 = vmatprep.subr.bf16.mxu0 %v11487_v44  ;;  %7825 = vmatprep.subr.bf16.mxu1 %v11489_v0  ;;  %v11499_v34 = vpack.c.bf16 %v654_v56, %v650_v30  ;;  %v658_v30 = vld [vmem:[#allocation11 + $0x48] sm:$0xff] }
 0x1f1   :  { %v662_v56 = vld [vmem:[#allocation11 + $0x68] sm:$0xff] }
 0x1f2   :  { %13580 = vst [vmem:[#allocation140_spill] sm:$0xff] %v11499_v34  ;;  %v11513_v16 = vpack.c.bf16 %v662_v56, %v658_v30  ;;  %v666_v30 = vld [vmem:[#allocation11 + $0x88] sm:$0xff] }
 0x1f3   :  { %7795 = vmatpush1.bf16.msra.mxu0 %v11491_v57  ;;  %7827 = vmatpush1.bf16.msra.mxu1 %v11494_v40  ;;  %v11507_v57 = vpack.c.bf16 %v655_v15, %v651_v3  ;;  %v660_v40 = vld [vmem:[#allocation11 + $0x58] sm:$0xff]  ;;  %v11517_v3 = vpack.c.bf16 %v661_v22, %v657_v48  ;;  %v659_v15 = vld [vmem:[#allocation11 + $0x50] sm:$0xff]  ;;  %v670_v56 = vld [vmem:[#allocation11 + $0xa8] sm:$0xff] }
 0x1f4   :  { %7829 = vmatprep.subr.bf16.mxu0 %v11499_v34  ;;  %7861 = vmatprep.subr.bf16.mxu1 %v11501_v27  ;;  %13584 = vst [vmem:[#allocation144_spill] sm:$0xff] %v11513_v16  ;;  %v11515_v34 = vpack.c.bf16 %v664_v2, %v660_v40  ;;  %v663_v27 = vld [vmem:[#allocation11 + $0x70] sm:$0xff]  ;;  %v11527_v40 = vpack.c.bf16 %v670_v56, %v666_v30  ;;  %v672_v2 = vld [vmem:[#allocation11 + $0xb8] sm:$0xff]  ;;  %v665_v48 = vld [vmem:[#allocation11 + $0x80] sm:$0xff] }
 0x1f5   :  { %13583 = vst [vmem:[#allocation143_spill] sm:$0xff] %v11507_v57  ;;  %13586 = vst [vmem:[#allocation146_spill] sm:$0xff] %v11517_v3  ;;  %v669_v22 = vld [vmem:[#allocation11 + $0xa0] sm:$0xff] }
 0x1f6   :  { %1304 = vmatmul.mubr.f32.vlgmr.msra.gmra.mrb[8].mxu0 %v13509_v9  ;;  %1375 = vmatmul.mubr.f32.vlgmr.msra.gmra.mrb[8].mxu1 %v13509_v9  ;;  %13585 = vst [vmem:[#allocation145_spill] sm:$0xff] %v11515_v34  ;;  %13588 = vst [vmem:[#allocation148_spill] sm:$0xff] %v11527_v40  ;;  %v11531_v44 = vpack.c.bf16 %v669_v22, %v665_v48  ;;  %v673_v56 = vld [vmem:[#allocation11 + $0xc0] sm:$0xff] }
 0x1f7   :  { %7831 = vmatpush1.bf16.msra.mxu0 %v11503_v5  ;;  %7863 = vmatpush1.bf16.msra.mxu1 %v11507_v57  ;;  %v11522_v5 = vpack.c.bf16 %v663_v27, %v659_v15  ;;  %v668_v57 = vld [vmem:[#allocation11 + $0x98] sm:$0xff]  ;;  %v667_v27 = vld [vmem:[#allocation11 + $0x90] sm:$0xff] }
 0x1f8   :  { %1445 = vmatprep.mubr.f32.mxu0 %v13509_v9  ;;  %1516 = vmatprep.mubr.f32.mxu1 %v13509_v9  ;;  %v11529_v0 = vpack.c.bf16 %v672_v2, %v668_v57  ;;  %13590 = vst [vmem:[#allocation150_spill] sm:$0xff] %v11531_v44  ;;  %v671_v15 = vld [vmem:[#allocation11 + $0xb0] sm:$0xff]  ;;  %v680_v57 = vld [vmem:[#allocation11 + $0xf8] sm:$0xff]  ;;  %v677_v2 = vld [vmem:[#allocation11 + $0xe0] sm:$0xff] }
 0x1f9   :  { %7833 = vmatprep.subr.bf16.mxu0 %v11513_v16  ;;  %13587 = vst [vmem:[#allocation147_spill] sm:$0xff] %v11522_v5  ;;  %7865 = vmatprep.subr.bf16.mxu1 %v11515_v34  ;;  %v11534_v34 = vpack.c.bf16 %v671_v15, %v667_v27  ;;  %v678_v16 = vld [vmem:[#allocation11 + $0xe8] sm:$0xff]  ;;  %v11543_v22 = vpack.c.bf16 %v677_v2, %v673_v56  ;;  %v675_v27 = vld [vmem:[#allocation11 + $0xd0] sm:$0xff] }
 0x1fa   :  { %13589 = vst [vmem:[#allocation149_spill] sm:$0xff] %v11529_v0  ;;  %v679_v15 = vld [vmem:[#allocation11 + $0xf0] sm:$0xff] }
 0x1fb   :  { %7835 = vmatpush1.bf16.msra.mxu0 %v11517_v3  ;;  %7867 = vmatpush1.bf16.msra.mxu1 %v11522_v5  ;;  %13591 = vst [vmem:[#allocation151_spill] sm:$0xff] %v11534_v34  ;;  %v674_v3 = vld [vmem:[#allocation11 + $0xc8] sm:$0xff]  ;;  %v676_v5 = vld [vmem:[#allocation11 + $0xd8] sm:$0xff]  ;;  %13594 = vst [vmem:[#allocation154_spill] sm:$0xff] %v11543_v22 }
 0x1fc   :  { %7837 = vmatprep.subr.bf16.mxu0 %v11527_v40  ;;  %7869 = vmatprep.subr.bf16.mxu1 %v11529_v0  ;;  %v11539_v30 = vpack.c.bf16 %v678_v16, %v674_v3  ;;  %v11541_v48 = vpack.c.bf16 %v680_v57, %v676_v5  ;;  %v11546_v0 = vpack.c.bf16 %v679_v15, %v675_v27  ;;  %v686_v40 = vld [vmem:[#allocation11 + $0x128] sm:$0xff]  ;;  %v688_v5 = vld [vmem:[#allocation11 + $0x138] sm:$0xff]  ;;  %v681_v3 = vld [vmem:[#allocation11 + $0x100] sm:$0xff] }
 0x1fd   :  { %v685_v57 = vld [vmem:[#allocation11 + $0x120] sm:$0xff]  ;;  %v683_v27 = vld [vmem:[#allocation11 + $0x110] sm:$0xff] }
 0x1fe   :  { %13592 = vst [vmem:[#allocation152_spill] sm:$0xff] %v11539_v30  ;;  %13593 = vst [vmem:[#allocation153_spill] sm:$0xff] %v11541_v48  ;;  %v11555_v2 = vpack.c.bf16 %v685_v57, %v681_v3  ;;  %v687_v15 = vld [vmem:[#allocation11 + $0x130] sm:$0xff] }
 0x1ff   :  { %7839 = vmatpush1.bf16.msra.mxu0 %v11531_v44  ;;  %7871 = vmatpush1.bf16.msra.mxu1 %v11534_v34  ;;  %13595 = vst [vmem:[#allocation155_spill] sm:$0xff] %v11546_v0  ;;  %v682_v44 = vld [vmem:[#allocation11 + $0x108] sm:$0xff]  ;;  %v684_v34 = vld [vmem:[#allocation11 + $0x118] sm:$0xff] }
 0x200   :  { %7841 = vmatprep.subr.bf16.mxu0 %v11539_v30  ;;  %7873 = vmatprep.subr.bf16.mxu1 %v11541_v48  ;;  %v11551_v16 = vpack.c.bf16 %v686_v40, %v682_v44  ;;  %v11553_v56 = vpack.c.bf16 %v688_v5, %v684_v34  ;;  %13598 = vst [vmem:[#allocation158_spill] sm:$0xff] %v11555_v2  ;;  %v694_v30 = vld [vmem:[#allocation11 + $0x168] sm:$0xff]  ;;  %v696_v34 = vld [vmem:[#allocation11 + $0x178] sm:$0xff]  ;;  %v689_v40 = vld [vmem:[#allocation11 + $0x140] sm:$0xff] }
 0x201   :  { %v11558_v48 = vpack.c.bf16 %v687_v15, %v683_v27  ;;  %v693_v5 = vld [vmem:[#allocation11 + $0x160] sm:$0xff]  ;;  %v691_v27 = vld [vmem:[#allocation11 + $0x150] sm:$0xff] }
 0x202   :  { %13596 = vst [vmem:[#allocation156_spill] sm:$0xff] %v11551_v16  ;;  %13597 = vst [vmem:[#allocation157_spill] sm:$0xff] %v11553_v56  ;;  %v11567_v57 = vpack.c.bf16 %v693_v5, %v689_v40  ;;  %v695_v15 = vld [vmem:[#allocation11 + $0x170] sm:$0xff] }
 0x203   :  { %7843 = vmatpush1.bf16.msra.mxu0 %v11543_v22  ;;  %7875 = vmatpush1.bf16.msra.mxu1 %v11546_v0  ;;  %13599 = vst [vmem:[#allocation159_spill] sm:$0xff] %v11558_v48  ;;  %v690_v22 = vld [vmem:[#allocation11 + $0x148] sm:$0xff]  ;;  %v692_v0 = vld [vmem:[#allocation11 + $0x158] sm:$0xff]  ;;  %v699_v40 = vld [vmem:[#allocation11 + $0x190] sm:$0xff] }
 0x204   :  { %7845 = vmatprep.subr.bf16.mxu0 %v11551_v16  ;;  %7877 = vmatprep.subr.bf16.mxu1 %v11553_v56  ;;  %v11563_v44 = vpack.c.bf16 %v694_v30, %v690_v22  ;;  %v11565_v3 = vpack.c.bf16 %v696_v34, %v692_v0  ;;  %13602 = vst [vmem:[#allocation162_spill] sm:$0xff] %v11567_v57  ;;  %v698_v16 = vld [vmem:[#allocation11 + $0x188] sm:$0xff]  ;;  %v697_v0 = vld [vmem:[#allocation11 + $0x180] sm:$0xff] }
 0x205   :  { %v11570_v56 = vpack.c.bf16 %v695_v15, %v691_v27  ;;  %v11573_v30 = vpack.c.bf16 %v702_v28, %v698_v16  ;;  %v701_v34 = vld [vmem:[#allocation11 + $0x1a0] sm:$0xff]  ;;  %v703_v27 = vld [vmem:[#allocation11 + $0x1b0] sm:$0xff]  ;;  %v706_v15 = vld [vmem:[#allocation11 + $0x1c8] sm:$0xff] }
 0x206   :  { %13600 = vst [vmem:[#allocation160_spill] sm:$0xff] %v11563_v44  ;;  %13601 = vst [vmem:[#allocation161_spill] sm:$0xff] %v11565_v3  ;;  %v11579_v5 = vpack.c.bf16 %v701_v34, %v697_v0  ;;  %v11583_v28 = vpack.c.bf16 %v703_v27, %v699_v40  ;;  %v708_v16 = vld [vmem:[#allocation11 + $0x1d8] sm:$0xff]  ;;  %v711_v0 = vld [vmem:[#allocation11 + $0x1f0] sm:$0xff] }
 0x207   :  { %7847 = vmatpush1.bf16.msra.mxu0 %v11555_v2  ;;  %7879 = vmatpush1.bf16.msra.mxu1 %v11558_v48  ;;  %13603 = vst [vmem:[#allocation163_spill] sm:$0xff] %v11570_v56  ;;  %v700_v2 = vld [vmem:[#allocation11 + $0x198] sm:$0xff]  ;;  %13604 = vst [vmem:[#allocation164_spill] sm:$0xff] %v11573_v30 }
 0x208   :  { %7849 = vmatprep.subr.bf16.mxu0 %v11563_v44  ;;  %7881 = vmatprep.subr.bf16.mxu1 %v11565_v3  ;;  %v11575_v22 = vpack.c.bf16 %v704_v58, %v700_v2  ;;  %13606 = vst [vmem:[#allocation166_spill] sm:$0xff] %v11579_v5  ;;  %v710_v44 = vld [vmem:[#allocation11 + $0x1e8] sm:$0xff]  ;;  %13607 = vst [vmem:[#allocation167_spill] sm:$0xff] %v11583_v28  ;;  %v712_v2 = vld [vmem:[#allocation11 + $0x1f8] sm:$0xff] }
 0x209   :  { %v11585_v58 = vpack.c.bf16 %v710_v44, %v706_v15  ;;  %v705_v3 = vld [vmem:[#allocation11 + $0x1c0] sm:$0xff]  ;;  %v11587_v48 = vpack.c.bf16 %v712_v2, %v708_v16  ;;  %v713_v44 = vld [vmem:[%s13143_s6] sm:$0xf] }
 0x20a   :  { %13605 = vst [vmem:[#allocation165_spill] sm:$0xff] %v11575_v22 }
 0x20b   :  { %7851 = vmatpush1.bf16.msra.mxu0 %v11567_v57  ;;  %7883 = vmatpush1.bf16.msra.mxu1 %v11570_v56  ;;  %13608 = vst [vmem:[#allocation168_spill] sm:$0xff] %v11585_v58  ;;  %13609 = vst [vmem:[#allocation169_spill] sm:$0xff] %v11587_v48  ;;  %v709_v57 = vld [vmem:[#allocation11 + $0x1e0] sm:$0xff]  ;;  %v707_v56 = vld [vmem:[#allocation11 + $0x1d0] sm:$0xff] }
 0x20c   :  { %7853 = vmatprep.subr.bf16.mxu0 %v11573_v30  ;;  %7885 = vmatprep.subr.bf16.mxu1 %v11575_v22  ;;  %v11591_v34 = vpack.c.bf16 %v709_v57, %v705_v3  ;;  %v11593_v30 = vpack.c.bf16 %v711_v0, %v707_v56  ;;  %v11605_v3 = vrot.slane %v713_v44, %v11365_v33 }
 0x20d   :  { %v11608_v56 = vrot.slane %v713_v44, %v11370_v11 }
 0x20e   :  { %13610 = vst [vmem:[#allocation170_spill] sm:$0xff] %v11591_v34  ;;  %13611 = vst [vmem:[#allocation171_spill] sm:$0xff] %v11593_v30 }
 0x20f   :  { %7855 = vmatpush1.bf16.msra.mxu0 %v11579_v5  ;;  %7887 = vmatpush1.bf16.msra.mxu1 %v11583_v28  ;;  %13612 = vst [vmem:[#allocation172_spill] sm:$0xff] %v11605_v3  ;;  %13613 = vst [vmem:[#allocation173_spill] sm:$0xff] %v11608_v56 }
 0x210   :  { %7857 = vmatprep.subr.bf16.mxu0 %v11585_v58  ;;  %7889 = vmatprep.subr.bf16.mxu1 %v11587_v48 }
 0x213   :  { %7859 = vmatpush1.bf16.msra.mxu0 %v11591_v34  ;;  %7891 = vmatpush1.bf16.msra.mxu1 %v11593_v30  ;;  %v11617_v34 = vrot.slane %v713_v44, %v11372_v1 }
 0x214   :  { %7893 = vmatprep.subr.bf16.mxu0 %v11059_v38  ;;  %7925 = vmatprep.subr.bf16.mxu1 %v11061_v42  ;;  %v11613_v42 = vrot.slane %v713_v44, %v11374_v39 }
 0x216   :  { %13614 = vst [vmem:[#allocation174_spill] sm:$0xff] %v11613_v42 }
 0x2a9   :  { %v1135_v57 = vpop.f32.mrb[6].mxu0  ;;  %v1206_v40 = vpop.f32.mrb[6].mxu1 }
 0x2aa   :  { %v1211_v27 = vadd.f32 %v1135_v57, %v11605_v3  ;;  %v1137_v15 = vpop.f32.mrb[7].mxu0  ;;  %v1208_v16 = vpop.f32.mrb[7].mxu1  ;;  %v1213_v58 = vadd.f32 %v1206_v40, %v11617_v34 }
 0x2ab   :  { %v1212_v2 = vadd.f32 %v1137_v15, %v11608_v56  ;;  %v1214_v30 = vadd.f32 %v1208_v16, %v11613_v42 }
 0x2ac   :  { %v7383_v0 = vmul.f32 -1.442695, %v1211_v27 }
 0x2ad   :  { %v7384_v38 = vmul.f32 -1.442695, %v1212_v2  ;;  %v7385_v48 = vmul.f32 -1.442695, %v1214_v30 }
 0x2ae   :  { %10258 = vpow2.f32 %v7383_v0 }
 0x2af   :  { %10260 = vpow2.f32 %v7384_v38 }
 0x2b0   :  { %10262 = vpow2.f32 %v7385_v48  ;;  %v13616_v48 = vld [vmem:[#allocation40_spill] sm:$0xff] }
 0x2b1   :  { %10264 = vtanh.f32 %v1213_v58  ;;  %v13618_v58 = vld [vmem:[#allocation42_spill] sm:$0xff] }
 0x2b8   :  { %v10259_v57 = vpop.eup %10258 }
 0x2b9   :  { %v10261_v3 = vpop.eup %10260  ;;  %v1224_v28 = vadd.f32 1.0, %v10259_v57 }
 0x2ba   :  { %v1225_v27 = vadd.f32 1.0, %v10261_v3  ;;  %v10263_v15 = vpop.eup %10262  ;;  %v13619_v3 = vld [vmem:[#allocation43_spill] sm:$0xff] }
 0x2bb   :  { %10266 = vrcp.f32 %v1224_v28  ;;  %v10265_v2 = vpop.eup %10264  ;;  %v1226_v16 = vadd.f32 1.0, %v10263_v15  ;;  %v13617_v28 = vld [vmem:[#allocation41_spill] sm:$0xff]  ;;  %v13623_v15 = vld [vmem:[#allocation46_spill] sm:$0xff] }
 0x2bc   :  { %10268 = vrcp.f32 %v1225_v27  ;;  %v13622_v27 = vld [vmem:[#allocation47_spill] sm:$0xff] }
 0x2bd   :  { %10270 = vrcp.f32 %v1226_v16  ;;  %v13627_v16 = vld [vmem:[#allocation50_spill] sm:$0xff] }
 0x2c5   :  { %v10267_v0 = vpop.eup %10266 }
 0x2c6   :  { %v10269_v38 = vpop.eup %10268  ;;  %v1235_v56 = vmul.f32 %v10267_v0, %v10265_v2  ;;  %v13624_v2 = vld [vmem:[#allocation48_spill] sm:$0xff]  ;;  %v13625_v0 = vld [vmem:[#allocation49_spill] sm:$0xff] }
 0x2c7   :  { %v1234_v42 = vmul.f32 0.0, %v10269_v38  ;;  %v10271_v30 = vpop.eup %10270  ;;  %v13626_v38 = vld [vmem:[#allocation51_spill] sm:$0xff] }
 0x2c9   :  { %v11620_v44 = vadd.f32 %v1235_v56, %v1234_v42  ;;  %v13615_v42 = vld [vmem:[#allocation39_spill] sm:$0xff]  ;;  %v13620_v56 = vld [vmem:[#allocation44_spill] sm:$0xff] }
 0x2cb   :  { %10272 = vtanh.f32 %v11620_v44 }
 0x2d5   :  { %v10273_v40 = vpop.eup %10272 }
 0x2d6   :  { %v11623_v57 = vmul.f32 %v10273_v40, %v10271_v30  ;;  %v13628_v30 = vld [vmem:[#allocation52_spill] sm:$0xff]  ;;  %v13629_v40 = vld [vmem:[#allocation53_spill] sm:$0xff] }
 0x2d8   :  { %1446 = vmatmul.mubr.f32.vlgmr.msra.gmra.mrb[8].mxu0 %v11623_v57  ;;  %1517 = vmatmul.mubr.f32.vlgmr.msra.gmra.mrb[8].mxu1 %v11623_v57 }
 0x2d9   :  { %7895 = vmatpush1.bf16.msra.mxu0 %v11063_v49  ;;  %7927 = vmatpush1.bf16.msra.mxu1 %v11066_v50 }
 0x2da   :  { %7897 = vmatprep.subr.bf16.mxu0 %v11068_v51  ;;  %7929 = vmatprep.subr.bf16.mxu1 %v11071_v55 }
 0x2db   :  { %1615 = vmatprep.mubr.f32.mxu0 %v13509_v9  ;;  %1686 = vmatprep.mubr.f32.mxu1 %v13509_v9 }
 0x2dd   :  { %7899 = vmatpush1.bf16.msra.mxu0 %v11074_v61  ;;  %7931 = vmatpush1.bf16.msra.mxu1 %v11078_v62 }
 0x2de   :  { %7901 = vmatprep.subr.bf16.mxu0 %v11080_v63  ;;  %7933 = vmatprep.subr.bf16.mxu1 %v11083_v4 }
 0x2e1   :  { %7903 = vmatpush1.bf16.msra.mxu0 %v11088_v10  ;;  %7935 = vmatpush1.bf16.msra.mxu1 %v11092_v12 }
 0x2e2   :  { %7905 = vmatprep.subr.bf16.mxu0 %v11094_v13  ;;  %7937 = vmatprep.subr.bf16.mxu1 %v11097_v17 }
 0x2e5   :  { %7907 = vmatpush1.bf16.msra.mxu0 %v11101_v23  ;;  %7939 = vmatpush1.bf16.msra.mxu1 %v11106_v24 }
 0x2e6   :  { %7909 = vmatprep.subr.bf16.mxu0 %v11108_v25  ;;  %7941 = vmatprep.subr.bf16.mxu1 %v11111_v29 }
 0x2e9   :  { %7911 = vmatpush1.bf16.msra.mxu0 %v11114_v35  ;;  %7943 = vmatpush1.bf16.msra.mxu1 %v11118_v36 }
 0x2ea   :  { %7913 = vmatprep.subr.bf16.mxu0 %v11120_v37  ;;  %7945 = vmatprep.subr.bf16.mxu1 %v11123_v43 }
 0x2ed   :  { %7915 = vmatpush1.bf16.msra.mxu0 %v11126_v52  ;;  %7947 = vmatpush1.bf16.msra.mxu1 %v11130_v53 }
 0x2ee   :  { %7917 = vmatprep.subr.bf16.mxu0 %v11132_v54  ;;  %7949 = vmatprep.subr.bf16.mxu1 %v11135_v59 }
 0x2f1   :  { %7919 = vmatpush1.bf16.msra.mxu0 %v11138_v6  ;;  %7951 = vmatpush1.bf16.msra.mxu1 %v11142_v7 }
 0x2f2   :  { %7921 = vmatprep.subr.bf16.mxu0 %v11144_v8  ;;  %7953 = vmatprep.subr.bf16.mxu1 %v11147_v14 }
 0x2f5   :  { %7923 = vmatpush1.bf16.msra.mxu0 %v11150_v18  ;;  %7955 = vmatpush1.bf16.msra.mxu1 %v11154_v19 }
 0x2f6   :  { %7957 = vmatprep.subr.bf16.mxu0 %v11163_v26  ;;  %7989 = vmatprep.subr.bf16.mxu1 %v11165_v31  ;;  %v13682_v31 = vld [vmem:[#allocation107_spill] sm:$0xff] }
 0x2f8   :  { %1616 = vmatmul.mubr.f32.vlgmr.msra.gmra.mrb[10].mxu0 %v11407_v20  ;;  %1687 = vmatmul.mubr.f32.vlgmr.msra.gmra.mrb[10].mxu1 %v11407_v20  ;;  %v13621_v20 = vld [vmem:[#allocation45_spill] sm:$0xff] }
 0x2f9   :  { %7959 = vmatpush1.bf16.msra.mxu0 %v11167_v32  ;;  %7991 = vmatpush1.bf16.msra.mxu1 %v11172_v45 }
 0x2fa   :  { %7961 = vmatprep.subr.bf16.mxu0 %v13615_v42  ;;  %7993 = vmatprep.subr.bf16.mxu1 %v13616_v48 }
 0x2fb   :  { %1800 = vmatprep.mubr.f32.mxu0 %v13509_v9  ;;  %1871 = vmatprep.mubr.f32.mxu1 %v13509_v9 }
 0x2fd   :  { %7963 = vmatpush1.bf16.msra.mxu0 %v13617_v28  ;;  %7995 = vmatpush1.bf16.msra.mxu1 %v13618_v58 }
 0x2fe   :  { %7965 = vmatprep.subr.bf16.mxu0 %v13619_v3  ;;  %7997 = vmatprep.subr.bf16.mxu1 %v13620_v56  ;;  %v13630_v3 = vld [vmem:[#allocation54_spill] sm:$0xff]  ;;  %v13631_v56 = vld [vmem:[#allocation55_spill] sm:$0xff] }
 0x301   :  { %7967 = vmatpush1.bf16.msra.mxu0 %v13621_v20  ;;  %7999 = vmatpush1.bf16.msra.mxu1 %v13622_v27  ;;  %v13632_v20 = vld [vmem:[#allocation56_spill] sm:$0xff]  ;;  %v13633_v27 = vld [vmem:[#allocation57_spill] sm:$0xff] }
 0x302   :  { %7969 = vmatprep.subr.bf16.mxu0 %v13623_v15  ;;  %8001 = vmatprep.subr.bf16.mxu1 %v13624_v2  ;;  %v13634_v15 = vld [vmem:[#allocation58_spill] sm:$0xff]  ;;  %v13635_v2 = vld [vmem:[#allocation59_spill] sm:$0xff] }
 0x305   :  { %7971 = vmatpush1.bf16.msra.mxu0 %v13625_v0  ;;  %8003 = vmatpush1.bf16.msra.mxu1 %v13626_v38  ;;  %v13636_v0 = vld [vmem:[#allocation60_spill] sm:$0xff]  ;;  %v13637_v38 = vld [vmem:[#allocation61_spill] sm:$0xff] }
 0x306   :  { %7973 = vmatprep.subr.bf16.mxu0 %v13627_v16  ;;  %8005 = vmatprep.subr.bf16.mxu1 %v13628_v30  ;;  %v13638_v16 = vld [vmem:[#allocation62_spill] sm:$0xff]  ;;  %v13639_v30 = vld [vmem:[#allocation63_spill] sm:$0xff] }
 0x309   :  { %7975 = vmatpush1.bf16.msra.mxu0 %v13629_v40  ;;  %8007 = vmatpush1.bf16.msra.mxu1 %v13630_v3  ;;  %v13640_v40 = vld [vmem:[#allocation64_spill] sm:$0xff]  ;;  %v13641_v3 = vld [vmem:[#allocation65_spill] sm:$0xff] }
 0x30a   :  { %7977 = vmatprep.subr.bf16.mxu0 %v13631_v56  ;;  %8009 = vmatprep.subr.bf16.mxu1 %v13632_v20  ;;  %v13642_v56 = vld [vmem:[#allocation66_spill] sm:$0xff]  ;;  %v13643_v20 = vld [vmem:[#allocation67_spill] sm:$0xff] }
 0x30d   :  { %7979 = vmatpush1.bf16.msra.mxu0 %v13633_v27  ;;  %8011 = vmatpush1.bf16.msra.mxu1 %v13634_v15  ;;  %v13644_v27 = vld [vmem:[#allocation68_spill] sm:$0xff] }
 0x30e   :  { %7981 = vmatprep.subr.bf16.mxu0 %v13635_v2  ;;  %8013 = vmatprep.subr.bf16.mxu1 %v13636_v0  ;;  %v13645_v0 = vld [vmem:[#allocation69_spill] sm:$0xff]  ;;  %v13659_v2 = vld [vmem:[#allocation83_spill] sm:$0xff] }
 0x311   :  { %7983 = vmatpush1.bf16.msra.mxu0 %v13637_v38  ;;  %8015 = vmatpush1.bf16.msra.mxu1 %v13638_v16  ;;  %v13646_v38 = vld [vmem:[#allocation70_spill] sm:$0xff]  ;;  %v13647_v16 = vld [vmem:[#allocation71_spill] sm:$0xff] }
 0x312   :  { %7985 = vmatprep.subr.bf16.mxu0 %v13639_v30  ;;  %8017 = vmatprep.subr.bf16.mxu1 %v13640_v40  ;;  %v13648_v30 = vld [vmem:[#allocation72_spill] sm:$0xff]  ;;  %v13658_v40 = vld [vmem:[#allocation82_spill] sm:$0xff] }
 0x315   :  { %7987 = vmatpush1.bf16.msra.mxu0 %v13641_v3  ;;  %8019 = vmatpush1.bf16.msra.mxu1 %v13642_v56  ;;  %v13649_v56 = vld [vmem:[#allocation73_spill] sm:$0xff]  ;;  %v13652_v3 = vld [vmem:[#allocation76_spill] sm:$0xff] }
 0x316   :  { %8021 = vmatprep.subr.bf16.mxu0 %v13643_v20  ;;  %8053 = vmatprep.subr.bf16.mxu1 %v13644_v27  ;;  %v13650_v20 = vld [vmem:[#allocation74_spill] sm:$0xff]  ;;  %v13651_v27 = vld [vmem:[#allocation75_spill] sm:$0xff] }
 0x318   :  { %1801 = vmatmul.mubr.f32.vlgmr.msra.gmra.mrb[12].mxu0 %v11623_v57  ;;  %1872 = vmatmul.mubr.f32.vlgmr.msra.gmra.mrb[12].mxu1 %v11623_v57  ;;  %v13653_v57 = vld [vmem:[#allocation77_spill] sm:$0xff] }
 0x319   :  { %8023 = vmatpush1.bf16.msra.mxu0 %v13645_v0  ;;  %8055 = vmatpush1.bf16.msra.mxu1 %v13646_v38  ;;  %v13654_v0 = vld [vmem:[#allocation78_spill] sm:$0xff]  ;;  %v13655_v38 = vld [vmem:[#allocation79_spill] sm:$0xff] }
 0x31a   :  { %8025 = vmatprep.subr.bf16.mxu0 %v13647_v16  ;;  %8057 = vmatprep.subr.bf16.mxu1 %v13648_v30  ;;  %v13656_v16 = vld [vmem:[#allocation80_spill] sm:$0xff]  ;;  %v13657_v30 = vld [vmem:[#allocation81_spill] sm:$0xff] }
 0x31b   :  { %1945 = vmatprep.mubr.f32.mxu0 %v13509_v9  ;;  %2016 = vmatprep.mubr.f32.mxu1 %v13509_v9 }
 0x31d   :  { %8027 = vmatpush1.bf16.msra.mxu0 %v13649_v56  ;;  %8059 = vmatpush1.bf16.msra.mxu1 %v13650_v20  ;;  %v13660_v56 = vld [vmem:[#allocation84_spill] sm:$0xff]  ;;  %v13661_v20 = vld [vmem:[#allocation85_spill] sm:$0xff] }
 0x31e   :  { %8029 = vmatprep.subr.bf16.mxu0 %v13651_v27  ;;  %8061 = vmatprep.subr.bf16.mxu1 %v13652_v3  ;;  %v13662_v27 = vld [vmem:[#allocation86_spill] sm:$0xff]  ;;  %v13663_v3 = vld [vmem:[#allocation87_spill] sm:$0xff] }
 0x321   :  { %8031 = vmatpush1.bf16.msra.mxu0 %v13653_v57  ;;  %8063 = vmatpush1.bf16.msra.mxu1 %v13654_v0  ;;  %v13664_v57 = vld [vmem:[#allocation88_spill] sm:$0xff]  ;;  %v13665_v0 = vld [vmem:[#allocation89_spill] sm:$0xff] }
 0x322   :  { %8033 = vmatprep.subr.bf16.mxu0 %v13655_v38  ;;  %8065 = vmatprep.subr.bf16.mxu1 %v13656_v16  ;;  %v13666_v38 = vld [vmem:[#allocation90_spill] sm:$0xff]  ;;  %v13667_v16 = vld [vmem:[#allocation91_spill] sm:$0xff] }
 0x325   :  { %8035 = vmatpush1.bf16.msra.mxu0 %v13657_v30  ;;  %8067 = vmatpush1.bf16.msra.mxu1 %v13658_v40  ;;  %v13668_v30 = vld [vmem:[#allocation92_spill] sm:$0xff]  ;;  %v13669_v40 = vld [vmem:[#allocation93_spill] sm:$0xff] }
 0x326   :  { %8037 = vmatprep.subr.bf16.mxu0 %v13659_v2  ;;  %8069 = vmatprep.subr.bf16.mxu1 %v13660_v56  ;;  %v13670_v2 = vld [vmem:[#allocation94_spill] sm:$0xff]  ;;  %v13671_v56 = vld [vmem:[#allocation95_spill] sm:$0xff] }
 0x329   :  { %8039 = vmatpush1.bf16.msra.mxu0 %v13661_v20  ;;  %8071 = vmatpush1.bf16.msra.mxu1 %v13662_v27  ;;  %v13672_v20 = vld [vmem:[#allocation96_spill] sm:$0xff]  ;;  %v13673_v27 = vld [vmem:[#allocation97_spill] sm:$0xff] }
 0x32a   :  { %8041 = vmatprep.subr.bf16.mxu0 %v13663_v3  ;;  %8073 = vmatprep.subr.bf16.mxu1 %v13664_v57  ;;  %v13674_v3 = vld [vmem:[#allocation98_spill] sm:$0xff]  ;;  %v13675_v57 = vld [vmem:[#allocation99_spill] sm:$0xff] }
 0x32d   :  { %8043 = vmatpush1.bf16.msra.mxu0 %v13665_v0  ;;  %8075 = vmatpush1.bf16.msra.mxu1 %v13666_v38  ;;  %v13676_v0 = vld [vmem:[#allocation100_spill] sm:$0xff] }
 0x32e   :  { %8045 = vmatprep.subr.bf16.mxu0 %v13667_v16  ;;  %8077 = vmatprep.subr.bf16.mxu1 %v13668_v30  ;;  %v11736_v30 = vld [vmem:[%s13146_s9] sm:$0xf] }
 0x331   :  { %8047 = vmatpush1.bf16.msra.mxu0 %v13669_v40  ;;  %8079 = vmatpush1.bf16.msra.mxu1 %v13670_v2  ;;  %v11740_v2 = vrot.slane %v11736_v30, %v11365_v33  ;;  %v11750_v33 = vrot.slane %v11736_v30, %v11372_v1 }
 0x332   :  { %8049 = vmatprep.subr.bf16.mxu0 %v13671_v56  ;;  %8081 = vmatprep.subr.bf16.mxu1 %v13672_v20  ;;  %v11744_v20 = vrot.slane %v11736_v30, %v11370_v11 }
 0x333   :  { %13677 = vst [vmem:[#allocation175_spill] sm:$0xff] %v11740_v2  ;;  %13679 = vst [vmem:[#allocation177_spill] sm:$0xff] %v11750_v33 }
 0x334   :  { %13678 = vst [vmem:[#allocation176_spill] sm:$0xff] %v11744_v20 }
 0x335   :  { %8051 = vmatpush1.bf16.msra.mxu0 %v13673_v27  ;;  %8083 = vmatpush1.bf16.msra.mxu1 %v13674_v3 }
 0x336   :  { %8085 = vmatprep.subr.bf16.mxu0 %v13675_v57  ;;  %8117 = vmatprep.subr.bf16.mxu1 %v13676_v0 }
 0x3ab   :  { %v1447_v27 = vpop.f32.mrb[8].mxu0  ;;  %v1518_v56 = vpop.f32.mrb[8].mxu1 }
 0x3ac   :  { %v1523_v3 = vadd.f32 %v1447_v27, %v11740_v2  ;;  %v1449_v57 = vpop.f32.mrb[9].mxu0  ;;  %v1520_v40 = vpop.f32.mrb[9].mxu1  ;;  %v1525_v15 = vadd.f32 %v1518_v56, %v11750_v33  ;;  %v13680_v33 = vld [vmem:[#allocation105_spill] sm:$0xff] }
 0x3ad   :  { %v1524_v0 = vadd.f32 %v1449_v57, %v11744_v20 }
 0x3ae   :  { %v7386_v16 = vmul.f32 -1.442695, %v1523_v3 }
 0x3af   :  { %v7387_v38 = vmul.f32 -1.442695, %v1524_v0 }
 0x3b0   :  { %10274 = vpow2.f32 %v7386_v16 }
 0x3b1   :  { %10276 = vpow2.f32 %v7387_v38 }
 0x3b2   :  { %10278 = vtanh.f32 %v1525_v15 }
 0x3ba   :  { %v10275_v11 = vpop.eup %10274 }
 0x3bb   :  { %v10277_v58 = vpop.eup %10276  ;;  %v1536_v28 = vadd.f32 1.0, %v10275_v11  ;;  %v13681_v11 = vld [vmem:[#allocation106_spill] sm:$0xff] }
 0x3bc   :  { %v1537_v48 = vadd.f32 1.0, %v10277_v58  ;;  %v10279_v27 = vpop.eup %10278 }
 0x3bd   :  { %10280 = vrcp.f32 %v1536_v28 }
 0x3be   :  { %10282 = vrcp.f32 %v1537_v48 }
 0x3c7   :  { %v10281_v2 = vpop.eup %10280 }
 0x3c8   :  { %v10283_v57 = vpop.eup %10282  ;;  %v1547_v3 = vmul.f32 %v10281_v2, %v10279_v27 }
 0x3c9   :  { %v1546_v0 = vmul.f32 0.0, %v10283_v57 }
 0x3cb   :  { %v11753_v16 = vadd.f32 %v1547_v3, %v1546_v0  ;;  %v1617_v38 = vpop.f32.mrb[10].mxu0  ;;  %v1688_v20 = vpop.f32.mrb[10].mxu1  ;;  %v13683_v3 = vld [vmem:[#allocation108_spill] sm:$0xff] }
 0x3cc   :  { %v1697_v1 = vrot.slane %v1617_v38, 6  ;;  %v1619_v42 = vpop.f32.mrb[11].mxu0  ;;  %v1690_v45 = vpop.f32.mrb[11].mxu1  ;;  %v1699_v27 = vrot.slane %v1688_v20, 6 }
 0x3cd   :  { %v1698_v56 = vrot.slane %v1619_v42, 6  ;;  %v1700_v48 = vrot.slane %v1690_v45, 6  ;;  %v13684_v45 = vld [vmem:[#allocation109_spill] sm:$0xff] }
 0x3ce   :  { %v1705_v32 = vadd.f32 %v1697_v1, %v13680_v33  ;;  %v1707_v0 = vadd.f32 %v1699_v27, %v13683_v3 }
 0x3cf   :  { %v1706_v15 = vadd.f32 %v1698_v56, %v13681_v11  ;;  %v1708_v2 = vadd.f32 %v1700_v48, %v13682_v31 }
 0x3d0   :  { %v7389_v58 = vmul.f32 -1.442695, %v1705_v32 }
 0x3d1   :  { %v7390_v28 = vmul.f32 -1.442695, %v1706_v15  ;;  %v7391_v57 = vmul.f32 -1.442695, %v1708_v2  ;;  %v1729_v15 = vrot.slane %v13684_v45, 6  ;;  %v13691_v45 = vld [vmem:[#allocation121_spill] sm:$0xff] }
 0x3d2   :  { %10284 = vpow2.f32 %v7389_v58 }
 0x3d3   :  { %10286 = vpow2.f32 %v7390_v28 }
 0x3d4   :  { %10288 = vpow2.f32 %v7391_v57 }
 0x3d5   :  { %10290 = vtanh.f32 %v1707_v0 }
 0x3dc   :  { %v10285_v26 = vpop.eup %10284 }
 0x3dd   :  { %v10287_v38 = vpop.eup %10286  ;;  %v1718_v19 = vadd.f32 1.0, %v10285_v26  ;;  %v11765_v26 = vrot.slane %v11736_v30, %v11374_v39  ;;  %v13688_v39 = vld [vmem:[#allocation113_spill] sm:$0xff]  ;;  %v13689_v30 = vld [vmem:[#allocation114_spill] sm:$0xff] }
 0x3de   :  { %v1719_v42 = vadd.f32 1.0, %v10287_v38  ;;  %v10289_v1 = vpop.eup %10288 }
 0x3df   :  { %10292 = vrcp.f32 %v1718_v19  ;;  %v10291_v32 = vpop.eup %10290  ;;  %v1720_v48 = vadd.f32 1.0, %v10289_v1  ;;  %v1526_v27 = vadd.f32 %v1520_v40, %v11765_v26  ;;  %v13685_v1 = vld [vmem:[#allocation110_spill] sm:$0xff]  ;;  %v13690_v40 = vld [vmem:[#allocation115_spill] sm:$0xff] }
 0x3e0   :  { %10294 = vrcp.f32 %v1719_v42 }
 0x3e1   :  { %10296 = vrcp.f32 %v1720_v48  ;;  %v7388_v38 = vmul.f32 -1.442695, %v1526_v27  ;;  %v13694_v48 = vld [vmem:[#allocation124_spill] sm:$0xff]  ;;  %v13696_v27 = vld [vmem:[#allocation126_spill] sm:$0xff] }
 0x3e9   :  { %v10293_v56 = vpop.eup %10292 }
 0x3ea   :  { %v10295_v58 = vpop.eup %10294  ;;  %v1732_v28 = vmul.f32 %v10293_v56, %v10291_v32  ;;  %v13686_v32 = vld [vmem:[#allocation111_spill] sm:$0xff]  ;;  %v13687_v56 = vld [vmem:[#allocation112_spill] sm:$0xff] }
 0x3eb   :  { %v1731_v20 = vmul.f32 %v10295_v58, %v1729_v15  ;;  %v10297_v19 = vpop.eup %10296  ;;  %v13692_v58 = vld [vmem:[#allocation122_spill] sm:$0xff] }
 0x3ed   :  { %v11760_v2 = vadd.f32 %v1732_v28, %v1731_v20  ;;  %v13693_v28 = vld [vmem:[#allocation123_spill] sm:$0xff]  ;;  %v13695_v20 = vld [vmem:[#allocation125_spill] sm:$0xff] }
 0x3ef   :  { %10298 = vtanh.f32 %v11760_v2 }
 0x3f0   :  { %10300 = vpow2.f32 %v7388_v38  ;;  %v13699_v38 = vld [vmem:[#allocation129_spill] sm:$0xff] }
 0x3f1   :  { %10302 = vtanh.f32 %v11753_v16 }
 0x3f9   :  { %v10299_v57 = vpop.eup %10298 }
 0x3fa   :  { %v1735_v0 = vmul.f32 %v10299_v57, %v10297_v19  ;;  %v10301_v15 = vpop.eup %10300  ;;  %v13697_v57 = vld [vmem:[#allocation127_spill] sm:$0xff] }
 0x3fb   :  { %v1538_v19 = vadd.f32 1.0, %v10301_v15  ;;  %v13704_v15 = vld [vmem:[#allocation134_spill] sm:$0xff] }
 0x3fc   :  { %v11768_v42 = vrot.slane %v1735_v0, 2  ;;  %v13698_v0 = vld [vmem:[#allocation128_spill] sm:$0xff] }
 0x3fd   :  { %10304 = vrcp.f32 %v1538_v19  ;;  %v13709_v19 = vld [vmem:[#allocation139_spill] sm:$0xff] }
 0x3fe   :  { %1946 = vmatmul.mubr.f32.vlgmr.msra.gmra.mrb[12].mxu0 %v11768_v42  ;;  %2017 = vmatmul.mubr.f32.vlgmr.msra.gmra.mrb[12].mxu1 %v11768_v42 }
 0x3ff   :  { %8087 = vmatpush1.bf16.msra.mxu0 %v13685_v1  ;;  %8119 = vmatpush1.bf16.msra.mxu1 %v13686_v32 }
 0x400   :  { %8089 = vmatprep.subr.bf16.mxu0 %v13687_v56  ;;  %8121 = vmatprep.subr.bf16.mxu1 %v13688_v39 }
 0x401   :  { %2115 = vmatprep.mubr.f32.mxu0 %v13509_v9  ;;  %2186 = vmatprep.mubr.f32.mxu1 %v13509_v9 }
 0x403   :  { %8091 = vmatpush1.bf16.msra.mxu0 %v13689_v30  ;;  %8123 = vmatpush1.bf16.msra.mxu1 %v13690_v40 }
 0x404   :  { %8093 = vmatprep.subr.bf16.mxu0 %v11423_v60  ;;  %8125 = vmatprep.subr.bf16.mxu1 %v11425_v21 }
 0x407   :  { %8095 = vmatpush1.bf16.msra.mxu0 %v11431_v46  ;;  %8127 = vmatpush1.bf16.msra.mxu1 %v11433_v47 }
 0x408   :  { %8097 = vmatprep.subr.bf16.mxu0 %v11437_v41  ;;  %8129 = vmatprep.subr.bf16.mxu1 %v13691_v45  ;;  %v13700_v45 = vld [vmem:[#allocation130_spill] sm:$0xff] }
 0x40b   :  { %8099 = vmatpush1.bf16.msra.mxu0 %v13692_v58  ;;  %8131 = vmatpush1.bf16.msra.mxu1 %v13693_v28  ;;  %v13701_v58 = vld [vmem:[#allocation131_spill] sm:$0xff]  ;;  %v13702_v28 = vld [vmem:[#allocation132_spill] sm:$0xff] }
 0x40c   :  { %8101 = vmatprep.subr.bf16.mxu0 %v13694_v48  ;;  %8133 = vmatprep.subr.bf16.mxu1 %v13695_v20  ;;  %v13703_v48 = vld [vmem:[#allocation133_spill] sm:$0xff]  ;;  %v13705_v20 = vld [vmem:[#allocation135_spill] sm:$0xff] }
 0x40f   :  { %8103 = vmatpush1.bf16.msra.mxu0 %v13696_v27  ;;  %8135 = vmatpush1.bf16.msra.mxu1 %v13697_v57  ;;  %v13706_v27 = vld [vmem:[#allocation136_spill] sm:$0xff]  ;;  %v13707_v57 = vld [vmem:[#allocation137_spill] sm:$0xff] }
 0x410   :  { %8105 = vmatprep.subr.bf16.mxu0 %v13698_v0  ;;  %8137 = vmatprep.subr.bf16.mxu1 %v13699_v38  ;;  %v10303_v0 = vpop.eup %10302  ;;  %v13708_v38 = vld [vmem:[#allocation138_spill] sm:$0xff] }
 0x411   :  { %v10305_v41 = vpop.eup %10304 }
 0x413   :  { %8107 = vmatpush1.bf16.msra.mxu0 %v13700_v45  ;;  %8139 = vmatpush1.bf16.msra.mxu1 %v13701_v58  ;;  %v11805_v45 = vmul.f32 %v10305_v41, %v10303_v0  ;;  %v13711_v58 = vld [vmem:[#allocation140_spill] sm:$0xff]  ;;  %v13717_v41 = vld [vmem:[#allocation146_spill] sm:$0xff]  ;;  %v13718_v0 = vld [vmem:[#allocation147_spill] sm:$0xff] }
 0x414   :  { %8109 = vmatprep.subr.bf16.mxu0 %v13702_v28  ;;  %8141 = vmatprep.subr.bf16.mxu1 %v13703_v48  ;;  %v13712_v28 = vld [vmem:[#allocation141_spill] sm:$0xff] }
 0x415   :  { %13710 = vst [vmem:[#allocation105_spill] sm:$0xff] %v11805_v45  ;;  %v13744_v48 = vld [vmem:[#allocation173_spill] sm:$0xff] }
 0x417   :  { %8111 = vmatpush1.bf16.msra.mxu0 %v13704_v15  ;;  %8143 = vmatpush1.bf16.msra.mxu1 %v13705_v20  ;;  %v13713_v20 = vld [vmem:[#allocation142_spill] sm:$0xff]  ;;  %v13716_v15 = vld [vmem:[#allocation145_spill] sm:$0xff] }
 0x418   :  { %8113 = vmatprep.subr.bf16.mxu0 %v13706_v27  ;;  %8145 = vmatprep.subr.bf16.mxu1 %v13707_v57  ;;  %v13714_v27 = vld [vmem:[#allocation143_spill] sm:$0xff]  ;;  %v13715_v57 = vld [vmem:[#allocation144_spill] sm:$0xff] }
 0x41b   :  { %8115 = vmatpush1.bf16.msra.mxu0 %v13708_v38  ;;  %8147 = vmatpush1.bf16.msra.mxu1 %v13709_v19  ;;  %v13726_v19 = vld [vmem:[#allocation155_spill] sm:$0xff]  ;;  %v13727_v38 = vld [vmem:[#allocation156_spill] sm:$0xff] }
 0x41c   :  { %8149 = vmatprep.subr.bf16.mxu0 %v13711_v58  ;;  %8181 = vmatprep.subr.bf16.mxu1 %v13712_v28  ;;  %v13719_v28 = vld [vmem:[#allocation148_spill] sm:$0xff]  ;;  %v13720_v58 = vld [vmem:[#allocation149_spill] sm:$0xff] }
 0x41e   :  { %2116 = vmatmul.mubr.f32.vlgmr.msra.gmra.mrb[14].mxu0 %v11805_v45  ;;  %2187 = vmatmul.mubr.f32.vlgmr.msra.gmra.mrb[14].mxu1 %v11805_v45  ;;  %v13721_v45 = vld [vmem:[#allocation150_spill] sm:$0xff] }
 0x41f   :  { %8151 = vmatpush1.bf16.msra.mxu0 %v13713_v20  ;;  %8183 = vmatpush1.bf16.msra.mxu1 %v13714_v27  ;;  %v13722_v20 = vld [vmem:[#allocation151_spill] sm:$0xff]  ;;  %v13723_v27 = vld [vmem:[#allocation152_spill] sm:$0xff] }
 0x420   :  { %8153 = vmatprep.subr.bf16.mxu0 %v13715_v57  ;;  %8185 = vmatprep.subr.bf16.mxu1 %v13716_v15  ;;  %v13724_v57 = vld [vmem:[#allocation153_spill] sm:$0xff]  ;;  %v13725_v15 = vld [vmem:[#allocation154_spill] sm:$0xff] }
 0x421   :  { %2257 = vmatprep.mubr.f32.mxu0 %v13509_v9  ;;  %2328 = vmatprep.mubr.f32.mxu1 %v13509_v9 }
 0x423   :  { %8155 = vmatpush1.bf16.msra.mxu0 %v13717_v41  ;;  %8187 = vmatpush1.bf16.msra.mxu1 %v13718_v0  ;;  %v13728_v41 = vld [vmem:[#allocation157_spill] sm:$0xff]  ;;  %v13729_v0 = vld [vmem:[#allocation158_spill] sm:$0xff] }
 0x424   :  { %8157 = vmatprep.subr.bf16.mxu0 %v13719_v28  ;;  %8189 = vmatprep.subr.bf16.mxu1 %v13720_v58  ;;  %v13730_v28 = vld [vmem:[#allocation159_spill] sm:$0xff]  ;;  %v13731_v58 = vld [vmem:[#allocation160_spill] sm:$0xff] }
 0x427   :  { %8159 = vmatpush1.bf16.msra.mxu0 %v13721_v45  ;;  %8191 = vmatpush1.bf16.msra.mxu1 %v13722_v20  ;;  %v13732_v45 = vld [vmem:[#allocation161_spill] sm:$0xff]  ;;  %v13733_v20 = vld [vmem:[#allocation162_spill] sm:$0xff] }
 0x428   :  { %8161 = vmatprep.subr.bf16.mxu0 %v13723_v27  ;;  %8193 = vmatprep.subr.bf16.mxu1 %v13724_v57  ;;  %v13734_v27 = vld [vmem:[#allocation163_spill] sm:$0xff]  ;;  %v13735_v57 = vld [vmem:[#allocation164_spill] sm:$0xff] }
 0x42b   :  { %8163 = vmatpush1.bf16.msra.mxu0 %v13725_v15  ;;  %8195 = vmatpush1.bf16.msra.mxu1 %v13726_v19  ;;  %v13743_v19 = vld [vmem:[#allocation172_spill] sm:$0xff] }
 0x42c   :  { %8165 = vmatprep.subr.bf16.mxu0 %v13727_v38  ;;  %8197 = vmatprep.subr.bf16.mxu1 %v13728_v41  ;;  %v13736_v38 = vld [vmem:[#allocation167_spill] sm:$0xff]  ;;  %v13737_v41 = vld [vmem:[#allocation168_spill] sm:$0xff] }
 0x42f   :  { %8167 = vmatpush1.bf16.msra.mxu0 %v13729_v0  ;;  %8199 = vmatpush1.bf16.msra.mxu1 %v13730_v28  ;;  %v13738_v0 = vld [vmem:[#allocation169_spill] sm:$0xff]  ;;  %v13739_v28 = vld [vmem:[#allocation170_spill] sm:$0xff] }
 0x430   :  { %8169 = vmatprep.subr.bf16.mxu0 %v13731_v58  ;;  %8201 = vmatprep.subr.bf16.mxu1 %v13732_v45  ;;  %v13740_v58 = vld [vmem:[#allocation171_spill] sm:$0xff] }
 0x431   :  { %v13741_v45 = vld [vmem:[#allocation23_spill] sm:$0xff] }
 0x433   :  { %8171 = vmatpush1.bf16.msra.mxu0 %v13733_v20  ;;  %8203 = vmatpush1.bf16.msra.mxu1 %v13734_v27  ;;  %v13742_v20 = vld [vmem:[#allocation24_spill] sm:$0xff] }
 0x434   :  { %8173 = vmatprep.subr.bf16.mxu0 %v13735_v57  ;;  %8205 = vmatprep.subr.bf16.mxu1 %v11575_v22 }
 0x437   :  { %8175 = vmatpush1.bf16.msra.mxu0 %v11579_v5  ;;  %8207 = vmatpush1.bf16.msra.mxu1 %v13736_v38 }
 0x438   :  { %8177 = vmatprep.subr.bf16.mxu0 %v13737_v41  ;;  %8209 = vmatprep.subr.bf16.mxu1 %v13738_v0  ;;  %v13745_v0 = vld [vmem:[#allocation174_spill] sm:$0xff] }
 0x43b   :  { %8179 = vmatpush1.bf16.msra.mxu0 %v13739_v28  ;;  %8211 = vmatpush1.bf16.msra.mxu1 %v13740_v58 }
 0x43c   :  { %8213 = vmatprep.subr.bf16.mxu0 %v13741_v45  ;;  %8245 = vmatprep.subr.bf16.mxu1 %v13742_v20 }
 0x4d1   :  { %v1947_v27 = vpop.f32.mrb[12].mxu0  ;;  %v2018_v57 = vpop.f32.mrb[12].mxu1 }
 0x4d2   :  { %v2023_v22 = vadd.f32 %v1947_v27, %v13743_v19  ;;  %v1949_v15 = vpop.f32.mrb[13].mxu0  ;;  %v2020_v5 = vpop.f32.mrb[13].mxu1  ;;  %v2025_v58 = vadd.f32 %v2018_v57, %v11617_v34  ;;  %v13751_v57 = vld [vmem:[#allocation39_spill] sm:$0xff] }
 0x4d3   :  { %v2024_v38 = vadd.f32 %v1949_v15, %v13744_v48  ;;  %v2026_v28 = vadd.f32 %v2020_v5, %v13745_v0 }
 0x4d4   :  { %v7392_v47 = vmul.f32 -1.442695, %v2023_v22 }
 0x4d5   :  { %v7393_v41 = vmul.f32 -1.442695, %v2024_v38  ;;  %v7394_v46 = vmul.f32 -1.442695, %v2026_v28 }
 0x4d6   :  { %10306 = vpow2.f32 %v7392_v47 }
 0x4d7   :  { %10308 = vpow2.f32 %v7393_v41 }
 0x4d8   :  { %10310 = vpow2.f32 %v7394_v46 }
 0x4d9   :  { %10312 = vtanh.f32 %v2025_v58  ;;  %v13749_v58 = vld [vmem:[#allocation37_spill] sm:$0xff] }
 0x4e0   :  { %v10307_v45 = vpop.eup %10306 }
 0x4e1   :  { %v10309_v21 = vpop.eup %10308  ;;  %v2036_v20 = vadd.f32 1.0, %v10307_v45 }
 0x4e2   :  { %v2037_v60 = vadd.f32 1.0, %v10309_v21  ;;  %v10311_v27 = vpop.eup %10310  ;;  %v13747_v21 = vld [vmem:[#allocation35_spill] sm:$0xff] }
 0x4e3   :  { %10314 = vrcp.f32 %v2036_v20  ;;  %v10313_v19 = vpop.eup %10312  ;;  %v2038_v47 = vadd.f32 1.0, %v10311_v27  ;;  %v13750_v20 = vld [vmem:[#allocation38_spill] sm:$0xff]  ;;  %v13753_v27 = vld [vmem:[#allocation41_spill] sm:$0xff] }
 0x4e4   :  { %10316 = vrcp.f32 %v2037_v60  ;;  %v13746_v60 = vld [vmem:[#allocation34_spill] sm:$0xff] }
 0x4e5   :  { %10318 = vrcp.f32 %v2038_v47  ;;  %v13758_v47 = vld [vmem:[#allocation47_spill] sm:$0xff] }
 0x4ed   :  { %v10315_v15 = vpop.eup %10314 }
 0x4ee   :  { %v10317_v22 = vpop.eup %10316  ;;  %v2047_v38 = vmul.f32 %v10315_v15, %v10313_v19  ;;  %v13752_v19 = vld [vmem:[#allocation40_spill] sm:$0xff]  ;;  %v13754_v15 = vld [vmem:[#allocation42_spill] sm:$0xff] }
 0x4ef   :  { %v2046_v41 = vmul.f32 %v10317_v22, %v11620_v44  ;;  %v10319_v28 = vpop.eup %10318  ;;  %v13748_v44 = vld [vmem:[#allocation36_spill] sm:$0xff]  ;;  %v13755_v22 = vld [vmem:[#allocation43_spill] sm:$0xff] }
 0x4f1   :  { %v11850_v5 = vadd.f32 %v2047_v38, %v2046_v41  ;;  %v13756_v38 = vld [vmem:[#allocation44_spill] sm:$0xff]  ;;  %v13759_v41 = vld [vmem:[#allocation46_spill] sm:$0xff] }
 0x4f3   :  { %10320 = vtanh.f32 %v11850_v5 }
 0x4fd   :  { %v10321_v45 = vpop.eup %10320 }
 0x4fe   :  { %v11853_v46 = vmul.f32 %v10321_v45, %v10319_v28  ;;  %v13760_v28 = vld [vmem:[#allocation48_spill] sm:$0xff]  ;;  %v13761_v45 = vld [vmem:[#allocation49_spill] sm:$0xff] }
 0x500   :  { %2258 = vmatmul.mubr.f32.vlgmr.msra.gmra.mrb[14].mxu0 %v11853_v46  ;;  %2329 = vmatmul.mubr.f32.vlgmr.msra.gmra.mrb[14].mxu1 %v11853_v46 }
 0x501   :  { %8215 = vmatpush1.bf16.msra.mxu0 %v11063_v49  ;;  %8247 = vmatpush1.bf16.msra.mxu1 %v11066_v50 }
 0x502   :  { %8217 = vmatprep.subr.bf16.mxu0 %v11068_v51  ;;  %8249 = vmatprep.subr.bf16.mxu1 %v11071_v55 }
 0x503   :  { %2427 = vmatprep.mubr.f32.mxu0 %v13509_v9  ;;  %2498 = vmatprep.mubr.f32.mxu1 %v13509_v9 }
 0x505   :  { %8219 = vmatpush1.bf16.msra.mxu0 %v11074_v61  ;;  %8251 = vmatpush1.bf16.msra.mxu1 %v11078_v62 }
 0x506   :  { %8221 = vmatprep.subr.bf16.mxu0 %v11080_v63  ;;  %8253 = vmatprep.subr.bf16.mxu1 %v11083_v4 }
 0x509   :  { %8223 = vmatpush1.bf16.msra.mxu0 %v11088_v10  ;;  %8255 = vmatpush1.bf16.msra.mxu1 %v11092_v12 }
 0x50a   :  { %8225 = vmatprep.subr.bf16.mxu0 %v11094_v13  ;;  %8257 = vmatprep.subr.bf16.mxu1 %v11097_v17 }
 0x50d   :  { %8227 = vmatpush1.bf16.msra.mxu0 %v11101_v23  ;;  %8259 = vmatpush1.bf16.msra.mxu1 %v11106_v24 }
 0x50e   :  { %8229 = vmatprep.subr.bf16.mxu0 %v11108_v25  ;;  %8261 = vmatprep.subr.bf16.mxu1 %v11111_v29 }
 0x511   :  { %8231 = vmatpush1.bf16.msra.mxu0 %v11114_v35  ;;  %8263 = vmatpush1.bf16.msra.mxu1 %v11118_v36 }
 0x512   :  { %8233 = vmatprep.subr.bf16.mxu0 %v11120_v37  ;;  %8265 = vmatprep.subr.bf16.mxu1 %v11123_v43 }
 0x515   :  { %8235 = vmatpush1.bf16.msra.mxu0 %v11126_v52  ;;  %8267 = vmatpush1.bf16.msra.mxu1 %v11130_v53 }
 0x516   :  { %8237 = vmatprep.subr.bf16.mxu0 %v11132_v54  ;;  %8269 = vmatprep.subr.bf16.mxu1 %v11135_v59 }
 0x519   :  { %8239 = vmatpush1.bf16.msra.mxu0 %v11138_v6  ;;  %8271 = vmatpush1.bf16.msra.mxu1 %v11142_v7 }
 0x51a   :  { %8241 = vmatprep.subr.bf16.mxu0 %v11144_v8  ;;  %8273 = vmatprep.subr.bf16.mxu1 %v11147_v14 }
 0x51d   :  { %8243 = vmatpush1.bf16.msra.mxu0 %v11150_v18  ;;  %8275 = vmatpush1.bf16.msra.mxu1 %v13746_v60 }
 0x51e   :  { %8277 = vmatprep.subr.bf16.mxu0 %v13747_v21  ;;  %8309 = vmatprep.subr.bf16.mxu1 %v13748_v44 }
 0x520   :  { %2428 = vmatmul.mubr.f32.vlgmr.msra.gmra.mrb[16].mxu0 %v11768_v42  ;;  %2499 = vmatmul.mubr.f32.vlgmr.msra.gmra.mrb[16].mxu1 %v11768_v42  ;;  %v13757_v42 = vld [vmem:[#allocation45_spill] sm:$0xff] }
 0x521   :  { %8279 = vmatpush1.bf16.msra.mxu0 %v13749_v58  ;;  %8311 = vmatpush1.bf16.msra.mxu1 %v13750_v20  ;;  %v13814_v58 = vld [vmem:[#allocation176_spill] sm:$0xff] }
 0x522   :  { %8281 = vmatprep.subr.bf16.mxu0 %v13751_v57  ;;  %8313 = vmatprep.subr.bf16.mxu1 %v13752_v19  ;;  %v13762_v19 = vld [vmem:[#allocation51_spill] sm:$0xff]  ;;  %v13763_v57 = vld [vmem:[#allocation50_spill] sm:$0xff] }
 0x523   :  { %2612 = vmatprep.mubr.f32.mxu0 %v13509_v9  ;;  %2683 = vmatprep.mubr.f32.mxu1 %v13509_v9 }
 0x525   :  { %8283 = vmatpush1.bf16.msra.mxu0 %v13753_v27  ;;  %8315 = vmatpush1.bf16.msra.mxu1 %v13754_v15  ;;  %v13764_v27 = vld [vmem:[#allocation52_spill] sm:$0xff]  ;;  %v13765_v15 = vld [vmem:[#allocation53_spill] sm:$0xff] }
 0x526   :  { %8285 = vmatprep.subr.bf16.mxu0 %v13755_v22  ;;  %8317 = vmatprep.subr.bf16.mxu1 %v13756_v38  ;;  %v13766_v22 = vld [vmem:[#allocation54_spill] sm:$0xff]  ;;  %v13767_v38 = vld [vmem:[#allocation55_spill] sm:$0xff] }
 0x529   :  { %8287 = vmatpush1.bf16.msra.mxu0 %v13757_v42  ;;  %8319 = vmatpush1.bf16.msra.mxu1 %v13758_v47  ;;  %v13768_v42 = vld [vmem:[#allocation56_spill] sm:$0xff]  ;;  %v13769_v47 = vld [vmem:[#allocation57_spill] sm:$0xff] }
 0x52a   :  { %8289 = vmatprep.subr.bf16.mxu0 %v13759_v41  ;;  %8321 = vmatprep.subr.bf16.mxu1 %v13760_v28  ;;  %v13770_v41 = vld [vmem:[#allocation58_spill] sm:$0xff]  ;;  %v13771_v28 = vld [vmem:[#allocation59_spill] sm:$0xff] }
 0x52d   :  { %8291 = vmatpush1.bf16.msra.mxu0 %v13761_v45  ;;  %8323 = vmatpush1.bf16.msra.mxu1 %v13762_v19  ;;  %v13772_v45 = vld [vmem:[#allocation60_spill] sm:$0xff]  ;;  %v13773_v19 = vld [vmem:[#allocation61_spill] sm:$0xff] }
 0x52e   :  { %8293 = vmatprep.subr.bf16.mxu0 %v13763_v57  ;;  %8325 = vmatprep.subr.bf16.mxu1 %v13764_v27  ;;  %v13774_v57 = vld [vmem:[#allocation62_spill] sm:$0xff]  ;;  %v13775_v27 = vld [vmem:[#allocation63_spill] sm:$0xff] }
 0x531   :  { %8295 = vmatpush1.bf16.msra.mxu0 %v13765_v15  ;;  %8327 = vmatpush1.bf16.msra.mxu1 %v13766_v22  ;;  %v13776_v15 = vld [vmem:[#allocation64_spill] sm:$0xff]  ;;  %v13777_v22 = vld [vmem:[#allocation65_spill] sm:$0xff] }
 0x532   :  { %8297 = vmatprep.subr.bf16.mxu0 %v13767_v38  ;;  %8329 = vmatprep.subr.bf16.mxu1 %v13768_v42  ;;  %v13778_v38 = vld [vmem:[#allocation66_spill] sm:$0xff]  ;;  %v13779_v42 = vld [vmem:[#allocation67_spill] sm:$0xff] }
 0x535   :  { %8299 = vmatpush1.bf16.msra.mxu0 %v13769_v47  ;;  %8331 = vmatpush1.bf16.msra.mxu1 %v13770_v41  ;;  %v13780_v47 = vld [vmem:[#allocation68_spill] sm:$0xff]  ;;  %v13813_v41 = vld [vmem:[#allocation175_spill] sm:$0xff] }
 0x536   :  { %8301 = vmatprep.subr.bf16.mxu0 %v13771_v28  ;;  %8333 = vmatprep.subr.bf16.mxu1 %v13772_v45  ;;  %v13781_v45 = vld [vmem:[#allocation69_spill] sm:$0xff]  ;;  %v13795_v28 = vld [vmem:[#allocation83_spill] sm:$0xff] }
 0x539   :  { %8303 = vmatpush1.bf16.msra.mxu0 %v13773_v19  ;;  %8335 = vmatpush1.bf16.msra.mxu1 %v13774_v57  ;;  %v13782_v19 = vld [vmem:[#allocation70_spill] sm:$0xff]  ;;  %v13783_v57 = vld [vmem:[#allocation71_spill] sm:$0xff] }
 0x53a   :  { %8305 = vmatprep.subr.bf16.mxu0 %v13775_v27  ;;  %8337 = vmatprep.subr.bf16.mxu1 %v13776_v15  ;;  %v13784_v27 = vld [vmem:[#allocation72_spill] sm:$0xff]  ;;  %v13794_v15 = vld [vmem:[#allocation82_spill] sm:$0xff] }
 0x53d   :  { %8307 = vmatpush1.bf16.msra.mxu0 %v13777_v22  ;;  %8339 = vmatpush1.bf16.msra.mxu1 %v13778_v38  ;;  %v13785_v38 = vld [vmem:[#allocation73_spill] sm:$0xff]  ;;  %v13788_v22 = vld [vmem:[#allocation76_spill] sm:$0xff] }
 0x53e   :  { %8341 = vmatprep.subr.bf16.mxu0 %v13779_v42  ;;  %8373 = vmatprep.subr.bf16.mxu1 %v13780_v47  ;;  %v13786_v42 = vld [vmem:[#allocation74_spill] sm:$0xff]  ;;  %v13787_v47 = vld [vmem:[#allocation75_spill] sm:$0xff] }
 0x540   :  { %2613 = vmatmul.mubr.f32.vlgmr.msra.gmra.mrb[18].mxu0 %v11853_v46  ;;  %2684 = vmatmul.mubr.f32.vlgmr.msra.gmra.mrb[18].mxu1 %v11853_v46  ;;  %v13789_v46 = vld [vmem:[#allocation77_spill] sm:$0xff] }
 0x541   :  { %8343 = vmatpush1.bf16.msra.mxu0 %v13781_v45  ;;  %8375 = vmatpush1.bf16.msra.mxu1 %v13782_v19  ;;  %v13790_v45 = vld [vmem:[#allocation78_spill] sm:$0xff]  ;;  %v13791_v19 = vld [vmem:[#allocation79_spill] sm:$0xff] }
 0x542   :  { %8345 = vmatprep.subr.bf16.mxu0 %v13783_v57  ;;  %8377 = vmatprep.subr.bf16.mxu1 %v13784_v27  ;;  %v13792_v57 = vld [vmem:[#allocation80_spill] sm:$0xff]  ;;  %v13793_v27 = vld [vmem:[#allocation81_spill] sm:$0xff] }
 0x543   :  { %2757 = vmatprep.mubr.f32.mxu0 %v13509_v9  ;;  %2828 = vmatprep.mubr.f32.mxu1 %v13509_v9 }
 0x545   :  { %8347 = vmatpush1.bf16.msra.mxu0 %v13785_v38  ;;  %8379 = vmatpush1.bf16.msra.mxu1 %v13786_v42  ;;  %v13796_v38 = vld [vmem:[#allocation84_spill] sm:$0xff]  ;;  %v13797_v42 = vld [vmem:[#allocation85_spill] sm:$0xff] }
 0x546   :  { %8349 = vmatprep.subr.bf16.mxu0 %v13787_v47  ;;  %8381 = vmatprep.subr.bf16.mxu1 %v13788_v22  ;;  %v13798_v47 = vld [vmem:[#allocation86_spill] sm:$0xff]  ;;  %v13799_v22 = vld [vmem:[#allocation87_spill] sm:$0xff] }
 0x549   :  { %8351 = vmatpush1.bf16.msra.mxu0 %v13789_v46  ;;  %8383 = vmatpush1.bf16.msra.mxu1 %v13790_v45  ;;  %v13800_v46 = vld [vmem:[#allocation88_spill] sm:$0xff]  ;;  %v13801_v45 = vld [vmem:[#allocation89_spill] sm:$0xff] }
 0x54a   :  { %8353 = vmatprep.subr.bf16.mxu0 %v13791_v19  ;;  %8385 = vmatprep.subr.bf16.mxu1 %v13792_v57  ;;  %v13802_v19 = vld [vmem:[#allocation90_spill] sm:$0xff]  ;;  %v13803_v57 = vld [vmem:[#allocation91_spill] sm:$0xff] }
 0x54d   :  { %8355 = vmatpush1.bf16.msra.mxu0 %v13793_v27  ;;  %8387 = vmatpush1.bf16.msra.mxu1 %v13794_v15  ;;  %v13804_v27 = vld [vmem:[#allocation92_spill] sm:$0xff]  ;;  %v13805_v15 = vld [vmem:[#allocation93_spill] sm:$0xff] }
 0x54e   :  { %8357 = vmatprep.subr.bf16.mxu0 %v13795_v28  ;;  %8389 = vmatprep.subr.bf16.mxu1 %v13796_v38  ;;  %v13806_v28 = vld [vmem:[#allocation94_spill] sm:$0xff]  ;;  %v13807_v38 = vld [vmem:[#allocation95_spill] sm:$0xff] }
 0x551   :  { %8359 = vmatpush1.bf16.msra.mxu0 %v13797_v42  ;;  %8391 = vmatpush1.bf16.msra.mxu1 %v13798_v47  ;;  %v13808_v42 = vld [vmem:[#allocation96_spill] sm:$0xff]  ;;  %v13809_v47 = vld [vmem:[#allocation97_spill] sm:$0xff] }
 0x552   :  { %8361 = vmatprep.subr.bf16.mxu0 %v13799_v22  ;;  %8393 = vmatprep.subr.bf16.mxu1 %v13800_v46  ;;  %v13810_v22 = vld [vmem:[#allocation98_spill] sm:$0xff]  ;;  %v13811_v46 = vld [vmem:[#allocation99_spill] sm:$0xff] }
 0x555   :  { %8363 = vmatpush1.bf16.msra.mxu0 %v13801_v45  ;;  %8395 = vmatpush1.bf16.msra.mxu1 %v13802_v19  ;;  %v13812_v45 = vld [vmem:[#allocation100_spill] sm:$0xff] }
 0x556   :  { %8365 = vmatprep.subr.bf16.mxu0 %v13803_v57  ;;  %8397 = vmatprep.subr.bf16.mxu1 %v13804_v27 }
 0x559   :  { %8367 = vmatpush1.bf16.msra.mxu0 %v13805_v15  ;;  %8399 = vmatpush1.bf16.msra.mxu1 %v13806_v28 }
 0x55a   :  { %8369 = vmatprep.subr.bf16.mxu0 %v13807_v38  ;;  %8401 = vmatprep.subr.bf16.mxu1 %v13808_v42  ;;  %v13815_v42 = vld [vmem:[#allocation177_spill] sm:$0xff] }
 0x55d   :  { %8371 = vmatpush1.bf16.msra.mxu0 %v13809_v47  ;;  %8403 = vmatpush1.bf16.msra.mxu1 %v13810_v22 }
 0x55e   :  { %8405 = vmatprep.subr.bf16.mxu0 %v13811_v46  ;;  %8437 = vmatprep.subr.bf16.mxu1 %v13812_v45 }
 0x5d3   :  { %v2259_v19 = vpop.f32.mrb[14].mxu0  ;;  %v2330_v57 = vpop.f32.mrb[14].mxu1 }
 0x5d4   :  { %v2335_v27 = vadd.f32 %v2259_v19, %v13813_v41  ;;  %v2261_v20 = vpop.f32.mrb[15].mxu0  ;;  %v2332_v15 = vpop.f32.mrb[15].mxu1  ;;  %v2337_v47 = vadd.f32 %v2330_v57, %v13815_v42 }
 0x5d5   :  { %v2336_v28 = vadd.f32 %v2261_v20, %v13814_v58 }
 0x5d6   :  { %v7395_v44 = vmul.f32 -1.442695, %v2335_v27 }
 0x5d7   :  { %v7396_v38 = vmul.f32 -1.442695, %v2336_v28 }
 0x5d8   :  { %10322 = vpow2.f32 %v7395_v44 }
 0x5d9   :  { %10324 = vpow2.f32 %v7396_v38 }
 0x5da   :  { %10326 = vtanh.f32 %v2337_v47 }
 0x5e2   :  { %v10323_v21 = vpop.eup %10322 }
 0x5e3   :  { %v10325_v22 = vpop.eup %10324  ;;  %v2348_v60 = vadd.f32 1.0, %v10323_v21 }
 0x5e4   :  { %v2349_v46 = vadd.f32 1.0, %v10325_v22  ;;  %v10327_v45 = vpop.eup %10326 }
 0x5e5   :  { %10328 = vrcp.f32 %v2348_v60 }
 0x5e6   :  { %10330 = vrcp.f32 %v2349_v46 }
 0x5ef   :  { %v10329_v18 = vpop.eup %10328 }
 0x5f0   :  { %v10331_v19 = vpop.eup %10330  ;;  %v2359_v41 = vmul.f32 %v10329_v18, %v10327_v45 }
 0x5f1   :  { %v2358_v14 = vmul.f32 %v10331_v19, %v11753_v16 }
 0x5f3   :  { %v11967_v20 = vadd.f32 %v2359_v41, %v2358_v14  ;;  %v2429_v27 = vpop.f32.mrb[16].mxu0  ;;  %v2500_v44 = vpop.f32.mrb[16].mxu1 }
 0x5f4   :  { %v2509_v38 = vrot.slane %v2429_v27, 4  ;;  %v2431_v28 = vpop.f32.mrb[17].mxu0  ;;  %v2502_v57 = vpop.f32.mrb[17].mxu1  ;;  %v2511_v16 = vrot.slane %v2500_v44, 4 }
 0x5f5   :  { %v2510_v42 = vrot.slane %v2431_v28, 4  ;;  %v2512_v46 = vrot.slane %v2502_v57, 4  ;;  %v2541_v57 = vrot.slane %v11760_v2, 6  ;;  %v13816_v2 = vld [vmem:[#allocation116_spill] sm:$0xff] }
 0x5f6   :  { %v2517_v21 = vadd.f32 %v2509_v38, %v13680_v33  ;;  %v2519_v41 = vadd.f32 %v2511_v16, %v13683_v3  ;;  %v2338_v16 = vadd.f32 %v2332_v15, %v11765_v26  ;;  %v13817_v15 = vld [vmem:[#allocation117_spill] sm:$0xff] }
 0x5f7   :  { %v2518_v22 = vadd.f32 %v2510_v42, %v13681_v11  ;;  %v2520_v18 = vadd.f32 %v2512_v46, %v13682_v31 }
 0x5f8   :  { %v7398_v60 = vmul.f32 -1.442695, %v2517_v21 }
 0x5f9   :  { %v7399_v47 = vmul.f32 -1.442695, %v2518_v22  ;;  %v7400_v14 = vmul.f32 -1.442695, %v2520_v18 }
 0x5fa   :  { %10332 = vpow2.f32 %v7398_v60 }
 0x5fb   :  { %10334 = vpow2.f32 %v7399_v47 }
 0x5fc   :  { %10336 = vpow2.f32 %v7400_v14 }
 0x5fd   :  { %10338 = vtanh.f32 %v2519_v41 }
 0x604   :  { %v10333_v45 = vpop.eup %10332 }
 0x605   :  { %v10335_v19 = vpop.eup %10334  ;;  %v2530_v27 = vadd.f32 1.0, %v10333_v45  ;;  %v7397_v45 = vmul.f32 -1.442695, %v2338_v16  ;;  %v13827_v16 = vld [vmem:[#allocation127_spill] sm:$0xff] }
 0x606   :  { %v2531_v28 = vadd.f32 1.0, %v10335_v19  ;;  %v10337_v42 = vpop.eup %10336 }
 0x607   :  { %10340 = vrcp.f32 %v2530_v27  ;;  %v10339_v38 = vpop.eup %10338  ;;  %v2532_v47 = vadd.f32 1.0, %v10337_v42  ;;  %v13818_v27 = vld [vmem:[#allocation118_spill] sm:$0xff]  ;;  %v13820_v42 = vld [vmem:[#allocation120_spill] sm:$0xff] }
 0x608   :  { %10342 = vrcp.f32 %v2531_v28  ;;  %v13819_v28 = vld [vmem:[#allocation119_spill] sm:$0xff] }
 0x609   :  { %10344 = vrcp.f32 %v2532_v47  ;;  %v13825_v47 = vld [vmem:[#allocation125_spill] sm:$0xff] }
 0x611   :  { %v10341_v21 = vpop.eup %10340 }
 0x612   :  { %v10343_v22 = vpop.eup %10342  ;;  %v2544_v60 = vmul.f32 %v10341_v21, %v10339_v38  ;;  %v13821_v38 = vld [vmem:[#allocation121_spill] sm:$0xff] }
 0x613   :  { %v2543_v44 = vmul.f32 %v10343_v22, %v2541_v57  ;;  %v10345_v18 = vpop.eup %10344  ;;  %v13822_v57 = vld [vmem:[#allocation122_spill] sm:$0xff]  ;;  %v13823_v22 = vld [vmem:[#allocation123_spill] sm:$0xff] }
 0x615   :  { %v11974_v46 = vadd.f32 %v2544_v60, %v2543_v44  ;;  %v13824_v60 = vld [vmem:[#allocation124_spill] sm:$0xff] }
 0x617   :  { %10346 = vtanh.f32 %v11974_v46 }
 0x618   :  { %10348 = vpow2.f32 %v7397_v45  ;;  %v13830_v45 = vld [vmem:[#allocation130_spill] sm:$0xff] }
 0x619   :  { %10350 = vtanh.f32 %v11967_v20 }
 0x621   :  { %v10347_v14 = vpop.eup %10346 }
 0x622   :  { %v2547_v41 = vmul.f32 %v10347_v14, %v10345_v18  ;;  %v10349_v21 = vpop.eup %10348  ;;  %v13826_v18 = vld [vmem:[#allocation126_spill] sm:$0xff]  ;;  %v13828_v14 = vld [vmem:[#allocation128_spill] sm:$0xff] }
 0x623   :  { %v2350_v44 = vadd.f32 1.0, %v10349_v21  ;;  %v13834_v21 = vld [vmem:[#allocation134_spill] sm:$0xff] }
 0x624   :  { %v11978_v19 = vrot.slane %v2547_v41, 4  ;;  %v13829_v41 = vld [vmem:[#allocation129_spill] sm:$0xff] }
 0x625   :  { %10352 = vrcp.f32 %v2350_v44  ;;  %v13839_v44 = vld [vmem:[#allocation139_spill] sm:$0xff] }
 0x626   :  { %2758 = vmatmul.mubr.f32.vlgmr.msra.gmra.mrb[18].mxu0 %v11978_v19  ;;  %2829 = vmatmul.mubr.f32.vlgmr.msra.gmra.mrb[18].mxu1 %v11978_v19 }
 0x627   :  { %8407 = vmatpush1.bf16.msra.mxu0 %v13685_v1  ;;  %8439 = vmatpush1.bf16.msra.mxu1 %v13686_v32 }
 0x628   :  { %8409 = vmatprep.subr.bf16.mxu0 %v13687_v56  ;;  %8441 = vmatprep.subr.bf16.mxu1 %v13688_v39 }
 0x629   :  { %2927 = vmatprep.mubr.f32.mxu0 %v13509_v9  ;;  %2998 = vmatprep.mubr.f32.mxu1 %v13509_v9 }
 0x62b   :  { %8411 = vmatpush1.bf16.msra.mxu0 %v13689_v30  ;;  %8443 = vmatpush1.bf16.msra.mxu1 %v13690_v40 }
 0x62c   :  { %8413 = vmatprep.subr.bf16.mxu0 %v13816_v2  ;;  %8445 = vmatprep.subr.bf16.mxu1 %v13817_v15 }
 0x62f   :  { %8415 = vmatpush1.bf16.msra.mxu0 %v13818_v27  ;;  %8447 = vmatpush1.bf16.msra.mxu1 %v13819_v28 }
 0x630   :  { %8417 = vmatprep.subr.bf16.mxu0 %v13820_v42  ;;  %8449 = vmatprep.subr.bf16.mxu1 %v13821_v38 }
 0x633   :  { %8419 = vmatpush1.bf16.msra.mxu0 %v13822_v57  ;;  %8451 = vmatpush1.bf16.msra.mxu1 %v13823_v22  ;;  %v13831_v57 = vld [vmem:[#allocation131_spill] sm:$0xff]  ;;  %v13832_v22 = vld [vmem:[#allocation132_spill] sm:$0xff] }
 0x634   :  { %8421 = vmatprep.subr.bf16.mxu0 %v13824_v60  ;;  %8453 = vmatprep.subr.bf16.mxu1 %v13825_v47  ;;  %v13833_v60 = vld [vmem:[#allocation133_spill] sm:$0xff] }
 0x635   :  { %v13837_v47 = vld [vmem:[#allocation137_spill] sm:$0xff] }
 0x637   :  { %8423 = vmatpush1.bf16.msra.mxu0 %v13826_v18  ;;  %8455 = vmatpush1.bf16.msra.mxu1 %v13827_v16  ;;  %v13835_v18 = vld [vmem:[#allocation135_spill] sm:$0xff]  ;;  %v13836_v16 = vld [vmem:[#allocation136_spill] sm:$0xff] }
 0x638   :  { %8425 = vmatprep.subr.bf16.mxu0 %v13828_v14  ;;  %8457 = vmatprep.subr.bf16.mxu1 %v13829_v41  ;;  %v10351_v14 = vpop.eup %10350  ;;  %v13838_v41 = vld [vmem:[#allocation138_spill] sm:$0xff] }
 0x639   :  { %v10353_v38 = vpop.eup %10352 }
 0x63b   :  { %8427 = vmatpush1.bf16.msra.mxu0 %v13830_v45  ;;  %8459 = vmatpush1.bf16.msra.mxu1 %v13831_v57  ;;  %v12015_v45 = vmul.f32 %v10353_v38, %v10351_v14  ;;  %v13841_v57 = vld [vmem:[#allocation140_spill] sm:$0xff]  ;;  %v13847_v38 = vld [vmem:[#allocation146_spill] sm:$0xff]  ;;  %v13848_v14 = vld [vmem:[#allocation147_spill] sm:$0xff] }
 0x63c   :  { %8429 = vmatprep.subr.bf16.mxu0 %v13832_v22  ;;  %8461 = vmatprep.subr.bf16.mxu1 %v13833_v60  ;;  %v13842_v22 = vld [vmem:[#allocation141_spill] sm:$0xff]  ;;  %v13875_v60 = vld [vmem:[#allocation172_spill] sm:$0xff] }
 0x63d   :  { %13840 = vst [vmem:[#allocation106_spill] sm:$0xff] %v12015_v45 }
 0x63f   :  { %8431 = vmatpush1.bf16.msra.mxu0 %v13834_v21  ;;  %8463 = vmatpush1.bf16.msra.mxu1 %v13835_v18  ;;  %v13843_v18 = vld [vmem:[#allocation142_spill] sm:$0xff]  ;;  %v13846_v21 = vld [vmem:[#allocation145_spill] sm:$0xff] }
 0x640   :  { %8433 = vmatprep.subr.bf16.mxu0 %v13836_v16  ;;  %8465 = vmatprep.subr.bf16.mxu1 %v13837_v47  ;;  %v13844_v16 = vld [vmem:[#allocation143_spill] sm:$0xff]  ;;  %v13845_v47 = vld [vmem:[#allocation144_spill] sm:$0xff] }
 0x643   :  { %8435 = vmatpush1.bf16.msra.mxu0 %v13838_v41  ;;  %8467 = vmatpush1.bf16.msra.mxu1 %v13839_v44  ;;  %v13856_v44 = vld [vmem:[#allocation155_spill] sm:$0xff]  ;;  %v13857_v41 = vld [vmem:[#allocation156_spill] sm:$0xff] }
 0x644   :  { %8469 = vmatprep.subr.bf16.mxu0 %v13841_v57  ;;  %8501 = vmatprep.subr.bf16.mxu1 %v13842_v22  ;;  %v13849_v22 = vld [vmem:[#allocation148_spill] sm:$0xff]  ;;  %v13850_v57 = vld [vmem:[#allocation149_spill] sm:$0xff] }
 0x646   :  { %2928 = vmatmul.mubr.f32.vlgmr.msra.gmra.mrb[20].mxu0 %v12015_v45  ;;  %2999 = vmatmul.mubr.f32.vlgmr.msra.gmra.mrb[20].mxu1 %v12015_v45  ;;  %v13851_v45 = vld [vmem:[#allocation150_spill] sm:$0xff] }
 0x647   :  { %8471 = vmatpush1.bf16.msra.mxu0 %v13843_v18  ;;  %8503 = vmatpush1.bf16.msra.mxu1 %v13844_v16  ;;  %v13852_v18 = vld [vmem:[#allocation151_spill] sm:$0xff]  ;;  %v13853_v16 = vld [vmem:[#allocation152_spill] sm:$0xff] }
 0x648   :  { %8473 = vmatprep.subr.bf16.mxu0 %v13845_v47  ;;  %8505 = vmatprep.subr.bf16.mxu1 %v13846_v21  ;;  %v13854_v47 = vld [vmem:[#allocation153_spill] sm:$0xff]  ;;  %v13855_v21 = vld [vmem:[#allocation154_spill] sm:$0xff] }
 0x649   :  { %3069 = vmatprep.mubr.f32.mxu0 %v13509_v9  ;;  %3140 = vmatprep.mubr.f32.mxu1 %v13509_v9 }
 0x64b   :  { %8475 = vmatpush1.bf16.msra.mxu0 %v13847_v38  ;;  %8507 = vmatpush1.bf16.msra.mxu1 %v13848_v14  ;;  %v13858_v38 = vld [vmem:[#allocation157_spill] sm:$0xff]  ;;  %v13859_v14 = vld [vmem:[#allocation158_spill] sm:$0xff] }
 0x64c   :  { %8477 = vmatprep.subr.bf16.mxu0 %v13849_v22  ;;  %8509 = vmatprep.subr.bf16.mxu1 %v13850_v57  ;;  %v13860_v22 = vld [vmem:[#allocation159_spill] sm:$0xff]  ;;  %v13861_v57 = vld [vmem:[#allocation160_spill] sm:$0xff] }
 0x64f   :  { %8479 = vmatpush1.bf16.msra.mxu0 %v13851_v45  ;;  %8511 = vmatpush1.bf16.msra.mxu1 %v13852_v18  ;;  %v13862_v45 = vld [vmem:[#allocation161_spill] sm:$0xff]  ;;  %v13863_v18 = vld [vmem:[#allocation162_spill] sm:$0xff] }
 0x650   :  { %8481 = vmatprep.subr.bf16.mxu0 %v13853_v16  ;;  %8513 = vmatprep.subr.bf16.mxu1 %v13854_v47  ;;  %v13864_v16 = vld [vmem:[#allocation163_spill] sm:$0xff]  ;;  %v13865_v47 = vld [vmem:[#allocation164_spill] sm:$0xff] }
 0x653   :  { %8483 = vmatpush1.bf16.msra.mxu0 %v13855_v21  ;;  %8515 = vmatpush1.bf16.msra.mxu1 %v13856_v44  ;;  %v13866_v21 = vld [vmem:[#allocation165_spill] sm:$0xff]  ;;  %v13867_v44 = vld [vmem:[#allocation166_spill] sm:$0xff] }
 0x654   :  { %8485 = vmatprep.subr.bf16.mxu0 %v13857_v41  ;;  %8517 = vmatprep.subr.bf16.mxu1 %v13858_v38  ;;  %v13868_v41 = vld [vmem:[#allocation167_spill] sm:$0xff]  ;;  %v13869_v38 = vld [vmem:[#allocation168_spill] sm:$0xff] }
 0x657   :  { %8487 = vmatpush1.bf16.msra.mxu0 %v13859_v14  ;;  %8519 = vmatpush1.bf16.msra.mxu1 %v13860_v22  ;;  %v13870_v14 = vld [vmem:[#allocation169_spill] sm:$0xff]  ;;  %v13871_v22 = vld [vmem:[#allocation170_spill] sm:$0xff] }
 0x658   :  { %8489 = vmatprep.subr.bf16.mxu0 %v13861_v57  ;;  %8521 = vmatprep.subr.bf16.mxu1 %v13862_v45  ;;  %v13872_v57 = vld [vmem:[#allocation171_spill] sm:$0xff] }
 0x659   :  { %v13873_v45 = vld [vmem:[#allocation23_spill] sm:$0xff] }
 0x65b   :  { %8491 = vmatpush1.bf16.msra.mxu0 %v13863_v18  ;;  %8523 = vmatpush1.bf16.msra.mxu1 %v13864_v16  ;;  %v13874_v18 = vld [vmem:[#allocation24_spill] sm:$0xff] }
 0x65c   :  { %8493 = vmatprep.subr.bf16.mxu0 %v13865_v47  ;;  %8525 = vmatprep.subr.bf16.mxu1 %v13866_v21 }
 0x65f   :  { %8495 = vmatpush1.bf16.msra.mxu0 %v13867_v44  ;;  %8527 = vmatpush1.bf16.msra.mxu1 %v13868_v41 }
 0x660   :  { %8497 = vmatprep.subr.bf16.mxu0 %v13869_v38  ;;  %8529 = vmatprep.subr.bf16.mxu1 %v13870_v14 }
 0x663   :  { %8499 = vmatpush1.bf16.msra.mxu0 %v13871_v22  ;;  %8531 = vmatpush1.bf16.msra.mxu1 %v13872_v57 }
 0x664   :  { %8533 = vmatprep.subr.bf16.mxu0 %v13873_v45  ;;  %8565 = vmatprep.subr.bf16.mxu1 %v13874_v18 }
 0x6f9   :  { %v2759_v16 = vpop.f32.mrb[18].mxu0  ;;  %v2830_v47 = vpop.f32.mrb[18].mxu1 }
 0x6fa   :  { %v2835_v21 = vadd.f32 %v2759_v16, %v13875_v60  ;;  %v2761_v42 = vpop.f32.mrb[19].mxu0  ;;  %v2832_v44 = vpop.f32.mrb[19].mxu1  ;;  %v2837_v57 = vadd.f32 %v2830_v47, %v11617_v34 }
 0x6fb   :  { %v2836_v41 = vadd.f32 %v2761_v42, %v13744_v48  ;;  %v2838_v22 = vadd.f32 %v2832_v44, %v13745_v0 }
 0x6fc   :  { %v7401_v28 = vmul.f32 -1.442695, %v2835_v21 }
 0x6fd   :  { %v7402_v38 = vmul.f32 -1.442695, %v2836_v41  ;;  %v7403_v14 = vmul.f32 -1.442695, %v2838_v22 }
 0x6fe   :  { %10354 = vpow2.f32 %v7401_v28 }
 0x6ff   :  { %10356 = vpow2.f32 %v7402_v38 }
 0x700   :  { %10358 = vpow2.f32 %v7403_v14  ;;  %v13882_v14 = vld [vmem:[#allocation38_spill] sm:$0xff] }
 0x701   :  { %10360 = vtanh.f32 %v2837_v57  ;;  %v13879_v57 = vld [vmem:[#allocation35_spill] sm:$0xff] }
 0x708   :  { %v10355_v45 = vpop.eup %10354 }
 0x709   :  { %v10357_v27 = vpop.eup %10356  ;;  %v2848_v18 = vadd.f32 1.0, %v10355_v45 }
 0x70a   :  { %v2849_v15 = vadd.f32 1.0, %v10357_v27  ;;  %v10359_v16 = vpop.eup %10358  ;;  %v13878_v27 = vld [vmem:[#allocation34_spill] sm:$0xff] }
 0x70b   :  { %10362 = vrcp.f32 %v2848_v18  ;;  %v10361_v60 = vpop.eup %10360  ;;  %v2850_v28 = vadd.f32 1.0, %v10359_v16  ;;  %v13881_v18 = vld [vmem:[#allocation37_spill] sm:$0xff]  ;;  %v13883_v16 = vld [vmem:[#allocation39_spill] sm:$0xff] }
 0x70c   :  { %10364 = vrcp.f32 %v2849_v15  ;;  %v13877_v15 = vld [vmem:[#allocation33_spill] sm:$0xff] }
 0x70d   :  { %10366 = vrcp.f32 %v2850_v28  ;;  %v13887_v28 = vld [vmem:[#allocation43_spill] sm:$0xff] }
 0x715   :  { %v10363_v42 = vpop.eup %10362 }
 0x716   :  { %v10365_v21 = vpop.eup %10364  ;;  %v2859_v41 = vmul.f32 %v10363_v42, %v10361_v60  ;;  %v13880_v60 = vld [vmem:[#allocation36_spill] sm:$0xff] }
 0x717   :  { %v2858_v38 = vmul.f32 %v10365_v21, %v11850_v5  ;;  %v10367_v22 = vpop.eup %10366  ;;  %v13876_v5 = vld [vmem:[#allocation32_spill] sm:$0xff]  ;;  %v13885_v21 = vld [vmem:[#allocation41_spill] sm:$0xff] }
 0x718   :  { %v13884_v42 = vld [vmem:[#allocation40_spill] sm:$0xff] }
 0x719   :  { %v12060_v44 = vadd.f32 %v2859_v41, %v2858_v38  ;;  %v13886_v41 = vld [vmem:[#allocation42_spill] sm:$0xff]  ;;  %v13888_v38 = vld [vmem:[#allocation44_spill] sm:$0xff] }
 0x71b   :  { %10368 = vtanh.f32 %v12060_v44 }
 0x725   :  { %v10369_v47 = vpop.eup %10368 }
 0x726   :  { %v12063_v45 = vmul.f32 %v10369_v47, %v10367_v22  ;;  %v13890_v22 = vld [vmem:[#allocation47_spill] sm:$0xff]  ;;  %v13891_v47 = vld [vmem:[#allocation46_spill] sm:$0xff] }
 0x728   :  { %3070 = vmatmul.mubr.f32.vlgmr.msra.gmra.mrb[20].mxu0 %v12063_v45  ;;  %3141 = vmatmul.mubr.f32.vlgmr.msra.gmra.mrb[20].mxu1 %v12063_v45 }
 0x729   :  { %8535 = vmatpush1.bf16.msra.mxu0 %v11063_v49  ;;  %8567 = vmatpush1.bf16.msra.mxu1 %v11066_v50 }
 0x72a   :  { %8537 = vmatprep.subr.bf16.mxu0 %v11068_v51  ;;  %8569 = vmatprep.subr.bf16.mxu1 %v11071_v55 }
 0x72b   :  { %3239 = vmatprep.mubr.f32.mxu0 %v13509_v9  ;;  %3310 = vmatprep.mubr.f32.mxu1 %v13509_v9 }
 0x72d   :  { %8539 = vmatpush1.bf16.msra.mxu0 %v11074_v61  ;;  %8571 = vmatpush1.bf16.msra.mxu1 %v11078_v62 }
 0x72e   :  { %8541 = vmatprep.subr.bf16.mxu0 %v11080_v63  ;;  %8573 = vmatprep.subr.bf16.mxu1 %v11083_v4 }
 0x731   :  { %8543 = vmatpush1.bf16.msra.mxu0 %v11088_v10  ;;  %8575 = vmatpush1.bf16.msra.mxu1 %v11092_v12 }
 0x732   :  { %8545 = vmatprep.subr.bf16.mxu0 %v11094_v13  ;;  %8577 = vmatprep.subr.bf16.mxu1 %v11097_v17 }
 0x735   :  { %8547 = vmatpush1.bf16.msra.mxu0 %v11101_v23  ;;  %8579 = vmatpush1.bf16.msra.mxu1 %v11106_v24 }
 0x736   :  { %8549 = vmatprep.subr.bf16.mxu0 %v11108_v25  ;;  %8581 = vmatprep.subr.bf16.mxu1 %v11111_v29 }
 0x739   :  { %8551 = vmatpush1.bf16.msra.mxu0 %v11114_v35  ;;  %8583 = vmatpush1.bf16.msra.mxu1 %v11118_v36 }
 0x73a   :  { %8553 = vmatprep.subr.bf16.mxu0 %v11120_v37  ;;  %8585 = vmatprep.subr.bf16.mxu1 %v11123_v43 }
 0x73d   :  { %8555 = vmatpush1.bf16.msra.mxu0 %v11126_v52  ;;  %8587 = vmatpush1.bf16.msra.mxu1 %v11130_v53 }
 0x73e   :  { %8557 = vmatprep.subr.bf16.mxu0 %v11132_v54  ;;  %8589 = vmatprep.subr.bf16.mxu1 %v11135_v59 }
 0x741   :  { %8559 = vmatpush1.bf16.msra.mxu0 %v11138_v6  ;;  %8591 = vmatpush1.bf16.msra.mxu1 %v11142_v7 }
 0x742   :  { %8561 = vmatprep.subr.bf16.mxu0 %v11144_v8  ;;  %8593 = vmatprep.subr.bf16.mxu1 %v13876_v5 }
 0x745   :  { %8563 = vmatpush1.bf16.msra.mxu0 %v13877_v15  ;;  %8595 = vmatpush1.bf16.msra.mxu1 %v13878_v27 }
 0x746   :  { %8597 = vmatprep.subr.bf16.mxu0 %v13879_v57  ;;  %8629 = vmatprep.subr.bf16.mxu1 %v13880_v60 }
 0x748   :  { %3240 = vmatmul.mubr.f32.vlgmr.msra.gmra.mrb[22].mxu0 %v11978_v19  ;;  %3311 = vmatmul.mubr.f32.vlgmr.msra.gmra.mrb[22].mxu1 %v11978_v19  ;;  %v13889_v19 = vld [vmem:[#allocation45_spill] sm:$0xff] }
 0x749   :  { %8599 = vmatpush1.bf16.msra.mxu0 %v13881_v18  ;;  %8631 = vmatpush1.bf16.msra.mxu1 %v13882_v14  ;;  %v13894_v14 = vld [vmem:[#allocation51_spill] sm:$0xff]  ;;  %v13895_v18 = vld [vmem:[#allocation50_spill] sm:$0xff] }
 0x74a   :  { %8601 = vmatprep.subr.bf16.mxu0 %v13883_v16  ;;  %8633 = vmatprep.subr.bf16.mxu1 %v13884_v42  ;;  %v13892_v16 = vld [vmem:[#allocation48_spill] sm:$0xff]  ;;  %v13893_v42 = vld [vmem:[#allocation49_spill] sm:$0xff] }
 0x74b   :  { %3424 = vmatprep.mubr.f32.mxu0 %v13509_v9  ;;  %3495 = vmatprep.mubr.f32.mxu1 %v13509_v9 }
 0x74d   :  { %8603 = vmatpush1.bf16.msra.mxu0 %v13885_v21  ;;  %8635 = vmatpush1.bf16.msra.mxu1 %v13886_v41  ;;  %v13896_v21 = vld [vmem:[#allocation52_spill] sm:$0xff]  ;;  %v13897_v41 = vld [vmem:[#allocation53_spill] sm:$0xff] }
 0x74e   :  { %8605 = vmatprep.subr.bf16.mxu0 %v13887_v28  ;;  %8637 = vmatprep.subr.bf16.mxu1 %v13888_v38  ;;  %v13898_v28 = vld [vmem:[#allocation54_spill] sm:$0xff]  ;;  %v13899_v38 = vld [vmem:[#allocation55_spill] sm:$0xff] }
 0x751   :  { %8607 = vmatpush1.bf16.msra.mxu0 %v13889_v19  ;;  %8639 = vmatpush1.bf16.msra.mxu1 %v13890_v22  ;;  %v13900_v19 = vld [vmem:[#allocation56_spill] sm:$0xff]  ;;  %v13901_v22 = vld [vmem:[#allocation57_spill] sm:$0xff] }
 0x752   :  { %8609 = vmatprep.subr.bf16.mxu0 %v13891_v47  ;;  %8641 = vmatprep.subr.bf16.mxu1 %v13892_v16  ;;  %v13902_v47 = vld [vmem:[#allocation58_spill] sm:$0xff]  ;;  %v13903_v16 = vld [vmem:[#allocation59_spill] sm:$0xff] }
 0x755   :  { %8611 = vmatpush1.bf16.msra.mxu0 %v13893_v42  ;;  %8643 = vmatpush1.bf16.msra.mxu1 %v13894_v14  ;;  %v13904_v42 = vld [vmem:[#allocation60_spill] sm:$0xff]  ;;  %v13905_v14 = vld [vmem:[#allocation61_spill] sm:$0xff] }
 0x756   :  { %8613 = vmatprep.subr.bf16.mxu0 %v13895_v18  ;;  %8645 = vmatprep.subr.bf16.mxu1 %v13896_v21  ;;  %v13906_v18 = vld [vmem:[#allocation62_spill] sm:$0xff]  ;;  %v13907_v21 = vld [vmem:[#allocation63_spill] sm:$0xff] }
 0x759   :  { %8615 = vmatpush1.bf16.msra.mxu0 %v13897_v41  ;;  %8647 = vmatpush1.bf16.msra.mxu1 %v13898_v28  ;;  %v13908_v41 = vld [vmem:[#allocation64_spill] sm:$0xff]  ;;  %v13909_v28 = vld [vmem:[#allocation65_spill] sm:$0xff] }
 0x75a   :  { %8617 = vmatprep.subr.bf16.mxu0 %v13899_v38  ;;  %8649 = vmatprep.subr.bf16.mxu1 %v13900_v19  ;;  %v13910_v38 = vld [vmem:[#allocation66_spill] sm:$0xff]  ;;  %v13911_v19 = vld [vmem:[#allocation67_spill] sm:$0xff] }
 0x75d   :  { %8619 = vmatpush1.bf16.msra.mxu0 %v13901_v22  ;;  %8651 = vmatpush1.bf16.msra.mxu1 %v13902_v47  ;;  %v13912_v22 = vld [vmem:[#allocation68_spill] sm:$0xff]  ;;  %v13945_v47 = vld [vmem:[#allocation175_spill] sm:$0xff] }
 0x75e   :  { %8621 = vmatprep.subr.bf16.mxu0 %v13903_v16  ;;  %8653 = vmatprep.subr.bf16.mxu1 %v13904_v42  ;;  %v13913_v42 = vld [vmem:[#allocation69_spill] sm:$0xff]  ;;  %v13927_v16 = vld [vmem:[#allocation83_spill] sm:$0xff] }
 0x761   :  { %8623 = vmatpush1.bf16.msra.mxu0 %v13905_v14  ;;  %8655 = vmatpush1.bf16.msra.mxu1 %v13906_v18  ;;  %v13914_v14 = vld [vmem:[#allocation70_spill] sm:$0xff]  ;;  %v13915_v18 = vld [vmem:[#allocation71_spill] sm:$0xff] }
 0x762   :  { %8625 = vmatprep.subr.bf16.mxu0 %v13907_v21  ;;  %8657 = vmatprep.subr.bf16.mxu1 %v13908_v41  ;;  %v13916_v21 = vld [vmem:[#allocation72_spill] sm:$0xff]  ;;  %v13926_v41 = vld [vmem:[#allocation82_spill] sm:$0xff] }
 0x765   :  { %8627 = vmatpush1.bf16.msra.mxu0 %v13909_v28  ;;  %8659 = vmatpush1.bf16.msra.mxu1 %v13910_v38  ;;  %v13917_v38 = vld [vmem:[#allocation73_spill] sm:$0xff]  ;;  %v13920_v28 = vld [vmem:[#allocation76_spill] sm:$0xff] }
 0x766   :  { %8661 = vmatprep.subr.bf16.mxu0 %v13911_v19  ;;  %8693 = vmatprep.subr.bf16.mxu1 %v13912_v22  ;;  %v13918_v19 = vld [vmem:[#allocation74_spill] sm:$0xff]  ;;  %v13919_v22 = vld [vmem:[#allocation75_spill] sm:$0xff] }
 0x768   :  { %3425 = vmatmul.mubr.f32.vlgmr.msra.gmra.mrb[24].mxu0 %v12063_v45  ;;  %3496 = vmatmul.mubr.f32.vlgmr.msra.gmra.mrb[24].mxu1 %v12063_v45  ;;  %v13921_v45 = vld [vmem:[#allocation77_spill] sm:$0xff] }
 0x769   :  { %8663 = vmatpush1.bf16.msra.mxu0 %v13913_v42  ;;  %8695 = vmatpush1.bf16.msra.mxu1 %v13914_v14  ;;  %v13922_v42 = vld [vmem:[#allocation78_spill] sm:$0xff]  ;;  %v13923_v14 = vld [vmem:[#allocation79_spill] sm:$0xff] }
 0x76a   :  { %8665 = vmatprep.subr.bf16.mxu0 %v13915_v18  ;;  %8697 = vmatprep.subr.bf16.mxu1 %v13916_v21  ;;  %v13924_v18 = vld [vmem:[#allocation80_spill] sm:$0xff]  ;;  %v13925_v21 = vld [vmem:[#allocation81_spill] sm:$0xff] }
 0x76b   :  { %3569 = vmatprep.mubr.f32.mxu0 %v13509_v9  ;;  %3640 = vmatprep.mubr.f32.mxu1 %v13509_v9 }
 0x76d   :  { %8667 = vmatpush1.bf16.msra.mxu0 %v13917_v38  ;;  %8699 = vmatpush1.bf16.msra.mxu1 %v13918_v19  ;;  %v13928_v38 = vld [vmem:[#allocation84_spill] sm:$0xff]  ;;  %v13929_v19 = vld [vmem:[#allocation85_spill] sm:$0xff] }
 0x76e   :  { %8669 = vmatprep.subr.bf16.mxu0 %v13919_v22  ;;  %8701 = vmatprep.subr.bf16.mxu1 %v13920_v28  ;;  %v13930_v22 = vld [vmem:[#allocation86_spill] sm:$0xff]  ;;  %v13931_v28 = vld [vmem:[#allocation87_spill] sm:$0xff] }
 0x771   :  { %8671 = vmatpush1.bf16.msra.mxu0 %v13921_v45  ;;  %8703 = vmatpush1.bf16.msra.mxu1 %v13922_v42  ;;  %v13932_v45 = vld [vmem:[#allocation88_spill] sm:$0xff]  ;;  %v13933_v42 = vld [vmem:[#allocation89_spill] sm:$0xff] }
 0x772   :  { %8673 = vmatprep.subr.bf16.mxu0 %v13923_v14  ;;  %8705 = vmatprep.subr.bf16.mxu1 %v13924_v18  ;;  %v13934_v14 = vld [vmem:[#allocation90_spill] sm:$0xff]  ;;  %v13935_v18 = vld [vmem:[#allocation91_spill] sm:$0xff] }
 0x775   :  { %8675 = vmatpush1.bf16.msra.mxu0 %v13925_v21  ;;  %8707 = vmatpush1.bf16.msra.mxu1 %v13926_v41  ;;  %v13936_v21 = vld [vmem:[#allocation92_spill] sm:$0xff]  ;;  %v13937_v41 = vld [vmem:[#allocation93_spill] sm:$0xff] }
 0x776   :  { %8677 = vmatprep.subr.bf16.mxu0 %v13927_v16  ;;  %8709 = vmatprep.subr.bf16.mxu1 %v13928_v38  ;;  %v13938_v16 = vld [vmem:[#allocation94_spill] sm:$0xff]  ;;  %v13939_v38 = vld [vmem:[#allocation95_spill] sm:$0xff] }
 0x779   :  { %8679 = vmatpush1.bf16.msra.mxu0 %v13929_v19  ;;  %8711 = vmatpush1.bf16.msra.mxu1 %v13930_v22  ;;  %v13940_v19 = vld [vmem:[#allocation96_spill] sm:$0xff]  ;;  %v13941_v22 = vld [vmem:[#allocation97_spill] sm:$0xff] }
 0x77a   :  { %8681 = vmatprep.subr.bf16.mxu0 %v13931_v28  ;;  %8713 = vmatprep.subr.bf16.mxu1 %v13932_v45  ;;  %v13942_v28 = vld [vmem:[#allocation98_spill] sm:$0xff]  ;;  %v13943_v45 = vld [vmem:[#allocation99_spill] sm:$0xff] }
 0x77d   :  { %8683 = vmatpush1.bf16.msra.mxu0 %v13933_v42  ;;  %8715 = vmatpush1.bf16.msra.mxu1 %v13934_v14  ;;  %v13944_v42 = vld [vmem:[#allocation100_spill] sm:$0xff] }
 0x77e   :  { %8685 = vmatprep.subr.bf16.mxu0 %v13935_v18  ;;  %8717 = vmatprep.subr.bf16.mxu1 %v13936_v21 }
 0x781   :  { %8687 = vmatpush1.bf16.msra.mxu0 %v13937_v41  ;;  %8719 = vmatpush1.bf16.msra.mxu1 %v13938_v16 }
 0x782   :  { %8689 = vmatprep.subr.bf16.mxu0 %v13939_v38  ;;  %8721 = vmatprep.subr.bf16.mxu1 %v13940_v19  ;;  %v13946_v19 = vld [vmem:[#allocation177_spill] sm:$0xff] }
 0x785   :  { %8691 = vmatpush1.bf16.msra.mxu0 %v13941_v22  ;;  %8723 = vmatpush1.bf16.msra.mxu1 %v13942_v28 }
 0x786   :  { %8725 = vmatprep.subr.bf16.mxu0 %v13943_v45  ;;  %8757 = vmatprep.subr.bf16.mxu1 %v13944_v42 }
 0x7fb   :  { %v3071_v14 = vpop.f32.mrb[20].mxu0  ;;  %v3142_v18 = vpop.f32.mrb[20].mxu1 }
 0x7fc   :  { %v3147_v21 = vadd.f32 %v3071_v14, %v13945_v47  ;;  %v3073_v60 = vpop.f32.mrb[21].mxu0  ;;  %v3144_v41 = vpop.f32.mrb[21].mxu1  ;;  %v3149_v22 = vadd.f32 %v3142_v18, %v13946_v19 }
 0x7fd   :  { %v3148_v16 = vadd.f32 %v3073_v60, %v13814_v58 }
 0x7fe   :  { %v7404_v57 = vmul.f32 -1.442695, %v3147_v21 }
 0x7ff   :  { %v7405_v38 = vmul.f32 -1.442695, %v3148_v16 }
 0x800   :  { %10370 = vpow2.f32 %v7404_v57 }
 0x801   :  { %10372 = vpow2.f32 %v7405_v38 }
 0x802   :  { %10374 = vtanh.f32 %v3149_v22 }
 0x80a   :  { %v10371_v27 = vpop.eup %10370 }
 0x80b   :  { %v10373_v28 = vpop.eup %10372  ;;  %v3160_v15 = vadd.f32 1.0, %v10371_v27 }
 0x80c   :  { %v3161_v45 = vadd.f32 1.0, %v10373_v28  ;;  %v10375_v42 = vpop.eup %10374 }
 0x80d   :  { %10376 = vrcp.f32 %v3160_v15 }
 0x80e   :  { %10378 = vrcp.f32 %v3161_v45 }
 0x817   :  { %v10377_v5 = vpop.eup %10376 }
 0x818   :  { %v10379_v14 = vpop.eup %10378  ;;  %v3171_v47 = vmul.f32 %v10377_v5, %v10375_v42 }
 0x819   :  { %v3170_v8 = vmul.f32 %v10379_v14, %v11967_v20 }
 0x81b   :  { %v12177_v60 = vadd.f32 %v3171_v47, %v3170_v8  ;;  %v3241_v16 = vpop.f32.mrb[22].mxu0  ;;  %v3312_v57 = vpop.f32.mrb[22].mxu1 }
 0x81c   :  { %v3321_v21 = vrot.slane %v3241_v16, 2  ;;  %v3243_v38 = vpop.f32.mrb[23].mxu0  ;;  %v3314_v18 = vpop.f32.mrb[23].mxu1  ;;  %v3323_v20 = vrot.slane %v3312_v57, 2 }
 0x81d   :  { %v3322_v19 = vrot.slane %v3243_v38, 2  ;;  %v3324_v45 = vrot.slane %v3314_v18, 2 }
 0x81e   :  { %v3329_v27 = vadd.f32 %v3321_v21, %v13680_v33  ;;  %v3331_v42 = vadd.f32 %v3323_v20, %v13683_v3  ;;  %v3353_v21 = vrot.slane %v11974_v46, 6  ;;  %v13947_v46 = vld [vmem:[#allocation117_spill] sm:$0xff] }
 0x81f   :  { %v3330_v28 = vadd.f32 %v3322_v19, %v13681_v11  ;;  %v3332_v5 = vadd.f32 %v3324_v45, %v13682_v31 }
 0x820   :  { %v7407_v15 = vmul.f32 -1.442695, %v3329_v27 }
 0x821   :  { %v7408_v22 = vmul.f32 -1.442695, %v3330_v28  ;;  %v7409_v8 = vmul.f32 -1.442695, %v3332_v5 }
 0x822   :  { %10380 = vpow2.f32 %v7407_v15  ;;  %v3150_v15 = vadd.f32 %v3144_v41, %v11765_v26  ;;  %v13948_v41 = vld [vmem:[#allocation118_spill] sm:$0xff] }
 0x823   :  { %10382 = vpow2.f32 %v7408_v22 }
 0x824   :  { %10384 = vpow2.f32 %v7409_v8  ;;  %v7406_v5 = vmul.f32 -1.442695, %v3150_v15  ;;  %v13949_v8 = vld [vmem:[#allocation119_spill] sm:$0xff]  ;;  %v13962_v15 = vld [vmem:[#allocation132_spill] sm:$0xff] }
 0x825   :  { %10386 = vtanh.f32 %v3331_v42  ;;  %v13950_v42 = vld [vmem:[#allocation120_spill] sm:$0xff] }
 0x82c   :  { %v10381_v47 = vpop.eup %10380 }
 0x82d   :  { %v10383_v14 = vpop.eup %10382  ;;  %v3342_v16 = vadd.f32 1.0, %v10381_v47  ;;  %v13951_v47 = vld [vmem:[#allocation121_spill] sm:$0xff] }
 0x82e   :  { %v3343_v38 = vadd.f32 1.0, %v10383_v14  ;;  %v10385_v33 = vpop.eup %10384 }
 0x82f   :  { %10388 = vrcp.f32 %v3342_v16  ;;  %v10387_v11 = vpop.eup %10386  ;;  %v3344_v31 = vadd.f32 1.0, %v10385_v33  ;;  %v13952_v16 = vld [vmem:[#allocation122_spill] sm:$0xff]  ;;  %v13954_v33 = vld [vmem:[#allocation124_spill] sm:$0xff] }
 0x830   :  { %10390 = vrcp.f32 %v3343_v38  ;;  %v13953_v38 = vld [vmem:[#allocation123_spill] sm:$0xff] }
 0x831   :  { %10392 = vrcp.f32 %v3344_v31  ;;  %v13959_v31 = vld [vmem:[#allocation129_spill] sm:$0xff] }
 0x839   :  { %v10389_v19 = vpop.eup %10388 }
 0x83a   :  { %v10391_v18 = vpop.eup %10390  ;;  %v3356_v27 = vmul.f32 %v10389_v19, %v10387_v11  ;;  %v13955_v11 = vld [vmem:[#allocation125_spill] sm:$0xff] }
 0x83b   :  { %v3355_v57 = vmul.f32 %v10391_v18, %v3353_v21  ;;  %v10393_v3 = vpop.eup %10392  ;;  %v13956_v21 = vld [vmem:[#allocation126_spill] sm:$0xff]  ;;  %v13957_v18 = vld [vmem:[#allocation127_spill] sm:$0xff] }
 0x83d   :  { %v12184_v28 = vadd.f32 %v3356_v27, %v3355_v57  ;;  %v13958_v27 = vld [vmem:[#allocation128_spill] sm:$0xff]  ;;  %v13960_v57 = vld [vmem:[#allocation130_spill] sm:$0xff] }
 0x83f   :  { %10394 = vtanh.f32 %v12184_v28 }
 0x840   :  { %10396 = vpow2.f32 %v7406_v5  ;;  %v13965_v5 = vld [vmem:[#allocation135_spill] sm:$0xff] }
 0x841   :  { %10398 = vtanh.f32 %v12177_v60 }
 0x849   :  { %v10395_v22 = vpop.eup %10394 }
 0x84a   :  { %v3359_v45 = vmul.f32 %v10395_v22, %v10393_v3  ;;  %v10397_v14 = vpop.eup %10396  ;;  %v13961_v3 = vld [vmem:[#allocation131_spill] sm:$0xff]  ;;  %v13963_v22 = vld [vmem:[#allocation133_spill] sm:$0xff] }
 0x84b   :  { %v3162_v19 = vadd.f32 1.0, %v10397_v14  ;;  %v13966_v14 = vld [vmem:[#allocation136_spill] sm:$0xff] }
 0x84c   :  { %v12188_v20 = vrot.slane %v3359_v45, 6  ;;  %v13964_v45 = vld [vmem:[#allocation134_spill] sm:$0xff] }
 0x84d   :  { %10400 = vrcp.f32 %v3162_v19  ;;  %v13969_v19 = vld [vmem:[#allocation139_spill] sm:$0xff] }
 0x84e   :  { %3570 = vmatmul.mubr.f32.vlgmr.msra.gmra.mrb[24].mxu0 %v12188_v20  ;;  %3641 = vmatmul.mubr.f32.vlgmr.msra.gmra.mrb[24].mxu1 %v12188_v20 }
 0x84f   :  { %8727 = vmatpush1.bf16.msra.mxu0 %v13685_v1  ;;  %8759 = vmatpush1.bf16.msra.mxu1 %v13686_v32 }
 0x850   :  { %8729 = vmatprep.subr.bf16.mxu0 %v13687_v56  ;;  %8761 = vmatprep.subr.bf16.mxu1 %v13688_v39 }
 0x851   :  { %3739 = vmatprep.mubr.f32.mxu0 %v13509_v9  ;;  %3810 = vmatprep.mubr.f32.mxu1 %v13509_v9 }
 0x853   :  { %8731 = vmatpush1.bf16.msra.mxu0 %v13689_v30  ;;  %8763 = vmatpush1.bf16.msra.mxu1 %v13690_v40 }
 0x854   :  { %8733 = vmatprep.subr.bf16.mxu0 %v13816_v2  ;;  %8765 = vmatprep.subr.bf16.mxu1 %v13947_v46 }
 0x857   :  { %8735 = vmatpush1.bf16.msra.mxu0 %v13948_v41  ;;  %8767 = vmatpush1.bf16.msra.mxu1 %v13949_v8 }
 0x858   :  { %8737 = vmatprep.subr.bf16.mxu0 %v13950_v42  ;;  %8769 = vmatprep.subr.bf16.mxu1 %v13951_v47 }
 0x85b   :  { %8739 = vmatpush1.bf16.msra.mxu0 %v13952_v16  ;;  %8771 = vmatpush1.bf16.msra.mxu1 %v13953_v38 }
 0x85c   :  { %8741 = vmatprep.subr.bf16.mxu0 %v13954_v33  ;;  %8773 = vmatprep.subr.bf16.mxu1 %v13955_v11 }
 0x85f   :  { %8743 = vmatpush1.bf16.msra.mxu0 %v13956_v21  ;;  %8775 = vmatpush1.bf16.msra.mxu1 %v13957_v18  ;;  %v13967_v18 = vld [vmem:[#allocation137_spill] sm:$0xff] }
 0x860   :  { %8745 = vmatprep.subr.bf16.mxu0 %v13958_v27  ;;  %8777 = vmatprep.subr.bf16.mxu1 %v13959_v31  ;;  %v10399_v27 = vpop.eup %10398  ;;  %v13968_v31 = vld [vmem:[#allocation138_spill] sm:$0xff] }
 0x861   :  { %v10401_v21 = vpop.eup %10400 }
 0x863   :  { %8747 = vmatpush1.bf16.msra.mxu0 %v13960_v57  ;;  %8779 = vmatpush1.bf16.msra.mxu1 %v13961_v3  ;;  %v12225_v57 = vmul.f32 %v10401_v21, %v10399_v27  ;;  %v13971_v3 = vld [vmem:[#allocation140_spill] sm:$0xff]  ;;  %v13977_v21 = vld [vmem:[#allocation146_spill] sm:$0xff]  ;;  %v13978_v27 = vld [vmem:[#allocation147_spill] sm:$0xff] }
 0x864   :  { %8749 = vmatprep.subr.bf16.mxu0 %v13962_v15  ;;  %8781 = vmatprep.subr.bf16.mxu1 %v13963_v22  ;;  %v13972_v15 = vld [vmem:[#allocation141_spill] sm:$0xff]  ;;  %v14005_v22 = vld [vmem:[#allocation172_spill] sm:$0xff] }
 0x865   :  { %13970 = vst [vmem:[#allocation107_spill] sm:$0xff] %v12225_v57 }
 0x867   :  { %8751 = vmatpush1.bf16.msra.mxu0 %v13964_v45  ;;  %8783 = vmatpush1.bf16.msra.mxu1 %v13965_v5  ;;  %v13973_v5 = vld [vmem:[#allocation142_spill] sm:$0xff]  ;;  %v13976_v45 = vld [vmem:[#allocation145_spill] sm:$0xff] }
 0x868   :  { %8753 = vmatprep.subr.bf16.mxu0 %v13966_v14  ;;  %8785 = vmatprep.subr.bf16.mxu1 %v13967_v18  ;;  %v13974_v14 = vld [vmem:[#allocation143_spill] sm:$0xff]  ;;  %v13975_v18 = vld [vmem:[#allocation144_spill] sm:$0xff] }
 0x86b   :  { %8755 = vmatpush1.bf16.msra.mxu0 %v13968_v31  ;;  %8787 = vmatpush1.bf16.msra.mxu1 %v13969_v19  ;;  %v13986_v19 = vld [vmem:[#allocation155_spill] sm:$0xff]  ;;  %v13987_v31 = vld [vmem:[#allocation156_spill] sm:$0xff] }
 0x86c   :  { %8789 = vmatprep.subr.bf16.mxu0 %v13971_v3  ;;  %8821 = vmatprep.subr.bf16.mxu1 %v13972_v15  ;;  %v13979_v15 = vld [vmem:[#allocation148_spill] sm:$0xff]  ;;  %v13980_v3 = vld [vmem:[#allocation149_spill] sm:$0xff] }
 0x86e   :  { %3740 = vmatmul.mubr.f32.vlgmr.msra.gmra.mrb[26].mxu0 %v12225_v57  ;;  %3811 = vmatmul.mubr.f32.vlgmr.msra.gmra.mrb[26].mxu1 %v12225_v57  ;;  %v13981_v57 = vld [vmem:[#allocation150_spill] sm:$0xff] }
 0x86f   :  { %8791 = vmatpush1.bf16.msra.mxu0 %v13973_v5  ;;  %8823 = vmatpush1.bf16.msra.mxu1 %v13974_v14  ;;  %v13982_v5 = vld [vmem:[#allocation151_spill] sm:$0xff]  ;;  %v13983_v14 = vld [vmem:[#allocation152_spill] sm:$0xff] }
 0x870   :  { %8793 = vmatprep.subr.bf16.mxu0 %v13975_v18  ;;  %8825 = vmatprep.subr.bf16.mxu1 %v13976_v45  ;;  %v13984_v18 = vld [vmem:[#allocation153_spill] sm:$0xff]  ;;  %v13985_v45 = vld [vmem:[#allocation154_spill] sm:$0xff] }
 0x871   :  { %3881 = vmatprep.mubr.f32.mxu0 %v13509_v9  ;;  %3952 = vmatprep.mubr.f32.mxu1 %v13509_v9 }
 0x873   :  { %8795 = vmatpush1.bf16.msra.mxu0 %v13977_v21  ;;  %8827 = vmatpush1.bf16.msra.mxu1 %v13978_v27  ;;  %v13988_v21 = vld [vmem:[#allocation157_spill] sm:$0xff]  ;;  %v13989_v27 = vld [vmem:[#allocation158_spill] sm:$0xff] }
 0x874   :  { %8797 = vmatprep.subr.bf16.mxu0 %v13979_v15  ;;  %8829 = vmatprep.subr.bf16.mxu1 %v13980_v3  ;;  %v13990_v15 = vld [vmem:[#allocation159_spill] sm:$0xff]  ;;  %v13991_v3 = vld [vmem:[#allocation160_spill] sm:$0xff] }
 0x877   :  { %8799 = vmatpush1.bf16.msra.mxu0 %v13981_v57  ;;  %8831 = vmatpush1.bf16.msra.mxu1 %v13982_v5  ;;  %v13992_v57 = vld [vmem:[#allocation161_spill] sm:$0xff]  ;;  %v13993_v5 = vld [vmem:[#allocation162_spill] sm:$0xff] }
 0x878   :  { %8801 = vmatprep.subr.bf16.mxu0 %v13983_v14  ;;  %8833 = vmatprep.subr.bf16.mxu1 %v13984_v18  ;;  %v13994_v14 = vld [vmem:[#allocation163_spill] sm:$0xff]  ;;  %v13995_v18 = vld [vmem:[#allocation164_spill] sm:$0xff] }
 0x87b   :  { %8803 = vmatpush1.bf16.msra.mxu0 %v13985_v45  ;;  %8835 = vmatpush1.bf16.msra.mxu1 %v13986_v19  ;;  %v13996_v45 = vld [vmem:[#allocation165_spill] sm:$0xff]  ;;  %v13997_v19 = vld [vmem:[#allocation166_spill] sm:$0xff] }
 0x87c   :  { %8805 = vmatprep.subr.bf16.mxu0 %v13987_v31  ;;  %8837 = vmatprep.subr.bf16.mxu1 %v13988_v21  ;;  %v13998_v31 = vld [vmem:[#allocation167_spill] sm:$0xff]  ;;  %v13999_v21 = vld [vmem:[#allocation168_spill] sm:$0xff] }
 0x87f   :  { %8807 = vmatpush1.bf16.msra.mxu0 %v13989_v27  ;;  %8839 = vmatpush1.bf16.msra.mxu1 %v13990_v15  ;;  %v14000_v27 = vld [vmem:[#allocation169_spill] sm:$0xff]  ;;  %v14001_v15 = vld [vmem:[#allocation170_spill] sm:$0xff] }
 0x880   :  { %8809 = vmatprep.subr.bf16.mxu0 %v13991_v3  ;;  %8841 = vmatprep.subr.bf16.mxu1 %v13992_v57  ;;  %v14002_v3 = vld [vmem:[#allocation171_spill] sm:$0xff] }
 0x881   :  { %v14003_v57 = vld [vmem:[#allocation23_spill] sm:$0xff] }
 0x883   :  { %8811 = vmatpush1.bf16.msra.mxu0 %v13993_v5  ;;  %8843 = vmatpush1.bf16.msra.mxu1 %v13994_v14  ;;  %v14004_v5 = vld [vmem:[#allocation24_spill] sm:$0xff] }
 0x884   :  { %8813 = vmatprep.subr.bf16.mxu0 %v13995_v18  ;;  %8845 = vmatprep.subr.bf16.mxu1 %v13996_v45 }
 0x887   :  { %8815 = vmatpush1.bf16.msra.mxu0 %v13997_v19  ;;  %8847 = vmatpush1.bf16.msra.mxu1 %v13998_v31 }
 0x888   :  { %8817 = vmatprep.subr.bf16.mxu0 %v13999_v21  ;;  %8849 = vmatprep.subr.bf16.mxu1 %v14000_v27 }
 0x88b   :  { %8819 = vmatpush1.bf16.msra.mxu0 %v14001_v15  ;;  %8851 = vmatpush1.bf16.msra.mxu1 %v14002_v3 }
 0x88c   :  { %8853 = vmatprep.subr.bf16.mxu0 %v14003_v57  ;;  %8885 = vmatprep.subr.bf16.mxu1 %v14004_v5 }
 0x921   :  { %v3571_v14 = vpop.f32.mrb[24].mxu0  ;;  %v3642_v18 = vpop.f32.mrb[24].mxu1 }
 0x922   :  { %v3647_v45 = vadd.f32 %v3571_v14, %v14005_v22  ;;  %v3573_v11 = vpop.f32.mrb[25].mxu0  ;;  %v3644_v19 = vpop.f32.mrb[25].mxu1  ;;  %v3649_v3 = vadd.f32 %v3642_v18, %v11617_v34 }
 0x923   :  { %v3648_v31 = vadd.f32 %v3573_v11, %v13744_v48  ;;  %v3650_v15 = vadd.f32 %v3644_v19, %v13745_v0 }
 0x924   :  { %v7410_v33 = vmul.f32 -1.442695, %v3647_v45 }
 0x925   :  { %v7411_v21 = vmul.f32 -1.442695, %v3648_v31  ;;  %v7412_v27 = vmul.f32 -1.442695, %v3650_v15 }
 0x926   :  { %10402 = vpow2.f32 %v7410_v33 }
 0x927   :  { %10404 = vpow2.f32 %v7411_v21 }
 0x928   :  { %10406 = vpow2.f32 %v7412_v27  ;;  %v14012_v27 = vld [vmem:[#allocation37_spill] sm:$0xff] }
 0x929   :  { %10408 = vtanh.f32 %v3649_v3  ;;  %v14009_v3 = vld [vmem:[#allocation34_spill] sm:$0xff] }
 0x930   :  { %v10403_v57 = vpop.eup %10402 }
 0x931   :  { %v10405_v38 = vpop.eup %10404  ;;  %v3660_v5 = vadd.f32 1.0, %v10403_v57 }
 0x932   :  { %v3661_v16 = vadd.f32 1.0, %v10405_v38  ;;  %v10407_v14 = vpop.eup %10406  ;;  %v14008_v38 = vld [vmem:[#allocation33_spill] sm:$0xff] }
 0x933   :  { %10410 = vrcp.f32 %v3660_v5  ;;  %v10409_v22 = vpop.eup %10408  ;;  %v3662_v33 = vadd.f32 1.0, %v10407_v14  ;;  %v14011_v5 = vld [vmem:[#allocation36_spill] sm:$0xff]  ;;  %v14013_v14 = vld [vmem:[#allocation38_spill] sm:$0xff] }
 0x934   :  { %10412 = vrcp.f32 %v3661_v16  ;;  %v14007_v16 = vld [vmem:[#allocation32_spill] sm:$0xff] }
 0x935   :  { %10414 = vrcp.f32 %v3662_v33  ;;  %v14017_v33 = vld [vmem:[#allocation42_spill] sm:$0xff] }
 0x93d   :  { %v10411_v11 = vpop.eup %10410 }
 0x93e   :  { %v10413_v45 = vpop.eup %10412  ;;  %v3671_v31 = vmul.f32 %v10411_v11, %v10409_v22  ;;  %v14010_v22 = vld [vmem:[#allocation35_spill] sm:$0xff] }
 0x93f   :  { %v3670_v21 = vmul.f32 %v10413_v45, %v12060_v44  ;;  %v10415_v18 = vpop.eup %10414  ;;  %v14006_v44 = vld [vmem:[#allocation31_spill] sm:$0xff]  ;;  %v14015_v45 = vld [vmem:[#allocation40_spill] sm:$0xff] }
 0x940   :  { %v14014_v11 = vld [vmem:[#allocation39_spill] sm:$0xff] }
 0x941   :  { %v12270_v19 = vadd.f32 %v3671_v31, %v3670_v21  ;;  %v14016_v31 = vld [vmem:[#allocation41_spill] sm:$0xff]  ;;  %v14018_v21 = vld [vmem:[#allocation43_spill] sm:$0xff] }
 0x943   :  { %10416 = vtanh.f32 %v12270_v19 }
 0x94d   :  { %v10417_v57 = vpop.eup %10416 }
 0x94e   :  { %v12273_v15 = vmul.f32 %v10417_v57, %v10415_v18  ;;  %v14019_v18 = vld [vmem:[#allocation44_spill] sm:$0xff]  ;;  %v14021_v57 = vld [vmem:[#allocation47_spill] sm:$0xff] }
 0x950   :  { %3882 = vmatmul.mubr.f32.vlgmr.msra.gmra.mrb[26].mxu0 %v12273_v15  ;;  %3953 = vmatmul.mubr.f32.vlgmr.msra.gmra.mrb[26].mxu1 %v12273_v15 }
 0x951   :  { %8855 = vmatpush1.bf16.msra.mxu0 %v11063_v49  ;;  %8887 = vmatpush1.bf16.msra.mxu1 %v11066_v50 }
 0x952   :  { %8857 = vmatprep.subr.bf16.mxu0 %v11068_v51  ;;  %8889 = vmatprep.subr.bf16.mxu1 %v11071_v55 }
 0x953   :  { %4051 = vmatprep.mubr.f32.mxu0 %v13509_v9  ;;  %4122 = vmatprep.mubr.f32.mxu1 %v13509_v9 }
 0x955   :  { %8859 = vmatpush1.bf16.msra.mxu0 %v11074_v61  ;;  %8891 = vmatpush1.bf16.msra.mxu1 %v11078_v62 }
 0x956   :  { %8861 = vmatprep.subr.bf16.mxu0 %v11080_v63  ;;  %8893 = vmatprep.subr.bf16.mxu1 %v11083_v4 }
 0x959   :  { %8863 = vmatpush1.bf16.msra.mxu0 %v11088_v10  ;;  %8895 = vmatpush1.bf16.msra.mxu1 %v11092_v12 }
 0x95a   :  { %8865 = vmatprep.subr.bf16.mxu0 %v11094_v13  ;;  %8897 = vmatprep.subr.bf16.mxu1 %v11097_v17 }
 0x95d   :  { %8867 = vmatpush1.bf16.msra.mxu0 %v11101_v23  ;;  %8899 = vmatpush1.bf16.msra.mxu1 %v11106_v24 }
 0x95e   :  { %8869 = vmatprep.subr.bf16.mxu0 %v11108_v25  ;;  %8901 = vmatprep.subr.bf16.mxu1 %v11111_v29 }
 0x961   :  { %8871 = vmatpush1.bf16.msra.mxu0 %v11114_v35  ;;  %8903 = vmatpush1.bf16.msra.mxu1 %v11118_v36 }
 0x962   :  { %8873 = vmatprep.subr.bf16.mxu0 %v11120_v37  ;;  %8905 = vmatprep.subr.bf16.mxu1 %v11123_v43 }
 0x965   :  { %8875 = vmatpush1.bf16.msra.mxu0 %v11126_v52  ;;  %8907 = vmatpush1.bf16.msra.mxu1 %v11130_v53 }
 0x966   :  { %8877 = vmatprep.subr.bf16.mxu0 %v11132_v54  ;;  %8909 = vmatprep.subr.bf16.mxu1 %v11135_v59 }
 0x969   :  { %8879 = vmatpush1.bf16.msra.mxu0 %v11138_v6  ;;  %8911 = vmatpush1.bf16.msra.mxu1 %v11142_v7 }
 0x96a   :  { %8881 = vmatprep.subr.bf16.mxu0 %v14006_v44  ;;  %8913 = vmatprep.subr.bf16.mxu1 %v14007_v16 }
 0x96d   :  { %8883 = vmatpush1.bf16.msra.mxu0 %v14008_v38  ;;  %8915 = vmatpush1.bf16.msra.mxu1 %v14009_v3 }
 0x96e   :  { %8917 = vmatprep.subr.bf16.mxu0 %v14010_v22  ;;  %8949 = vmatprep.subr.bf16.mxu1 %v14011_v5  ;;  %v14026_v5 = vld [vmem:[#allocation50_spill] sm:$0xff] }
 0x970   :  { %4052 = vmatmul.mubr.f32.vlgmr.msra.gmra.mrb[28].mxu0 %v12188_v20  ;;  %4123 = vmatmul.mubr.f32.vlgmr.msra.gmra.mrb[28].mxu1 %v12188_v20  ;;  %v14020_v20 = vld [vmem:[#allocation45_spill] sm:$0xff] }
 0x971   :  { %8919 = vmatpush1.bf16.msra.mxu0 %v14012_v27  ;;  %8951 = vmatpush1.bf16.msra.mxu1 %v14013_v14  ;;  %v14022_v14 = vld [vmem:[#allocation46_spill] sm:$0xff]  ;;  %v14025_v27 = vld [vmem:[#allocation51_spill] sm:$0xff] }
 0x972   :  { %8921 = vmatprep.subr.bf16.mxu0 %v14014_v11  ;;  %8953 = vmatprep.subr.bf16.mxu1 %v14015_v45  ;;  %v14023_v11 = vld [vmem:[#allocation48_spill] sm:$0xff]  ;;  %v14024_v45 = vld [vmem:[#allocation49_spill] sm:$0xff] }
 0x973   :  { %4224 = vmatprep.mubr.f32.mxu0 %v13509_v9  ;;  %4295 = vmatprep.mubr.f32.mxu1 %v13509_v9 }
 0x975   :  { %8923 = vmatpush1.bf16.msra.mxu0 %v14016_v31  ;;  %8955 = vmatpush1.bf16.msra.mxu1 %v14017_v33  ;;  %v14027_v31 = vld [vmem:[#allocation52_spill] sm:$0xff]  ;;  %v14028_v33 = vld [vmem:[#allocation53_spill] sm:$0xff] }
 0x976   :  { %8925 = vmatprep.subr.bf16.mxu0 %v14018_v21  ;;  %8957 = vmatprep.subr.bf16.mxu1 %v14019_v18  ;;  %v14029_v21 = vld [vmem:[#allocation54_spill] sm:$0xff]  ;;  %v14030_v18 = vld [vmem:[#allocation55_spill] sm:$0xff] }
 0x979   :  { %8927 = vmatpush1.bf16.msra.mxu0 %v14020_v20  ;;  %8959 = vmatpush1.bf16.msra.mxu1 %v14021_v57  ;;  %v14031_v20 = vld [vmem:[#allocation56_spill] sm:$0xff]  ;;  %v14032_v57 = vld [vmem:[#allocation57_spill] sm:$0xff] }
 0x97a   :  { %8929 = vmatprep.subr.bf16.mxu0 %v14022_v14  ;;  %8961 = vmatprep.subr.bf16.mxu1 %v14023_v11  ;;  %v14033_v14 = vld [vmem:[#allocation58_spill] sm:$0xff]  ;;  %v14034_v11 = vld [vmem:[#allocation59_spill] sm:$0xff] }
 0x97d   :  { %8931 = vmatpush1.bf16.msra.mxu0 %v14024_v45  ;;  %8963 = vmatpush1.bf16.msra.mxu1 %v14025_v27  ;;  %v14035_v45 = vld [vmem:[#allocation60_spill] sm:$0xff]  ;;  %v14036_v27 = vld [vmem:[#allocation61_spill] sm:$0xff] }
 0x97e   :  { %8933 = vmatprep.subr.bf16.mxu0 %v14026_v5  ;;  %8965 = vmatprep.subr.bf16.mxu1 %v14027_v31  ;;  %v14037_v5 = vld [vmem:[#allocation62_spill] sm:$0xff]  ;;  %v14038_v31 = vld [vmem:[#allocation63_spill] sm:$0xff] }
 0x981   :  { %8935 = vmatpush1.bf16.msra.mxu0 %v14028_v33  ;;  %8967 = vmatpush1.bf16.msra.mxu1 %v14029_v21  ;;  %v14039_v33 = vld [vmem:[#allocation64_spill] sm:$0xff]  ;;  %v14040_v21 = vld [vmem:[#allocation65_spill] sm:$0xff] }
 0x982   :  { %8937 = vmatprep.subr.bf16.mxu0 %v14030_v18  ;;  %8969 = vmatprep.subr.bf16.mxu1 %v14031_v20  ;;  %v14041_v18 = vld [vmem:[#allocation66_spill] sm:$0xff]  ;;  %v14042_v20 = vld [vmem:[#allocation67_spill] sm:$0xff] }
 0x985   :  { %8939 = vmatpush1.bf16.msra.mxu0 %v14032_v57  ;;  %8971 = vmatpush1.bf16.msra.mxu1 %v14033_v14  ;;  %v14043_v57 = vld [vmem:[#allocation68_spill] sm:$0xff]  ;;  %v14076_v14 = vld [vmem:[#allocation175_spill] sm:$0xff] }
 0x986   :  { %8941 = vmatprep.subr.bf16.mxu0 %v14034_v11  ;;  %8973 = vmatprep.subr.bf16.mxu1 %v14035_v45  ;;  %v14044_v45 = vld [vmem:[#allocation69_spill] sm:$0xff]  ;;  %v14058_v11 = vld [vmem:[#allocation83_spill] sm:$0xff] }
 0x989   :  { %8943 = vmatpush1.bf16.msra.mxu0 %v14036_v27  ;;  %8975 = vmatpush1.bf16.msra.mxu1 %v14037_v5  ;;  %v14045_v27 = vld [vmem:[#allocation70_spill] sm:$0xff]  ;;  %v14046_v5 = vld [vmem:[#allocation71_spill] sm:$0xff] }
 0x98a   :  { %8945 = vmatprep.subr.bf16.mxu0 %v14038_v31  ;;  %8977 = vmatprep.subr.bf16.mxu1 %v14039_v33  ;;  %v14047_v31 = vld [vmem:[#allocation72_spill] sm:$0xff]  ;;  %v14057_v33 = vld [vmem:[#allocation82_spill] sm:$0xff] }
 0x98d   :  { %8947 = vmatpush1.bf16.msra.mxu0 %v14040_v21  ;;  %8979 = vmatpush1.bf16.msra.mxu1 %v14041_v18  ;;  %v14048_v18 = vld [vmem:[#allocation73_spill] sm:$0xff]  ;;  %v14051_v21 = vld [vmem:[#allocation76_spill] sm:$0xff] }
 0x98e   :  { %8981 = vmatprep.subr.bf16.mxu0 %v14042_v20  ;;  %9013 = vmatprep.subr.bf16.mxu1 %v14043_v57  ;;  %v14049_v20 = vld [vmem:[#allocation74_spill] sm:$0xff]  ;;  %v14050_v57 = vld [vmem:[#allocation75_spill] sm:$0xff] }
 0x990   :  { %4225 = vmatmul.mubr.f32.vlgmr.msra.gmra.mrb[30].mxu0 %v12273_v15  ;;  %4296 = vmatmul.mubr.f32.vlgmr.msra.gmra.mrb[30].mxu1 %v12273_v15  ;;  %v14052_v15 = vld [vmem:[#allocation77_spill] sm:$0xff] }
 0x991   :  { %8983 = vmatpush1.bf16.msra.mxu0 %v14044_v45  ;;  %9015 = vmatpush1.bf16.msra.mxu1 %v14045_v27  ;;  %v14053_v45 = vld [vmem:[#allocation78_spill] sm:$0xff]  ;;  %v14054_v27 = vld [vmem:[#allocation79_spill] sm:$0xff] }
 0x992   :  { %8985 = vmatprep.subr.bf16.mxu0 %v14046_v5  ;;  %9017 = vmatprep.subr.bf16.mxu1 %v14047_v31  ;;  %v14055_v5 = vld [vmem:[#allocation80_spill] sm:$0xff]  ;;  %v14056_v31 = vld [vmem:[#allocation81_spill] sm:$0xff] }
 0x993   :  { %4366 = vmatprep.mubr.f32.mxu0 %v13509_v9  ;;  %4437 = vmatprep.mubr.f32.mxu1 %v13509_v9 }
 0x995   :  { %8987 = vmatpush1.bf16.msra.mxu0 %v14048_v18  ;;  %9019 = vmatpush1.bf16.msra.mxu1 %v14049_v20  ;;  %v14059_v18 = vld [vmem:[#allocation84_spill] sm:$0xff]  ;;  %v14060_v20 = vld [vmem:[#allocation85_spill] sm:$0xff] }
 0x996   :  { %8989 = vmatprep.subr.bf16.mxu0 %v14050_v57  ;;  %9021 = vmatprep.subr.bf16.mxu1 %v14051_v21  ;;  %v14061_v57 = vld [vmem:[#allocation86_spill] sm:$0xff]  ;;  %v14062_v21 = vld [vmem:[#allocation87_spill] sm:$0xff] }
 0x999   :  { %8991 = vmatpush1.bf16.msra.mxu0 %v14052_v15  ;;  %9023 = vmatpush1.bf16.msra.mxu1 %v14053_v45  ;;  %v14063_v15 = vld [vmem:[#allocation88_spill] sm:$0xff]  ;;  %v14064_v45 = vld [vmem:[#allocation89_spill] sm:$0xff] }
 0x99a   :  { %8993 = vmatprep.subr.bf16.mxu0 %v14054_v27  ;;  %9025 = vmatprep.subr.bf16.mxu1 %v14055_v5  ;;  %v14065_v27 = vld [vmem:[#allocation90_spill] sm:$0xff]  ;;  %v14066_v5 = vld [vmem:[#allocation91_spill] sm:$0xff] }
 0x99d   :  { %8995 = vmatpush1.bf16.msra.mxu0 %v14056_v31  ;;  %9027 = vmatpush1.bf16.msra.mxu1 %v14057_v33  ;;  %v14067_v31 = vld [vmem:[#allocation92_spill] sm:$0xff]  ;;  %v14068_v33 = vld [vmem:[#allocation93_spill] sm:$0xff] }
 0x99e   :  { %8997 = vmatprep.subr.bf16.mxu0 %v14058_v11  ;;  %9029 = vmatprep.subr.bf16.mxu1 %v14059_v18  ;;  %v14069_v11 = vld [vmem:[#allocation94_spill] sm:$0xff]  ;;  %v14070_v18 = vld [vmem:[#allocation95_spill] sm:$0xff] }
 0x9a1   :  { %8999 = vmatpush1.bf16.msra.mxu0 %v14060_v20  ;;  %9031 = vmatpush1.bf16.msra.mxu1 %v14061_v57  ;;  %v14071_v20 = vld [vmem:[#allocation96_spill] sm:$0xff]  ;;  %v14072_v57 = vld [vmem:[#allocation97_spill] sm:$0xff] }
 0x9a2   :  { %9001 = vmatprep.subr.bf16.mxu0 %v14062_v21  ;;  %9033 = vmatprep.subr.bf16.mxu1 %v14063_v15  ;;  %v14073_v21 = vld [vmem:[#allocation98_spill] sm:$0xff]  ;;  %v14074_v15 = vld [vmem:[#allocation99_spill] sm:$0xff] }
 0x9a5   :  { %9003 = vmatpush1.bf16.msra.mxu0 %v14064_v45  ;;  %9035 = vmatpush1.bf16.msra.mxu1 %v14065_v27  ;;  %v14075_v45 = vld [vmem:[#allocation100_spill] sm:$0xff] }
 0x9a6   :  { %9005 = vmatprep.subr.bf16.mxu0 %v14066_v5  ;;  %9037 = vmatprep.subr.bf16.mxu1 %v14067_v31 }
 0x9a9   :  { %9007 = vmatpush1.bf16.msra.mxu0 %v14068_v33  ;;  %9039 = vmatpush1.bf16.msra.mxu1 %v14069_v11 }
 0x9aa   :  { %9009 = vmatprep.subr.bf16.mxu0 %v14070_v18  ;;  %9041 = vmatprep.subr.bf16.mxu1 %v14071_v20  ;;  %v14077_v20 = vld [vmem:[#allocation177_spill] sm:$0xff] }
 0x9ad   :  { %9011 = vmatpush1.bf16.msra.mxu0 %v14072_v57  ;;  %9043 = vmatpush1.bf16.msra.mxu1 %v14073_v21 }
 0x9ae   :  { %9045 = vmatprep.subr.bf16.mxu0 %v14074_v15  ;;  %9077 = vmatprep.subr.bf16.mxu1 %v14075_v45 }
 0xa23   :  { %v3883_v27 = vpop.f32.mrb[26].mxu0  ;;  %v3954_v5 = vpop.f32.mrb[26].mxu1 }
 0xa24   :  { %v3959_v31 = vadd.f32 %v3883_v27, %v14076_v14  ;;  %v3885_v22 = vpop.f32.mrb[27].mxu0  ;;  %v3956_v33 = vpop.f32.mrb[27].mxu1  ;;  %v3961_v57 = vadd.f32 %v3954_v5, %v14077_v20 }
 0xa25   :  { %v3960_v11 = vadd.f32 %v3885_v22, %v13814_v58  ;;  %v14079_v58 = vld [vmem:[#allocation102_spill] sm:$0xff] }
 0xa26   :  { %v7413_v3 = vmul.f32 -1.442695, %v3959_v31  ;;  %v14078_v31 = vld [vmem:[#allocation101_spill] sm:$0xff] }
 0xa27   :  { %v7414_v18 = vmul.f32 -1.442695, %v3960_v11 }
 0xa28   :  { %10418 = vpow2.f32 %v7413_v3 }
 0xa29   :  { %10420 = vpow2.f32 %v7414_v18 }
 0xa2a   :  { %10422 = vtanh.f32 %v3961_v57 }
 0xa32   :  { %v10419_v38 = vpop.eup %10418 }
 0xa33   :  { %v10421_v21 = vpop.eup %10420  ;;  %v3972_v16 = vadd.f32 1.0, %v10419_v38 }
 0xa34   :  { %v3973_v15 = vadd.f32 1.0, %v10421_v21  ;;  %v10423_v45 = vpop.eup %10422 }
 0xa35   :  { %10424 = vrcp.f32 %v3972_v16  ;;  %v14080_v16 = vld [vmem:[#allocation104_spill] sm:$0xff] }
 0xa36   :  { %10426 = vrcp.f32 %v3973_v15 }
 0xa3f   :  { %v10425_v44 = vpop.eup %10424 }
 0xa40   :  { %v10427_v27 = vpop.eup %10426  ;;  %v3983_v14 = vmul.f32 %v10425_v44, %v10423_v45  ;;  %v14081_v44 = vld [vmem:[#allocation103_spill] sm:$0xff] }
 0xa41   :  { %v3982_v7 = vmul.f32 %v10427_v27, %v12177_v60 }
 0xa43   :  { %v12387_v22 = vadd.f32 %v3983_v14, %v3982_v7  ;;  %v4053_v11 = vpop.f32.mrb[28].mxu0  ;;  %v4124_v3 = vpop.f32.mrb[28].mxu1 }
 0xa44   :  { %v4129_v18 = vadd.f32 %v4053_v11, %v14078_v31  ;;  %v4055_v5 = vpop.f32.mrb[29].mxu0  ;;  %v4126_v20 = vpop.f32.mrb[29].mxu1  ;;  %v4131_v45 = vadd.f32 %v4124_v3, %v14081_v44 }
 0xa45   :  { %v4130_v38 = vadd.f32 %v4055_v5, %v14079_v58  ;;  %v4132_v15 = vadd.f32 %v4126_v20, %v14080_v16 }
 0xa46   :  { %v7416_v57 = vmul.f32 -1.442695, %v4129_v18  ;;  %v4153_v18 = vrot.slane %v12184_v28, 6 }
 0xa47   :  { %v7417_v21 = vmul.f32 -1.442695, %v4130_v38  ;;  %v7418_v6 = vmul.f32 -1.442695, %v4132_v15 }
 0xa48   :  { %10428 = vpow2.f32 %v7416_v57 }
 0xa49   :  { %10430 = vpow2.f32 %v7417_v21 }
 0xa4a   :  { %10432 = vpow2.f32 %v7418_v6  ;;  %v3962_v6 = vadd.f32 %v3956_v33, %v11765_v26  ;;  %v14082_v33 = vld [vmem:[#allocation122_spill] sm:$0xff] }
 0xa4b   :  { %10434 = vtanh.f32 %v4131_v45 }
 0xa52   :  { %v10429_v60 = vpop.eup %10428 }
 0xa53   :  { %v10431_v7 = vpop.eup %10430  ;;  %v4142_v14 = vadd.f32 1.0, %v10429_v60  ;;  %v7415_v60 = vmul.f32 -1.442695, %v3962_v6  ;;  %v14092_v6 = vld [vmem:[#allocation132_spill] sm:$0xff] }
 0xa54   :  { %v4143_v27 = vadd.f32 1.0, %v10431_v7  ;;  %v10433_v11 = vpop.eup %10432 }
 0xa55   :  { %10436 = vrcp.f32 %v4142_v14  ;;  %v10435_v31 = vpop.eup %10434  ;;  %v4144_v21 = vadd.f32 1.0, %v10433_v11  ;;  %v14084_v14 = vld [vmem:[#allocation124_spill] sm:$0xff] }
 0xa56   :  { %10438 = vrcp.f32 %v4143_v27  ;;  %v14085_v27 = vld [vmem:[#allocation125_spill] sm:$0xff] }
 0xa57   :  { %10440 = vrcp.f32 %v4144_v21  ;;  %v14090_v21 = vld [vmem:[#allocation130_spill] sm:$0xff] }
 0xa5f   :  { %v10437_v5 = vpop.eup %10436 }
 0xa60   :  { %v10439_v38 = vpop.eup %10438  ;;  %v4156_v57 = vmul.f32 %v10437_v5, %v10435_v31  ;;  %v14083_v31 = vld [vmem:[#allocation123_spill] sm:$0xff]  ;;  %v14086_v5 = vld [vmem:[#allocation126_spill] sm:$0xff] }
 0xa61   :  { %v4155_v20 = vmul.f32 %v10439_v38, %v4153_v18  ;;  %v10441_v3 = vpop.eup %10440  ;;  %v14087_v18 = vld [vmem:[#allocation127_spill] sm:$0xff]  ;;  %v14088_v38 = vld [vmem:[#allocation128_spill] sm:$0xff] }
 0xa63   :  { %v12394_v15 = vadd.f32 %v4156_v57, %v4155_v20  ;;  %v14089_v57 = vld [vmem:[#allocation129_spill] sm:$0xff]  ;;  %v14091_v20 = vld [vmem:[#allocation131_spill] sm:$0xff] }
 0xa65   :  { %10442 = vtanh.f32 %v12394_v15 }
 0xa66   :  { %10444 = vpow2.f32 %v7415_v60  ;;  %v14095_v60 = vld [vmem:[#allocation135_spill] sm:$0xff] }
 0xa67   :  { %10446 = vtanh.f32 %v12387_v22 }
 0xa6f   :  { %v10443_v45 = vpop.eup %10442 }
 0xa70   :  { %v12398_v7 = vmul.f32 %v10443_v45, %v10441_v3  ;;  %v10445_v28 = vpop.eup %10444  ;;  %v14093_v3 = vld [vmem:[#allocation133_spill] sm:$0xff]  ;;  %v14094_v45 = vld [vmem:[#allocation134_spill] sm:$0xff] }
 0xa71   :  { %v3974_v11 = vadd.f32 1.0, %v10445_v28  ;;  %v14096_v28 = vld [vmem:[#allocation136_spill] sm:$0xff] }
 0xa72   :  { %4367 = vmatmul.mubr.f32.vlgmr.msra.gmra.mrb[30].mxu0 %v12398_v7  ;;  %4438 = vmatmul.mubr.f32.vlgmr.msra.gmra.mrb[30].mxu1 %v12398_v7 }
 0xa73   :  { %9047 = vmatpush1.bf16.msra.mxu0 %v13685_v1  ;;  %9079 = vmatpush1.bf16.msra.mxu1 %v13686_v32  ;;  %10448 = vrcp.f32 %v3974_v11  ;;  %v14099_v11 = vld [vmem:[#allocation139_spill] sm:$0xff] }
 0xa74   :  { %9049 = vmatprep.subr.bf16.mxu0 %v13687_v56  ;;  %9081 = vmatprep.subr.bf16.mxu1 %v13688_v39 }
 0xa75   :  { %4536 = vmatprep.mubr.f32.mxu0 %v13509_v9  ;;  %4607 = vmatprep.mubr.f32.mxu1 %v13509_v9 }
 0xa77   :  { %9051 = vmatpush1.bf16.msra.mxu0 %v13689_v30  ;;  %9083 = vmatpush1.bf16.msra.mxu1 %v13690_v40 }
 0xa78   :  { %9053 = vmatprep.subr.bf16.mxu0 %v13816_v2  ;;  %9085 = vmatprep.subr.bf16.mxu1 %v13947_v46 }
 0xa7b   :  { %9055 = vmatpush1.bf16.msra.mxu0 %v13948_v41  ;;  %9087 = vmatpush1.bf16.msra.mxu1 %v13949_v8 }
 0xa7c   :  { %9057 = vmatprep.subr.bf16.mxu0 %v13950_v42  ;;  %9089 = vmatprep.subr.bf16.mxu1 %v13951_v47 }
 0xa7f   :  { %9059 = vmatpush1.bf16.msra.mxu0 %v14082_v33  ;;  %9091 = vmatpush1.bf16.msra.mxu1 %v14083_v31 }
 0xa80   :  { %9061 = vmatprep.subr.bf16.mxu0 %v14084_v14  ;;  %9093 = vmatprep.subr.bf16.mxu1 %v14085_v27 }
 0xa83   :  { %9063 = vmatpush1.bf16.msra.mxu0 %v14086_v5  ;;  %9095 = vmatpush1.bf16.msra.mxu1 %v14087_v18  ;;  %v14097_v18 = vld [vmem:[#allocation137_spill] sm:$0xff] }
 0xa84   :  { %9065 = vmatprep.subr.bf16.mxu0 %v14088_v38  ;;  %9097 = vmatprep.subr.bf16.mxu1 %v14089_v57  ;;  %v10447_v38 = vpop.eup %10446  ;;  %v14098_v57 = vld [vmem:[#allocation138_spill] sm:$0xff] }
 0xa85   :  { %v10449_v5 = vpop.eup %10448 }
 0xa87   :  { %9067 = vmatpush1.bf16.msra.mxu0 %v14090_v21  ;;  %9099 = vmatpush1.bf16.msra.mxu1 %v14091_v20  ;;  %v12435_v21 = vmul.f32 %v10449_v5, %v10447_v38  ;;  %v14101_v20 = vld [vmem:[#allocation140_spill] sm:$0xff]  ;;  %v14107_v5 = vld [vmem:[#allocation146_spill] sm:$0xff]  ;;  %v14108_v38 = vld [vmem:[#allocation147_spill] sm:$0xff] }
 0xa88   :  { %9069 = vmatprep.subr.bf16.mxu0 %v14092_v6  ;;  %9101 = vmatprep.subr.bf16.mxu1 %v14093_v3  ;;  %v14102_v6 = vld [vmem:[#allocation141_spill] sm:$0xff]  ;;  %v14135_v3 = vld [vmem:[#allocation172_spill] sm:$0xff] }
 0xa89   :  { %14100 = vst [vmem:[#allocation108_spill] sm:$0xff] %v12435_v21 }
 0xa8b   :  { %9071 = vmatpush1.bf16.msra.mxu0 %v14094_v45  ;;  %9103 = vmatpush1.bf16.msra.mxu1 %v14095_v60  ;;  %v14103_v60 = vld [vmem:[#allocation142_spill] sm:$0xff]  ;;  %v14106_v45 = vld [vmem:[#allocation145_spill] sm:$0xff] }
 0xa8c   :  { %9073 = vmatprep.subr.bf16.mxu0 %v14096_v28  ;;  %9105 = vmatprep.subr.bf16.mxu1 %v14097_v18  ;;  %v14104_v28 = vld [vmem:[#allocation143_spill] sm:$0xff]  ;;  %v14105_v18 = vld [vmem:[#allocation144_spill] sm:$0xff] }
 0xa8f   :  { %9075 = vmatpush1.bf16.msra.mxu0 %v14098_v57  ;;  %9107 = vmatpush1.bf16.msra.mxu1 %v14099_v11  ;;  %v14116_v11 = vld [vmem:[#allocation155_spill] sm:$0xff]  ;;  %v14117_v57 = vld [vmem:[#allocation156_spill] sm:$0xff] }
 0xa90   :  { %9109 = vmatprep.subr.bf16.mxu0 %v14101_v20  ;;  %9141 = vmatprep.subr.bf16.mxu1 %v14102_v6  ;;  %v14109_v6 = vld [vmem:[#allocation148_spill] sm:$0xff]  ;;  %v14110_v20 = vld [vmem:[#allocation149_spill] sm:$0xff] }
 0xa92   :  { %4537 = vmatmul.mubr.f32.vlgmr.msra.gmra.mrb[32].mxu0 %v12435_v21  ;;  %4608 = vmatmul.mubr.f32.vlgmr.msra.gmra.mrb[32].mxu1 %v12435_v21  ;;  %v14111_v21 = vld [vmem:[#allocation150_spill] sm:$0xff] }
 0xa93   :  { %9111 = vmatpush1.bf16.msra.mxu0 %v14103_v60  ;;  %9143 = vmatpush1.bf16.msra.mxu1 %v14104_v28  ;;  %v14112_v60 = vld [vmem:[#allocation151_spill] sm:$0xff]  ;;  %v14113_v28 = vld [vmem:[#allocation152_spill] sm:$0xff] }
 0xa94   :  { %9113 = vmatprep.subr.bf16.mxu0 %v14105_v18  ;;  %9145 = vmatprep.subr.bf16.mxu1 %v14106_v45  ;;  %v14114_v18 = vld [vmem:[#allocation153_spill] sm:$0xff]  ;;  %v14115_v45 = vld [vmem:[#allocation154_spill] sm:$0xff] }
 0xa95   :  { %4678 = vmatprep.mubr.f32.mxu0 %v13509_v9  ;;  %4749 = vmatprep.mubr.f32.mxu1 %v13509_v9 }
 0xa97   :  { %9115 = vmatpush1.bf16.msra.mxu0 %v14107_v5  ;;  %9147 = vmatpush1.bf16.msra.mxu1 %v14108_v38  ;;  %v14118_v5 = vld [vmem:[#allocation157_spill] sm:$0xff]  ;;  %v14119_v38 = vld [vmem:[#allocation158_spill] sm:$0xff] }
 0xa98   :  { %9117 = vmatprep.subr.bf16.mxu0 %v14109_v6  ;;  %9149 = vmatprep.subr.bf16.mxu1 %v14110_v20  ;;  %v14120_v6 = vld [vmem:[#allocation159_spill] sm:$0xff]  ;;  %v14121_v20 = vld [vmem:[#allocation160_spill] sm:$0xff] }
 0xa9b   :  { %9119 = vmatpush1.bf16.msra.mxu0 %v14111_v21  ;;  %9151 = vmatpush1.bf16.msra.mxu1 %v14112_v60  ;;  %v14122_v21 = vld [vmem:[#allocation161_spill] sm:$0xff]  ;;  %v14123_v60 = vld [vmem:[#allocation162_spill] sm:$0xff] }
 0xa9c   :  { %9121 = vmatprep.subr.bf16.mxu0 %v14113_v28  ;;  %9153 = vmatprep.subr.bf16.mxu1 %v14114_v18  ;;  %v14124_v28 = vld [vmem:[#allocation163_spill] sm:$0xff]  ;;  %v14125_v18 = vld [vmem:[#allocation164_spill] sm:$0xff] }
 0xa9f   :  { %9123 = vmatpush1.bf16.msra.mxu0 %v14115_v45  ;;  %9155 = vmatpush1.bf16.msra.mxu1 %v14116_v11  ;;  %v14126_v45 = vld [vmem:[#allocation165_spill] sm:$0xff]  ;;  %v14127_v11 = vld [vmem:[#allocation166_spill] sm:$0xff] }
 0xaa0   :  { %9125 = vmatprep.subr.bf16.mxu0 %v14117_v57  ;;  %9157 = vmatprep.subr.bf16.mxu1 %v14118_v5  ;;  %v14128_v57 = vld [vmem:[#allocation167_spill] sm:$0xff]  ;;  %v14129_v5 = vld [vmem:[#allocation168_spill] sm:$0xff] }
 0xaa3   :  { %9127 = vmatpush1.bf16.msra.mxu0 %v14119_v38  ;;  %9159 = vmatpush1.bf16.msra.mxu1 %v14120_v6  ;;  %v14130_v38 = vld [vmem:[#allocation169_spill] sm:$0xff]  ;;  %v14131_v6 = vld [vmem:[#allocation170_spill] sm:$0xff] }
 0xaa4   :  { %9129 = vmatprep.subr.bf16.mxu0 %v14121_v20  ;;  %9161 = vmatprep.subr.bf16.mxu1 %v14122_v21  ;;  %v14132_v20 = vld [vmem:[#allocation171_spill] sm:$0xff] }
 0xaa5   :  { %v14133_v21 = vld [vmem:[#allocation23_spill] sm:$0xff] }
 0xaa7   :  { %9131 = vmatpush1.bf16.msra.mxu0 %v14123_v60  ;;  %9163 = vmatpush1.bf16.msra.mxu1 %v14124_v28  ;;  %v14134_v60 = vld [vmem:[#allocation24_spill] sm:$0xff] }
 0xaa8   :  { %9133 = vmatprep.subr.bf16.mxu0 %v14125_v18  ;;  %9165 = vmatprep.subr.bf16.mxu1 %v14126_v45 }
 0xaab   :  { %9135 = vmatpush1.bf16.msra.mxu0 %v14127_v11  ;;  %9167 = vmatpush1.bf16.msra.mxu1 %v14128_v57 }
 0xaac   :  { %9137 = vmatprep.subr.bf16.mxu0 %v14129_v5  ;;  %9169 = vmatprep.subr.bf16.mxu1 %v14130_v38 }
 0xaaf   :  { %9139 = vmatpush1.bf16.msra.mxu0 %v14131_v6  ;;  %9171 = vmatpush1.bf16.msra.mxu1 %v14132_v20 }
 0xab0   :  { %9173 = vmatprep.subr.bf16.mxu0 %v14133_v21  ;;  %9205 = vmatprep.subr.bf16.mxu1 %v14134_v60 }
 0xb45   :  { %v4368_v28 = vpop.f32.mrb[30].mxu0  ;;  %v4439_v18 = vpop.f32.mrb[30].mxu1 }
 0xb46   :  { %v4444_v45 = vadd.f32 %v4368_v28, %v14135_v3  ;;  %v4370_v27 = vpop.f32.mrb[31].mxu0  ;;  %v4441_v11 = vpop.f32.mrb[31].mxu1  ;;  %v4446_v20 = vadd.f32 %v4439_v18, %v11617_v34 }
 0xb47   :  { %v4445_v57 = vadd.f32 %v4370_v27, %v13744_v48  ;;  %v4447_v6 = vadd.f32 %v4441_v11, %v13745_v0 }
 0xb48   :  { %v7419_v14 = vmul.f32 -1.442695, %v4444_v45 }
 0xb49   :  { %v7420_v5 = vmul.f32 -1.442695, %v4445_v57  ;;  %v7421_v38 = vmul.f32 -1.442695, %v4447_v6 }
 0xb4a   :  { %10450 = vpow2.f32 %v7419_v14 }
 0xb4b   :  { %10452 = vpow2.f32 %v7420_v5 }
 0xb4c   :  { %10454 = vpow2.f32 %v7421_v38  ;;  %v14142_v38 = vld [vmem:[#allocation35_spill] sm:$0xff] }
 0xb4d   :  { %10456 = vtanh.f32 %v4446_v20  ;;  %v14139_v20 = vld [vmem:[#allocation32_spill] sm:$0xff] }
 0xb54   :  { %v10451_v21 = vpop.eup %10450 }
 0xb55   :  { %v10453_v31 = vpop.eup %10452  ;;  %v4457_v60 = vadd.f32 1.0, %v10451_v21 }
 0xb56   :  { %v4458_v33 = vadd.f32 1.0, %v10453_v31  ;;  %v10455_v28 = vpop.eup %10454  ;;  %v14138_v31 = vld [vmem:[#allocation31_spill] sm:$0xff] }
 0xb57   :  { %10458 = vrcp.f32 %v4457_v60  ;;  %v10457_v3 = vpop.eup %10456  ;;  %v4459_v14 = vadd.f32 1.0, %v10455_v28  ;;  %v14141_v60 = vld [vmem:[#allocation34_spill] sm:$0xff]  ;;  %v14143_v28 = vld [vmem:[#allocation36_spill] sm:$0xff] }
 0xb58   :  { %10460 = vrcp.f32 %v4458_v33  ;;  %v14137_v33 = vld [vmem:[#allocation30_spill] sm:$0xff] }
 0xb59   :  { %10462 = vrcp.f32 %v4459_v14  ;;  %v14147_v14 = vld [vmem:[#allocation40_spill] sm:$0xff] }
 0xb61   :  { %v10459_v27 = vpop.eup %10458 }
 0xb62   :  { %v10461_v45 = vpop.eup %10460  ;;  %v4468_v57 = vmul.f32 %v10459_v27, %v10457_v3  ;;  %v14140_v3 = vld [vmem:[#allocation33_spill] sm:$0xff] }
 0xb63   :  { %v4467_v5 = vmul.f32 %v10461_v45, %v12270_v19  ;;  %v10463_v18 = vpop.eup %10462  ;;  %v14136_v19 = vld [vmem:[#allocation29_spill] sm:$0xff]  ;;  %v14145_v45 = vld [vmem:[#allocation38_spill] sm:$0xff] }
 0xb64   :  { %v14144_v27 = vld [vmem:[#allocation37_spill] sm:$0xff] }
 0xb65   :  { %v12480_v11 = vadd.f32 %v4468_v57, %v4467_v5  ;;  %v14146_v57 = vld [vmem:[#allocation39_spill] sm:$0xff]  ;;  %v14148_v5 = vld [vmem:[#allocation41_spill] sm:$0xff] }
 0xb67   :  { %10464 = vtanh.f32 %v12480_v11 }
 0xb71   :  { %v10465_v21 = vpop.eup %10464 }
 0xb72   :  { %v12483_v6 = vmul.f32 %v10465_v21, %v10463_v18  ;;  %v14149_v18 = vld [vmem:[#allocation42_spill] sm:$0xff]  ;;  %v14150_v21 = vld [vmem:[#allocation43_spill] sm:$0xff] }
 0xb74   :  { %4679 = vmatmul.mubr.f32.vlgmr.msra.gmra.mrb[32].mxu0 %v12483_v6  ;;  %4750 = vmatmul.mubr.f32.vlgmr.msra.gmra.mrb[32].mxu1 %v12483_v6 }
 0xb75   :  { %9175 = vmatpush1.bf16.msra.mxu0 %v11063_v49  ;;  %9207 = vmatpush1.bf16.msra.mxu1 %v11066_v50 }
 0xb76   :  { %9177 = vmatprep.subr.bf16.mxu0 %v11068_v51  ;;  %9209 = vmatprep.subr.bf16.mxu1 %v11071_v55 }
 0xb77   :  { %4848 = vmatprep.mubr.f32.mxu0 %v13509_v9  ;;  %4919 = vmatprep.mubr.f32.mxu1 %v13509_v9 }
 0xb79   :  { %9179 = vmatpush1.bf16.msra.mxu0 %v11074_v61  ;;  %9211 = vmatpush1.bf16.msra.mxu1 %v11078_v62 }
 0xb7a   :  { %9181 = vmatprep.subr.bf16.mxu0 %v11080_v63  ;;  %9213 = vmatprep.subr.bf16.mxu1 %v11083_v4 }
 0xb7d   :  { %9183 = vmatpush1.bf16.msra.mxu0 %v11088_v10  ;;  %9215 = vmatpush1.bf16.msra.mxu1 %v11092_v12 }
 0xb7e   :  { %9185 = vmatprep.subr.bf16.mxu0 %v11094_v13  ;;  %9217 = vmatprep.subr.bf16.mxu1 %v11097_v17 }
 0xb81   :  { %9187 = vmatpush1.bf16.msra.mxu0 %v11101_v23  ;;  %9219 = vmatpush1.bf16.msra.mxu1 %v11106_v24 }
 0xb82   :  { %9189 = vmatprep.subr.bf16.mxu0 %v11108_v25  ;;  %9221 = vmatprep.subr.bf16.mxu1 %v11111_v29 }
 0xb85   :  { %9191 = vmatpush1.bf16.msra.mxu0 %v11114_v35  ;;  %9223 = vmatpush1.bf16.msra.mxu1 %v11118_v36 }
 0xb86   :  { %9193 = vmatprep.subr.bf16.mxu0 %v11120_v37  ;;  %9225 = vmatprep.subr.bf16.mxu1 %v11123_v43 }
 0xb89   :  { %9195 = vmatpush1.bf16.msra.mxu0 %v11126_v52  ;;  %9227 = vmatpush1.bf16.msra.mxu1 %v11130_v53 }
 0xb8a   :  { %9197 = vmatprep.subr.bf16.mxu0 %v11132_v54  ;;  %9229 = vmatprep.subr.bf16.mxu1 %v11135_v59 }
 0xb8d   :  { %9199 = vmatpush1.bf16.msra.mxu0 %v14136_v19  ;;  %9231 = vmatpush1.bf16.msra.mxu1 %v14137_v33 }
 0xb8e   :  { %9201 = vmatprep.subr.bf16.mxu0 %v14138_v31  ;;  %9233 = vmatprep.subr.bf16.mxu1 %v14139_v20  ;;  %v14209_v20 = vld [vmem:[#allocation176_spill] sm:$0xff] }
 0xb91   :  { %9203 = vmatpush1.bf16.msra.mxu0 %v14140_v3  ;;  %9235 = vmatpush1.bf16.msra.mxu1 %v14141_v60  ;;  %v14158_v60 = vld [vmem:[#allocation50_spill] sm:$0xff] }
 0xb92   :  { %9237 = vmatprep.subr.bf16.mxu0 %v14142_v38  ;;  %9269 = vmatprep.subr.bf16.mxu1 %v14143_v28  ;;  %v14151_v28 = vld [vmem:[#allocation44_spill] sm:$0xff]  ;;  %v14157_v38 = vld [vmem:[#allocation51_spill] sm:$0xff] }
 0xb94   :  { %4849 = vmatmul.mubr.f32.vlgmr.msra.gmra.mrb[34].mxu0 %v12398_v7  ;;  %4920 = vmatmul.mubr.f32.vlgmr.msra.gmra.mrb[34].mxu1 %v12398_v7  ;;  %v14152_v7 = vld [vmem:[#allocation45_spill] sm:$0xff] }
 0xb95   :  { %9239 = vmatpush1.bf16.msra.mxu0 %v14144_v27  ;;  %9271 = vmatpush1.bf16.msra.mxu1 %v14145_v45  ;;  %v14153_v27 = vld [vmem:[#allocation47_spill] sm:$0xff]  ;;  %v14154_v45 = vld [vmem:[#allocation46_spill] sm:$0xff] }
 0xb96   :  { %9241 = vmatprep.subr.bf16.mxu0 %v14146_v57  ;;  %9273 = vmatprep.subr.bf16.mxu1 %v14147_v14  ;;  %v14155_v57 = vld [vmem:[#allocation48_spill] sm:$0xff]  ;;  %v14156_v14 = vld [vmem:[#allocation49_spill] sm:$0xff] }
 0xb97   :  { %5033 = vmatprep.mubr.f32.mxu0 %v13509_v9  ;;  %5104 = vmatprep.mubr.f32.mxu1 %v13509_v9 }
 0xb99   :  { %9243 = vmatpush1.bf16.msra.mxu0 %v14148_v5  ;;  %9275 = vmatpush1.bf16.msra.mxu1 %v14149_v18  ;;  %v14159_v5 = vld [vmem:[#allocation52_spill] sm:$0xff]  ;;  %v14160_v18 = vld [vmem:[#allocation53_spill] sm:$0xff] }
 0xb9a   :  { %9245 = vmatprep.subr.bf16.mxu0 %v14150_v21  ;;  %9277 = vmatprep.subr.bf16.mxu1 %v14151_v28  ;;  %v14161_v21 = vld [vmem:[#allocation54_spill] sm:$0xff]  ;;  %v14162_v28 = vld [vmem:[#allocation55_spill] sm:$0xff] }
 0xb9d   :  { %9247 = vmatpush1.bf16.msra.mxu0 %v14152_v7  ;;  %9279 = vmatpush1.bf16.msra.mxu1 %v14153_v27  ;;  %v14163_v7 = vld [vmem:[#allocation56_spill] sm:$0xff]  ;;  %v14164_v27 = vld [vmem:[#allocation57_spill] sm:$0xff] }
 0xb9e   :  { %9249 = vmatprep.subr.bf16.mxu0 %v14154_v45  ;;  %9281 = vmatprep.subr.bf16.mxu1 %v14155_v57  ;;  %v14165_v45 = vld [vmem:[#allocation58_spill] sm:$0xff]  ;;  %v14166_v57 = vld [vmem:[#allocation59_spill] sm:$0xff] }
 0xba1   :  { %9251 = vmatpush1.bf16.msra.mxu0 %v14156_v14  ;;  %9283 = vmatpush1.bf16.msra.mxu1 %v14157_v38  ;;  %v14167_v14 = vld [vmem:[#allocation60_spill] sm:$0xff]  ;;  %v14168_v38 = vld [vmem:[#allocation61_spill] sm:$0xff] }
 0xba2   :  { %9253 = vmatprep.subr.bf16.mxu0 %v14158_v60  ;;  %9285 = vmatprep.subr.bf16.mxu1 %v14159_v5  ;;  %v14169_v60 = vld [vmem:[#allocation62_spill] sm:$0xff]  ;;  %v14170_v5 = vld [vmem:[#allocation63_spill] sm:$0xff] }
 0xba5   :  { %9255 = vmatpush1.bf16.msra.mxu0 %v14160_v18  ;;  %9287 = vmatpush1.bf16.msra.mxu1 %v14161_v21  ;;  %v14171_v18 = vld [vmem:[#allocation64_spill] sm:$0xff]  ;;  %v14172_v21 = vld [vmem:[#allocation65_spill] sm:$0xff] }
 0xba6   :  { %9257 = vmatprep.subr.bf16.mxu0 %v14162_v28  ;;  %9289 = vmatprep.subr.bf16.mxu1 %v14163_v7  ;;  %v14173_v28 = vld [vmem:[#allocation66_spill] sm:$0xff]  ;;  %v14174_v7 = vld [vmem:[#allocation67_spill] sm:$0xff] }
 0xba9   :  { %9259 = vmatpush1.bf16.msra.mxu0 %v14164_v27  ;;  %9291 = vmatpush1.bf16.msra.mxu1 %v14165_v45  ;;  %v14175_v27 = vld [vmem:[#allocation68_spill] sm:$0xff]  ;;  %v14208_v45 = vld [vmem:[#allocation175_spill] sm:$0xff] }
 0xbaa   :  { %9261 = vmatprep.subr.bf16.mxu0 %v14166_v57  ;;  %9293 = vmatprep.subr.bf16.mxu1 %v14167_v14  ;;  %v14176_v14 = vld [vmem:[#allocation69_spill] sm:$0xff]  ;;  %v14190_v57 = vld [vmem:[#allocation83_spill] sm:$0xff] }
 0xbad   :  { %9263 = vmatpush1.bf16.msra.mxu0 %v14168_v38  ;;  %9295 = vmatpush1.bf16.msra.mxu1 %v14169_v60  ;;  %v14177_v38 = vld [vmem:[#allocation70_spill] sm:$0xff]  ;;  %v14178_v60 = vld [vmem:[#allocation71_spill] sm:$0xff] }
 0xbae   :  { %9265 = vmatprep.subr.bf16.mxu0 %v14170_v5  ;;  %9297 = vmatprep.subr.bf16.mxu1 %v14171_v18  ;;  %v14179_v5 = vld [vmem:[#allocation72_spill] sm:$0xff]  ;;  %v14189_v18 = vld [vmem:[#allocation82_spill] sm:$0xff] }
 0xbb1   :  { %9267 = vmatpush1.bf16.msra.mxu0 %v14172_v21  ;;  %9299 = vmatpush1.bf16.msra.mxu1 %v14173_v28  ;;  %v14180_v28 = vld [vmem:[#allocation73_spill] sm:$0xff]  ;;  %v14183_v21 = vld [vmem:[#allocation76_spill] sm:$0xff] }
 0xbb2   :  { %9301 = vmatprep.subr.bf16.mxu0 %v14174_v7  ;;  %9333 = vmatprep.subr.bf16.mxu1 %v14175_v27  ;;  %v14181_v7 = vld [vmem:[#allocation74_spill] sm:$0xff]  ;;  %v14182_v27 = vld [vmem:[#allocation75_spill] sm:$0xff] }
 0xbb4   :  { %5034 = vmatmul.mubr.f32.vlgmr.msra.gmra.mrb[36].mxu0 %v12483_v6  ;;  %5105 = vmatmul.mubr.f32.vlgmr.msra.gmra.mrb[36].mxu1 %v12483_v6  ;;  %v14184_v6 = vld [vmem:[#allocation77_spill] sm:$0xff] }
 0xbb5   :  { %9303 = vmatpush1.bf16.msra.mxu0 %v14176_v14  ;;  %9335 = vmatpush1.bf16.msra.mxu1 %v14177_v38  ;;  %v14185_v14 = vld [vmem:[#allocation78_spill] sm:$0xff]  ;;  %v14186_v38 = vld [vmem:[#allocation79_spill] sm:$0xff] }
 0xbb6   :  { %9305 = vmatprep.subr.bf16.mxu0 %v14178_v60  ;;  %9337 = vmatprep.subr.bf16.mxu1 %v14179_v5  ;;  %v14187_v60 = vld [vmem:[#allocation80_spill] sm:$0xff]  ;;  %v14188_v5 = vld [vmem:[#allocation81_spill] sm:$0xff] }
 0xbb7   :  { %5178 = vmatprep.mubr.f32.mxu0 %v13509_v9  ;;  %5249 = vmatprep.mubr.f32.mxu1 %v13509_v9 }
 0xbb9   :  { %9307 = vmatpush1.bf16.msra.mxu0 %v14180_v28  ;;  %9339 = vmatpush1.bf16.msra.mxu1 %v14181_v7  ;;  %v14191_v28 = vld [vmem:[#allocation84_spill] sm:$0xff]  ;;  %v14192_v7 = vld [vmem:[#allocation85_spill] sm:$0xff] }
 0xbba   :  { %9309 = vmatprep.subr.bf16.mxu0 %v14182_v27  ;;  %9341 = vmatprep.subr.bf16.mxu1 %v14183_v21  ;;  %v14193_v27 = vld [vmem:[#allocation86_spill] sm:$0xff]  ;;  %v14194_v21 = vld [vmem:[#allocation87_spill] sm:$0xff] }
 0xbbd   :  { %9311 = vmatpush1.bf16.msra.mxu0 %v14184_v6  ;;  %9343 = vmatpush1.bf16.msra.mxu1 %v14185_v14  ;;  %v14195_v6 = vld [vmem:[#allocation88_spill] sm:$0xff]  ;;  %v14196_v14 = vld [vmem:[#allocation89_spill] sm:$0xff] }
 0xbbe   :  { %9313 = vmatprep.subr.bf16.mxu0 %v14186_v38  ;;  %9345 = vmatprep.subr.bf16.mxu1 %v14187_v60  ;;  %v14197_v38 = vld [vmem:[#allocation90_spill] sm:$0xff]  ;;  %v14198_v60 = vld [vmem:[#allocation91_spill] sm:$0xff] }
 0xbc1   :  { %9315 = vmatpush1.bf16.msra.mxu0 %v14188_v5  ;;  %9347 = vmatpush1.bf16.msra.mxu1 %v14189_v18  ;;  %v14199_v5 = vld [vmem:[#allocation92_spill] sm:$0xff]  ;;  %v14200_v18 = vld [vmem:[#allocation93_spill] sm:$0xff] }
 0xbc2   :  { %9317 = vmatprep.subr.bf16.mxu0 %v14190_v57  ;;  %9349 = vmatprep.subr.bf16.mxu1 %v14191_v28  ;;  %v14201_v57 = vld [vmem:[#allocation94_spill] sm:$0xff]  ;;  %v14202_v28 = vld [vmem:[#allocation95_spill] sm:$0xff] }
 0xbc5   :  { %9319 = vmatpush1.bf16.msra.mxu0 %v14192_v7  ;;  %9351 = vmatpush1.bf16.msra.mxu1 %v14193_v27  ;;  %v14203_v7 = vld [vmem:[#allocation96_spill] sm:$0xff]  ;;  %v14204_v27 = vld [vmem:[#allocation97_spill] sm:$0xff] }
 0xbc6   :  { %9321 = vmatprep.subr.bf16.mxu0 %v14194_v21  ;;  %9353 = vmatprep.subr.bf16.mxu1 %v14195_v6  ;;  %v14205_v21 = vld [vmem:[#allocation98_spill] sm:$0xff]  ;;  %v14206_v6 = vld [vmem:[#allocation99_spill] sm:$0xff] }
 0xbc9   :  { %9323 = vmatpush1.bf16.msra.mxu0 %v14196_v14  ;;  %9355 = vmatpush1.bf16.msra.mxu1 %v14197_v38  ;;  %v14207_v14 = vld [vmem:[#allocation100_spill] sm:$0xff] }
 0xbca   :  { %9325 = vmatprep.subr.bf16.mxu0 %v14198_v60  ;;  %9357 = vmatprep.subr.bf16.mxu1 %v14199_v5 }
 0xbcd   :  { %9327 = vmatpush1.bf16.msra.mxu0 %v14200_v18  ;;  %9359 = vmatpush1.bf16.msra.mxu1 %v14201_v57 }
 0xbce   :  { %9329 = vmatprep.subr.bf16.mxu0 %v14202_v28  ;;  %9361 = vmatprep.subr.bf16.mxu1 %v14203_v7  ;;  %v14210_v7 = vld [vmem:[#allocation177_spill] sm:$0xff] }
 0xbd1   :  { %9331 = vmatpush1.bf16.msra.mxu0 %v14204_v27  ;;  %9363 = vmatpush1.bf16.msra.mxu1 %v14205_v21 }
 0xbd2   :  { %9365 = vmatprep.subr.bf16.mxu0 %v14206_v6  ;;  %9397 = vmatprep.subr.bf16.mxu1 %v14207_v14 }
 0xc47   :  { %v4680_v38 = vpop.f32.mrb[32].mxu0  ;;  %v4751_v60 = vpop.f32.mrb[32].mxu1 }
 0xc48   :  { %v4756_v5 = vadd.f32 %v4680_v38, %v14208_v45  ;;  %v4682_v3 = vpop.f32.mrb[33].mxu0  ;;  %v4753_v18 = vpop.f32.mrb[33].mxu1  ;;  %v4758_v27 = vadd.f32 %v4751_v60, %v14210_v7 }
 0xc49   :  { %v4757_v57 = vadd.f32 %v4682_v3, %v14209_v20  ;;  %v14211_v20 = vld [vmem:[#allocation101_spill] sm:$0xff] }
 0xc4a   :  { %v7422_v31 = vmul.f32 -1.442695, %v4756_v5 }
 0xc4b   :  { %v7423_v28 = vmul.f32 -1.442695, %v4757_v57 }
 0xc4c   :  { %10466 = vpow2.f32 %v7422_v31 }
 0xc4d   :  { %10468 = vpow2.f32 %v7423_v28 }
 0xc4e   :  { %10470 = vtanh.f32 %v4758_v27 }
 0xc56   :  { %v10467_v33 = vpop.eup %10466 }
 0xc57   :  { %v10469_v21 = vpop.eup %10468  ;;  %v4769_v19 = vadd.f32 1.0, %v10467_v33 }
 0xc58   :  { %v4770_v6 = vadd.f32 1.0, %v10469_v21  ;;  %v10471_v14 = vpop.eup %10470 }
 0xc59   :  { %10472 = vrcp.f32 %v4769_v19 }
 0xc5a   :  { %10474 = vrcp.f32 %v4770_v6 }
 0xc63   :  { %v10473_v59 = vpop.eup %10472 }
 0xc64   :  { %v10475_v38 = vpop.eup %10474  ;;  %v4780_v45 = vmul.f32 %v10473_v59, %v10471_v14 }
 0xc65   :  { %v4779_v54 = vmul.f32 %v10475_v38, %v12387_v22 }
 0xc67   :  { %v12597_v3 = vadd.f32 %v4780_v45, %v4779_v54  ;;  %v4850_v57 = vpop.f32.mrb[34].mxu0  ;;  %v4921_v31 = vpop.f32.mrb[34].mxu1 }
 0xc68   :  { %v4930_v28 = vrot.slane %v4850_v57, 6  ;;  %v4852_v5 = vpop.f32.mrb[35].mxu0  ;;  %v4923_v60 = vpop.f32.mrb[35].mxu1  ;;  %v4932_v22 = vrot.slane %v4921_v31, 6 }
 0xc69   :  { %v4931_v7 = vrot.slane %v4852_v5, 6  ;;  %v4933_v6 = vrot.slane %v4923_v60, 6  ;;  %v4962_v60 = vrot.slane %v12394_v15, 6 }
 0xc6a   :  { %v4938_v33 = vadd.f32 %v4930_v28, %v14211_v20  ;;  %v4940_v45 = vadd.f32 %v4932_v22, %v14081_v44  ;;  %v4759_v22 = vadd.f32 %v4753_v18, %v11765_v26  ;;  %v14212_v18 = vld [vmem:[#allocation122_spill] sm:$0xff] }
 0xc6b   :  { %v4939_v27 = vadd.f32 %v4931_v7, %v14079_v58  ;;  %v4941_v59 = vadd.f32 %v4933_v6, %v14080_v16 }
 0xc6c   :  { %v7425_v19 = vmul.f32 -1.442695, %v4938_v33 }
 0xc6d   :  { %v7426_v21 = vmul.f32 -1.442695, %v4939_v27  ;;  %v7427_v54 = vmul.f32 -1.442695, %v4941_v59 }
 0xc6e   :  { %10476 = vpow2.f32 %v7425_v19 }
 0xc6f   :  { %10478 = vpow2.f32 %v7426_v21 }
 0xc70   :  { %10480 = vpow2.f32 %v7427_v54 }
 0xc71   :  { %10482 = vtanh.f32 %v4940_v45 }
 0xc78   :  { %v10477_v14 = vpop.eup %10476 }
 0xc79   :  { %v10479_v38 = vpop.eup %10478  ;;  %v4951_v57 = vadd.f32 1.0, %v10477_v14  ;;  %v7424_v14 = vmul.f32 -1.442695, %v4759_v22  ;;  %v14223_v22 = vld [vmem:[#allocation133_spill] sm:$0xff] }
 0xc7a   :  { %v4952_v5 = vadd.f32 1.0, %v10479_v38  ;;  %v10481_v7 = vpop.eup %10480 }
 0xc7b   :  { %10484 = vrcp.f32 %v4951_v57  ;;  %v10483_v28 = vpop.eup %10482  ;;  %v4953_v21 = vadd.f32 1.0, %v10481_v7  ;;  %v14213_v57 = vld [vmem:[#allocation123_spill] sm:$0xff]  ;;  %v14215_v7 = vld [vmem:[#allocation125_spill] sm:$0xff] }
 0xc7c   :  { %10486 = vrcp.f32 %v4952_v5  ;;  %v14214_v5 = vld [vmem:[#allocation124_spill] sm:$0xff] }
 0xc7d   :  { %10488 = vrcp.f32 %v4953_v21  ;;  %v14220_v21 = vld [vmem:[#allocation130_spill] sm:$0xff] }
 0xc85   :  { %v10485_v33 = vpop.eup %10484 }
 0xc86   :  { %v10487_v27 = vpop.eup %10486  ;;  %v4965_v19 = vmul.f32 %v10485_v33, %v10483_v28  ;;  %v14216_v33 = vld [vmem:[#allocation126_spill] sm:$0xff] }
 0xc87   :  { %v4964_v31 = vmul.f32 %v10487_v27, %v4962_v60  ;;  %v10489_v59 = vpop.eup %10488  ;;  %v14217_v60 = vld [vmem:[#allocation127_spill] sm:$0xff]  ;;  %v14218_v27 = vld [vmem:[#allocation128_spill] sm:$0xff] }
 0xc89   :  { %v12604_v6 = vadd.f32 %v4965_v19, %v4964_v31  ;;  %v14219_v19 = vld [vmem:[#allocation129_spill] sm:$0xff]  ;;  %v14221_v31 = vld [vmem:[#allocation131_spill] sm:$0xff] }
 0xc8b   :  { %10490 = vtanh.f32 %v12604_v6 }
 0xc8c   :  { %10492 = vpow2.f32 %v7424_v14  ;;  %v14226_v14 = vld [vmem:[#allocation136_spill] sm:$0xff] }
 0xc8d   :  { %10494 = vtanh.f32 %v12597_v3 }
 0xc95   :  { %v10491_v54 = vpop.eup %10490 }
 0xc96   :  { %v4968_v45 = vmul.f32 %v10491_v54, %v10489_v59  ;;  %v10493_v15 = vpop.eup %10492  ;;  %v14222_v59 = vld [vmem:[#allocation132_spill] sm:$0xff]  ;;  %v14224_v54 = vld [vmem:[#allocation134_spill] sm:$0xff] }
 0xc97   :  { %v4771_v28 = vadd.f32 1.0, %v10493_v15  ;;  %v14227_v15 = vld [vmem:[#allocation137_spill] sm:$0xff] }
 0xc98   :  { %v12608_v38 = vrot.slane %v4968_v45, 2  ;;  %v14225_v45 = vld [vmem:[#allocation135_spill] sm:$0xff] }
 0xc99   :  { %10496 = vrcp.f32 %v4771_v28  ;;  %v14229_v28 = vld [vmem:[#allocation139_spill] sm:$0xff] }
 0xc9a   :  { %5179 = vmatmul.mubr.f32.vlgmr.msra.gmra.mrb[36].mxu0 %v12608_v38  ;;  %5250 = vmatmul.mubr.f32.vlgmr.msra.gmra.mrb[36].mxu1 %v12608_v38 }
 0xc9b   :  { %9367 = vmatpush1.bf16.msra.mxu0 %v13685_v1  ;;  %9399 = vmatpush1.bf16.msra.mxu1 %v13686_v32 }
 0xc9c   :  { %9369 = vmatprep.subr.bf16.mxu0 %v13687_v56  ;;  %9401 = vmatprep.subr.bf16.mxu1 %v13688_v39 }
 0xc9d   :  { %5348 = vmatprep.mubr.f32.mxu0 %v13509_v9  ;;  %5419 = vmatprep.mubr.f32.mxu1 %v13509_v9 }
 0xc9f   :  { %9371 = vmatpush1.bf16.msra.mxu0 %v13689_v30  ;;  %9403 = vmatpush1.bf16.msra.mxu1 %v13690_v40 }
 0xca0   :  { %9373 = vmatprep.subr.bf16.mxu0 %v13816_v2  ;;  %9405 = vmatprep.subr.bf16.mxu1 %v13947_v46 }
 0xca3   :  { %9375 = vmatpush1.bf16.msra.mxu0 %v13948_v41  ;;  %9407 = vmatpush1.bf16.msra.mxu1 %v13949_v8 }
 0xca4   :  { %9377 = vmatprep.subr.bf16.mxu0 %v13950_v42  ;;  %9409 = vmatprep.subr.bf16.mxu1 %v13951_v47 }
 0xca7   :  { %9379 = vmatpush1.bf16.msra.mxu0 %v14212_v18  ;;  %9411 = vmatpush1.bf16.msra.mxu1 %v14213_v57 }
 0xca8   :  { %9381 = vmatprep.subr.bf16.mxu0 %v14214_v5  ;;  %9413 = vmatprep.subr.bf16.mxu1 %v14215_v7 }
 0xcab   :  { %9383 = vmatpush1.bf16.msra.mxu0 %v14216_v33  ;;  %9415 = vmatpush1.bf16.msra.mxu1 %v14217_v60 }
 0xcac   :  { %9385 = vmatprep.subr.bf16.mxu0 %v14218_v27  ;;  %9417 = vmatprep.subr.bf16.mxu1 %v14219_v19  ;;  %v10495_v27 = vpop.eup %10494  ;;  %v14228_v19 = vld [vmem:[#allocation138_spill] sm:$0xff] }
 0xcad   :  { %v10497_v60 = vpop.eup %10496 }
 0xcaf   :  { %9387 = vmatpush1.bf16.msra.mxu0 %v14220_v21  ;;  %9419 = vmatpush1.bf16.msra.mxu1 %v14221_v31  ;;  %v12645_v21 = vmul.f32 %v10497_v60, %v10495_v27  ;;  %v14231_v31 = vld [vmem:[#allocation140_spill] sm:$0xff]  ;;  %v14237_v60 = vld [vmem:[#allocation146_spill] sm:$0xff]  ;;  %v14238_v27 = vld [vmem:[#allocation147_spill] sm:$0xff] }
 0xcb0   :  { %9389 = vmatprep.subr.bf16.mxu0 %v14222_v59  ;;  %9421 = vmatprep.subr.bf16.mxu1 %v14223_v22  ;;  %v14232_v59 = vld [vmem:[#allocation141_spill] sm:$0xff]  ;;  %v14265_v22 = vld [vmem:[#allocation172_spill] sm:$0xff] }
 0xcb1   :  { %14230 = vst [vmem:[#allocation109_spill] sm:$0xff] %v12645_v21 }
 0xcb3   :  { %9391 = vmatpush1.bf16.msra.mxu0 %v14224_v54  ;;  %9423 = vmatpush1.bf16.msra.mxu1 %v14225_v45  ;;  %v14233_v45 = vld [vmem:[#allocation142_spill] sm:$0xff]  ;;  %v14236_v54 = vld [vmem:[#allocation145_spill] sm:$0xff] }
 0xcb4   :  { %9393 = vmatprep.subr.bf16.mxu0 %v14226_v14  ;;  %9425 = vmatprep.subr.bf16.mxu1 %v14227_v15  ;;  %v14234_v14 = vld [vmem:[#allocation143_spill] sm:$0xff]  ;;  %v14235_v15 = vld [vmem:[#allocation144_spill] sm:$0xff] }
 0xcb7   :  { %9395 = vmatpush1.bf16.msra.mxu0 %v14228_v19  ;;  %9427 = vmatpush1.bf16.msra.mxu1 %v14229_v28  ;;  %v14246_v28 = vld [vmem:[#allocation155_spill] sm:$0xff]  ;;  %v14247_v19 = vld [vmem:[#allocation156_spill] sm:$0xff] }
 0xcb8   :  { %9429 = vmatprep.subr.bf16.mxu0 %v14231_v31  ;;  %9461 = vmatprep.subr.bf16.mxu1 %v14232_v59  ;;  %v14239_v59 = vld [vmem:[#allocation148_spill] sm:$0xff]  ;;  %v14240_v31 = vld [vmem:[#allocation149_spill] sm:$0xff] }
 0xcba   :  { %5349 = vmatmul.mubr.f32.vlgmr.msra.gmra.mrb[38].mxu0 %v12645_v21  ;;  %5420 = vmatmul.mubr.f32.vlgmr.msra.gmra.mrb[38].mxu1 %v12645_v21  ;;  %v14241_v21 = vld [vmem:[#allocation150_spill] sm:$0xff] }
 0xcbb   :  { %9431 = vmatpush1.bf16.msra.mxu0 %v14233_v45  ;;  %9463 = vmatpush1.bf16.msra.mxu1 %v14234_v14  ;;  %v14242_v45 = vld [vmem:[#allocation151_spill] sm:$0xff]  ;;  %v14243_v14 = vld [vmem:[#allocation152_spill] sm:$0xff] }
 0xcbc   :  { %9433 = vmatprep.subr.bf16.mxu0 %v14235_v15  ;;  %9465 = vmatprep.subr.bf16.mxu1 %v14236_v54  ;;  %v14244_v15 = vld [vmem:[#allocation153_spill] sm:$0xff]  ;;  %v14245_v54 = vld [vmem:[#allocation154_spill] sm:$0xff] }
 0xcbd   :  { %5490 = vmatprep.mubr.f32.mxu0 %v13509_v9  ;;  %5561 = vmatprep.mubr.f32.mxu1 %v13509_v9 }
 0xcbf   :  { %9435 = vmatpush1.bf16.msra.mxu0 %v14237_v60  ;;  %9467 = vmatpush1.bf16.msra.mxu1 %v14238_v27  ;;  %v14248_v60 = vld [vmem:[#allocation157_spill] sm:$0xff]  ;;  %v14249_v27 = vld [vmem:[#allocation158_spill] sm:$0xff] }
 0xcc0   :  { %9437 = vmatprep.subr.bf16.mxu0 %v14239_v59  ;;  %9469 = vmatprep.subr.bf16.mxu1 %v14240_v31  ;;  %v14250_v59 = vld [vmem:[#allocation159_spill] sm:$0xff]  ;;  %v14251_v31 = vld [vmem:[#allocation160_spill] sm:$0xff] }
 0xcc3   :  { %9439 = vmatpush1.bf16.msra.mxu0 %v14241_v21  ;;  %9471 = vmatpush1.bf16.msra.mxu1 %v14242_v45  ;;  %v14252_v21 = vld [vmem:[#allocation161_spill] sm:$0xff]  ;;  %v14253_v45 = vld [vmem:[#allocation162_spill] sm:$0xff] }
 0xcc4   :  { %9441 = vmatprep.subr.bf16.mxu0 %v14243_v14  ;;  %9473 = vmatprep.subr.bf16.mxu1 %v14244_v15  ;;  %v14254_v14 = vld [vmem:[#allocation163_spill] sm:$0xff]  ;;  %v14255_v15 = vld [vmem:[#allocation164_spill] sm:$0xff] }
 0xcc7   :  { %9443 = vmatpush1.bf16.msra.mxu0 %v14245_v54  ;;  %9475 = vmatpush1.bf16.msra.mxu1 %v14246_v28  ;;  %v14256_v54 = vld [vmem:[#allocation165_spill] sm:$0xff]  ;;  %v14257_v28 = vld [vmem:[#allocation166_spill] sm:$0xff] }
 0xcc8   :  { %9445 = vmatprep.subr.bf16.mxu0 %v14247_v19  ;;  %9477 = vmatprep.subr.bf16.mxu1 %v14248_v60  ;;  %v14258_v19 = vld [vmem:[#allocation167_spill] sm:$0xff]  ;;  %v14259_v60 = vld [vmem:[#allocation168_spill] sm:$0xff] }
 0xccb   :  { %9447 = vmatpush1.bf16.msra.mxu0 %v14249_v27  ;;  %9479 = vmatpush1.bf16.msra.mxu1 %v14250_v59  ;;  %v14260_v27 = vld [vmem:[#allocation169_spill] sm:$0xff]  ;;  %v14261_v59 = vld [vmem:[#allocation170_spill] sm:$0xff] }
 0xccc   :  { %9449 = vmatprep.subr.bf16.mxu0 %v14251_v31  ;;  %9481 = vmatprep.subr.bf16.mxu1 %v14252_v21  ;;  %v14262_v31 = vld [vmem:[#allocation171_spill] sm:$0xff] }
 0xccd   :  { %v14263_v21 = vld [vmem:[#allocation23_spill] sm:$0xff] }
 0xccf   :  { %9451 = vmatpush1.bf16.msra.mxu0 %v14253_v45  ;;  %9483 = vmatpush1.bf16.msra.mxu1 %v14254_v14  ;;  %v14264_v45 = vld [vmem:[#allocation24_spill] sm:$0xff] }
 0xcd0   :  { %9453 = vmatprep.subr.bf16.mxu0 %v14255_v15  ;;  %9485 = vmatprep.subr.bf16.mxu1 %v14256_v54 }
 0xcd3   :  { %9455 = vmatpush1.bf16.msra.mxu0 %v14257_v28  ;;  %9487 = vmatpush1.bf16.msra.mxu1 %v14258_v19 }
 0xcd4   :  { %9457 = vmatprep.subr.bf16.mxu0 %v14259_v60  ;;  %9489 = vmatprep.subr.bf16.mxu1 %v14260_v27 }
 0xcd7   :  { %9459 = vmatpush1.bf16.msra.mxu0 %v14261_v59  ;;  %9491 = vmatpush1.bf16.msra.mxu1 %v14262_v31 }
 0xcd8   :  { %9493 = vmatprep.subr.bf16.mxu0 %v14263_v21  ;;  %9525 = vmatprep.subr.bf16.mxu1 %v14264_v45 }
 0xd6d   :  { %v5180_v14 = vpop.f32.mrb[36].mxu0  ;;  %v5251_v15 = vpop.f32.mrb[36].mxu1 }
 0xd6e   :  { %v5256_v54 = vadd.f32 %v5180_v14, %v14265_v22  ;;  %v5182_v33 = vpop.f32.mrb[37].mxu0  ;;  %v5253_v28 = vpop.f32.mrb[37].mxu1  ;;  %v5258_v31 = vadd.f32 %v5251_v15, %v11617_v34 }
 0xd6f   :  { %v5257_v19 = vadd.f32 %v5182_v33, %v13744_v48  ;;  %v5259_v59 = vadd.f32 %v5253_v28, %v13745_v0 }
 0xd70   :  { %v7428_v7 = vmul.f32 -1.442695, %v5256_v54 }
 0xd71   :  { %v7429_v60 = vmul.f32 -1.442695, %v5257_v19  ;;  %v7430_v27 = vmul.f32 -1.442695, %v5259_v59 }
 0xd72   :  { %10498 = vpow2.f32 %v7428_v7 }
 0xd73   :  { %10500 = vpow2.f32 %v7429_v60 }
 0xd74   :  { %10502 = vpow2.f32 %v7430_v27  ;;  %v14272_v27 = vld [vmem:[#allocation33_spill] sm:$0xff] }
 0xd75   :  { %10504 = vtanh.f32 %v5258_v31  ;;  %v14269_v31 = vld [vmem:[#allocation30_spill] sm:$0xff] }
 0xd7c   :  { %v10499_v21 = vpop.eup %10498 }
 0xd7d   :  { %v10501_v5 = vpop.eup %10500  ;;  %v5269_v45 = vadd.f32 1.0, %v10499_v21 }
 0xd7e   :  { %v5270_v57 = vadd.f32 1.0, %v10501_v5  ;;  %v10503_v14 = vpop.eup %10502  ;;  %v14268_v5 = vld [vmem:[#allocation29_spill] sm:$0xff] }
 0xd7f   :  { %10506 = vrcp.f32 %v5269_v45  ;;  %v10505_v22 = vpop.eup %10504  ;;  %v5271_v7 = vadd.f32 1.0, %v10503_v14  ;;  %v14271_v45 = vld [vmem:[#allocation32_spill] sm:$0xff]  ;;  %v14273_v14 = vld [vmem:[#allocation34_spill] sm:$0xff] }
 0xd80   :  { %10508 = vrcp.f32 %v5270_v57  ;;  %v14267_v57 = vld [vmem:[#allocation28_spill] sm:$0xff] }
 0xd81   :  { %10510 = vrcp.f32 %v5271_v7  ;;  %v14277_v7 = vld [vmem:[#allocation38_spill] sm:$0xff] }
 0xd89   :  { %v10507_v33 = vpop.eup %10506 }
 0xd8a   :  { %v10509_v54 = vpop.eup %10508  ;;  %v5280_v19 = vmul.f32 %v10507_v33, %v10505_v22  ;;  %v14270_v22 = vld [vmem:[#allocation31_spill] sm:$0xff] }
 0xd8b   :  { %v5279_v60 = vmul.f32 %v10509_v54, %v12480_v11  ;;  %v10511_v59 = vpop.eup %10510  ;;  %v14266_v11 = vld [vmem:[#allocation27_spill] sm:$0xff]  ;;  %v14275_v54 = vld [vmem:[#allocation36_spill] sm:$0xff] }
 0xd8c   :  { %v14274_v33 = vld [vmem:[#allocation35_spill] sm:$0xff] }
 0xd8d   :  { %v12690_v28 = vadd.f32 %v5280_v19, %v5279_v60  ;;  %v14276_v19 = vld [vmem:[#allocation37_spill] sm:$0xff]  ;;  %v14278_v60 = vld [vmem:[#allocation39_spill] sm:$0xff] }
 0xd8f   :  { %10512 = vtanh.f32 %v12690_v28 }
 0xd99   :  { %v10513_v21 = vpop.eup %10512 }
 0xd9a   :  { %v12693_v15 = vmul.f32 %v10513_v21, %v10511_v59  ;;  %v14279_v59 = vld [vmem:[#allocation40_spill] sm:$0xff]  ;;  %v14280_v21 = vld [vmem:[#allocation41_spill] sm:$0xff] }
 0xd9c   :  { %5491 = vmatmul.mubr.f32.vlgmr.msra.gmra.mrb[38].mxu0 %v12693_v15  ;;  %5562 = vmatmul.mubr.f32.vlgmr.msra.gmra.mrb[38].mxu1 %v12693_v15 }
 0xd9d   :  { %9495 = vmatpush1.bf16.msra.mxu0 %v11063_v49  ;;  %9527 = vmatpush1.bf16.msra.mxu1 %v11066_v50 }
 0xd9e   :  { %9497 = vmatprep.subr.bf16.mxu0 %v11068_v51  ;;  %9529 = vmatprep.subr.bf16.mxu1 %v11071_v55 }
 0xd9f   :  { %5660 = vmatprep.mubr.f32.mxu0 %v13509_v9  ;;  %5731 = vmatprep.mubr.f32.mxu1 %v13509_v9 }
 0xda1   :  { %9499 = vmatpush1.bf16.msra.mxu0 %v11074_v61  ;;  %9531 = vmatpush1.bf16.msra.mxu1 %v11078_v62 }
 0xda2   :  { %9501 = vmatprep.subr.bf16.mxu0 %v11080_v63  ;;  %9533 = vmatprep.subr.bf16.mxu1 %v11083_v4 }
 0xda5   :  { %9503 = vmatpush1.bf16.msra.mxu0 %v11088_v10  ;;  %9535 = vmatpush1.bf16.msra.mxu1 %v11092_v12 }
 0xda6   :  { %9505 = vmatprep.subr.bf16.mxu0 %v11094_v13  ;;  %9537 = vmatprep.subr.bf16.mxu1 %v11097_v17 }
 0xda9   :  { %9507 = vmatpush1.bf16.msra.mxu0 %v11101_v23  ;;  %9539 = vmatpush1.bf16.msra.mxu1 %v11106_v24 }
 0xdaa   :  { %9509 = vmatprep.subr.bf16.mxu0 %v11108_v25  ;;  %9541 = vmatprep.subr.bf16.mxu1 %v11111_v29 }
 0xdad   :  { %9511 = vmatpush1.bf16.msra.mxu0 %v11114_v35  ;;  %9543 = vmatpush1.bf16.msra.mxu1 %v11118_v36 }
 0xdae   :  { %9513 = vmatprep.subr.bf16.mxu0 %v11120_v37  ;;  %9545 = vmatprep.subr.bf16.mxu1 %v11123_v43 }
 0xdb1   :  { %9515 = vmatpush1.bf16.msra.mxu0 %v11126_v52  ;;  %9547 = vmatpush1.bf16.msra.mxu1 %v11130_v53 }
 0xdb2   :  { %9517 = vmatprep.subr.bf16.mxu0 %v14266_v11  ;;  %9549 = vmatprep.subr.bf16.mxu1 %v14267_v57 }
 0xdb5   :  { %9519 = vmatpush1.bf16.msra.mxu0 %v14268_v5  ;;  %9551 = vmatpush1.bf16.msra.mxu1 %v14269_v31  ;;  %v14341_v31 = vld [vmem:[#allocation176_spill] sm:$0xff] }
 0xdb6   :  { %9521 = vmatprep.subr.bf16.mxu0 %v14270_v22  ;;  %9553 = vmatprep.subr.bf16.mxu1 %v14271_v45  ;;  %v14290_v45 = vld [vmem:[#allocation50_spill] sm:$0xff] }
 0xdb9   :  { %9523 = vmatpush1.bf16.msra.mxu0 %v14272_v27  ;;  %9555 = vmatpush1.bf16.msra.mxu1 %v14273_v14  ;;  %v14283_v14 = vld [vmem:[#allocation44_spill] sm:$0xff]  ;;  %v14289_v27 = vld [vmem:[#allocation51_spill] sm:$0xff] }
 0xdba   :  { %9557 = vmatprep.subr.bf16.mxu0 %v14274_v33  ;;  %9589 = vmatprep.subr.bf16.mxu1 %v14275_v54  ;;  %v14281_v33 = vld [vmem:[#allocation42_spill] sm:$0xff]  ;;  %v14282_v54 = vld [vmem:[#allocation43_spill] sm:$0xff] }
 0xdbc   :  { %5661 = vmatmul.mubr.f32.vlgmr.msra.gmra.mrb[40].mxu0 %v12608_v38  ;;  %5732 = vmatmul.mubr.f32.vlgmr.msra.gmra.mrb[40].mxu1 %v12608_v38  ;;  %v14284_v38 = vld [vmem:[#allocation45_spill] sm:$0xff] }
 0xdbd   :  { %9559 = vmatpush1.bf16.msra.mxu0 %v14276_v19  ;;  %9591 = vmatpush1.bf16.msra.mxu1 %v14277_v7  ;;  %v14285_v19 = vld [vmem:[#allocation47_spill] sm:$0xff]  ;;  %v14286_v7 = vld [vmem:[#allocation46_spill] sm:$0xff] }
 0xdbe   :  { %9561 = vmatprep.subr.bf16.mxu0 %v14278_v60  ;;  %9593 = vmatprep.subr.bf16.mxu1 %v14279_v59  ;;  %v14287_v60 = vld [vmem:[#allocation48_spill] sm:$0xff]  ;;  %v14288_v59 = vld [vmem:[#allocation49_spill] sm:$0xff] }
 0xdbf   :  { %5845 = vmatprep.mubr.f32.mxu0 %v13509_v9  ;;  %5916 = vmatprep.mubr.f32.mxu1 %v13509_v9 }
 0xdc1   :  { %9563 = vmatpush1.bf16.msra.mxu0 %v14280_v21  ;;  %9595 = vmatpush1.bf16.msra.mxu1 %v14281_v33  ;;  %v14291_v21 = vld [vmem:[#allocation52_spill] sm:$0xff]  ;;  %v14292_v33 = vld [vmem:[#allocation53_spill] sm:$0xff] }
 0xdc2   :  { %9565 = vmatprep.subr.bf16.mxu0 %v14282_v54  ;;  %9597 = vmatprep.subr.bf16.mxu1 %v14283_v14  ;;  %v14293_v54 = vld [vmem:[#allocation54_spill] sm:$0xff]  ;;  %v14294_v14 = vld [vmem:[#allocation55_spill] sm:$0xff] }
 0xdc5   :  { %9567 = vmatpush1.bf16.msra.mxu0 %v14284_v38  ;;  %9599 = vmatpush1.bf16.msra.mxu1 %v14285_v19  ;;  %v14295_v38 = vld [vmem:[#allocation56_spill] sm:$0xff]  ;;  %v14296_v19 = vld [vmem:[#allocation57_spill] sm:$0xff] }
 0xdc6   :  { %9569 = vmatprep.subr.bf16.mxu0 %v14286_v7  ;;  %9601 = vmatprep.subr.bf16.mxu1 %v14287_v60  ;;  %v14297_v7 = vld [vmem:[#allocation58_spill] sm:$0xff]  ;;  %v14298_v60 = vld [vmem:[#allocation59_spill] sm:$0xff] }
 0xdc9   :  { %9571 = vmatpush1.bf16.msra.mxu0 %v14288_v59  ;;  %9603 = vmatpush1.bf16.msra.mxu1 %v14289_v27  ;;  %v14299_v59 = vld [vmem:[#allocation60_spill] sm:$0xff]  ;;  %v14300_v27 = vld [vmem:[#allocation61_spill] sm:$0xff] }
 0xdca   :  { %9573 = vmatprep.subr.bf16.mxu0 %v14290_v45  ;;  %9605 = vmatprep.subr.bf16.mxu1 %v14291_v21  ;;  %v14301_v45 = vld [vmem:[#allocation62_spill] sm:$0xff]  ;;  %v14302_v21 = vld [vmem:[#allocation63_spill] sm:$0xff] }
 0xdcd   :  { %9575 = vmatpush1.bf16.msra.mxu0 %v14292_v33  ;;  %9607 = vmatpush1.bf16.msra.mxu1 %v14293_v54  ;;  %v14303_v33 = vld [vmem:[#allocation64_spill] sm:$0xff]  ;;  %v14304_v54 = vld [vmem:[#allocation65_spill] sm:$0xff] }
 0xdce   :  { %9577 = vmatprep.subr.bf16.mxu0 %v14294_v14  ;;  %9609 = vmatprep.subr.bf16.mxu1 %v14295_v38  ;;  %v14305_v14 = vld [vmem:[#allocation66_spill] sm:$0xff]  ;;  %v14306_v38 = vld [vmem:[#allocation67_spill] sm:$0xff] }
 0xdd1   :  { %9579 = vmatpush1.bf16.msra.mxu0 %v14296_v19  ;;  %9611 = vmatpush1.bf16.msra.mxu1 %v14297_v7  ;;  %v14307_v19 = vld [vmem:[#allocation68_spill] sm:$0xff]  ;;  %v14340_v7 = vld [vmem:[#allocation175_spill] sm:$0xff] }
 0xdd2   :  { %9581 = vmatprep.subr.bf16.mxu0 %v14298_v60  ;;  %9613 = vmatprep.subr.bf16.mxu1 %v14299_v59  ;;  %v14308_v59 = vld [vmem:[#allocation69_spill] sm:$0xff]  ;;  %v14322_v60 = vld [vmem:[#allocation83_spill] sm:$0xff] }
 0xdd5   :  { %9583 = vmatpush1.bf16.msra.mxu0 %v14300_v27  ;;  %9615 = vmatpush1.bf16.msra.mxu1 %v14301_v45  ;;  %v14309_v27 = vld [vmem:[#allocation70_spill] sm:$0xff]  ;;  %v14310_v45 = vld [vmem:[#allocation71_spill] sm:$0xff] }
 0xdd6   :  { %9585 = vmatprep.subr.bf16.mxu0 %v14302_v21  ;;  %9617 = vmatprep.subr.bf16.mxu1 %v14303_v33  ;;  %v14311_v21 = vld [vmem:[#allocation72_spill] sm:$0xff]  ;;  %v14321_v33 = vld [vmem:[#allocation82_spill] sm:$0xff] }
 0xdd9   :  { %9587 = vmatpush1.bf16.msra.mxu0 %v14304_v54  ;;  %9619 = vmatpush1.bf16.msra.mxu1 %v14305_v14  ;;  %v14312_v14 = vld [vmem:[#allocation73_spill] sm:$0xff]  ;;  %v14315_v54 = vld [vmem:[#allocation76_spill] sm:$0xff] }
 0xdda   :  { %9621 = vmatprep.subr.bf16.mxu0 %v14306_v38  ;;  %9653 = vmatprep.subr.bf16.mxu1 %v14307_v19  ;;  %v14313_v38 = vld [vmem:[#allocation74_spill] sm:$0xff]  ;;  %v14314_v19 = vld [vmem:[#allocation75_spill] sm:$0xff] }
 0xddc   :  { %5846 = vmatmul.mubr.f32.vlgmr.msra.gmra.mrb[42].mxu0 %v12693_v15  ;;  %5917 = vmatmul.mubr.f32.vlgmr.msra.gmra.mrb[42].mxu1 %v12693_v15  ;;  %v14316_v15 = vld [vmem:[#allocation77_spill] sm:$0xff] }
 0xddd   :  { %9623 = vmatpush1.bf16.msra.mxu0 %v14308_v59  ;;  %9655 = vmatpush1.bf16.msra.mxu1 %v14309_v27  ;;  %v14317_v59 = vld [vmem:[#allocation78_spill] sm:$0xff]  ;;  %v14318_v27 = vld [vmem:[#allocation79_spill] sm:$0xff] }
 0xdde   :  { %9625 = vmatprep.subr.bf16.mxu0 %v14310_v45  ;;  %9657 = vmatprep.subr.bf16.mxu1 %v14311_v21  ;;  %v14319_v45 = vld [vmem:[#allocation80_spill] sm:$0xff]  ;;  %v14320_v21 = vld [vmem:[#allocation81_spill] sm:$0xff] }
 0xddf   :  { %5990 = vmatprep.mubr.f32.mxu0 %v13509_v9  ;;  %6061 = vmatprep.mubr.f32.mxu1 %v13509_v9 }
 0xde1   :  { %9627 = vmatpush1.bf16.msra.mxu0 %v14312_v14  ;;  %9659 = vmatpush1.bf16.msra.mxu1 %v14313_v38  ;;  %v14323_v14 = vld [vmem:[#allocation84_spill] sm:$0xff]  ;;  %v14324_v38 = vld [vmem:[#allocation85_spill] sm:$0xff] }
 0xde2   :  { %9629 = vmatprep.subr.bf16.mxu0 %v14314_v19  ;;  %9661 = vmatprep.subr.bf16.mxu1 %v14315_v54  ;;  %v14325_v19 = vld [vmem:[#allocation86_spill] sm:$0xff]  ;;  %v14326_v54 = vld [vmem:[#allocation87_spill] sm:$0xff] }
 0xde5   :  { %9631 = vmatpush1.bf16.msra.mxu0 %v14316_v15  ;;  %9663 = vmatpush1.bf16.msra.mxu1 %v14317_v59  ;;  %v14327_v15 = vld [vmem:[#allocation88_spill] sm:$0xff]  ;;  %v14328_v59 = vld [vmem:[#allocation89_spill] sm:$0xff] }
 0xde6   :  { %9633 = vmatprep.subr.bf16.mxu0 %v14318_v27  ;;  %9665 = vmatprep.subr.bf16.mxu1 %v14319_v45  ;;  %v14329_v27 = vld [vmem:[#allocation90_spill] sm:$0xff]  ;;  %v14330_v45 = vld [vmem:[#allocation91_spill] sm:$0xff] }
 0xde9   :  { %9635 = vmatpush1.bf16.msra.mxu0 %v14320_v21  ;;  %9667 = vmatpush1.bf16.msra.mxu1 %v14321_v33  ;;  %v14331_v21 = vld [vmem:[#allocation92_spill] sm:$0xff]  ;;  %v14332_v33 = vld [vmem:[#allocation93_spill] sm:$0xff] }
 0xdea   :  { %9637 = vmatprep.subr.bf16.mxu0 %v14322_v60  ;;  %9669 = vmatprep.subr.bf16.mxu1 %v14323_v14  ;;  %v14333_v60 = vld [vmem:[#allocation94_spill] sm:$0xff]  ;;  %v14334_v14 = vld [vmem:[#allocation95_spill] sm:$0xff] }
 0xded   :  { %9639 = vmatpush1.bf16.msra.mxu0 %v14324_v38  ;;  %9671 = vmatpush1.bf16.msra.mxu1 %v14325_v19  ;;  %v14335_v38 = vld [vmem:[#allocation96_spill] sm:$0xff]  ;;  %v14336_v19 = vld [vmem:[#allocation97_spill] sm:$0xff] }
 0xdee   :  { %9641 = vmatprep.subr.bf16.mxu0 %v14326_v54  ;;  %9673 = vmatprep.subr.bf16.mxu1 %v14327_v15  ;;  %v14337_v54 = vld [vmem:[#allocation98_spill] sm:$0xff]  ;;  %v14338_v15 = vld [vmem:[#allocation99_spill] sm:$0xff] }
 0xdf1   :  { %9643 = vmatpush1.bf16.msra.mxu0 %v14328_v59  ;;  %9675 = vmatpush1.bf16.msra.mxu1 %v14329_v27  ;;  %v14339_v59 = vld [vmem:[#allocation100_spill] sm:$0xff] }
 0xdf2   :  { %9645 = vmatprep.subr.bf16.mxu0 %v14330_v45  ;;  %9677 = vmatprep.subr.bf16.mxu1 %v14331_v21 }
 0xdf5   :  { %9647 = vmatpush1.bf16.msra.mxu0 %v14332_v33  ;;  %9679 = vmatpush1.bf16.msra.mxu1 %v14333_v60 }
 0xdf6   :  { %9649 = vmatprep.subr.bf16.mxu0 %v14334_v14  ;;  %9681 = vmatprep.subr.bf16.mxu1 %v14335_v38  ;;  %v14342_v38 = vld [vmem:[#allocation177_spill] sm:$0xff] }
 0xdf9   :  { %9651 = vmatpush1.bf16.msra.mxu0 %v14336_v19  ;;  %9683 = vmatpush1.bf16.msra.mxu1 %v14337_v54 }
 0xdfa   :  { %9685 = vmatprep.subr.bf16.mxu0 %v14338_v15  ;;  %9717 = vmatprep.subr.bf16.mxu1 %v14339_v59 }
 0xe6f   :  { %v5492_v27 = vpop.f32.mrb[38].mxu0  ;;  %v5563_v45 = vpop.f32.mrb[38].mxu1 }
 0xe70   :  { %v5568_v21 = vadd.f32 %v5492_v27, %v14340_v7  ;;  %v5494_v22 = vpop.f32.mrb[39].mxu0  ;;  %v5565_v33 = vpop.f32.mrb[39].mxu1  ;;  %v5570_v19 = vadd.f32 %v5563_v45, %v14342_v38 }
 0xe71   :  { %v5569_v60 = vadd.f32 %v5494_v22, %v14341_v31 }
 0xe72   :  { %v7431_v5 = vmul.f32 -1.442695, %v5568_v21 }
 0xe73   :  { %v7432_v14 = vmul.f32 -1.442695, %v5569_v60 }
 0xe74   :  { %10514 = vpow2.f32 %v7431_v5 }
 0xe75   :  { %10516 = vpow2.f32 %v7432_v14 }
 0xe76   :  { %10518 = vtanh.f32 %v5570_v19 }
 0xe7e   :  { %v10515_v57 = vpop.eup %10514 }
 0xe7f   :  { %v10517_v54 = vpop.eup %10516  ;;  %v5581_v11 = vadd.f32 1.0, %v10515_v57 }
 0xe80   :  { %v5582_v15 = vadd.f32 1.0, %v10517_v54  ;;  %v10519_v59 = vpop.eup %10518 }
 0xe81   :  { %10520 = vrcp.f32 %v5581_v11 }
 0xe82   :  { %10522 = vrcp.f32 %v5582_v15 }
 0xe8b   :  { %v10521_v53 = vpop.eup %10520 }
 0xe8c   :  { %v10523_v27 = vpop.eup %10522  ;;  %v5592_v7 = vmul.f32 %v10521_v53, %v10519_v59 }
 0xe8d   :  { %v5591_v52 = vmul.f32 %v10523_v27, %v12597_v3 }
 0xe8f   :  { %v12807_v22 = vadd.f32 %v5592_v7, %v5591_v52  ;;  %v5662_v60 = vpop.f32.mrb[40].mxu0  ;;  %v5733_v5 = vpop.f32.mrb[40].mxu1 }
 0xe90   :  { %v5742_v14 = vrot.slane %v5662_v60, 4  ;;  %v5664_v21 = vpop.f32.mrb[41].mxu0  ;;  %v5735_v45 = vpop.f32.mrb[41].mxu1  ;;  %v5744_v3 = vrot.slane %v5733_v5, 4 }
 0xe91   :  { %v5743_v38 = vrot.slane %v5664_v21, 4  ;;  %v5745_v15 = vrot.slane %v5735_v45, 4  ;;  %v5774_v45 = vrot.slane %v12604_v6, 6 }
 0xe92   :  { %v5750_v57 = vadd.f32 %v5742_v14, %v14211_v20  ;;  %v5752_v7 = vadd.f32 %v5744_v3, %v14081_v44  ;;  %v5571_v3 = vadd.f32 %v5565_v33, %v11765_v26  ;;  %v14343_v33 = vld [vmem:[#allocation123_spill] sm:$0xff] }
 0xe93   :  { %v5751_v54 = vadd.f32 %v5743_v38, %v14079_v58  ;;  %v5753_v53 = vadd.f32 %v5745_v15, %v14080_v16 }
 0xe94   :  { %v7434_v11 = vmul.f32 -1.442695, %v5750_v57 }
 0xe95   :  { %v7435_v19 = vmul.f32 -1.442695, %v5751_v54  ;;  %v7436_v52 = vmul.f32 -1.442695, %v5753_v53 }
 0xe96   :  { %10524 = vpow2.f32 %v7434_v11 }
 0xe97   :  { %10526 = vpow2.f32 %v7435_v19 }
 0xe98   :  { %10528 = vpow2.f32 %v7436_v52 }
 0xe99   :  { %10530 = vtanh.f32 %v5752_v7 }
 0xea0   :  { %v10525_v59 = vpop.eup %10524 }
 0xea1   :  { %v10527_v27 = vpop.eup %10526  ;;  %v5763_v60 = vadd.f32 1.0, %v10525_v59  ;;  %v7433_v59 = vmul.f32 -1.442695, %v5571_v3  ;;  %v14354_v3 = vld [vmem:[#allocation134_spill] sm:$0xff] }
 0xea2   :  { %v5764_v21 = vadd.f32 1.0, %v10527_v27  ;;  %v10529_v38 = vpop.eup %10528 }
 0xea3   :  { %10532 = vrcp.f32 %v5763_v60  ;;  %v10531_v14 = vpop.eup %10530  ;;  %v5765_v19 = vadd.f32 1.0, %v10529_v38  ;;  %v14344_v60 = vld [vmem:[#allocation124_spill] sm:$0xff] }
 0xea4   :  { %10534 = vrcp.f32 %v5764_v21  ;;  %v14345_v21 = vld [vmem:[#allocation125_spill] sm:$0xff] }
 0xea5   :  { %10536 = vrcp.f32 %v5765_v19  ;;  %v14351_v19 = vld [vmem:[#allocation131_spill] sm:$0xff] }
 0xead   :  { %v10533_v57 = vpop.eup %10532 }
 0xeae   :  { %v10535_v54 = vpop.eup %10534  ;;  %v5777_v11 = vmul.f32 %v10533_v57, %v10531_v14  ;;  %v14346_v14 = vld [vmem:[#allocation126_spill] sm:$0xff]  ;;  %v14347_v57 = vld [vmem:[#allocation127_spill] sm:$0xff] }
 0xeaf   :  { %v5776_v5 = vmul.f32 %v10535_v54, %v5774_v45  ;;  %v10537_v53 = vpop.eup %10536  ;;  %v14348_v45 = vld [vmem:[#allocation128_spill] sm:$0xff]  ;;  %v14349_v54 = vld [vmem:[#allocation129_spill] sm:$0xff] }
 0xeb1   :  { %v12814_v15 = vadd.f32 %v5777_v11, %v5776_v5  ;;  %v14350_v11 = vld [vmem:[#allocation130_spill] sm:$0xff]  ;;  %v14352_v5 = vld [vmem:[#allocation132_spill] sm:$0xff] }
 0xeb3   :  { %10538 = vtanh.f32 %v12814_v15 }
 0xeb4   :  { %10540 = vpow2.f32 %v7433_v59  ;;  %v14357_v59 = vld [vmem:[#allocation137_spill] sm:$0xff] }
 0xeb5   :  { %10542 = vtanh.f32 %v12807_v22 }
 0xebd   :  { %v10539_v52 = vpop.eup %10538 }
 0xebe   :  { %v5780_v7 = vmul.f32 %v10539_v52, %v10537_v53  ;;  %v10541_v6 = vpop.eup %10540  ;;  %v14353_v53 = vld [vmem:[#allocation133_spill] sm:$0xff]  ;;  %v14355_v52 = vld [vmem:[#allocation135_spill] sm:$0xff] }
 0xebf   :  { %v5583_v38 = vadd.f32 1.0, %v10541_v6  ;;  %v10543_v6 = vpop.eup %10542 }
 0xec0   :  { %v12818_v27 = vrot.slane %v5780_v7, 4  ;;  %v14356_v7 = vld [vmem:[#allocation136_spill] sm:$0xff] }
 0xec1   :  { %10544 = vrcp.f32 %v5583_v38  ;;  %v14359_v38 = vld [vmem:[#allocation139_spill] sm:$0xff] }
 0xec2   :  { %5991 = vmatmul.mubr.f32.vlgmr.msra.gmra.mrb[42].mxu0 %v12818_v27  ;;  %6062 = vmatmul.mubr.f32.vlgmr.msra.gmra.mrb[42].mxu1 %v12818_v27 }
 0xec3   :  { %9687 = vmatpush1.bf16.msra.mxu0 %v13685_v1  ;;  %9719 = vmatpush1.bf16.msra.mxu1 %v13686_v32 }
 0xec4   :  { %9689 = vmatprep.subr.bf16.mxu0 %v13687_v56  ;;  %9721 = vmatprep.subr.bf16.mxu1 %v13688_v39 }
 0xec5   :  { %6160 = vmatprep.mubr.f32.mxu0 %v13509_v9  ;;  %6231 = vmatprep.mubr.f32.mxu1 %v13509_v9 }
 0xec7   :  { %9691 = vmatpush1.bf16.msra.mxu0 %v13689_v30  ;;  %9723 = vmatpush1.bf16.msra.mxu1 %v13690_v40 }
 0xec8   :  { %9693 = vmatprep.subr.bf16.mxu0 %v13816_v2  ;;  %9725 = vmatprep.subr.bf16.mxu1 %v13947_v46 }
 0xecb   :  { %9695 = vmatpush1.bf16.msra.mxu0 %v13948_v41  ;;  %9727 = vmatpush1.bf16.msra.mxu1 %v13949_v8 }
 0xecc   :  { %9697 = vmatprep.subr.bf16.mxu0 %v13950_v42  ;;  %9729 = vmatprep.subr.bf16.mxu1 %v13951_v47 }
 0xecf   :  { %9699 = vmatpush1.bf16.msra.mxu0 %v14212_v18  ;;  %9731 = vmatpush1.bf16.msra.mxu1 %v14343_v33 }
 0xed0   :  { %9701 = vmatprep.subr.bf16.mxu0 %v14344_v60  ;;  %9733 = vmatprep.subr.bf16.mxu1 %v14345_v21 }
 0xed3   :  { %9703 = vmatpush1.bf16.msra.mxu0 %v14346_v14  ;;  %9735 = vmatpush1.bf16.msra.mxu1 %v14347_v57 }
 0xed4   :  { %9705 = vmatprep.subr.bf16.mxu0 %v14348_v45  ;;  %9737 = vmatprep.subr.bf16.mxu1 %v14349_v54  ;;  %v10545_v45 = vpop.eup %10544  ;;  %v14358_v54 = vld [vmem:[#allocation138_spill] sm:$0xff] }
 0xed7   :  { %9707 = vmatpush1.bf16.msra.mxu0 %v14350_v11  ;;  %9739 = vmatpush1.bf16.msra.mxu1 %v14351_v19  ;;  %v12855_v11 = vmul.f32 %v10545_v45, %v10543_v6  ;;  %v14361_v19 = vld [vmem:[#allocation140_spill] sm:$0xff]  ;;  %v14367_v45 = vld [vmem:[#allocation146_spill] sm:$0xff]  ;;  %v14368_v6 = vld [vmem:[#allocation147_spill] sm:$0xff] }
 0xed8   :  { %9709 = vmatprep.subr.bf16.mxu0 %v14352_v5  ;;  %9741 = vmatprep.subr.bf16.mxu1 %v14353_v53  ;;  %v14362_v5 = vld [vmem:[#allocation141_spill] sm:$0xff]  ;;  %v14395_v53 = vld [vmem:[#allocation172_spill] sm:$0xff] }
 0xed9   :  { %14360 = vst [vmem:[#allocation110_spill] sm:$0xff] %v12855_v11 }
 0xedb   :  { %9711 = vmatpush1.bf16.msra.mxu0 %v14354_v3  ;;  %9743 = vmatpush1.bf16.msra.mxu1 %v14355_v52  ;;  %v14363_v52 = vld [vmem:[#allocation142_spill] sm:$0xff]  ;;  %v14366_v3 = vld [vmem:[#allocation145_spill] sm:$0xff] }
 0xedc   :  { %9713 = vmatprep.subr.bf16.mxu0 %v14356_v7  ;;  %9745 = vmatprep.subr.bf16.mxu1 %v14357_v59  ;;  %v14364_v7 = vld [vmem:[#allocation143_spill] sm:$0xff]  ;;  %v14365_v59 = vld [vmem:[#allocation144_spill] sm:$0xff] }
 0xedf   :  { %9715 = vmatpush1.bf16.msra.mxu0 %v14358_v54  ;;  %9747 = vmatpush1.bf16.msra.mxu1 %v14359_v38  ;;  %v14376_v38 = vld [vmem:[#allocation155_spill] sm:$0xff]  ;;  %v14377_v54 = vld [vmem:[#allocation156_spill] sm:$0xff] }
 0xee0   :  { %9749 = vmatprep.subr.bf16.mxu0 %v14361_v19  ;;  %9781 = vmatprep.subr.bf16.mxu1 %v14362_v5  ;;  %v14369_v5 = vld [vmem:[#allocation148_spill] sm:$0xff]  ;;  %v14370_v19 = vld [vmem:[#allocation149_spill] sm:$0xff] }
 0xee2   :  { %6161 = vmatmul.mubr.f32.vlgmr.msra.gmra.mrb[44].mxu0 %v12855_v11  ;;  %6232 = vmatmul.mubr.f32.vlgmr.msra.gmra.mrb[44].mxu1 %v12855_v11  ;;  %v14371_v11 = vld [vmem:[#allocation150_spill] sm:$0xff] }
 0xee3   :  { %9751 = vmatpush1.bf16.msra.mxu0 %v14363_v52  ;;  %9783 = vmatpush1.bf16.msra.mxu1 %v14364_v7  ;;  %v14372_v52 = vld [vmem:[#allocation151_spill] sm:$0xff]  ;;  %v14373_v7 = vld [vmem:[#allocation152_spill] sm:$0xff] }
 0xee4   :  { %9753 = vmatprep.subr.bf16.mxu0 %v14365_v59  ;;  %9785 = vmatprep.subr.bf16.mxu1 %v14366_v3  ;;  %v14374_v59 = vld [vmem:[#allocation153_spill] sm:$0xff]  ;;  %v14375_v3 = vld [vmem:[#allocation154_spill] sm:$0xff] }
 0xee5   :  { %6302 = vmatprep.mubr.f32.mxu0 %v13509_v9  ;;  %6373 = vmatprep.mubr.f32.mxu1 %v13509_v9 }
 0xee7   :  { %9755 = vmatpush1.bf16.msra.mxu0 %v14367_v45  ;;  %9787 = vmatpush1.bf16.msra.mxu1 %v14368_v6  ;;  %v14378_v45 = vld [vmem:[#allocation157_spill] sm:$0xff]  ;;  %v14379_v6 = vld [vmem:[#allocation158_spill] sm:$0xff] }
 0xee8   :  { %9757 = vmatprep.subr.bf16.mxu0 %v14369_v5  ;;  %9789 = vmatprep.subr.bf16.mxu1 %v14370_v19  ;;  %v14380_v5 = vld [vmem:[#allocation159_spill] sm:$0xff]  ;;  %v14381_v19 = vld [vmem:[#allocation160_spill] sm:$0xff] }
 0xeeb   :  { %9759 = vmatpush1.bf16.msra.mxu0 %v14371_v11  ;;  %9791 = vmatpush1.bf16.msra.mxu1 %v14372_v52  ;;  %v14382_v11 = vld [vmem:[#allocation161_spill] sm:$0xff]  ;;  %v14383_v52 = vld [vmem:[#allocation162_spill] sm:$0xff] }
 0xeec   :  { %9761 = vmatprep.subr.bf16.mxu0 %v14373_v7  ;;  %9793 = vmatprep.subr.bf16.mxu1 %v14374_v59  ;;  %v14384_v7 = vld [vmem:[#allocation163_spill] sm:$0xff]  ;;  %v14385_v59 = vld [vmem:[#allocation164_spill] sm:$0xff] }
 0xeef   :  { %9763 = vmatpush1.bf16.msra.mxu0 %v14375_v3  ;;  %9795 = vmatpush1.bf16.msra.mxu1 %v14376_v38  ;;  %v14386_v3 = vld [vmem:[#allocation165_spill] sm:$0xff]  ;;  %v14387_v38 = vld [vmem:[#allocation166_spill] sm:$0xff] }
 0xef0   :  { %9765 = vmatprep.subr.bf16.mxu0 %v14377_v54  ;;  %9797 = vmatprep.subr.bf16.mxu1 %v14378_v45  ;;  %v14388_v54 = vld [vmem:[#allocation167_spill] sm:$0xff]  ;;  %v14389_v45 = vld [vmem:[#allocation168_spill] sm:$0xff] }
 0xef3   :  { %9767 = vmatpush1.bf16.msra.mxu0 %v14379_v6  ;;  %9799 = vmatpush1.bf16.msra.mxu1 %v14380_v5  ;;  %v14390_v6 = vld [vmem:[#allocation169_spill] sm:$0xff]  ;;  %v14391_v5 = vld [vmem:[#allocation170_spill] sm:$0xff] }
 0xef4   :  { %9769 = vmatprep.subr.bf16.mxu0 %v14381_v19  ;;  %9801 = vmatprep.subr.bf16.mxu1 %v14382_v11  ;;  %v14392_v19 = vld [vmem:[#allocation171_spill] sm:$0xff] }
 0xef5   :  { %v14393_v11 = vld [vmem:[#allocation23_spill] sm:$0xff] }
 0xef7   :  { %9771 = vmatpush1.bf16.msra.mxu0 %v14383_v52  ;;  %9803 = vmatpush1.bf16.msra.mxu1 %v14384_v7  ;;  %v14394_v52 = vld [vmem:[#allocation24_spill] sm:$0xff] }
 0xef8   :  { %9773 = vmatprep.subr.bf16.mxu0 %v14385_v59  ;;  %9805 = vmatprep.subr.bf16.mxu1 %v14386_v3 }
 0xefb   :  { %9775 = vmatpush1.bf16.msra.mxu0 %v14387_v38  ;;  %9807 = vmatpush1.bf16.msra.mxu1 %v14388_v54 }
 0xefc   :  { %9777 = vmatprep.subr.bf16.mxu0 %v14389_v45  ;;  %9809 = vmatprep.subr.bf16.mxu1 %v14390_v6 }
 0xeff   :  { %9779 = vmatpush1.bf16.msra.mxu0 %v14391_v5  ;;  %9811 = vmatpush1.bf16.msra.mxu1 %v14392_v19 }
 0xf00   :  { %9813 = vmatprep.subr.bf16.mxu0 %v14393_v11  ;;  %9845 = vmatprep.subr.bf16.mxu1 %v14394_v52 }
 0xf95   :  { %v5992_v7 = vpop.f32.mrb[42].mxu0  ;;  %v6063_v59 = vpop.f32.mrb[42].mxu1 }
 0xf96   :  { %v6068_v3 = vadd.f32 %v5992_v7, %v14395_v53  ;;  %v5994_v57 = vpop.f32.mrb[43].mxu0  ;;  %v6065_v38 = vpop.f32.mrb[43].mxu1  ;;  %v6070_v19 = vadd.f32 %v6063_v59, %v11617_v34 }
 0xf97   :  { %v6069_v54 = vadd.f32 %v5994_v57, %v13744_v48  ;;  %v6071_v5 = vadd.f32 %v6065_v38, %v13745_v0 }
 0xf98   :  { %v7437_v14 = vmul.f32 -1.442695, %v6068_v3 }
 0xf99   :  { %v7438_v45 = vmul.f32 -1.442695, %v6069_v54  ;;  %v7439_v6 = vmul.f32 -1.442695, %v6071_v5 }
 0xf9a   :  { %10546 = vpow2.f32 %v7437_v14 }
 0xf9b   :  { %10548 = vpow2.f32 %v7438_v45 }
 0xf9c   :  { %10550 = vpow2.f32 %v7439_v6 }
 0xf9d   :  { %10552 = vtanh.f32 %v6070_v19  ;;  %v14420_v19 = vld [vmem:[#allocation49_spill] sm:$0xff] }
 0xfa4   :  { %v10547_v11 = vpop.eup %10546 }
 0xfa5   :  { %v10549_v21 = vpop.eup %10548  ;;  %v6081_v52 = vadd.f32 1.0, %v10547_v11  ;;  %v14422_v11 = vld [vmem:[#allocation50_spill] sm:$0xff] }
 0xfa6   :  { %v6082_v60 = vadd.f32 1.0, %v10549_v21  ;;  %v10551_v7 = vpop.eup %10550  ;;  %v14419_v21 = vld [vmem:[#allocation48_spill] sm:$0xff] }
 0xfa7   :  { %10554 = vrcp.f32 %v6081_v52  ;;  %v10553_v53 = vpop.eup %10552  ;;  %v6083_v14 = vadd.f32 1.0, %v10551_v7  ;;  %v14423_v52 = vld [vmem:[#allocation52_spill] sm:$0xff]  ;;  %v14424_v7 = vld [vmem:[#allocation53_spill] sm:$0xff] }
 0xfa8   :  { %10556 = vrcp.f32 %v6082_v60  ;;  %v14418_v60 = vld [vmem:[#allocation46_spill] sm:$0xff] }
 0xfa9   :  { %10558 = vrcp.f32 %v6083_v14  ;;  %v14428_v14 = vld [vmem:[#allocation57_spill] sm:$0xff] }
 0xfb1   :  { %v10555_v57 = vpop.eup %10554 }
 0xfb2   :  { %v10557_v3 = vpop.eup %10556  ;;  %v6092_v54 = vmul.f32 %v10555_v57, %v10553_v53  ;;  %v14421_v53 = vld [vmem:[#allocation51_spill] sm:$0xff]  ;;  %v14425_v57 = vld [vmem:[#allocation54_spill] sm:$0xff] }
 0xfb3   :  { %v6091_v45 = vmul.f32 %v10557_v3, %v12690_v28  ;;  %v10559_v5 = vpop.eup %10558  ;;  %v14416_v28 = vld [vmem:[#allocation45_spill] sm:$0xff]  ;;  %v14426_v3 = vld [vmem:[#allocation55_spill] sm:$0xff] }
 0xfb5   :  { %v12900_v38 = vadd.f32 %v6092_v54, %v6091_v45  ;;  %v14427_v54 = vld [vmem:[#allocation56_spill] sm:$0xff]  ;;  %v14429_v45 = vld [vmem:[#allocation58_spill] sm:$0xff] }
 0xfb7   :  { %10560 = vtanh.f32 %v12900_v38 }
 0xfc1   :  { %v10561_v59 = vpop.eup %10560 }
 0xfc2   :  { %v12903_v6 = vmul.f32 %v10561_v59, %v10559_v5  ;;  %v14430_v5 = vld [vmem:[#allocation59_spill] sm:$0xff]  ;;  %v14431_v59 = vld [vmem:[#allocation60_spill] sm:$0xff] }
 0xfc4   :  { %6303 = vmatmul.mubr.f32.vlgmr.msra.gmra.mrb[44].mxu0 %v12903_v6  ;;  %6374 = vmatmul.mubr.f32.vlgmr.msra.gmra.mrb[44].mxu1 %v12903_v6 }
 0xfc5   :  { %9815 = vmatpush1.bf16.msra.mxu0 %v11063_v49  ;;  %9847 = vmatpush1.bf16.msra.mxu1 %v11066_v50  ;;  %v14396_v49 = vld [vmem:[#allocation25_spill] sm:$0xff]  ;;  %v14397_v50 = vld [vmem:[#allocation26_spill] sm:$0xff] }
 0xfc6   :  { %9817 = vmatprep.subr.bf16.mxu0 %v11068_v51  ;;  %9849 = vmatprep.subr.bf16.mxu1 %v11071_v55  ;;  %v14398_v51 = vld [vmem:[#allocation27_spill] sm:$0xff]  ;;  %v14399_v55 = vld [vmem:[#allocation28_spill] sm:$0xff] }
 0xfc7   :  { %6472 = vmatprep.mubr.f32.mxu0 %v13509_v9  ;;  %6543 = vmatprep.mubr.f32.mxu1 %v13509_v9 }
 0xfc9   :  { %9819 = vmatpush1.bf16.msra.mxu0 %v11074_v61  ;;  %9851 = vmatpush1.bf16.msra.mxu1 %v11078_v62  ;;  %v14400_v61 = vld [vmem:[#allocation29_spill] sm:$0xff]  ;;  %v14401_v62 = vld [vmem:[#allocation30_spill] sm:$0xff] }
 0xfca   :  { %9821 = vmatprep.subr.bf16.mxu0 %v11080_v63  ;;  %9853 = vmatprep.subr.bf16.mxu1 %v11083_v4  ;;  %v14402_v63 = vld [vmem:[#allocation31_spill] sm:$0xff]  ;;  %v14403_v4 = vld [vmem:[#allocation32_spill] sm:$0xff] }
 0xfcd   :  { %9823 = vmatpush1.bf16.msra.mxu0 %v11088_v10  ;;  %9855 = vmatpush1.bf16.msra.mxu1 %v11092_v12  ;;  %v14404_v10 = vld [vmem:[#allocation33_spill] sm:$0xff]  ;;  %v14405_v12 = vld [vmem:[#allocation34_spill] sm:$0xff] }
 0xfce   :  { %9825 = vmatprep.subr.bf16.mxu0 %v11094_v13  ;;  %9857 = vmatprep.subr.bf16.mxu1 %v11097_v17  ;;  %v14406_v13 = vld [vmem:[#allocation35_spill] sm:$0xff]  ;;  %v14407_v17 = vld [vmem:[#allocation36_spill] sm:$0xff] }
 0xfd1   :  { %9827 = vmatpush1.bf16.msra.mxu0 %v11101_v23  ;;  %9859 = vmatpush1.bf16.msra.mxu1 %v11106_v24  ;;  %v14408_v23 = vld [vmem:[#allocation37_spill] sm:$0xff]  ;;  %v14409_v24 = vld [vmem:[#allocation38_spill] sm:$0xff] }
 0xfd2   :  { %9829 = vmatprep.subr.bf16.mxu0 %v11108_v25  ;;  %9861 = vmatprep.subr.bf16.mxu1 %v11111_v29  ;;  %v14410_v25 = vld [vmem:[#allocation39_spill] sm:$0xff]  ;;  %v14411_v29 = vld [vmem:[#allocation40_spill] sm:$0xff] }
 0xfd5   :  { %9831 = vmatpush1.bf16.msra.mxu0 %v11114_v35  ;;  %9863 = vmatpush1.bf16.msra.mxu1 %v11118_v36  ;;  %v14412_v35 = vld [vmem:[#allocation41_spill] sm:$0xff]  ;;  %v14413_v36 = vld [vmem:[#allocation42_spill] sm:$0xff] }
 0xfd6   :  { %9833 = vmatprep.subr.bf16.mxu0 %v11120_v37  ;;  %9865 = vmatprep.subr.bf16.mxu1 %v11123_v43  ;;  %v14414_v37 = vld [vmem:[#allocation43_spill] sm:$0xff]  ;;  %v14415_v43 = vld [vmem:[#allocation44_spill] sm:$0xff] }
 0xfd9   :  { %9835 = vmatpush1.bf16.msra.mxu0 %v14396_v49  ;;  %9867 = vmatpush1.bf16.msra.mxu1 %v14397_v50  ;;  %v14432_v49 = vld [vmem:[#allocation61_spill] sm:$0xff]  ;;  %v14433_v50 = vld [vmem:[#allocation62_spill] sm:$0xff] }
 0xfda   :  { %9837 = vmatprep.subr.bf16.mxu0 %v14398_v51  ;;  %9869 = vmatprep.subr.bf16.mxu1 %v14399_v55  ;;  %v14434_v51 = vld [vmem:[#allocation63_spill] sm:$0xff]  ;;  %v14435_v55 = vld [vmem:[#allocation64_spill] sm:$0xff] }
 0xfdd   :  { %9839 = vmatpush1.bf16.msra.mxu0 %v14400_v61  ;;  %9871 = vmatpush1.bf16.msra.mxu1 %v14401_v62  ;;  %v14436_v61 = vld [vmem:[#allocation65_spill] sm:$0xff]  ;;  %v14437_v62 = vld [vmem:[#allocation66_spill] sm:$0xff] }
 0xfde   :  { %9841 = vmatprep.subr.bf16.mxu0 %v14402_v63  ;;  %9873 = vmatprep.subr.bf16.mxu1 %v14403_v4  ;;  %v14438_v63 = vld [vmem:[#allocation67_spill] sm:$0xff]  ;;  %v14439_v4 = vld [vmem:[#allocation68_spill] sm:$0xff] }
 0xfe1   :  { %9843 = vmatpush1.bf16.msra.mxu0 %v14404_v10  ;;  %9875 = vmatpush1.bf16.msra.mxu1 %v14405_v12  ;;  %v14440_v10 = vld [vmem:[#allocation69_spill] sm:$0xff]  ;;  %v14441_v12 = vld [vmem:[#allocation70_spill] sm:$0xff] }
 0xfe2   :  { %9877 = vmatprep.subr.bf16.mxu0 %v14406_v13  ;;  %9909 = vmatprep.subr.bf16.mxu1 %v14407_v17  ;;  %v14442_v13 = vld [vmem:[#allocation71_spill] sm:$0xff]  ;;  %v14443_v17 = vld [vmem:[#allocation72_spill] sm:$0xff] }
 0xfe4   :  { %6473 = vmatmul.mubr.f32.vlgmr.msra.gmra.mrb[46].mxu0 %v12818_v27  ;;  %6544 = vmatmul.mubr.f32.vlgmr.msra.gmra.mrb[46].mxu1 %v12818_v27  ;;  %v14417_v27 = vld [vmem:[#allocation47_spill] sm:$0xff] }
 0xfe5   :  { %9879 = vmatpush1.bf16.msra.mxu0 %v14408_v23  ;;  %9911 = vmatpush1.bf16.msra.mxu1 %v14409_v24  ;;  %v14444_v23 = vld [vmem:[#allocation73_spill] sm:$0xff]  ;;  %v14445_v24 = vld [vmem:[#allocation74_spill] sm:$0xff] }
 0xfe6   :  { %9881 = vmatprep.subr.bf16.mxu0 %v14410_v25  ;;  %9913 = vmatprep.subr.bf16.mxu1 %v14411_v29  ;;  %v14446_v25 = vld [vmem:[#allocation75_spill] sm:$0xff]  ;;  %v14447_v29 = vld [vmem:[#allocation76_spill] sm:$0xff] }
 0xfe7   :  { %6657 = vmatprep.mubr.f32.mxu0 %v13509_v9  ;;  %6728 = vmatprep.mubr.f32.mxu1 %v13509_v9 }
 0xfe9   :  { %9883 = vmatpush1.bf16.msra.mxu0 %v14412_v35  ;;  %9915 = vmatpush1.bf16.msra.mxu1 %v14413_v36  ;;  %v14449_v35 = vld [vmem:[#allocation78_spill] sm:$0xff]  ;;  %v14450_v36 = vld [vmem:[#allocation79_spill] sm:$0xff] }
 0xfea   :  { %9885 = vmatprep.subr.bf16.mxu0 %v14414_v37  ;;  %9917 = vmatprep.subr.bf16.mxu1 %v14415_v43  ;;  %v14451_v37 = vld [vmem:[#allocation80_spill] sm:$0xff]  ;;  %v14452_v43 = vld [vmem:[#allocation81_spill] sm:$0xff] }
 0xfed   :  { %9887 = vmatpush1.bf16.msra.mxu0 %v14416_v28  ;;  %9919 = vmatpush1.bf16.msra.mxu1 %v14417_v27  ;;  %v14453_v28 = vld [vmem:[#allocation82_spill] sm:$0xff]  ;;  %v14454_v27 = vld [vmem:[#allocation83_spill] sm:$0xff] }
 0xfee   :  { %9889 = vmatprep.subr.bf16.mxu0 %v14418_v60  ;;  %9921 = vmatprep.subr.bf16.mxu1 %v14419_v21  ;;  %v14455_v60 = vld [vmem:[#allocation84_spill] sm:$0xff]  ;;  %v14456_v21 = vld [vmem:[#allocation85_spill] sm:$0xff] }
 0xff1   :  { %9891 = vmatpush1.bf16.msra.mxu0 %v14420_v19  ;;  %9923 = vmatpush1.bf16.msra.mxu1 %v14421_v53  ;;  %v14457_v19 = vld [vmem:[#allocation86_spill] sm:$0xff]  ;;  %v14458_v53 = vld [vmem:[#allocation87_spill] sm:$0xff] }
 0xff2   :  { %9893 = vmatprep.subr.bf16.mxu0 %v14422_v11  ;;  %9925 = vmatprep.subr.bf16.mxu1 %v14423_v52  ;;  %v14459_v11 = vld [vmem:[#allocation88_spill] sm:$0xff]  ;;  %v14460_v52 = vld [vmem:[#allocation89_spill] sm:$0xff] }
 0xff5   :  { %9895 = vmatpush1.bf16.msra.mxu0 %v14424_v7  ;;  %9927 = vmatpush1.bf16.msra.mxu1 %v14425_v57  ;;  %v14461_v7 = vld [vmem:[#allocation90_spill] sm:$0xff]  ;;  %v14462_v57 = vld [vmem:[#allocation91_spill] sm:$0xff] }
 0xff6   :  { %9897 = vmatprep.subr.bf16.mxu0 %v14426_v3  ;;  %9929 = vmatprep.subr.bf16.mxu1 %v14427_v54  ;;  %v14463_v3 = vld [vmem:[#allocation92_spill] sm:$0xff]  ;;  %v14464_v54 = vld [vmem:[#allocation93_spill] sm:$0xff] }
 0xff9   :  { %9899 = vmatpush1.bf16.msra.mxu0 %v14428_v14  ;;  %9931 = vmatpush1.bf16.msra.mxu1 %v14429_v45  ;;  %v14465_v14 = vld [vmem:[#allocation94_spill] sm:$0xff]  ;;  %v14466_v45 = vld [vmem:[#allocation95_spill] sm:$0xff] }
 0xffa   :  { %9901 = vmatprep.subr.bf16.mxu0 %v14430_v5  ;;  %9933 = vmatprep.subr.bf16.mxu1 %v14431_v59  ;;  %v14467_v5 = vld [vmem:[#allocation96_spill] sm:$0xff]  ;;  %v14468_v59 = vld [vmem:[#allocation97_spill] sm:$0xff] }
 0xffd   :  { %9903 = vmatpush1.bf16.msra.mxu0 %v14432_v49  ;;  %9935 = vmatpush1.bf16.msra.mxu1 %v14433_v50  ;;  %v14469_v49 = vld [vmem:[#allocation98_spill] sm:$0xff]  ;;  %v14470_v50 = vld [vmem:[#allocation99_spill] sm:$0xff] }
 0xffe   :  { %9905 = vmatprep.subr.bf16.mxu0 %v14434_v51  ;;  %9937 = vmatprep.subr.bf16.mxu1 %v14435_v55  ;;  %v14471_v51 = vld [vmem:[#allocation100_spill] sm:$0xff] }
0x1001   :  { %9907 = vmatpush1.bf16.msra.mxu0 %v14436_v61  ;;  %9939 = vmatpush1.bf16.msra.mxu1 %v14437_v62  ;;  %v14472_v62 = vld [vmem:[#allocation175_spill] sm:$0xff] }
0x1002   :  { %9941 = vmatprep.subr.bf16.mxu0 %v14438_v63  ;;  %9973 = vmatprep.subr.bf16.mxu1 %v14439_v4 }
0x1004   :  { %6658 = vmatmul.mubr.f32.vlgmr.msra.gmra.mrb[48].mxu0 %v12903_v6  ;;  %6729 = vmatmul.mubr.f32.vlgmr.msra.gmra.mrb[48].mxu1 %v12903_v6  ;;  %v14448_v6 = vld [vmem:[#allocation77_spill] sm:$0xff] }
0x1005   :  { %9943 = vmatpush1.bf16.msra.mxu0 %v14440_v10  ;;  %9975 = vmatpush1.bf16.msra.mxu1 %v14441_v12 }
0x1006   :  { %9945 = vmatprep.subr.bf16.mxu0 %v14442_v13  ;;  %9977 = vmatprep.subr.bf16.mxu1 %v14443_v17 }
0x1007   :  { %6802 = vmatprep.mubr.f32.mxu0 %v13509_v9  ;;  %6873 = vmatprep.mubr.f32.mxu1 %v13509_v9 }
0x1009   :  { %9947 = vmatpush1.bf16.msra.mxu0 %v14444_v23  ;;  %9979 = vmatpush1.bf16.msra.mxu1 %v14445_v24  ;;  %v14473_v23 = vld [vmem:[#allocation177_spill] sm:$0xff] }
0x100a   :  { %9949 = vmatprep.subr.bf16.mxu0 %v14446_v25  ;;  %9981 = vmatprep.subr.bf16.mxu1 %v14447_v29 }
0x100d   :  { %9951 = vmatpush1.bf16.msra.mxu0 %v14448_v6  ;;  %9983 = vmatpush1.bf16.msra.mxu1 %v14449_v35 }
0x100e   :  { %9953 = vmatprep.subr.bf16.mxu0 %v14450_v36  ;;  %9985 = vmatprep.subr.bf16.mxu1 %v14451_v37 }
0x1011   :  { %9955 = vmatpush1.bf16.msra.mxu0 %v14452_v43  ;;  %9987 = vmatpush1.bf16.msra.mxu1 %v14453_v28 }
0x1012   :  { %9957 = vmatprep.subr.bf16.mxu0 %v14454_v27  ;;  %9989 = vmatprep.subr.bf16.mxu1 %v14455_v60 }
0x1015   :  { %9959 = vmatpush1.bf16.msra.mxu0 %v14456_v21  ;;  %9991 = vmatpush1.bf16.msra.mxu1 %v14457_v19 }
0x1016   :  { %9961 = vmatprep.subr.bf16.mxu0 %v14458_v53  ;;  %9993 = vmatprep.subr.bf16.mxu1 %v14459_v11 }
0x1019   :  { %9963 = vmatpush1.bf16.msra.mxu0 %v14460_v52  ;;  %9995 = vmatpush1.bf16.msra.mxu1 %v14461_v7 }
0x101a   :  { %9965 = vmatprep.subr.bf16.mxu0 %v14462_v57  ;;  %9997 = vmatprep.subr.bf16.mxu1 %v14463_v3 }
0x101d   :  { %9967 = vmatpush1.bf16.msra.mxu0 %v14464_v54  ;;  %9999 = vmatpush1.bf16.msra.mxu1 %v14465_v14 }
0x101e   :  { %9969 = vmatprep.subr.bf16.mxu0 %v14466_v45  ;;  %10001 = vmatprep.subr.bf16.mxu1 %v14467_v5 }
0x1021   :  { %9971 = vmatpush1.bf16.msra.mxu0 %v14468_v59  ;;  %10003 = vmatpush1.bf16.msra.mxu1 %v14469_v49 }
0x1022   :  { %10005 = vmatprep.subr.bf16.mxu0 %v14470_v50  ;;  %10037 = vmatprep.subr.bf16.mxu1 %v14471_v51 }
0x1097   :  { %v6304_v55 = vpop.f32.mrb[44].mxu0  ;;  %v6375_v61 = vpop.f32.mrb[44].mxu1 }
0x1098   :  { %v6380_v63 = vadd.f32 %v6304_v55, %v14472_v62  ;;  %v6306_v4 = vpop.f32.mrb[45].mxu0  ;;  %v6377_v10 = vpop.f32.mrb[45].mxu1  ;;  %v6382_v24 = vadd.f32 %v6375_v61, %v14473_v23 }
0x1099   :  { %v6381_v12 = vadd.f32 %v6306_v4, %v14341_v31  ;;  %v6586_v4 = vrot.slane %v12814_v15, 6  ;;  %v14485_v15 = vld [vmem:[#allocation135_spill] sm:$0xff] }
0x109a   :  { %v7440_v13 = vmul.f32 -1.442695, %v6380_v63 }
0x109b   :  { %v7441_v17 = vmul.f32 -1.442695, %v6381_v12 }
0x109c   :  { %10562 = vpow2.f32 %v7440_v13 }
0x109d   :  { %10564 = vpow2.f32 %v7441_v17 }
0x109e   :  { %10566 = vtanh.f32 %v6382_v24 }
0x10a6   :  { %v10563_v25 = vpop.eup %10562 }
0x10a7   :  { %v10565_v29 = vpop.eup %10564  ;;  %v6393_v6 = vadd.f32 1.0, %v10563_v25  ;;  %v6383_v25 = vadd.f32 %v6377_v10, %v11765_v26  ;;  %v14487_v10 = vld [vmem:[#allocation137_spill] sm:$0xff] }
0x10a8   :  { %v6394_v35 = vadd.f32 1.0, %v10565_v29  ;;  %v10567_v36 = vpop.eup %10566 }
0x10a9   :  { %10568 = vrcp.f32 %v6393_v6 }
0x10aa   :  { %10570 = vrcp.f32 %v6394_v35  ;;  %v7442_v35 = vmul.f32 -1.442695, %v6383_v25  ;;  %v14519_v25 = vld [vmem:[#allocation169_spill] sm:$0xff] }
0x10b3   :  { %v10569_v37 = vpop.eup %10568 }
0x10b4   :  { %v10571_v43 = vpop.eup %10570  ;;  %v6404_v28 = vmul.f32 %v10569_v37, %v10567_v36 }
0x10b5   :  { %v6403_v27 = vmul.f32 %v10571_v43, %v12807_v22 }
0x10b7   :  { %v13017_v60 = vadd.f32 %v6404_v28, %v6403_v27  ;;  %v6474_v21 = vpop.f32.mrb[46].mxu0  ;;  %v6545_v19 = vpop.f32.mrb[46].mxu1  ;;  %v14488_v28 = vld [vmem:[#allocation138_spill] sm:$0xff]  ;;  %v14489_v27 = vld [vmem:[#allocation139_spill] sm:$0xff] }
0x10b8   :  { %v6554_v53 = vrot.slane %v6474_v21, 2  ;;  %v6476_v11 = vpop.f32.mrb[47].mxu0  ;;  %v6547_v52 = vpop.f32.mrb[47].mxu1  ;;  %v6556_v22 = vrot.slane %v6545_v19, 2  ;;  %v14490_v19 = vld [vmem:[#allocation140_spill] sm:$0xff] }
0x10b9   :  { %v6555_v7 = vrot.slane %v6476_v11, 2  ;;  %v6557_v45 = vrot.slane %v6547_v52, 2  ;;  %v14492_v11 = vld [vmem:[#allocation142_spill] sm:$0xff]  ;;  %v14493_v52 = vld [vmem:[#allocation143_spill] sm:$0xff] }
0x10ba   :  { %v6562_v57 = vadd.f32 %v6554_v53, %v14211_v20  ;;  %v6564_v49 = vadd.f32 %v6556_v22, %v14081_v44  ;;  %v14491_v53 = vld [vmem:[#allocation141_spill] sm:$0xff]  ;;  %v14501_v22 = vld [vmem:[#allocation151_spill] sm:$0xff] }
0x10bb   :  { %v6563_v3 = vadd.f32 %v6555_v7, %v14079_v58  ;;  %v6565_v5 = vadd.f32 %v6557_v45, %v14080_v16  ;;  %v14494_v7 = vld [vmem:[#allocation144_spill] sm:$0xff]  ;;  %v14499_v45 = vld [vmem:[#allocation149_spill] sm:$0xff] }
0x10bc   :  { %v7443_v54 = vmul.f32 -1.442695, %v6562_v57  ;;  %v14495_v57 = vld [vmem:[#allocation145_spill] sm:$0xff] }
0x10bd   :  { %v7444_v14 = vmul.f32 -1.442695, %v6563_v3  ;;  %v7445_v59 = vmul.f32 -1.442695, %v6565_v5  ;;  %v14496_v3 = vld [vmem:[#allocation146_spill] sm:$0xff] }
0x10be   :  { %10572 = vpow2.f32 %v7443_v54  ;;  %v14497_v54 = vld [vmem:[#allocation147_spill] sm:$0xff]  ;;  %v14500_v5 = vld [vmem:[#allocation150_spill] sm:$0xff] }
0x10bf   :  { %10574 = vpow2.f32 %v7444_v14  ;;  %v14498_v14 = vld [vmem:[#allocation148_spill] sm:$0xff] }
0x10c0   :  { %10576 = vpow2.f32 %v7445_v59  ;;  %v14502_v59 = vld [vmem:[#allocation152_spill] sm:$0xff] }
0x10c1   :  { %10578 = vtanh.f32 %v6564_v49  ;;  %v14503_v49 = vld [vmem:[#allocation153_spill] sm:$0xff] }
0x10c8   :  { %v10573_v50 = vpop.eup %10572 }
0x10c9   :  { %v10575_v51 = vpop.eup %10574  ;;  %v6575_v55 = vadd.f32 1.0, %v10573_v50  ;;  %v14504_v50 = vld [vmem:[#allocation154_spill] sm:$0xff] }
0x10ca   :  { %v6576_v61 = vadd.f32 1.0, %v10575_v51  ;;  %v10577_v58 = vpop.eup %10576  ;;  %v14505_v51 = vld [vmem:[#allocation155_spill] sm:$0xff] }
0x10cb   :  { %10580 = vrcp.f32 %v6575_v55  ;;  %v10579_v20 = vpop.eup %10578  ;;  %v6577_v16 = vadd.f32 1.0, %v10577_v58  ;;  %v14507_v55 = vld [vmem:[#allocation157_spill] sm:$0xff]  ;;  %v14509_v58 = vld [vmem:[#allocation159_spill] sm:$0xff] }
0x10cc   :  { %10582 = vrcp.f32 %v6576_v61  ;;  %v14508_v61 = vld [vmem:[#allocation158_spill] sm:$0xff] }
0x10cd   :  { %10584 = vrcp.f32 %v6577_v16  ;;  %v14515_v16 = vld [vmem:[#allocation165_spill] sm:$0xff] }
0x10d5   :  { %v10581_v63 = vpop.eup %10580 }
0x10d6   :  { %v10583_v12 = vpop.eup %10582  ;;  %v6589_v13 = vmul.f32 %v10581_v63, %v10579_v20  ;;  %v14510_v20 = vld [vmem:[#allocation160_spill] sm:$0xff]  ;;  %v14511_v63 = vld [vmem:[#allocation161_spill] sm:$0xff] }
0x10d7   :  { %v6588_v17 = vmul.f32 %v10583_v12, %v6586_v4  ;;  %v10585_v44 = vpop.eup %10584  ;;  %v14512_v4 = vld [vmem:[#allocation162_spill] sm:$0xff]  ;;  %v14513_v12 = vld [vmem:[#allocation163_spill] sm:$0xff] }
0x10d9   :  { %v6590_v24 = vadd.f32 %v6589_v13, %v6588_v17  ;;  %v14514_v13 = vld [vmem:[#allocation164_spill] sm:$0xff]  ;;  %v14516_v17 = vld [vmem:[#allocation166_spill] sm:$0xff] }
0x10db   :  { %10586 = vtanh.f32 %v6590_v24  ;;  %v14517_v24 = vld [vmem:[#allocation167_spill] sm:$0xff] }
0x10dc   :  { %10588 = vpow2.f32 %v7442_v35 }
0x10dd   :  { %10590 = vtanh.f32 %v13017_v60 }
0x10e5   :  { %v10587_v29 = vpop.eup %10586 }
0x10e6   :  { %v6592_v6 = vmul.f32 %v10587_v29, %v10585_v44  ;;  %v14518_v44 = vld [vmem:[#allocation168_spill] sm:$0xff]  ;;  %v14520_v29 = vld [vmem:[#allocation170_spill] sm:$0xff] }
0x10e8   :  { %v6736_v36 = vrot.slane %v6592_v6, 6  ;;  %v14521_v6 = vld [vmem:[#allocation171_spill] sm:$0xff] }
0x10ea   :  { %6803 = vmatmul.mubr.f32.vlgmr.msra.gmra.mrb[48].mxu0 %v6736_v36  ;;  %6874 = vmatmul.mubr.f32.vlgmr.msra.gmra.mrb[48].mxu1 %v6736_v36 }
0x10eb   :  { %10007 = vmatpush1.bf16.msra.mxu0 %v13685_v1  ;;  %10039 = vmatpush1.bf16.msra.mxu1 %v13686_v32  ;;  %v10589_v1 = vpop.eup %10588  ;;  %v14474_v32 = vld [vmem:[#allocation124_spill] sm:$0xff] }
0x10ec   :  { %10009 = vmatprep.subr.bf16.mxu0 %v13687_v56  ;;  %10041 = vmatprep.subr.bf16.mxu1 %v13688_v39  ;;  %v14475_v56 = vld [vmem:[#allocation125_spill] sm:$0xff]  ;;  %v6395_v39 = vadd.f32 1.0, %v10589_v1  ;;  %v10591_v37 = vpop.eup %10590  ;;  %v14522_v1 = vld [vmem:[#allocation172_spill] sm:$0xff] }
0x10ed   :  { %6972 = vmatprep.mubr.f32.mxu0 %v13509_v9  ;;  %7043 = vmatprep.mubr.f32.mxu1 %v13509_v9 }
0x10ee   :  { %10592 = vrcp.f32 %v6395_v39 }
0x10ef   :  { %10011 = vmatpush1.bf16.msra.mxu0 %v13689_v30  ;;  %10043 = vmatpush1.bf16.msra.mxu1 %v13690_v40  ;;  %v14476_v30 = vld [vmem:[#allocation126_spill] sm:$0xff]  ;;  %v14477_v40 = vld [vmem:[#allocation127_spill] sm:$0xff] }
0x10f0   :  { %10013 = vmatprep.subr.bf16.mxu0 %v13816_v2  ;;  %10045 = vmatprep.subr.bf16.mxu1 %v13947_v46  ;;  %v14478_v2 = vld [vmem:[#allocation128_spill] sm:$0xff]  ;;  %v14479_v46 = vld [vmem:[#allocation129_spill] sm:$0xff] }
0x10f3   :  { %10015 = vmatpush1.bf16.msra.mxu0 %v13948_v41  ;;  %10047 = vmatpush1.bf16.msra.mxu1 %v13949_v8  ;;  %v14480_v41 = vld [vmem:[#allocation130_spill] sm:$0xff]  ;;  %v14481_v8 = vld [vmem:[#allocation131_spill] sm:$0xff] }
0x10f4   :  { %10017 = vmatprep.subr.bf16.mxu0 %v13950_v42  ;;  %10049 = vmatprep.subr.bf16.mxu1 %v13951_v47  ;;  %v14482_v42 = vld [vmem:[#allocation132_spill] sm:$0xff]  ;;  %v14483_v47 = vld [vmem:[#allocation133_spill] sm:$0xff] }
0x10f7   :  { %10019 = vmatpush1.bf16.msra.mxu0 %v14212_v18  ;;  %10051 = vmatpush1.bf16.msra.mxu1 %v14343_v33  ;;  %v14484_v18 = vld [vmem:[#allocation134_spill] sm:$0xff]  ;;  %v14486_v33 = vld [vmem:[#allocation136_spill] sm:$0xff] }
0x10f8   :  { %10021 = vmatprep.subr.bf16.mxu0 %v14474_v32  ;;  %10053 = vmatprep.subr.bf16.mxu1 %v14475_v56  ;;  %v10593_v43 = vpop.eup %10592 }
0x10f9   :  { %v13058_v21 = vmul.f32 %v10593_v43, %v10591_v37 }
0x10fb   :  { %10023 = vmatpush1.bf16.msra.mxu0 %v14476_v30  ;;  %10055 = vmatpush1.bf16.msra.mxu1 %v14477_v40 }
0x10fc   :  { %10025 = vmatprep.subr.bf16.mxu0 %v14478_v2  ;;  %10057 = vmatprep.subr.bf16.mxu1 %v14479_v46 }
0x10ff   :  { %10027 = vmatpush1.bf16.msra.mxu0 %v14480_v41  ;;  %10059 = vmatpush1.bf16.msra.mxu1 %v14481_v8 }
0x1100   :  { %10029 = vmatprep.subr.bf16.mxu0 %v14482_v42  ;;  %10061 = vmatprep.subr.bf16.mxu1 %v14483_v47 }
0x1103   :  { %10031 = vmatpush1.bf16.msra.mxu0 %v14484_v18  ;;  %10063 = vmatpush1.bf16.msra.mxu1 %v14485_v15 }
0x1104   :  { %10033 = vmatprep.subr.bf16.mxu0 %v14486_v33  ;;  %10065 = vmatprep.subr.bf16.mxu1 %v14487_v10 }
0x1107   :  { %10035 = vmatpush1.bf16.msra.mxu0 %v14488_v28  ;;  %10067 = vmatpush1.bf16.msra.mxu1 %v14489_v27 }
0x1108   :  { %10069 = vmatprep.subr.bf16.mxu0 %v14490_v19  ;;  %10101 = vmatprep.subr.bf16.mxu1 %v14491_v53  ;;  %v14524_v53 = vld [vmem:[#allocation107_spill] sm:$0xff] }
0x110a   :  { %6973 = vmatmul.mubr.f32.vlgmr.msra.gmra.mrb[50].mxu0 %v13058_v21  ;;  %7044 = vmatmul.mubr.f32.vlgmr.msra.gmra.mrb[50].mxu1 %v13058_v21 }
0x110b   :  { %10071 = vmatpush1.bf16.msra.mxu0 %v14492_v11  ;;  %10103 = vmatpush1.bf16.msra.mxu1 %v14493_v52  ;;  %v7224_v11 = vrot.slane %v14524_v53, 4  ;;  %v7233_v53 = vrot.slane %v13058_v21, 4 }
0x110c   :  { %10073 = vmatprep.subr.bf16.mxu0 %v14494_v7  ;;  %10105 = vmatprep.subr.bf16.mxu1 %v14495_v57  ;;  %v14525_v7 = vld [vmem:[#allocation108_spill] sm:$0xff] }
0x110d   :  { %7114 = vmatprep.mubr.f32.mxu0 %v13509_v9  ;;  %7185 = vmatprep.mubr.f32.mxu1 %v13509_v9  ;;  %v14506_v9 = vld [vmem:[#allocation156_spill] sm:$0xff]  ;;  %v7227_v57 = vrot.slane %v14525_v7, 2  ;;  %v14528_v7 = vld [vmem:[#allocation109_spill] sm:$0xff] }
0x110f   :  { %10075 = vmatpush1.bf16.msra.mxu0 %v14496_v3  ;;  %10107 = vmatpush1.bf16.msra.mxu1 %v14497_v54 }
0x1110   :  { %10077 = vmatprep.subr.bf16.mxu0 %v14498_v14  ;;  %10109 = vmatprep.subr.bf16.mxu1 %v14499_v45  ;;  %v14526_v14 = vld [vmem:[#allocation105_spill] sm:$0xff] }
0x1113   :  { %10079 = vmatpush1.bf16.msra.mxu0 %v14500_v5  ;;  %10111 = vmatpush1.bf16.msra.mxu1 %v14501_v22  ;;  %v7247_v22 = vld [vmem:[#allocation14] sm:$0xff] }
0x1114   :  { %10081 = vmatprep.subr.bf16.mxu0 %v14502_v59  ;;  %10113 = vmatprep.subr.bf16.mxu1 %v14503_v49  ;;  %v7248_v59 = vld [vmem:[#allocation14 + $0x8] sm:$0xff] }
0x1115   :  { %v10132_v49 = vpack.c.bf16 %v7248_v59, %v7247_v22 }
0x1117   :  { %10083 = vmatpush1.bf16.msra.mxu0 %v14504_v50  ;;  %10115 = vmatpush1.bf16.msra.mxu1 %v14505_v51  ;;  %v7249_v50 = vld [vmem:[#allocation14 + $0x10] sm:$0xff]  ;;  %v7250_v51 = vld [vmem:[#allocation14 + $0x18] sm:$0xff] }
0x1118   :  { %10085 = vmatprep.subr.bf16.mxu0 %v14506_v9  ;;  %10117 = vmatprep.subr.bf16.mxu1 %v14507_v55  ;;  %v10136_v9 = vpack.c.bf16 %v7250_v51, %v7249_v50  ;;  %v7251_v55 = vld [vmem:[#allocation14 + $0x20] sm:$0xff] }
0x111b   :  { %10087 = vmatpush1.bf16.msra.mxu0 %v14508_v61  ;;  %10119 = vmatpush1.bf16.msra.mxu1 %v14509_v58  ;;  %v7252_v61 = vld [vmem:[#allocation14 + $0x28] sm:$0xff] }
0x111c   :  { %10089 = vmatprep.subr.bf16.mxu0 %v14510_v20  ;;  %10121 = vmatprep.subr.bf16.mxu1 %v14511_v63  ;;  %v10140_v58 = vpack.c.bf16 %v7252_v61, %v7251_v55  ;;  %v7253_v20 = vld [vmem:[#allocation14 + $0x30] sm:$0xff]  ;;  %v7254_v63 = vld [vmem:[#allocation14 + $0x38] sm:$0xff] }
0x111f   :  { %10091 = vmatpush1.bf16.msra.mxu0 %v14512_v4  ;;  %10123 = vmatpush1.bf16.msra.mxu1 %v14513_v12  ;;  %v10144_v4 = vpack.c.bf16 %v7254_v63, %v7253_v20  ;;  %v7255_v12 = vld [vmem:[#allocation14 + $0x40] sm:$0xff] }
0x1120   :  { %10093 = vmatprep.subr.bf16.mxu0 %v14514_v13  ;;  %10125 = vmatprep.subr.bf16.mxu1 %v14515_v16  ;;  %v7256_v13 = vld [vmem:[#allocation14 + $0x48] sm:$0xff] }
0x1121   :  { %v10148_v16 = vpack.c.bf16 %v7256_v13, %v7255_v12 }
0x1123   :  { %10095 = vmatpush1.bf16.msra.mxu0 %v14516_v17  ;;  %10127 = vmatpush1.bf16.msra.mxu1 %v14517_v24  ;;  %v7257_v17 = vld [vmem:[#allocation14 + $0x50] sm:$0xff]  ;;  %v7258_v24 = vld [vmem:[#allocation14 + $0x58] sm:$0xff] }
0x1124   :  { %10097 = vmatprep.subr.bf16.mxu0 %v14518_v44  ;;  %10129 = vmatprep.subr.bf16.mxu1 %v14519_v25  ;;  %v7259_v44 = vld [vmem:[#allocation14 + $0x60] sm:$0xff]  ;;  %v10152_v25 = vpack.c.bf16 %v7258_v24, %v7257_v17 }
0x1127   :  { %10099 = vmatpush1.bf16.msra.mxu0 %v14520_v29  ;;  %10131 = vmatpush1.bf16.msra.mxu1 %v14521_v6  ;;  %v7260_v29 = vld [vmem:[#allocation14 + $0x68] sm:$0xff] }
0x1128   :  { %10133 = vmatprep.subr.bf16.mxu0 %v10132_v49  ;;  %v10156_v6 = vpack.c.bf16 %v7260_v29, %v7259_v44 }
0x11bd   :  { %v6804_v35 = vpop.f32.mrb[48].mxu0  ;;  %v6875_v36 = vpop.f32.mrb[48].mxu1 }
0x11be   :  { %v6880_v32 = vadd.f32 %v6804_v35, %v14522_v1  ;;  %v6806_v56 = vpop.f32.mrb[49].mxu0  ;;  %v6877_v39 = vpop.f32.mrb[49].mxu1  ;;  %v6882_v8 = vadd.f32 %v6875_v36, %v11617_v34  ;;  %v14523_v34 = vld [vmem:[#allocation106_spill] sm:$0xff]  ;;  %v7261_v35 = vld [vmem:[#allocation14 + $0x70] sm:$0xff]  ;;  %v7262_v36 = vld [vmem:[#allocation14 + $0x78] sm:$0xff] }
0x11bf   :  { %v6881_v30 = vadd.f32 %v6806_v56, %v13744_v48  ;;  %v6883_v46 = vadd.f32 %v6877_v39, %v13745_v0  ;;  %v7221_v19 = vrot.slane %v14523_v34, 6  ;;  %v10160_v1 = vpack.c.bf16 %v7262_v36, %v7261_v35 }
0x11c0   :  { %v7446_v40 = vmul.f32 -1.442695, %v6880_v32 }
0x11c1   :  { %v7447_v2 = vmul.f32 -1.442695, %v6881_v30  ;;  %v7448_v41 = vmul.f32 -1.442695, %v6883_v46  ;;  %v7239_v45 = vsel %vm7238_vm0, %v14526_v14, %v7221_v19 }
0x11c2   :  { %10594 = vpow2.f32 %v7446_v40 }
0x11c3   :  { %10596 = vpow2.f32 %v7447_v2 }
0x11c4   :  { %10598 = vpow2.f32 %v7448_v41 }
0x11c5   :  { %10600 = vtanh.f32 %v6882_v8 }
0x11cc   :  { %v10595_v42 = vpop.eup %10594 }
0x11cd   :  { %v10597_v47 = vpop.eup %10596  ;;  %v6893_v18 = vadd.f32 1.0, %v10595_v42 }
0x11ce   :  { %v6894_v15 = vadd.f32 1.0, %v10597_v47  ;;  %v10599_v33 = vpop.eup %10598 }
0x11cf   :  { %10602 = vrcp.f32 %v6893_v18  ;;  %v10601_v10 = vpop.eup %10600  ;;  %v6895_v28 = vadd.f32 1.0, %v10599_v33 }
0x11d0   :  { %10604 = vrcp.f32 %v6894_v15 }
0x11d1   :  { %10606 = vrcp.f32 %v6895_v28 }
0x11d9   :  { %v10603_v48 = vpop.eup %10602 }
0x11da   :  { %v10605_v37 = vpop.eup %10604  ;;  %v6904_v43 = vmul.f32 %v10603_v48, %v10601_v10 }
0x11db   :  { %v6903_v27 = vmul.f32 %v10605_v37, %v12900_v38  ;;  %v10607_v52 = vpop.eup %10606  ;;  %v7241_v38 = vsel %vm7240_vm1, %v7239_v45, %v7224_v11 }
0x11dc   :  { %v7243_v5 = vsel %vm7242_vm2, %v7241_v38, %v7227_v57 }
0x11dd   :  { %v6905_v0 = vadd.f32 %v6904_v43, %v6903_v27 }
0x11df   :  { %10608 = vtanh.f32 %v6905_v0  ;;  %v14527_v0 = vld [vmem:[#allocation110_spill] sm:$0xff] }
0x11e0   :  { %v7230_v34 = vrot.slane %v14527_v0, 6 }
0x11e2   :  { %v7244_v57 = vsel %vm7238_vm0, %v14528_v7, %v7230_v34 }
0x11e9   :  { %v10609_v3 = vpop.eup %10608 }
0x11ea   :  { %v6907_v54 = vmul.f32 %v10609_v3, %v10607_v52  ;;  %v7245_v3 = vsel %vm7240_vm1, %v7244_v57, %v7233_v53 }
0x11ec   :  { %7115 = vmatmul.mubr.f32.vlgmr.msra.gmra.mrb[50].mxu0 %v6907_v54  ;;  %7186 = vmatmul.mubr.f32.vlgmr.msra.gmra.mrb[50].mxu1 %v6907_v54 }
0x11ed   :  { %7505 = vmatprep.mubr.f32.mxu0 %v7243_v5  ;;  %10135 = vmatpush3.bf16.msra.mxu0 %v10132_v49 }
0x11ee   :  { %10137 = vmatprep.subr.bf16.mxu0 %v10136_v9 }
0x11f1   :  { %10139 = vmatpush3.bf16.msra.mxu0 %v10136_v9 }
0x11f2   :  { %10141 = vmatprep.subr.bf16.mxu0 %v10140_v58 }
0x11f5   :  { %10143 = vmatpush3.bf16.msra.mxu0 %v10140_v58 }
0x11f6   :  { %10145 = vmatprep.subr.bf16.mxu0 %v10144_v4 }
0x11f9   :  { %10147 = vmatpush3.bf16.msra.mxu0 %v10144_v4 }
0x11fa   :  { %10149 = vmatprep.subr.bf16.mxu0 %v10148_v16 }
0x11fd   :  { %10151 = vmatpush3.bf16.msra.mxu0 %v10148_v16 }
0x11fe   :  { %10153 = vmatprep.subr.bf16.mxu0 %v10152_v25 }
0x1201   :  { %10155 = vmatpush3.bf16.msra.mxu0 %v10152_v25 }
0x1202   :  { %10157 = vmatprep.subr.bf16.mxu0 %v10156_v6 }
0x1205   :  { %10159 = vmatpush3.bf16.msra.mxu0 %v10156_v6 }
0x1206   :  { %10161 = vmatprep.subr.bf16.mxu0 %v10160_v1 }
0x1209   :  { %10163 = vmatpush3.bf16.msra.mxu0 %v10160_v1 }
0x12bf   :  { %v7116_v32 = vpop.f32.mrb[50].mxu0  ;;  %v7187_v56 = vpop.f32.mrb[50].mxu1 }
0x12c0   :  { %v7192_v39 = vadd.f32 %v7116_v32, %v14472_v62  ;;  %v7118_v30 = vpop.f32.mrb[51].mxu0  ;;  %v7189_v40 = vpop.f32.mrb[51].mxu1  ;;  %v7194_v47 = vadd.f32 %v7187_v56, %v14473_v23 }
0x12c1   :  { %v7193_v2 = vadd.f32 %v7118_v30, %v14341_v31  ;;  %v7195_v8 = vadd.f32 %v7189_v40, %v11765_v26 }
0x12c2   :  { %v7449_v46 = vmul.f32 -1.442695, %v7192_v39 }
0x12c3   :  { %v7450_v41 = vmul.f32 -1.442695, %v7193_v2  ;;  %v7451_v42 = vmul.f32 -1.442695, %v7195_v8 }
0x12c4   :  { %10610 = vpow2.f32 %v7449_v46 }
0x12c5   :  { %10612 = vpow2.f32 %v7450_v41 }
0x12c6   :  { %10614 = vpow2.f32 %v7451_v42 }
0x12c7   :  { %10616 = vtanh.f32 %v7194_v47 }
0x12ce   :  { %v10611_v18 = vpop.eup %10610 }
0x12cf   :  { %v10613_v15 = vpop.eup %10612  ;;  %v7205_v33 = vadd.f32 1.0, %v10611_v18 }
0x12d0   :  { %v7206_v10 = vadd.f32 1.0, %v10613_v15  ;;  %v10615_v62 = vpop.eup %10614 }
0x12d1   :  { %10618 = vrcp.f32 %v7205_v33  ;;  %v10617_v48 = vpop.eup %10616  ;;  %v7207_v28 = vadd.f32 1.0, %v10615_v62 }
0x12d2   :  { %10620 = vrcp.f32 %v7206_v10 }
0x12d3   :  { %10622 = vrcp.f32 %v7207_v28 }
0x12db   :  { %v10619_v31 = vpop.eup %10618 }
0x12dc   :  { %v10621_v37 = vpop.eup %10620  ;;  %v7216_v43 = vmul.f32 %v10619_v31, %v10617_v48 }
0x12dd   :  { %v7215_v27 = vmul.f32 %v10621_v37, %v13017_v60  ;;  %v10623_v23 = vpop.eup %10622  ;;  %v7452_v60 = vld [vmem:[%s13148_s11] ss:$0 sm:$0xff]  ;;  %s10810_s11 = scalar_lea.vmem %s7365_s26, 256 }
0x12de   :  { %p10811_p8 = scmp.ne.s32.totalorder %s7365_s26, %s10810_s11  ;;  %p10816_p10 = scmp.lt.s32.totalorder %s10810_s11, %s10810_s11 }
0x12df   :  { %v7217_v26 = vadd.f32 %v7216_v43, %v7215_v27 }
0x12e0   :  { %p10817_p11 = por %p10816_p10, %p10815_p9 }
0x12e1   :  { %10624 = vtanh.f32 %v7217_v26 }
0x12e2   :  { %p10818_p12 = pnand %p10817_p11, %p10811_p8 }
0x12eb   :  { %v10625_v19 = vpop.eup %10624 }
0x12ec   :  { %v7219_v11 = vmul.f32 %v10625_v19, %v10623_v23 }
0x12ee   :  { %v7236_v52 = vrot.slane %v7219_v11, 2 }
0x12f0   :  { %v7246_v54 = vsel %vm7242_vm2, %v7245_v3, %v7236_v52 }
0x12f1   :  { %7506 = vmatmul.mubr.f32.vlgmr.msra.gmra.mrb[52].mxu0 %v7246_v54 }
0x13c4   :  { %v7507_v14 = vpop.f32.mrb[52].mxu0 }
0x13c5   :  { %v7342_v45 = vadd.f32 %v7507_v14, %v7452_v60  ;;  %v7336_v38 = vpop.f32.mrb[53].mxu0 }
0x13c6   :  { %v7337_v5 = vadd.f32 %v7452_v60, %v7336_v38 }
0x13c7   :  { %v7454_v22 = vmul.f32 -1.442695, %v7342_v45 }
0x13c8   :  { %v7453_v21 = vmul.f32 -1.442695, %v7337_v5 }
0x13c9   :  { %10626 = vpow2.f32 %v7454_v22 }
0x13ca   :  { %10628 = vpow2.f32 %v7453_v21 }
0x13d3   :  { %v10627_v59 = vpop.eup %10626 }
0x13d4   :  { %v10629_v49 = vpop.eup %10628  ;;  %v7352_v50 = vadd.f32 1.0, %v10627_v59 }
0x13d5   :  { %v7351_v51 = vadd.f32 1.0, %v10629_v49 }
0x13d6   :  { %10630 = vrcp.f32 %v7352_v50 }
0x13d7   :  { %10632 = vrcp.f32 %v7351_v51 }
0x13e0   :  { %v10631_v9 = vpop.eup %10630 }
0x13e1   :  { %v10633_v55 = vpop.eup %10632  ;;  %7358 = vst [vmem:[#allocation16 + $0x8] sm:$0xff] %v10631_v9 }
0x13e2   :  { %7357 = vst [vmem:[#allocation16] sm:$0xff] %v10633_v55 }
0x13e3   :  { %10821 = shalt.err (!%p10818_p12)
}
0x13e4   :  { %s10822_s16 = scalar_lea.hbm %s13149_s12, 256 }
0x13e5   :  { %p10823_p13 = scmp.ne.s32.totalorder %s13149_s12, %s10822_s16  ;;  %p10826_p0 = scmp.lt.u32.totalorder %s10822_s16, %s13149_s12 }
0x13e7   :  { %p10828_p1 = pnand %p10826_p0, %p10823_p13 }
0x13e9   :  { %10831 = shalt.err (!%p10828_p1)
}
0x13ea   :  { %7370 = dma.vmem_to_hbm [thread:$0]  %s7365_s26, 256, %s13149_s12, [#allocation4], %s10850_s7, %s10850_s7, %s10851_s20  }
0x13eb   :  { %10842 = dma.done.wait [#allocation4], 256  }
0x13ec   :  { %10843 = vsyncadd [#allocation4], 4294967040 }
0x13ed   :  { %7374 = vsyncpa [#allocation3], 1 }
0x13ee   :  { %7375 = vsyncpa [#allocation6], 1 }
0x13ef   :  { %7376 = vsyncpa [#allocation9], 1 }
0x13f0   :  { %7377 = vsyncpa [#allocation12], 1 }
0x13f1   :  { %7378 = vsyncpa [#allocation15], 1 }
0x13f2   :  { %7379 = vsyncpa [#allocation4], 1 }

</bundles_post_ra>
